<compile_context>
chip_gen: v7x
topology: tpu7x:2x2x1
jax: 0.10.0
libtpu: 0.0.40
codegen_flags: <defaults>
</compile_context>

<pallas_src>
import jax
import jax.numpy as jnp
from jax.experimental import pallas as pl
from jax.experimental.pallas import tpu as pltpu


# ---------------------------------------------------------------------------
# Fused kernel: conv1+relu -> conv2+relu -> conv3+relu -> maxpool2x2
# ---------------------------------------------------------------------------
def _make_fused_kernel(Bt, H, W, Cpad):
    Hh, Wh = H // 2, W // 2

    def kernel(x_ref, w_ref, b_ref, o_ref, pad_ref, patch_ref):
        # x_ref:     (Bt, H, W, Cpad)      f32 channel-padded NHWC input tile
        # w_ref:     (3, 9*Cpad, Cpad)     bf16 folded HWIO weights (all convs)
        # b_ref:     (3, 1, Cpad)          f32 biases (channel-padded)
        # o_ref:     (Bt, Hh, Wh, Cpad)    f32 pooled output (lane-dense)
        # pad_ref:   (Bt, H+2, W+2, Cpad)  f32 halo scratch
        # patch_ref: (Bt, H, W, 9*Cpad)    bf16 im2col scratch

        # Zero the halo buffer ONCE per image; the interior (all Cpad channels)
        # is fully rewritten by every conv, and the 1-wide border / padded
        # channel lanes stay zero, so no re-zeroing between layers.
        pad_ref[...] = jnp.zeros_like(pad_ref)
        pad_ref[:, 1:H + 1, 1:W + 1, :] = x_ref[...]

        act = None
        for layer in range(3):
            # im2col: the 9 shifted windows sit side-by-side on the lane axis
            # at 128-aligned offsets (Cpad % 128 == 0) -> full-lane stores.
            # Windows are sliced directly off the ref (no value-slicing).
            for kh in range(3):
                for kw in range(3):
                    t = kh * 3 + kw
                    patch_ref[:, :, :, t * Cpad:(t + 1) * Cpad] = (
                        pad_ref[:, kh:kh + H, kw:kw + W, :].astype(jnp.bfloat16))

            patch = patch_ref[...].reshape(Bt * H * W, 9 * Cpad)   # leading-dim merge
            # Single MXU matmul per conv: bf16 operands, f32 accumulation.
            y = jnp.dot(patch, w_ref[layer],
                        preferred_element_type=jnp.float32)
            y = jnp.maximum(y + b_ref[layer], 0.0)                 # bias + ReLU (f32 VPU)

            if layer < 2:
                # Padded output channels are relu(0 + 0) = 0, so the halo
                # buffer stays valid for the next conv without re-zeroing.
                pad_ref[:, 1:H + 1, 1:W + 1, :] = y.reshape(Bt, H, W, Cpad)
            else:
                act = y.reshape(Bt, H, W, Cpad)                    # pool from the accumulator

        # Fused 2x2/2 max-pool: contiguous pair reductions, no stride-2 slices.
        rows = act.reshape(Bt, Hh, 2, W, Cpad)
        rows = jnp.maximum(rows[:, :, 0], rows[:, :, 1])           # (Bt, Hh, W, Cpad)
        cols = rows.reshape(Bt, Hh, Wh, 2, Cpad)
        o_ref[...] = jnp.max(cols, axis=3).astype(o_ref.dtype)     # (Bt, Hh, Wh, Cpad)

    return kernel


# ---------------------------------------------------------------------------
# Wrapper
# ---------------------------------------------------------------------------
def vgg16_block2_forward(x_nchw, params, *, block_batch=None):
    """params: list of 3 (w, b) pairs, w in HWIO layout (3, 3, cin, cout)."""
    (w1, b1), (w2, b2), (w3, b3) = params
    N, Cin, H, W = x_nchw.shape
    Cout = w1.shape[-1]
    assert H % 2 == 0 and W % 2 == 0, "kernel assumes even H/W (pool 2x2/2)"

    Cpad = ((max(Cin, Cout) + 127) // 128) * 128    # lane-dense channel width
    Hh, Wh = H // 2, W // 2

    # Images per grid step: amortize per-step overhead, but keep >= 2 grid
    # steps so both v7x TensorCores receive work.
    if block_batch is None:
        Bt = 1
        for cand in (8, 4, 2):
            if N % cand == 0 and N // cand >= 2:
                Bt = cand
                break
    else:
        Bt = block_batch
    assert N % Bt == 0

    # NCHW -> channel-padded NHWC (one small fused HBM copy; a full NHWC
    # pipeline would feed the kernel directly and skip this layout op).
    x_nhwc = jnp.transpose(x_nchw, (0, 2, 3, 1)).astype(jnp.float32)
    x_nhwc = jnp.pad(x_nhwc, ((0, 0), (0, 0), (0, 0), (0, Cpad - Cin)))

    def fold(w):
        # HWIO (3,3,cin,cout) -> zero-pad both channel dims to Cpad
        # -> (9*Cpad, Cpad); row order (kh, kw, cin) matches the im2col layout.
        cin, cout = w.shape[2], w.shape[3]
        wp = jnp.pad(w, ((0, 0), (0, 0), (0, Cpad - cin), (0, Cpad - cout)))
        return wp.reshape(9 * Cpad, Cpad)

    w_all = jnp.stack([fold(w1), fold(w2), fold(w3)]).astype(jnp.bfloat16)
    b_all = jnp.stack([
        jnp.pad(b.astype(jnp.float32), (0, Cpad - b.shape[0])).reshape(1, Cpad)
        for b in (b1, b2, b3)])                                     # (3, 1, Cpad) f32

    kernel = _make_fused_kernel(Bt, H, W, Cpad)

    out = pl.pallas_call(
        kernel,
        out_shape=jax.ShapeDtypeStruct((N, Hh, Wh, Cpad), jnp.float32),
        grid=(N // Bt,),
        in_specs=[
            pl.BlockSpec((Bt, H, W, Cpad), lambda n: (n, 0, 0, 0)),
            pl.BlockSpec((3, 9 * Cpad, Cpad), lambda n: (0, 0, 0)),
            pl.BlockSpec((3, 1, Cpad), lambda n: (0, 0, 0)),
        ],
        out_specs=pl.BlockSpec((Bt, Hh, Wh, Cpad), lambda n: (n, 0, 0, 0)),
        scratch_shapes=[
            pltpu.VMEM((Bt, H + 2, W + 2, Cpad), jnp.float32),      # halo scratch
            pltpu.VMEM((Bt, H, W, 9 * Cpad), jnp.bfloat16),         # im2col scratch
        ],
        compiler_params=pltpu.CompilerParams(
            dimension_semantics=("parallel",),
            vmem_limit_bytes=48 * 1024 * 1024),
    )(x_nhwc, w_all, b_all)

    # Drop padded channels, back to NCHW (tiny wrapper-side layout op).
    return jnp.transpose(out[:, :, :, :Cout], (0, 3, 1, 2))


# ---------------------------------------------------------------------------
# Reference (plain JAX) for the correctness check
# ---------------------------------------------------------------------------
def _reference_forward(x_nchw, params):
    x = x_nchw
    for (w, b) in params:
        w_oihw = jnp.transpose(w, (3, 2, 0, 1))    # HWIO -> OIHW
        x = jax.lax.conv_general_dilated(
            x, w_oihw, window_strides=(1, 1), padding=((1, 1), (1, 1)),
            dimension_numbers=("NCHW", "OIHW", "NCHW"))
        x = x + b[None, :, None, None]
        x = jnp.maximum(x, 0.0)
    x = jax.lax.reduce_window(x, -jnp.inf, jax.lax.max,
                              (1, 1, 2, 2), (1, 1, 2, 2), "VALID")
    return x


# ---------------------------------------------------------------------------
if __name__ == "__main__":
    # Small shapes consistent with the module: in_channels=4, out_conv=8.
    N, Cin, H, W = 2, 4, 16, 16
    Cout = 8

    key = jax.random.PRNGKey(0)
    keys = jax.random.split(key, 7)

    x = jax.random.normal(keys[0], (N, Cin, H, W), dtype=jnp.float32)

    def make_conv(kw, kb, cin, cout):
        w = jax.random.normal(kw, (3, 3, cin, cout), jnp.float32) * (1.0 / (3 * 3 * cin)) ** 0.5
        b = jax.random.normal(kb, (cout,), jnp.float32) * 0.01
        return w, b

    params = [
        make_conv(keys[1], keys[2], Cin, Cout),
        make_conv(keys[3], keys[4], Cout, Cout),
        make_conv(keys[5], keys[6], Cout, Cout),
    ]

    out = jax.jit(vgg16_block2_forward)(x, params)
    out = jax.block_until_ready(out)

    ref = _reference_forward(x, params)
    assert out.shape == (N, Cout, H // 2, W // 2), out.shape
    # bf16 MXU operands -> looser tolerance than a pure-f32 reference.
    max_err = float(jnp.max(jnp.abs(out - ref)))
    assert jnp.allclose(out, ref, atol=5e-2, rtol=5e-2), max_err

    print("KERNEL_OK")
</pallas_src>

<mosaic_0001>
module attributes {stable_mosaic.version = 11 : i64} {
  func.func @kernel(%arg0: i32, %arg1: memref<1x16x16x128xf32, #tpu.memory_space<vmem>>, %arg2: memref<3x1152x128xbf16, #tpu.memory_space<vmem>>, %arg3: memref<3x1x128xf32, #tpu.memory_space<vmem>>, %arg4: memref<1x8x8x128xf32, #tpu.memory_space<vmem>>, %arg5: memref<1x18x18x128xf32, #tpu.memory_space<vmem>>, %arg6: memref<1x16x16x1152xbf16, #tpu.memory_space<vmem>>) attributes {dimension_semantics = [#tpu.dimension_semantics<parallel>], iteration_bounds = array<i64: 2>, scalar_prefetch = 0 : i64, scratch_operands = 2 : i64, tpu.core_type = #tpu.core_type<tc>, window_params = [{transform_indices = @transform_0, window_bounds = array<i64: 1, 16, 16, 128>}, {pipeline_mode = #tpu.pipeline_mode<synchronous>, transform_indices = @transform_1, window_bounds = array<i64: 3, 1152, 128>}, {pipeline_mode = #tpu.pipeline_mode<synchronous>, transform_indices = @transform_2, window_bounds = array<i64: 3, 1, 128>}, {transform_indices = @transform_3, window_bounds = array<i64: 1, 8, 8, 128>}]} {
    %cst = arith.constant 0.000000e+00 : f32
    %0 = vector.broadcast %cst : f32 to vector<1x18x18x128xf32>
    %c0 = arith.constant 0 : index
    %c0_0 = arith.constant 0 : index
    %c0_1 = arith.constant 0 : index
    %c0_2 = arith.constant 0 : index
    %1 = vector.load %arg5[%c0, %c0_0, %c0_1, %c0_2] : memref<1x18x18x128xf32, #tpu.memory_space<vmem>>, vector<1x18x18x128xf32>
    tpu.vector_store %arg5[%c0, %c0_0, %c0_1, %c0_2], %0 {strides = array<i32>} : memref<1x18x18x128xf32, #tpu.memory_space<vmem>>, vector<1x18x18x128xf32>,
    %c0_3 = arith.constant 0 : index
    %c0_4 = arith.constant 0 : index
    %c0_5 = arith.constant 0 : index
    %c0_6 = arith.constant 0 : index
    %2 = vector.load %arg1[%c0_3, %c0_4, %c0_5, %c0_6] : memref<1x16x16x128xf32, #tpu.memory_space<vmem>>, vector<1x16x16x128xf32>
    %c0_7 = arith.constant 0 : index
    %c1 = arith.constant 1 : index
    %c1_8 = arith.constant 1 : index
    %c0_9 = arith.constant 0 : index
    %3 = vector.load %arg5[%c0_7, %c1, %c1_8, %c0_9] : memref<1x18x18x128xf32, #tpu.memory_space<vmem>>, vector<1x16x16x128xf32>
    tpu.vector_store %arg5[%c0_7, %c1, %c1_8, %c0_9], %2 {strides = array<i32>} : memref<1x18x18x128xf32, #tpu.memory_space<vmem>>, vector<1x16x16x128xf32>,
    %c0_10 = arith.constant 0 : index
    %c0_11 = arith.constant 0 : index
    %c0_12 = arith.constant 0 : index
    %c0_13 = arith.constant 0 : index
    %4 = vector.load %arg5[%c0_10, %c0_11, %c0_12, %c0_13] : memref<1x18x18x128xf32, #tpu.memory_space<vmem>>, vector<1x16x16x128xf32>
    %5 = arith.truncf %4 : vector<1x16x16x128xf32> to vector<1x16x16x128xbf16>
    %c0_14 = arith.constant 0 : index
    %c0_15 = arith.constant 0 : index
    %c0_16 = arith.constant 0 : index
    %c0_17 = arith.constant 0 : index
    %6 = vector.load %arg6[%c0_14, %c0_15, %c0_16, %c0_17] : memref<1x16x16x1152xbf16, #tpu.memory_space<vmem>>, vector<1x16x16x128xbf16>
    tpu.vector_store %arg6[%c0_14, %c0_15, %c0_16, %c0_17], %5 {strides = array<i32>} : memref<1x16x16x1152xbf16, #tpu.memory_space<vmem>>, vector<1x16x16x128xbf16>,
    %c0_18 = arith.constant 0 : index
    %c0_19 = arith.constant 0 : index
    %c1_20 = arith.constant 1 : index
    %c0_21 = arith.constant 0 : index
    %7 = vector.load %arg5[%c0_18, %c0_19, %c1_20, %c0_21] : memref<1x18x18x128xf32, #tpu.memory_space<vmem>>, vector<1x16x16x128xf32>
    %8 = arith.truncf %7 : vector<1x16x16x128xf32> to vector<1x16x16x128xbf16>
    %c0_22 = arith.constant 0 : index
    %c0_23 = arith.constant 0 : index
    %c0_24 = arith.constant 0 : index
    %c128 = arith.constant 128 : index
    %9 = vector.load %arg6[%c0_22, %c0_23, %c0_24, %c128] : memref<1x16x16x1152xbf16, #tpu.memory_space<vmem>>, vector<1x16x16x128xbf16>
    tpu.vector_store %arg6[%c0_22, %c0_23, %c0_24, %c128], %8 {strides = array<i32>} : memref<1x16x16x1152xbf16, #tpu.memory_space<vmem>>, vector<1x16x16x128xbf16>,
    %c0_25 = arith.constant 0 : index
    %c0_26 = arith.constant 0 : index
    %c2 = arith.constant 2 : index
    %c0_27 = arith.constant 0 : index
    %10 = vector.load %arg5[%c0_25, %c0_26, %c2, %c0_27] : memref<1x18x18x128xf32, #tpu.memory_space<vmem>>, vector<1x16x16x128xf32>
    %11 = arith.truncf %10 : vector<1x16x16x128xf32> to vector<1x16x16x128xbf16>
    %c0_28 = arith.constant 0 : index
    %c0_29 = arith.constant 0 : index
    %c0_30 = arith.constant 0 : index
    %c256 = arith.constant 256 : index
    %12 = vector.load %arg6[%c0_28, %c0_29, %c0_30, %c256] : memref<1x16x16x1152xbf16, #tpu.memory_space<vmem>>, vector<1x16x16x128xbf16>
    tpu.vector_store %arg6[%c0_28, %c0_29, %c0_30, %c256], %11 {strides = array<i32>} : memref<1x16x16x1152xbf16, #tpu.memory_space<vmem>>, vector<1x16x16x128xbf16>,
    %c0_31 = arith.constant 0 : index
    %c1_32 = arith.constant 1 : index
    %c0_33 = arith.constant 0 : index
    %c0_34 = arith.constant 0 : index
    %13 = vector.load %arg5[%c0_31, %c1_32, %c0_33, %c0_34] : memref<1x18x18x128xf32, #tpu.memory_space<vmem>>, vector<1x16x16x128xf32>
    %14 = arith.truncf %13 : vector<1x16x16x128xf32> to vector<1x16x16x128xbf16>
    %c0_35 = arith.constant 0 : index
    %c0_36 = arith.constant 0 : index
    %c0_37 = arith.constant 0 : index
    %c384 = arith.constant 384 : index
    %15 = vector.load %arg6[%c0_35, %c0_36, %c0_37, %c384] : memref<1x16x16x1152xbf16, #tpu.memory_space<vmem>>, vector<1x16x16x128xbf16>
    tpu.vector_store %arg6[%c0_35, %c0_36, %c0_37, %c384], %14 {strides = array<i32>} : memref<1x16x16x1152xbf16, #tpu.memory_space<vmem>>, vector<1x16x16x128xbf16>,
    %c0_38 = arith.constant 0 : index
    %c1_39 = arith.constant 1 : index
    %c1_40 = arith.constant 1 : index
    %c0_41 = arith.constant 0 : index
    %16 = vector.load %arg5[%c0_38, %c1_39, %c1_40, %c0_41] : memref<1x18x18x128xf32, #tpu.memory_space<vmem>>, vector<1x16x16x128xf32>
    %17 = arith.truncf %16 : vector<1x16x16x128xf32> to vector<1x16x16x128xbf16>
    %c0_42 = arith.constant 0 : index
    %c0_43 = arith.constant 0 : index
    %c0_44 = arith.constant 0 : index
    %c512 = arith.constant 512 : index
    %18 = vector.load %arg6[%c0_42, %c0_43, %c0_44, %c512] : memref<1x16x16x1152xbf16, #tpu.memory_space<vmem>>, vector<1x16x16x128xbf16>
    tpu.vector_store %arg6[%c0_42, %c0_43, %c0_44, %c512], %17 {strides = array<i32>} : memref<1x16x16x1152xbf16, #tpu.memory_space<vmem>>, vector<1x16x16x128xbf16>,
    %c0_45 = arith.constant 0 : index
    %c1_46 = arith.constant 1 : index
    %c2_47 = arith.constant 2 : index
    %c0_48 = arith.constant 0 : index
    %19 = vector.load %arg5[%c0_45, %c1_46, %c2_47, %c0_48] : memref<1x18x18x128xf32, #tpu.memory_space<vmem>>, vector<1x16x16x128xf32>
    %20 = arith.truncf %19 : vector<1x16x16x128xf32> to vector<1x16x16x128xbf16>
    %c0_49 = arith.constant 0 : index
    %c0_50 = arith.constant 0 : index
    %c0_51 = arith.constant 0 : index
    %c640 = arith.constant 640 : index
    %21 = vector.load %arg6[%c0_49, %c0_50, %c0_51, %c640] : memref<1x16x16x1152xbf16, #tpu.memory_space<vmem>>, vector<1x16x16x128xbf16>
    tpu.vector_store %arg6[%c0_49, %c0_50, %c0_51, %c640], %20 {strides = array<i32>} : memref<1x16x16x1152xbf16, #tpu.memory_space<vmem>>, vector<1x16x16x128xbf16>,
    %c0_52 = arith.constant 0 : index
    %c2_53 = arith.constant 2 : index
    %c0_54 = arith.constant 0 : index
    %c0_55 = arith.constant 0 : index
    %22 = vector.load %arg5[%c0_52, %c2_53, %c0_54, %c0_55] : memref<1x18x18x128xf32, #tpu.memory_space<vmem>>, vector<1x16x16x128xf32>
    %23 = arith.truncf %22 : vector<1x16x16x128xf32> to vector<1x16x16x128xbf16>
    %c0_56 = arith.constant 0 : index
    %c0_57 = arith.constant 0 : index
    %c0_58 = arith.constant 0 : index
    %c768 = arith.constant 768 : index
    %24 = vector.load %arg6[%c0_56, %c0_57, %c0_58, %c768] : memref<1x16x16x1152xbf16, #tpu.memory_space<vmem>>, vector<1x16x16x128xbf16>
    tpu.vector_store %arg6[%c0_56, %c0_57, %c0_58, %c768], %23 {strides = array<i32>} : memref<1x16x16x1152xbf16, #tpu.memory_space<vmem>>, vector<1x16x16x128xbf16>,
    %c0_59 = arith.constant 0 : index
    %c2_60 = arith.constant 2 : index
    %c1_61 = arith.constant 1 : index
    %c0_62 = arith.constant 0 : index
    %25 = vector.load %arg5[%c0_59, %c2_60, %c1_61, %c0_62] : memref<1x18x18x128xf32, #tpu.memory_space<vmem>>, vector<1x16x16x128xf32>
    %26 = arith.truncf %25 : vector<1x16x16x128xf32> to vector<1x16x16x128xbf16>
    %c0_63 = arith.constant 0 : index
    %c0_64 = arith.constant 0 : index
    %c0_65 = arith.constant 0 : index
    %c896 = arith.constant 896 : index
    %27 = vector.load %arg6[%c0_63, %c0_64, %c0_65, %c896] : memref<1x16x16x1152xbf16, #tpu.memory_space<vmem>>, vector<1x16x16x128xbf16>
    tpu.vector_store %arg6[%c0_63, %c0_64, %c0_65, %c896], %26 {strides = array<i32>} : memref<1x16x16x1152xbf16, #tpu.memory_space<vmem>>, vector<1x16x16x128xbf16>,
    %c0_66 = arith.constant 0 : index
    %c2_67 = arith.constant 2 : index
    %c2_68 = arith.constant 2 : index
    %c0_69 = arith.constant 0 : index
    %28 = vector.load %arg5[%c0_66, %c2_67, %c2_68, %c0_69] : memref<1x18x18x128xf32, #tpu.memory_space<vmem>>, vector<1x16x16x128xf32>
    %29 = arith.truncf %28 : vector<1x16x16x128xf32> to vector<1x16x16x128xbf16>
    %c0_70 = arith.constant 0 : index
    %c0_71 = arith.constant 0 : index
    %c0_72 = arith.constant 0 : index
    %c1024 = arith.constant 1024 : index
    %30 = vector.load %arg6[%c0_70, %c0_71, %c0_72, %c1024] : memref<1x16x16x1152xbf16, #tpu.memory_space<vmem>>, vector<1x16x16x128xbf16>
    tpu.vector_store %arg6[%c0_70, %c0_71, %c0_72, %c1024], %29 {strides = array<i32>} : memref<1x16x16x1152xbf16, #tpu.memory_space<vmem>>, vector<1x16x16x128xbf16>,
    %c0_73 = arith.constant 0 : index
    %c0_74 = arith.constant 0 : index
    %c0_75 = arith.constant 0 : index
    %c0_76 = arith.constant 0 : index
    %31 = vector.load %arg6[%c0_73, %c0_74, %c0_75, %c0_76] : memref<1x16x16x1152xbf16, #tpu.memory_space<vmem>>, vector<1x16x16x1152xbf16>
    %32 = vector.shape_cast %31 : vector<1x16x16x1152xbf16> to vector<256x1152xbf16>
    %c0_77 = arith.constant 0 : index
    %c0_78 = arith.constant 0 : index
    %c0_79 = arith.constant 0 : index
    %33 = vector.load %arg2[%c0_77, %c0_78, %c0_79] : memref<3x1152x128xbf16, #tpu.memory_space<vmem>>, vector<1x1152x128xbf16>
    %34 = vector.shape_cast %33 : vector<1x1152x128xbf16> to vector<1152x128xbf16>
    %cst_80 = arith.constant dense<0.000000e+00> : vector<256x128xf32>
    %35 = tpu.matmul %32, %34, %cst_80 {dimension_numbers = #tpu.dot_dimension_numbers<[1], [0], [0], [1], [0, 0, 1, 1], [], []>} : vector<256x1152xbf16>, vector<1152x128xbf16>, vector<256x128xf32> -> vector<256x128xf32>
    %c0_81 = arith.constant 0 : index
    %c0_82 = arith.constant 0 : index
    %c0_83 = arith.constant 0 : index
    %36 = vector.load %arg3[%c0_81, %c0_82, %c0_83] : memref<3x1x128xf32, #tpu.memory_space<vmem>>, vector<1x1x128xf32>
    %37 = vector.shape_cast %36 : vector<1x1x128xf32> to vector<1x128xf32>
    %38 = vector.broadcast %37 : vector<1x128xf32> to vector<256x128xf32>
    %39 = arith.addf %35, %38 : vector<256x128xf32>
    %cst_84 = arith.constant 0.000000e+00 : f32
    %40 = vector.broadcast %cst_84 : f32 to vector<256x128xf32>
    %41 = arith.maximumf %39, %40 : vector<256x128xf32>
    %42 = vector.shape_cast %41 : vector<256x128xf32> to vector<1x16x16x128xf32>
    %c0_85 = arith.constant 0 : index
    %c1_86 = arith.constant 1 : index
    %c1_87 = arith.constant 1 : index
    %c0_88 = arith.constant 0 : index
    %43 = vector.load %arg5[%c0_85, %c1_86, %c1_87, %c0_88] : memref<1x18x18x128xf32, #tpu.memory_space<vmem>>, vector<1x16x16x128xf32>
    tpu.vector_store %arg5[%c0_85, %c1_86, %c1_87, %c0_88], %42 {strides = array<i32>} : memref<1x18x18x128xf32, #tpu.memory_space<vmem>>, vector<1x16x16x128xf32>,
    %c0_89 = arith.constant 0 : index
    %c0_90 = arith.constant 0 : index
    %c0_91 = arith.constant 0 : index
    %c0_92 = arith.constant 0 : index
    %44 = vector.load %arg5[%c0_89, %c0_90, %c0_91, %c0_92] : memref<1x18x18x128xf32, #tpu.memory_space<vmem>>, vector<1x16x16x128xf32>
    %45 = arith.truncf %44 : vector<1x16x16x128xf32> to vector<1x16x16x128xbf16>
    %c0_93 = arith.constant 0 : index
    %c0_94 = arith.constant 0 : index
    %c0_95 = arith.constant 0 : index
    %c0_96 = arith.constant 0 : index
    %46 = vector.load %arg6[%c0_93, %c0_94, %c0_95, %c0_96] : memref<1x16x16x1152xbf16, #tpu.memory_space<vmem>>, vector<1x16x16x128xbf16>
    tpu.vector_store %arg6[%c0_93, %c0_94, %c0_95, %c0_96], %45 {strides = array<i32>} : memref<1x16x16x1152xbf16, #tpu.memory_space<vmem>>, vector<1x16x16x128xbf16>,
    %c0_97 = arith.constant 0 : index
    %c0_98 = arith.constant 0 : index
    %c1_99 = arith.constant 1 : index
    %c0_100 = arith.constant 0 : index
    %47 = vector.load %arg5[%c0_97, %c0_98, %c1_99, %c0_100] : memref<1x18x18x128xf32, #tpu.memory_space<vmem>>, vector<1x16x16x128xf32>
    %48 = arith.truncf %47 : vector<1x16x16x128xf32> to vector<1x16x16x128xbf16>
    %c0_101 = arith.constant 0 : index
    %c0_102 = arith.constant 0 : index
    %c0_103 = arith.constant 0 : index
    %c128_104 = arith.constant 128 : index
    %49 = vector.load %arg6[%c0_101, %c0_102, %c0_103, %c128_104] : memref<1x16x16x1152xbf16, #tpu.memory_space<vmem>>, vector<1x16x16x128xbf16>
    tpu.vector_store %arg6[%c0_101, %c0_102, %c0_103, %c128_104], %48 {strides = array<i32>} : memref<1x16x16x1152xbf16, #tpu.memory_space<vmem>>, vector<1x16x16x128xbf16>,
    %c0_105 = arith.constant 0 : index
    %c0_106 = arith.constant 0 : index
    %c2_107 = arith.constant 2 : index
    %c0_108 = arith.constant 0 : index
    %50 = vector.load %arg5[%c0_105, %c0_106, %c2_107, %c0_108] : memref<1x18x18x128xf32, #tpu.memory_space<vmem>>, vector<1x16x16x128xf32>
    %51 = arith.truncf %50 : vector<1x16x16x128xf32> to vector<1x16x16x128xbf16>
    %c0_109 = arith.constant 0 : index
    %c0_110 = arith.constant 0 : index
    %c0_111 = arith.constant 0 : index
    %c256_112 = arith.constant 256 : index
    %52 = vector.load %arg6[%c0_109, %c0_110, %c0_111, %c256_112] : memref<1x16x16x1152xbf16, #tpu.memory_space<vmem>>, vector<1x16x16x128xbf16>
    tpu.vector_store %arg6[%c0_109, %c0_110, %c0_111, %c256_112], %51 {strides = array<i32>} : memref<1x16x16x1152xbf16, #tpu.memory_space<vmem>>, vector<1x16x16x128xbf16>,
    %c0_113 = arith.constant 0 : index
    %c1_114 = arith.constant 1 : index
    %c0_115 = arith.constant 0 : index
    %c0_116 = arith.constant 0 : index
    %53 = vector.load %arg5[%c0_113, %c1_114, %c0_115, %c0_116] : memref<1x18x18x128xf32, #tpu.memory_space<vmem>>, vector<1x16x16x128xf32>
    %54 = arith.truncf %53 : vector<1x16x16x128xf32> to vector<1x16x16x128xbf16>
    %c0_117 = arith.constant 0 : index
    %c0_118 = arith.constant 0 : index
    %c0_119 = arith.constant 0 : index
    %c384_120 = arith.constant 384 : index
    %55 = vector.load %arg6[%c0_117, %c0_118, %c0_119, %c384_120] : memref<1x16x16x1152xbf16, #tpu.memory_space<vmem>>, vector<1x16x16x128xbf16>
    tpu.vector_store %arg6[%c0_117, %c0_118, %c0_119, %c384_120], %54 {strides = array<i32>} : memref<1x16x16x1152xbf16, #tpu.memory_space<vmem>>, vector<1x16x16x128xbf16>,
    %c0_121 = arith.constant 0 : index
    %c1_122 = arith.constant 1 : index
    %c1_123 = arith.constant 1 : index
    %c0_124 = arith.constant 0 : index
    %56 = vector.load %arg5[%c0_121, %c1_122, %c1_123, %c0_124] : memref<1x18x18x128xf32, #tpu.memory_space<vmem>>, vector<1x16x16x128xf32>
    %57 = arith.truncf %56 : vector<1x16x16x128xf32> to vector<1x16x16x128xbf16>
    %c0_125 = arith.constant 0 : index
    %c0_126 = arith.constant 0 : index
    %c0_127 = arith.constant 0 : index
    %c512_128 = arith.constant 512 : index
    %58 = vector.load %arg6[%c0_125, %c0_126, %c0_127, %c512_128] : memref<1x16x16x1152xbf16, #tpu.memory_space<vmem>>, vector<1x16x16x128xbf16>
    tpu.vector_store %arg6[%c0_125, %c0_126, %c0_127, %c512_128], %57 {strides = array<i32>} : memref<1x16x16x1152xbf16, #tpu.memory_space<vmem>>, vector<1x16x16x128xbf16>,
    %c0_129 = arith.constant 0 : index
    %c1_130 = arith.constant 1 : index
    %c2_131 = arith.constant 2 : index
    %c0_132 = arith.constant 0 : index
    %59 = vector.load %arg5[%c0_129, %c1_130, %c2_131, %c0_132] : memref<1x18x18x128xf32, #tpu.memory_space<vmem>>, vector<1x16x16x128xf32>
    %60 = arith.truncf %59 : vector<1x16x16x128xf32> to vector<1x16x16x128xbf16>
    %c0_133 = arith.constant 0 : index
    %c0_134 = arith.constant 0 : index
    %c0_135 = arith.constant 0 : index
    %c640_136 = arith.constant 640 : index
    %61 = vector.load %arg6[%c0_133, %c0_134, %c0_135, %c640_136] : memref<1x16x16x1152xbf16, #tpu.memory_space<vmem>>, vector<1x16x16x128xbf16>
    tpu.vector_store %arg6[%c0_133, %c0_134, %c0_135, %c640_136], %60 {strides = array<i32>} : memref<1x16x16x1152xbf16, #tpu.memory_space<vmem>>, vector<1x16x16x128xbf16>,
    %c0_137 = arith.constant 0 : index
    %c2_138 = arith.constant 2 : index
    %c0_139 = arith.constant 0 : index
    %c0_140 = arith.constant 0 : index
    %62 = vector.load %arg5[%c0_137, %c2_138, %c0_139, %c0_140] : memref<1x18x18x128xf32, #tpu.memory_space<vmem>>, vector<1x16x16x128xf32>
    %63 = arith.truncf %62 : vector<1x16x16x128xf32> to vector<1x16x16x128xbf16>
    %c0_141 = arith.constant 0 : index
    %c0_142 = arith.constant 0 : index
    %c0_143 = arith.constant 0 : index
    %c768_144 = arith.constant 768 : index
    %64 = vector.load %arg6[%c0_141, %c0_142, %c0_143, %c768_144] : memref<1x16x16x1152xbf16, #tpu.memory_space<vmem>>, vector<1x16x16x128xbf16>
    tpu.vector_store %arg6[%c0_141, %c0_142, %c0_143, %c768_144], %63 {strides = array<i32>} : memref<1x16x16x1152xbf16, #tpu.memory_space<vmem>>, vector<1x16x16x128xbf16>,
    %c0_145 = arith.constant 0 : index
    %c2_146 = arith.constant 2 : index
    %c1_147 = arith.constant 1 : index
    %c0_148 = arith.constant 0 : index
    %65 = vector.load %arg5[%c0_145, %c2_146, %c1_147, %c0_148] : memref<1x18x18x128xf32, #tpu.memory_space<vmem>>, vector<1x16x16x128xf32>
    %66 = arith.truncf %65 : vector<1x16x16x128xf32> to vector<1x16x16x128xbf16>
    %c0_149 = arith.constant 0 : index
    %c0_150 = arith.constant 0 : index
    %c0_151 = arith.constant 0 : index
    %c896_152 = arith.constant 896 : index
    %67 = vector.load %arg6[%c0_149, %c0_150, %c0_151, %c896_152] : memref<1x16x16x1152xbf16, #tpu.memory_space<vmem>>, vector<1x16x16x128xbf16>
    tpu.vector_store %arg6[%c0_149, %c0_150, %c0_151, %c896_152], %66 {strides = array<i32>} : memref<1x16x16x1152xbf16, #tpu.memory_space<vmem>>, vector<1x16x16x128xbf16>,
    %c0_153 = arith.constant 0 : index
    %c2_154 = arith.constant 2 : index
    %c2_155 = arith.constant 2 : index
    %c0_156 = arith.constant 0 : index
    %68 = vector.load %arg5[%c0_153, %c2_154, %c2_155, %c0_156] : memref<1x18x18x128xf32, #tpu.memory_space<vmem>>, vector<1x16x16x128xf32>
    %69 = arith.truncf %68 : vector<1x16x16x128xf32> to vector<1x16x16x128xbf16>
    %c0_157 = arith.constant 0 : index
    %c0_158 = arith.constant 0 : index
    %c0_159 = arith.constant 0 : index
    %c1024_160 = arith.constant 1024 : index
    %70 = vector.load %arg6[%c0_157, %c0_158, %c0_159, %c1024_160] : memref<1x16x16x1152xbf16, #tpu.memory_space<vmem>>, vector<1x16x16x128xbf16>
    tpu.vector_store %arg6[%c0_157, %c0_158, %c0_159, %c1024_160], %69 {strides = array<i32>} : memref<1x16x16x1152xbf16, #tpu.memory_space<vmem>>, vector<1x16x16x128xbf16>,
    %c0_161 = arith.constant 0 : index
    %c0_162 = arith.constant 0 : index
    %c0_163 = arith.constant 0 : index
    %c0_164 = arith.constant 0 : index
    %71 = vector.load %arg6[%c0_161, %c0_162, %c0_163, %c0_164] : memref<1x16x16x1152xbf16, #tpu.memory_space<vmem>>, vector<1x16x16x1152xbf16>
    %72 = vector.shape_cast %71 : vector<1x16x16x1152xbf16> to vector<256x1152xbf16>
    %c1_165 = arith.constant 1 : index
    %c0_166 = arith.constant 0 : index
    %c0_167 = arith.constant 0 : index
    %73 = vector.load %arg2[%c1_165, %c0_166, %c0_167] : memref<3x1152x128xbf16, #tpu.memory_space<vmem>>, vector<1x1152x128xbf16>
    %74 = vector.shape_cast %73 : vector<1x1152x128xbf16> to vector<1152x128xbf16>
    %cst_168 = arith.constant dense<0.000000e+00> : vector<256x128xf32>
    %75 = tpu.matmul %72, %74, %cst_168 {dimension_numbers = #tpu.dot_dimension_numbers<[1], [0], [0], [1], [0, 0, 1, 1], [], []>} : vector<256x1152xbf16>, vector<1152x128xbf16>, vector<256x128xf32> -> vector<256x128xf32>
    %c1_169 = arith.constant 1 : index
    %c0_170 = arith.constant 0 : index
    %c0_171 = arith.constant 0 : index
    %76 = vector.load %arg3[%c1_169, %c0_170, %c0_171] : memref<3x1x128xf32, #tpu.memory_space<vmem>>, vector<1x1x128xf32>
    %77 = vector.shape_cast %76 : vector<1x1x128xf32> to vector<1x128xf32>
    %78 = vector.broadcast %77 : vector<1x128xf32> to vector<256x128xf32>
    %79 = arith.addf %75, %78 : vector<256x128xf32>
    %cst_172 = arith.constant 0.000000e+00 : f32
    %80 = vector.broadcast %cst_172 : f32 to vector<256x128xf32>
    %81 = arith.maximumf %79, %80 : vector<256x128xf32>
    %82 = vector.shape_cast %81 : vector<256x128xf32> to vector<1x16x16x128xf32>
    %c0_173 = arith.constant 0 : index
    %c1_174 = arith.constant 1 : index
    %c1_175 = arith.constant 1 : index
    %c0_176 = arith.constant 0 : index
    %83 = vector.load %arg5[%c0_173, %c1_174, %c1_175, %c0_176] : memref<1x18x18x128xf32, #tpu.memory_space<vmem>>, vector<1x16x16x128xf32>
    tpu.vector_store %arg5[%c0_173, %c1_174, %c1_175, %c0_176], %82 {strides = array<i32>} : memref<1x18x18x128xf32, #tpu.memory_space<vmem>>, vector<1x16x16x128xf32>,
    %c0_177 = arith.constant 0 : index
    %c0_178 = arith.constant 0 : index
    %c0_179 = arith.constant 0 : index
    %c0_180 = arith.constant 0 : index
    %84 = vector.load %arg5[%c0_177, %c0_178, %c0_179, %c0_180] : memref<1x18x18x128xf32, #tpu.memory_space<vmem>>, vector<1x16x16x128xf32>
    %85 = arith.truncf %84 : vector<1x16x16x128xf32> to vector<1x16x16x128xbf16>
    %c0_181 = arith.constant 0 : index
    %c0_182 = arith.constant 0 : index
    %c0_183 = arith.constant 0 : index
    %c0_184 = arith.constant 0 : index
    %86 = vector.load %arg6[%c0_181, %c0_182, %c0_183, %c0_184] : memref<1x16x16x1152xbf16, #tpu.memory_space<vmem>>, vector<1x16x16x128xbf16>
    tpu.vector_store %arg6[%c0_181, %c0_182, %c0_183, %c0_184], %85 {strides = array<i32>} : memref<1x16x16x1152xbf16, #tpu.memory_space<vmem>>, vector<1x16x16x128xbf16>,
    %c0_185 = arith.constant 0 : index
    %c0_186 = arith.constant 0 : index
    %c1_187 = arith.constant 1 : index
    %c0_188 = arith.constant 0 : index
    %87 = vector.load %arg5[%c0_185, %c0_186, %c1_187, %c0_188] : memref<1x18x18x128xf32, #tpu.memory_space<vmem>>, vector<1x16x16x128xf32>
    %88 = arith.truncf %87 : vector<1x16x16x128xf32> to vector<1x16x16x128xbf16>
    %c0_189 = arith.constant 0 : index
    %c0_190 = arith.constant 0 : index
    %c0_191 = arith.constant 0 : index
    %c128_192 = arith.constant 128 : index
    %89 = vector.load %arg6[%c0_189, %c0_190, %c0_191, %c128_192] : memref<1x16x16x1152xbf16, #tpu.memory_space<vmem>>, vector<1x16x16x128xbf16>
    tpu.vector_store %arg6[%c0_189, %c0_190, %c0_191, %c128_192], %88 {strides = array<i32>} : memref<1x16x16x1152xbf16, #tpu.memory_space<vmem>>, vector<1x16x16x128xbf16>,
    %c0_193 = arith.constant 0 : index
    %c0_194 = arith.constant 0 : index
    %c2_195 = arith.constant 2 : index
    %c0_196 = arith.constant 0 : index
    %90 = vector.load %arg5[%c0_193, %c0_194, %c2_195, %c0_196] : memref<1x18x18x128xf32, #tpu.memory_space<vmem>>, vector<1x16x16x128xf32>
    %91 = arith.truncf %90 : vector<1x16x16x128xf32> to vector<1x16x16x128xbf16>
    %c0_197 = arith.constant 0 : index
    %c0_198 = arith.constant 0 : index
    %c0_199 = arith.constant 0 : index
    %c256_200 = arith.constant 256 : index
    %92 = vector.load %arg6[%c0_197, %c0_198, %c0_199, %c256_200] : memref<1x16x16x1152xbf16, #tpu.memory_space<vmem>>, vector<1x16x16x128xbf16>
    tpu.vector_store %arg6[%c0_197, %c0_198, %c0_199, %c256_200], %91 {strides = array<i32>} : memref<1x16x16x1152xbf16, #tpu.memory_space<vmem>>, vector<1x16x16x128xbf16>,
    %c0_201 = arith.constant 0 : index
    %c1_202 = arith.constant 1 : index
    %c0_203 = arith.constant 0 : index
    %c0_204 = arith.constant 0 : index
    %93 = vector.load %arg5[%c0_201, %c1_202, %c0_203, %c0_204] : memref<1x18x18x128xf32, #tpu.memory_space<vmem>>, vector<1x16x16x128xf32>
    %94 = arith.truncf %93 : vector<1x16x16x128xf32> to vector<1x16x16x128xbf16>
    %c0_205 = arith.constant 0 : index
    %c0_206 = arith.constant 0 : index
    %c0_207 = arith.constant 0 : index
    %c384_208 = arith.constant 384 : index
    %95 = vector.load %arg6[%c0_205, %c0_206, %c0_207, %c384_208] : memref<1x16x16x1152xbf16, #tpu.memory_space<vmem>>, vector<1x16x16x128xbf16>
    tpu.vector_store %arg6[%c0_205, %c0_206, %c0_207, %c384_208], %94 {strides = array<i32>} : memref<1x16x16x1152xbf16, #tpu.memory_space<vmem>>, vector<1x16x16x128xbf16>,
    %c0_209 = arith.constant 0 : index
    %c1_210 = arith.constant 1 : index
    %c1_211 = arith.constant 1 : index
    %c0_212 = arith.constant 0 : index
    %96 = vector.load %arg5[%c0_209, %c1_210, %c1_211, %c0_212] : memref<1x18x18x128xf32, #tpu.memory_space<vmem>>, vector<1x16x16x128xf32>
    %97 = arith.truncf %96 : vector<1x16x16x128xf32> to vector<1x16x16x128xbf16>
    %c0_213 = arith.constant 0 : index
    %c0_214 = arith.constant 0 : index
    %c0_215 = arith.constant 0 : index
    %c512_216 = arith.constant 512 : index
    %98 = vector.load %arg6[%c0_213, %c0_214, %c0_215, %c512_216] : memref<1x16x16x1152xbf16, #tpu.memory_space<vmem>>, vector<1x16x16x128xbf16>
    tpu.vector_store %arg6[%c0_213, %c0_214, %c0_215, %c512_216], %97 {strides = array<i32>} : memref<1x16x16x1152xbf16, #tpu.memory_space<vmem>>, vector<1x16x16x128xbf16>,
    %c0_217 = arith.constant 0 : index
    %c1_218 = arith.constant 1 : index
    %c2_219 = arith.constant 2 : index
    %c0_220 = arith.constant 0 : index
    %99 = vector.load %arg5[%c0_217, %c1_218, %c2_219, %c0_220] : memref<1x18x18x128xf32, #tpu.memory_space<vmem>>, vector<1x16x16x128xf32>
    %100 = arith.truncf %99 : vector<1x16x16x128xf32> to vector<1x16x16x128xbf16>
    %c0_221 = arith.constant 0 : index
    %c0_222 = arith.constant 0 : index
    %c0_223 = arith.constant 0 : index
    %c640_224 = arith.constant 640 : index
    %101 = vector.load %arg6[%c0_221, %c0_222, %c0_223, %c640_224] : memref<1x16x16x1152xbf16, #tpu.memory_space<vmem>>, vector<1x16x16x128xbf16>
    tpu.vector_store %arg6[%c0_221, %c0_222, %c0_223, %c640_224], %100 {strides = array<i32>} : memref<1x16x16x1152xbf16, #tpu.memory_space<vmem>>, vector<1x16x16x128xbf16>,
    %c0_225 = arith.constant 0 : index
    %c2_226 = arith.constant 2 : index
    %c0_227 = arith.constant 0 : index
    %c0_228 = arith.constant 0 : index
    %102 = vector.load %arg5[%c0_225, %c2_226, %c0_227, %c0_228] : memref<1x18x18x128xf32, #tpu.memory_space<vmem>>, vector<1x16x16x128xf32>
    %103 = arith.truncf %102 : vector<1x16x16x128xf32> to vector<1x16x16x128xbf16>
    %c0_229 = arith.constant 0 : index
    %c0_230 = arith.constant 0 : index
    %c0_231 = arith.constant 0 : index
    %c768_232 = arith.constant 768 : index
    %104 = vector.load %arg6[%c0_229, %c0_230, %c0_231, %c768_232] : memref<1x16x16x1152xbf16, #tpu.memory_space<vmem>>, vector<1x16x16x128xbf16>
    tpu.vector_store %arg6[%c0_229, %c0_230, %c0_231, %c768_232], %103 {strides = array<i32>} : memref<1x16x16x1152xbf16, #tpu.memory_space<vmem>>, vector<1x16x16x128xbf16>,
    %c0_233 = arith.constant 0 : index
    %c2_234 = arith.constant 2 : index
    %c1_235 = arith.constant 1 : index
    %c0_236 = arith.constant 0 : index
    %105 = vector.load %arg5[%c0_233, %c2_234, %c1_235, %c0_236] : memref<1x18x18x128xf32, #tpu.memory_space<vmem>>, vector<1x16x16x128xf32>
    %106 = arith.truncf %105 : vector<1x16x16x128xf32> to vector<1x16x16x128xbf16>
    %c0_237 = arith.constant 0 : index
    %c0_238 = arith.constant 0 : index
    %c0_239 = arith.constant 0 : index
    %c896_240 = arith.constant 896 : index
    %107 = vector.load %arg6[%c0_237, %c0_238, %c0_239, %c896_240] : memref<1x16x16x1152xbf16, #tpu.memory_space<vmem>>, vector<1x16x16x128xbf16>
    tpu.vector_store %arg6[%c0_237, %c0_238, %c0_239, %c896_240], %106 {strides = array<i32>} : memref<1x16x16x1152xbf16, #tpu.memory_space<vmem>>, vector<1x16x16x128xbf16>,
    %c0_241 = arith.constant 0 : index
    %c2_242 = arith.constant 2 : index
    %c2_243 = arith.constant 2 : index
    %c0_244 = arith.constant 0 : index
    %108 = vector.load %arg5[%c0_241, %c2_242, %c2_243, %c0_244] : memref<1x18x18x128xf32, #tpu.memory_space<vmem>>, vector<1x16x16x128xf32>
    %109 = arith.truncf %108 : vector<1x16x16x128xf32> to vector<1x16x16x128xbf16>
    %c0_245 = arith.constant 0 : index
    %c0_246 = arith.constant 0 : index
    %c0_247 = arith.constant 0 : index
    %c1024_248 = arith.constant 1024 : index
    %110 = vector.load %arg6[%c0_245, %c0_246, %c0_247, %c1024_248] : memref<1x16x16x1152xbf16, #tpu.memory_space<vmem>>, vector<1x16x16x128xbf16>
    tpu.vector_store %arg6[%c0_245, %c0_246, %c0_247, %c1024_248], %109 {strides = array<i32>} : memref<1x16x16x1152xbf16, #tpu.memory_space<vmem>>, vector<1x16x16x128xbf16>,
    %c0_249 = arith.constant 0 : index
    %c0_250 = arith.constant 0 : index
    %c0_251 = arith.constant 0 : index
    %c0_252 = arith.constant 0 : index
    %111 = vector.load %arg6[%c0_249, %c0_250, %c0_251, %c0_252] : memref<1x16x16x1152xbf16, #tpu.memory_space<vmem>>, vector<1x16x16x1152xbf16>
    %112 = vector.shape_cast %111 : vector<1x16x16x1152xbf16> to vector<256x1152xbf16>
    %c2_253 = arith.constant 2 : index
    %c0_254 = arith.constant 0 : index
    %c0_255 = arith.constant 0 : index
    %113 = vector.load %arg2[%c2_253, %c0_254, %c0_255] : memref<3x1152x128xbf16, #tpu.memory_space<vmem>>, vector<1x1152x128xbf16>
    %114 = vector.shape_cast %113 : vector<1x1152x128xbf16> to vector<1152x128xbf16>
    %cst_256 = arith.constant dense<0.000000e+00> : vector<256x128xf32>
    %115 = tpu.matmul %112, %114, %cst_256 {dimension_numbers = #tpu.dot_dimension_numbers<[1], [0], [0], [1], [0, 0, 1, 1], [], []>} : vector<256x1152xbf16>, vector<1152x128xbf16>, vector<256x128xf32> -> vector<256x128xf32>
    %c2_257 = arith.constant 2 : index
    %c0_258 = arith.constant 0 : index
    %c0_259 = arith.constant 0 : index
    %116 = vector.load %arg3[%c2_257, %c0_258, %c0_259] : memref<3x1x128xf32, #tpu.memory_space<vmem>>, vector<1x1x128xf32>
    %117 = vector.shape_cast %116 : vector<1x1x128xf32> to vector<1x128xf32>
    %118 = vector.broadcast %117 : vector<1x128xf32> to vector<256x128xf32>
    %119 = arith.addf %115, %118 : vector<256x128xf32>
    %cst_260 = arith.constant 0.000000e+00 : f32
    %120 = vector.broadcast %cst_260 : f32 to vector<256x128xf32>
    %121 = arith.maximumf %119, %120 : vector<256x128xf32>
    %122 = vector.shape_cast %121 : vector<256x128xf32> to vector<1x16x16x128xf32>
    %123 = vector.shape_cast %122 : vector<1x16x16x128xf32> to vector<1x8x2x16x128xf32>
    %124 = vector.extract_strided_slice %123 {offsets = [0, 0, 0, 0, 0], sizes = [1, 8, 1, 16, 128], strides = [1, 1, 1, 1, 1]} : vector<1x8x2x16x128xf32> to vector<1x8x1x16x128xf32>
    %125 = vector.shape_cast %124 : vector<1x8x1x16x128xf32> to vector<1x8x16x128xf32>
    %126 = vector.extract_strided_slice %123 {offsets = [0, 0, 1, 0, 0], sizes = [1, 8, 1, 16, 128], strides = [1, 1, 1, 1, 1]} : vector<1x8x2x16x128xf32> to vector<1x8x1x16x128xf32>
    %127 = vector.shape_cast %126 : vector<1x8x1x16x128xf32> to vector<1x8x16x128xf32>
    %128 = arith.maximumf %125, %127 : vector<1x8x16x128xf32>
    %129 = vector.shape_cast %128 : vector<1x8x16x128xf32> to vector<1x8x8x2x128xf32>
    %cst_261 = arith.constant dense<0xFF800000> : vector<1x8x8x128xf32>
    %130 = vector.multi_reduction <maximumf>, %129, %cst_261 [3] : vector<1x8x8x2x128xf32> to vector<1x8x8x128xf32>
    %c0_262 = arith.constant 0 : index
    %c0_263 = arith.constant 0 : index
    %c0_264 = arith.constant 0 : index
    %c0_265 = arith.constant 0 : index
    %131 = vector.load %arg4[%c0_262, %c0_263, %c0_264, %c0_265] : memref<1x8x8x128xf32, #tpu.memory_space<vmem>>, vector<1x8x8x128xf32>
    tpu.vector_store %arg4[%c0_262, %c0_263, %c0_264, %c0_265], %130 {strides = array<i32>} : memref<1x8x8x128xf32, #tpu.memory_space<vmem>>, vector<1x8x8x128xf32>,
    return
  }
  func.func @transform_0(%arg0: i32) -> (i32, i32, i32, i32) {
    %c0_i32 = arith.constant 0 : i32
    %c0_i32_0 = arith.constant 0 : i32
    %c0_i32_1 = arith.constant 0 : i32
    %c0_i32_2 = arith.constant 0 : i32
    return %arg0, %c0_i32, %c0_i32_0, %c0_i32_1 : i32, i32, i32, i32
  }
  func.func @transform_1(%arg0: i32) -> (i32, i32, i32) {
    %c0_i32 = arith.constant 0 : i32
    %c0_i32_0 = arith.constant 0 : i32
    %c0_i32_1 = arith.constant 0 : i32
    %c0_i32_2 = arith.constant 0 : i32
    return %c0_i32, %c0_i32_0, %c0_i32_1 : i32, i32, i32
  }
  func.func @transform_2(%arg0: i32) -> (i32, i32, i32) {
    %c0_i32 = arith.constant 0 : i32
    %c0_i32_0 = arith.constant 0 : i32
    %c0_i32_1 = arith.constant 0 : i32
    %c0_i32_2 = arith.constant 0 : i32
    return %c0_i32, %c0_i32_0, %c0_i32_1 : i32, i32, i32
  }
  func.func @transform_3(%arg0: i32) -> (i32, i32, i32, i32) {
    %c0_i32 = arith.constant 0 : i32
    %c0_i32_0 = arith.constant 0 : i32
    %c0_i32_1 = arith.constant 0 : i32
    %c0_i32_2 = arith.constant 0 : i32
    return %arg0, %c0_i32, %c0_i32_0, %c0_i32_1 : i32, i32, i32, i32
  }
}

</mosaic_0001>

<bundles_post_ra>
// kernel: vgg16_block2_forward.1
= control target key start
LH: loop header
LB: loop body
LE: loop exit
PB: predicated region body
PF: predicated region fallthrough
CT: control target
= control target key end

     0   :  { %s10153_s12 = smov 0   ;;  %s12652_s0 = inlined_call_operand.vmem [shape: f32[2,16,16,128], index: 0, kind: input, shape index: {}]   ;;  %s12653_s1 = inlined_call_operand.vmem [shape: bf16[3,1152,128], index: 1, kind: input, shape index: {}]   ;;  %s12654_s2 = inlined_call_operand.vmem [shape: f32[3,1,128], index: 2, kind: input, shape index: {}]   ;;  %s12655_s3 = inlined_call_operand.vmem [shape: f32[2,8,8,128], index: 3, kind: output, shape index: {}]  }
   0x1 LB: > { %s7795_s13 = sadd.s32 4294967295, %s10128_s12   ;;  %p7799_p0 = scmp.ge.s32.totalorder %s10128_s12, 1  ;;  %s10128_s12 = sphi %s10153_s12, %s13_s12  }
   0x2   : > { %p137_p1 = scmp.lt.s32.totalorder %s10128_s12, 3 }
   0x4   : > { %p138_p2 = pnand %p7799_p0, %p137_p1 }
   0x6   : > { %141 = sbr.rel (%p138_p2) target bundleno = 1621 (0x655), region = 32 }
   0xd   : > { %v9903_v0 = vld [vmem:[%s12653_s1 + $0x40] sm:$0xff]   ;;  %v10130_v2 = vmov 0.0   ;;  %v9905_v3 = vld [vmem:[%s12653_s1 + $0x48] sm:$0xff]   ;;  %p161_p3 = scmp.lt.s32.totalorder %s7795_s13, 1  ;;  %v9907_v5 = vld [vmem:[%s12653_s1 + $0x50] sm:$0xff]   ;;  %v10131_v46 = vmov 0.0|0.0  }
   0xe   : > { %v9904_v1 = vld [vmem:[%s12653_s1] sm:$0xff]   ;;  %172 = vst [vmem:[#allocation2] sm:$0xff] %v10130_v2  ;;  %173 = vst [vmem:[#allocation2 + $0x8] sm:$0xff] %v10130_v2  ;;  %8317 = vmatprep.subr.bf16.mxu0 %v9903_v0  ;;  %9877 = vmatprep.subr.bf16.mxu1 %v9903_v0  ;;  %v9906_v4 = vld [vmem:[%s12653_s1 + $0x8] sm:$0xff]   ;;  %vm7148_vm0 = vcmask 1041408   ;;  %vm7661_vm1 = vcmask 1041409  }
   0xf   : > { %174 = vst [vmem:[#allocation2 + $0x10] sm:$0x3] %v10130_v2  ;;  %175 = vst [vmem:[#allocation2 + $0x18] sm:$0xff] %v10130_v2  ;;  %8318 = vmatpush3.bf16.msra.mxu0 %v9904_v1  ;;  %9885 = vmatpush3.bf16.msra.mxu1 %v9904_v1  ;;  %s12669_s13 = smov (!%p161_p3, %s7795_s13), 1  ;;  %v9908_v6 = vld [vmem:[%s12653_s1 + $0x10] sm:$0xff]   ;;  %v9909_v7 = vld [vmem:[%s12653_s1 + $0x58] sm:$0xff]  }
  0x10   : > { %176 = vst [vmem:[#allocation2 + $0x20] sm:$0xff] %v10130_v2  ;;  %177 = vst [vmem:[#allocation2 + $0x28] sm:$0x3] %v10130_v2  ;;  %8319 = vmatprep.subr.bf16.mxu0 %v9905_v3  ;;  %9878 = vmatprep.subr.bf16.mxu1 %v9905_v3  ;;  %s8315_s28 = sshll.u32 %s12669_s13, 8  ;;  %v9910_v8 = vld [vmem:[%s12653_s1 + $0x18] sm:$0xff]   ;;  %v9911_v9 = vld [vmem:[%s12653_s1 + $0x60] sm:$0xff]  }
  0x11   : > { %178 = vst [vmem:[#allocation2 + $0x30] sm:$0xff] %v10130_v2  ;;  %179 = vst [vmem:[#allocation2 + $0x38] sm:$0xff] %v10130_v2  ;;  %s10198_s8 = scalar_lea.vmem %s12652_s0, %s8315_s28  ;;  %v9912_v10 = vld [vmem:[%s12653_s1 + $0x20] sm:$0xff]   ;;  %v9913_v11 = vld [vmem:[%s12653_s1 + $0x68] sm:$0xff]   ;;  %vm7663_vm2 = vcmask 1042434   ;;  %vm7665_vm3 = vcmask 1043459  }
  0x12   : > { %180 = vst [vmem:[#allocation2 + $0x40] sm:$0x3] %v10130_v2  ;;  %181 = vst [vmem:[#allocation2 + $0x48] sm:$0xff] %v10130_v2  ;;  %v248_v14 = vld [vmem:[%s10198_s8 + $0xb0] sm:$0xff]  ;;  %v249_v16 = vld [vmem:[%s10198_s8 + $0xb8] sm:$0xff]  ;;  %vm7667_vm4 = vcmask 1044484  }
  0x13   : > { %182 = vst [vmem:[#allocation2 + $0x50] sm:$0xff] %v10130_v2  ;;  %183 = vst [vmem:[#allocation2 + $0x58] sm:$0x3] %v10130_v2  ;;  %8320 = vmatpush3.bf16.msra.mxu0 %v9906_v4  ;;  %9886 = vmatpush3.bf16.msra.mxu1 %v9906_v4  ;;  %v399_v17 = vpack.c.bf16 %v249_v16, %v248_v14  ;;  %v9914_v18 = vld [vmem:[%s12653_s1 + $0x28] sm:$0xff]   ;;  %v9915_v19 = vld [vmem:[%s12653_s1 + $0x70] sm:$0xff]   ;;  %vm7669_vm5 = vcmask 1045509  }
  0x14   : > { %184 = vst [vmem:[#allocation2 + $0x60] sm:$0xff] %v10130_v2  ;;  %185 = vst [vmem:[#allocation2 + $0x68] sm:$0xff] %v10130_v2  ;;  %8321 = vmatprep.subr.bf16.mxu0 %v9907_v5  ;;  %9879 = vmatprep.subr.bf16.mxu1 %v9907_v5  ;;  %v9916_v20 = vld [vmem:[%s12653_s1 + $0x30] sm:$0xff]   ;;  %v226_v21 = vld [vmem:[%s10198_s8] sm:$0xff]  ;;  %vm7671_vm6 = vcmask 1046534   ;;  %vm7673_vm7 = vcmask 1047559  }
  0x15   : > { %186 = vst [vmem:[#allocation2 + $0x70] sm:$0x3] %v10130_v2  ;;  %187 = vst [vmem:[#allocation2 + $0x78] sm:$0xff] %v10130_v2  ;;  %v355_v12 = vld [vmem:[#allocation2 + $0x1] sm:$0xff]  ;;  %1723 = vmatprep.mubr.bf16.mxu1 %v399_v17  ;;  %v9917_v23 = vld [vmem:[%s12653_s1 + $0x78] sm:$0xff]   ;;  %s8316_s7 = sshll.u32 %s12669_s13, 6 }
  0x16   : > { %188 = vst [vmem:[#allocation2 + $0x80] sm:$0xff] %v10130_v2  ;;  %189 = vst [vmem:[#allocation2 + $0x88] sm:$0x3] %v10130_v2  ;;  %v356_v13 = vld [vmem:[#allocation2 + $0x9] sm:$0xff]  ;;  %v250_v24 = vld [vmem:[%s10198_s8 + $0xc0] sm:$0xff]  ;;  %s12398_s10 = scalar_lea.vmem %s12655_s3, %s8316_s7 }
  0x17   : > { %190 = vst [vmem:[#allocation2 + $0x90] sm:$0xff] %v10130_v2  ;;  %191 = vst [vmem:[#allocation2 + $0x98] sm:$0xff] %v10130_v2  ;;  %8322 = vmatpush3.bf16.msra.mxu0 %v9908_v6  ;;  %9887 = vmatpush3.bf16.msra.mxu1 %v9908_v6  ;;  %v387_v15 = vpack.c.bf16 %v356_v13, %v355_v12  ;;  %v227_v22 = vld [vmem:[%s10198_s8 + $0x8] sm:$0xff]  ;;  %v9918_v26 = vld [vmem:[%s12653_s1 + $0x38] sm:$0xff]  }
  0x18   : > { %192 = vst [vmem:[#allocation2 + $0xa0] sm:$0x3] %v10130_v2  ;;  %193 = vst [vmem:[#allocation2 + $0xa8] sm:$0xff] %v10130_v2  ;;  %8323 = vmatprep.subr.bf16.mxu0 %v9909_v7  ;;  %9880 = vmatprep.subr.bf16.mxu1 %v9909_v7  ;;  %v251_v25 = vld [vmem:[%s10198_s8 + $0xc8] sm:$0xff]  ;;  %v9919_v28 = vld [vmem:[%s12653_s1 + $0xc0] sm:$0xff]   ;;  %v10244_v35 = vpack.c.bf16 %v227_v22, %v226_v21 }
  0x19   : > { %194 = vst [vmem:[#allocation2 + $0xb0] sm:$0xff] %v10130_v2  ;;  %195 = vst [vmem:[#allocation2 + $0xb8] sm:$0x3] %v10130_v2  ;;  %1627 = vmatprep.mubr.bf16.mxu0 %v387_v15  ;;  %v9920_v30 = vld [vmem:[%s12653_s1 + $0x140] sm:$0xff]   ;;  %v9923_v34 = vld [vmem:[%s12653_s1 + $0xc8] sm:$0xff]   ;;  %v400_v39 = vpack.c.bf16 %v251_v25, %v250_v24 }
  0x1a   : > { %196 = vst [vmem:[#allocation2 + $0xc0] sm:$0xff] %v10130_v2  ;;  %197 = vst [vmem:[#allocation2 + $0xc8] sm:$0xff] %v10130_v2  ;;  %v9921_v32 = vld [vmem:[%s12653_s1 + $0x80] sm:$0xff]   ;;  %v9928_v36 = vld [vmem:[%s12653_s1 + $0x148] sm:$0xff]  }
  0x1b   : > { %198 = vst [vmem:[#allocation2 + $0xd0] sm:$0x3] %v10130_v2  ;;  %199 = vst [vmem:[#allocation2 + $0xd8] sm:$0xff] %v10130_v2  ;;  %8324 = vmatpush3.bf16.msra.mxu0 %v9910_v8  ;;  %9888 = vmatpush3.bf16.msra.mxu1 %v9910_v8  ;;  %v9922_v33 = vld [vmem:[%s12653_s1 + $0x100] sm:$0xff]   ;;  %v228_v37 = vld [vmem:[%s10198_s8 + $0x10] sm:$0xff] }
  0x1c   : > { %200 = vst [vmem:[#allocation2 + $0xe0] sm:$0xff] %v10130_v2  ;;  %201 = vst [vmem:[#allocation2 + $0xe8] sm:$0x3] %v10130_v2  ;;  %8325 = vmatprep.subr.bf16.mxu0 %v9911_v9  ;;  %9881 = vmatprep.subr.bf16.mxu1 %v9911_v9  ;;  %v9924_v38 = vld [vmem:[%s12653_s1 + $0x88] sm:$0xff]   ;;  %v229_v43 = vld [vmem:[%s10198_s8 + $0x18] sm:$0xff] }
  0x1d   : > { %202 = vst [vmem:[#allocation2 + $0xf0] sm:$0xff] %v10130_v2  ;;  %203 = vst [vmem:[#allocation2 + $0xf8] sm:$0xff] %v10130_v2  ;;  %v9930_v42 = vld [vmem:[%s12653_s1 + $0x108] sm:$0xff]   ;;  %v252_v44 = vld [vmem:[%s10198_s8 + $0xd0] sm:$0xff]  ;;  %v10274_v56 = vpack.c.bf16 %v229_v43, %v228_v37 }
  0x1e   : > { %204 = vst [vmem:[#allocation2 + $0x100] sm:$0x3] %v10130_v2  ;;  %205 = vst [vmem:[#allocation2 + $0x108] sm:$0xff] %v10130_v2  ;;  %v253_v45 = vld [vmem:[%s10198_s8 + $0xd8] sm:$0xff]  ;;  %v9925_v49 = vld [vmem:[%s12653_s1 + $0xd0] sm:$0xff]  }
  0x1f   : > { %206 = vst [vmem:[#allocation2 + $0x110] sm:$0xff] %v10130_v2  ;;  %207 = vst [vmem:[#allocation2 + $0x118] sm:$0x3] %v10130_v2  ;;  %8326 = vmatpush3.bf16.msra.mxu0 %v9912_v10  ;;  %9889 = vmatpush3.bf16.msra.mxu1 %v9912_v10  ;;  %v9926_v50 = vld [vmem:[%s12653_s1 + $0x90] sm:$0xff]   ;;  %v230_v53 = vld [vmem:[%s10198_s8 + $0x20] sm:$0xff]  ;;  %v401_v59 = vpack.c.bf16 %v253_v45, %v252_v44 }
  0x20   : > { %208 = vst [vmem:[#allocation2 + $0x120] sm:$0xff] %v10130_v2  ;;  %209 = vst [vmem:[#allocation2 + $0x128] sm:$0xff] %v10130_v2  ;;  %8327 = vmatprep.subr.bf16.mxu0 %v9913_v11  ;;  %9882 = vmatprep.subr.bf16.mxu1 %v9913_v11  ;;  %v231_v54 = vld [vmem:[%s10198_s8 + $0x28] sm:$0xff]  ;;  %v254_v55 = vld [vmem:[%s10198_s8 + $0xe0] sm:$0xff] }
  0x21   : > { %210 = vst [vmem:[#allocation2 + $0x130] sm:$0x3] %v10130_v2  ;;  %211 = vst [vmem:[#allocation2 + $0x138] sm:$0xff] %v10130_v2  ;;  %v255_v57 = vld [vmem:[%s10198_s8 + $0xe8] sm:$0xff]  ;;  %v9927_v58 = vld [vmem:[%s12653_s1 + $0xd8] sm:$0xff]   ;;  %v10302_v7 = vpack.c.bf16 %v231_v54, %v230_v53 }
  0x22   : > { %212 = vst [vmem:[#allocation2 + $0x140] sm:$0xff] %v10130_v2  ;;  %213 = vst [vmem:[#allocation2 + $0x148] sm:$0x3] %v10130_v2  ;;  %v9929_v60 = vld [vmem:[%s12653_s1 + $0x98] sm:$0xff]   ;;  %v9931_v0 = vld [vmem:[%s12653_s1 + $0xe0] sm:$0xff]   ;;  %v402_v9 = vpack.c.bf16 %v255_v57, %v254_v55 }
  0x23   : > { %214 = vst [vmem:[#allocation2 + $0x150] sm:$0xff] %v10130_v2  ;;  %215 = vst [vmem:[#allocation2 + $0x158] sm:$0xff] %v10130_v2  ;;  %8328 = vmatpush3.bf16.msra.mxu0 %v9914_v18  ;;  %9890 = vmatpush3.bf16.msra.mxu1 %v9914_v18  ;;  %v9936_v1 = vld [vmem:[%s12653_s1 + $0x150] sm:$0xff]   ;;  %v9932_v6 = vld [vmem:[%s12653_s1 + $0xa0] sm:$0xff]  }
  0x24   : > { %216 = vst [vmem:[#allocation2 + $0x160] sm:$0x3] %v10130_v2  ;;  %217 = vst [vmem:[#allocation2 + $0x168] sm:$0xff] %v10130_v2  ;;  %8329 = vmatprep.subr.bf16.mxu0 %v9915_v19  ;;  %9883 = vmatprep.subr.bf16.mxu1 %v9915_v19  ;;  %v9938_v3 = vld [vmem:[%s12653_s1 + $0x110] sm:$0xff]   ;;  %v9933_v8 = vld [vmem:[%s12653_s1 + $0xe8] sm:$0xff]  }
  0x25   : > { %218 = vst [vmem:[#allocation2 + $0x170] sm:$0xff] %v10130_v2  ;;  %219 = vst [vmem:[#allocation2 + $0x178] sm:$0x3] %v10130_v2  ;;  %v232_v10 = vld [vmem:[%s10198_s8 + $0x30] sm:$0xff]  ;;  %v233_v11 = vld [vmem:[%s10198_s8 + $0x38] sm:$0xff] }
  0x26   : > { %220 = vst [vmem:[#allocation2 + $0x180] sm:$0xff] %v10130_v2  ;;  %221 = vst [vmem:[#allocation2 + $0x188] sm:$0xff] %v10130_v2  ;;  %v9934_v12 = vld [vmem:[%s12653_s1 + $0xa8] sm:$0xff]   ;;  %v9941_v17 = vld [vmem:[%s12653_s1 + $0x158] sm:$0xff]  }
  0x27   : > { %222 = vst [vmem:[#allocation2 + $0x190] sm:$0x3] %v10130_v2  ;;  %223 = vst [vmem:[#allocation2 + $0x198] sm:$0xff] %v10130_v2  ;;  %8330 = vmatpush3.bf16.msra.mxu0 %v9916_v20  ;;  %9891 = vmatpush3.bf16.msra.mxu1 %v9916_v20  ;;  %v9942_v18 = vld [vmem:[%s12653_s1 + $0x118] sm:$0xff]   ;;  %v234_v19 = vld [vmem:[%s10198_s8 + $0x40] sm:$0xff] }
  0x28   : > { %224 = vst [vmem:[#allocation2 + $0x1a0] sm:$0xff] %v10130_v2  ;;  %225 = vst [vmem:[#allocation2 + $0x1a8] sm:$0x3] %v10130_v2  ;;  %8331 = vmatprep.subr.bf16.mxu0 %v9917_v23  ;;  %9884 = vmatprep.subr.bf16.mxu1 %v9917_v23  ;;  %v235_v20 = vld [vmem:[%s10198_s8 + $0x48] sm:$0xff]  ;;  %v10330_v23 = vld [vmem:[%s10198_s8 + $0x58] sm:$0xff] }
  0x29   : > { %281 = vst [vmem:[#allocation2 + $0x121] sm:$0xff] %v248_v14  ;;  %282 = vst [vmem:[#allocation2 + $0x129] sm:$0xff] %v249_v16 }
  0x2a   : > { %259 = vst [vmem:[#allocation2 + $0x19] sm:$0xff] %v226_v21  ;;  %260 = vst [vmem:[#allocation2 + $0x21] sm:$0xff] %v227_v22  ;;  %v9935_v21 = vld [vmem:[%s12653_s1 + $0xf0] sm:$0xff]  }
  0x2b   : > { %283 = vst [vmem:[#allocation2 + $0x139] sm:$0xff] %v250_v24  ;;  %284 = vst [vmem:[#allocation2 + $0x141] sm:$0xff] %v251_v25  ;;  %8332 = vmatpush3.bf16.msra.mxu0 %v9918_v26  ;;  %9892 = vmatpush3.bf16.msra.mxu1 %v9918_v26  ;;  %v10327_v22 = vld [vmem:[%s10198_s8 + $0x50] sm:$0xff]  ;;  %v9943_v26 = vld [vmem:[%s12653_s1 + $0x160] sm:$0xff]  }
  0x2c   : > { %8429 = vmatprep.subr.bf16.mxu1 %v9919_v28  ;;  %8541 = vmatprep.subr.bf16.mxu0 %v9920_v30  ;;  %261 = vst [vmem:[#allocation2 + $0x31] sm:$0xff] %v228_v37  ;;  %262 = vst [vmem:[#allocation2 + $0x39] sm:$0xff] %v229_v43  ;;  %v10344_v28 = vpack.c.bf16 %v233_v11, %v232_v10  ;;  %v10350_v30 = vld [vmem:[%s10198_s8 + $0x60] sm:$0xff]  ;;  %v10359_v37 = vld [vmem:[%s10198_s8 + $0x68] sm:$0xff] }
  0x2d   : > { %285 = vst [vmem:[#allocation2 + $0x151] sm:$0xff] %v252_v44  ;;  %286 = vst [vmem:[#allocation2 + $0x159] sm:$0xff] %v253_v45  ;;  %v10377_v43 = vld [vmem:[%s10198_s8 + $0x78] sm:$0xff] }
  0x2e   : > { %1628 = vmatmul.mubr.bf16.vlgmr.msra.gmra.mrb[0].mxu0 %v10131_v46  ;;  %263 = vst [vmem:[#allocation2 + $0x49] sm:$0xff] %v230_v53  ;;  %264 = vst [vmem:[#allocation2 + $0x51] sm:$0xff] %v231_v54  ;;  %v10384_v46 = vld [vmem:[%s10198_s8 + $0x80] sm:$0xff]  ;;  %v9948_v53 = vld [vmem:[%s12653_s1 + $0x130] sm:$0xff]  }
  0x2f   : > { %8542 = vmatpush3.bf16.msra.mxu0 %v9922_v33  ;;  %1635 = vmatprep.mubr.bf16.mxu0 %v10244_v35  ;;  %287 = vst [vmem:[#allocation2 + $0x169] sm:$0xff] %v254_v55  ;;  %288 = vst [vmem:[#allocation2 + $0x171] sm:$0xff] %v255_v57  ;;  %v419_v33 = vld [vmem:[#allocation2 + $0x2] sm:$0xff]  ;;  %v10401_v54 = vld [vmem:[%s10198_s8 + $0x90] sm:$0xff] }
  0x30   : > { %v315_v27 = vld [vmem:[#allocation2 + $0x120] sm:$0xff]  ;;  %v316_v29 = vld [vmem:[#allocation2 + $0x128] sm:$0xff]  ;;  %8543 = vmatprep.subr.bf16.mxu0 %v9928_v36  ;;  %265 = vst [vmem:[#allocation2 + $0x61] sm:$0xff] %v232_v10  ;;  %266 = vst [vmem:[#allocation2 + $0x69] sm:$0xff] %v233_v11 }
  0x31   : > { %v10233_v31 = vpack.c.bf16 %v316_v29, %v315_v27  ;;  %v293_v40 = vld [vmem:[#allocation2 + $0x18] sm:$0xff]  ;;  %v294_v41 = vld [vmem:[#allocation2 + $0x20] sm:$0xff]  ;;  %267 = vst [vmem:[#allocation2 + $0x79] sm:$0xff] %v234_v19  ;;  %268 = vst [vmem:[#allocation2 + $0x81] sm:$0xff] %v235_v20 }
  0x32   : > { %v317_v47 = vld [vmem:[#allocation2 + $0x138] sm:$0xff]  ;;  %v318_v48 = vld [vmem:[#allocation2 + $0x140] sm:$0xff]  ;;  %v10267_v51 = vpack.c.bf16 %v294_v41, %v293_v40  ;;  %269 = vst [vmem:[#allocation2 + $0x91] sm:$0xff] %v10327_v22  ;;  %270 = vst [vmem:[#allocation2 + $0x99] sm:$0xff] %v10330_v23 }
  0x33   : > { %1724 = vmatmul.mubr.bf16.vlgmr.msra.gmra.mrb[0].mxu1 %v10233_v31  ;;  %v10269_v52 = vpack.c.bf16 %v318_v48, %v317_v47  ;;  %8544 = vmatpush3.bf16.msra.mxu0 %v9930_v42  ;;  %v295_v61 = vld [vmem:[#allocation2 + $0x30] sm:$0xff]  ;;  %v296_v62 = vld [vmem:[#allocation2 + $0x38] sm:$0xff]  ;;  %v9944_v36 = vld [vmem:[%s12653_s1 + $0x120] sm:$0xff]   ;;  %271 = vst [vmem:[#allocation2 + $0xa9] sm:$0xff] %v10350_v30  ;;  %v10386_v47 = vpack.c.bf16 %v235_v20, %v234_v19 }
  0x34   : > { %8430 = vmatpush3.bf16.msra.mxu1 %v9921_v32  ;;  %1731 = vmatprep.mubr.bf16.mxu1 %v400_v39  ;;  %v319_v63 = vld [vmem:[#allocation2 + $0x150] sm:$0xff]  ;;  %v320_v2 = vld [vmem:[#allocation2 + $0x158] sm:$0xff]  ;;  %v10295_v4 = vpack.c.bf16 %v296_v62, %v295_v61  ;;  %272 = vst [vmem:[#allocation2 + $0xb1] sm:$0xff] %v10359_v37  ;;  %v9946_v41 = vld [vmem:[%s12653_s1 + $0x128] sm:$0xff]  }
  0x35   : > { %8431 = vmatprep.subr.bf16.mxu1 %v9923_v34  ;;  %8545 = vmatprep.subr.bf16.mxu0 %v9936_v1  ;;  %v10297_v5 = vpack.c.bf16 %v320_v2, %v319_v63  ;;  %v297_v13 = vld [vmem:[#allocation2 + $0x48] sm:$0xff]  ;;  %v298_v14 = vld [vmem:[#allocation2 + $0x50] sm:$0xff]  ;;  %v9939_v29 = vld [vmem:[%s12653_s1 + $0xf8] sm:$0xff]   ;;  %274 = vst [vmem:[#allocation2 + $0xc9] sm:$0xff] %v10377_v43  ;;  %v10422_v63 = vpack.c.bf16 %v10330_v23, %v10327_v22 }
  0x36   : > { %1636 = vmatmul.mubr.bf16.gmra.mrb[4].mxu0 %v10267_v51  ;;  %v321_v15 = vld [vmem:[#allocation2 + $0x168] sm:$0xff]  ;;  %v322_v16 = vld [vmem:[#allocation2 + $0x170] sm:$0xff]  ;;  %v10333_v24 = vpack.c.bf16 %v298_v14, %v297_v13  ;;  %v9940_v32 = vld [vmem:[%s12653_s1 + $0xb8] sm:$0xff]   ;;  %275 = vst [vmem:[#allocation2 + $0xd9] sm:$0xff] %v10384_v46 }
  0x37   : > { %1643 = vmatprep.mubr.bf16.mxu0 %v10274_v56  ;;  %8546 = vmatpush3.bf16.msra.mxu0 %v9938_v3  ;;  %v10335_v25 = vpack.c.bf16 %v322_v16, %v321_v15  ;;  %v9937_v27 = vld [vmem:[%s12653_s1 + $0xb0] sm:$0xff]   ;;  %v299_v39 = vld [vmem:[#allocation2 + $0x60] sm:$0xff]  ;;  %v300_v40 = vld [vmem:[#allocation2 + $0x68] sm:$0xff]  ;;  %277 = vst [vmem:[#allocation2 + $0xf1] sm:$0xff] %v10401_v54  ;;  %v10457_v15 = vpack.c.bf16 %v10359_v37, %v10350_v30 }
  0x38   : > { %8432 = vmatpush3.bf16.msra.mxu1 %v9924_v38  ;;  %8547 = vmatprep.subr.bf16.mxu0 %v9941_v17  ;;  %v420_v34 = vld [vmem:[#allocation2 + $0xa] sm:$0xff]  ;;  %v10379_v44 = vpack.c.bf16 %v300_v40, %v299_v39  ;;  %v301_v55 = vld [vmem:[#allocation2 + $0x78] sm:$0xff]  ;;  %v302_v57 = vld [vmem:[#allocation2 + $0x80] sm:$0xff] }
  0x39   : > { %8433 = vmatprep.subr.bf16.mxu1 %v9925_v49  ;;  %v9945_v38 = vld [vmem:[%s12653_s1 + $0x168] sm:$0xff]   ;;  %v10374_v42 = vld [vmem:[%s10198_s8 + $0x70] sm:$0xff]  ;;  %v451_v45 = vpack.c.bf16 %v420_v34, %v419_v33  ;;  %v421_v49 = vld [vmem:[#allocation2 + $0x1a] sm:$0xff] }
  0x3a   : > { %273 = vst [vmem:[#allocation2 + $0xc1] sm:$0xff] %v10374_v42  ;;  %v10389_v48 = vld [vmem:[%s10198_s8 + $0x88] sm:$0xff]  ;;  %v9950_v62 = vld [vmem:[%s12653_s1 + $0x138] sm:$0xff]   ;;  %v9951_v2 = vld [vmem:[%s12653_s1 + $0x1c0] sm:$0xff]  }
  0x3b   : > { %1732 = vmatmul.mubr.bf16.gmra.mrb[4].mxu1 %v10269_v52  ;;  %8548 = vmatpush3.bf16.msra.mxu0 %v9942_v18  ;;  %276 = vst [vmem:[#allocation2 + $0xe1] sm:$0xff] %v10389_v48  ;;  %v10428_v1 = vld [vmem:[%s10198_s8 + $0xa8] sm:$0xff]  ;;  %v423_v3 = vld [vmem:[#allocation2 + $0x32] sm:$0xff]  ;;  %v424_v10 = vld [vmem:[#allocation2 + $0x3a] sm:$0xff] }
  0x3c   : > { %8434 = vmatpush3.bf16.msra.mxu1 %v9926_v50  ;;  %1739 = vmatprep.mubr.bf16.mxu1 %v401_v59  ;;  %v422_v50 = vld [vmem:[#allocation2 + $0x22] sm:$0xff]  ;;  %v9949_v59 = vld [vmem:[%s12653_s1 + $0x178] sm:$0xff]   ;;  %280 = vst [vmem:[#allocation2 + $0x111] sm:$0xff] %v10428_v1  ;;  %v10449_v13 = vpack.c.bf16 %v424_v10, %v423_v3  ;;  %v425_v17 = vld [vmem:[#allocation2 + $0x4a] sm:$0xff] }
  0x3d   : > { %8435 = vmatprep.subr.bf16.mxu1 %v9927_v58  ;;  %8549 = vmatprep.subr.bf16.mxu0 %v9943_v26  ;;  %v10406_v58 = vld [vmem:[%s10198_s8 + $0x98] sm:$0xff]  ;;  %v10415_v61 = vpack.c.bf16 %v422_v50, %v421_v49  ;;  %v10445_v11 = vld [vmem:[%s12653_s1 + $0x200] sm:$0xff]   ;;  %v9954_v14 = vld [vmem:[%s12653_s1 + $0x1c8] sm:$0xff]  }
  0x3e   : > { %1644 = vmatmul.mubr.bf16.gmra.mrb[8].mxu0 %v10295_v4  ;;  %278 = vst [vmem:[#allocation2 + $0xf9] sm:$0xff] %v10406_v58  ;;  %v9955_v16 = vld [vmem:[%s12653_s1 + $0x188] sm:$0xff]   ;;  %v426_v18 = vld [vmem:[#allocation2 + $0x52] sm:$0xff]  ;;  %v429_v50 = vld [vmem:[#allocation2 + $0x7a] sm:$0xff] }
  0x3f   : > { %1651 = vmatprep.mubr.bf16.mxu0 %v10302_v7  ;;  %8550 = vmatpush3.bf16.msra.mxu0 %v9944_v36  ;;  %v305_v19 = vld [vmem:[#allocation2 + $0xa8] sm:$0xff]  ;;  %v306_v20 = vld [vmem:[#allocation2 + $0xb0] sm:$0xff]  ;;  %v10474_v26 = vpack.c.bf16 %v426_v18, %v425_v17  ;;  %v9961_v30 = vld [vmem:[%s12653_s1 + $0x198] sm:$0xff]  }
  0x40   : > { %8436 = vmatpush3.bf16.msra.mxu1 %v9929_v60  ;;  %8551 = vmatprep.subr.bf16.mxu0 %v9945_v38  ;;  %v10413_v60 = vpack.c.bf16 %v302_v57, %v301_v55  ;;  %v9958_v22 = vld [vmem:[%s12653_s1 + $0x190] sm:$0xff]   ;;  %v10472_v23 = vpack.c.bf16 %v306_v20, %v305_v19  ;;  %v427_v33 = vld [vmem:[#allocation2 + $0x62] sm:$0xff]  ;;  %v9969_v57 = vld [vmem:[%s12653_s1 + $0x1f8] sm:$0xff]  }
  0x41   : > { %8437 = vmatprep.subr.bf16.mxu1 %v9931_v0  ;;  %v10425_v0 = vld [vmem:[%s10198_s8 + $0xa0] sm:$0xff]  ;;  %v428_v34 = vld [vmem:[#allocation2 + $0x6a] sm:$0xff]  ;;  %v9970_v3 = vld [vmem:[%s12653_s1 + $0x1b8] sm:$0xff]  }
  0x42   : > { %279 = vst [vmem:[#allocation2 + $0x109] sm:$0xff] %v10425_v0  ;;  %v9962_v36 = vld [vmem:[%s12653_s1 + $0x1e0] sm:$0xff]   ;;  %v308_v37 = vld [vmem:[#allocation2 + $0xc8] sm:$0xff]  ;;  %v9968_v55 = vld [vmem:[%s12653_s1 + $0x1b0] sm:$0xff]  }
  0x43   : > { %1740 = vmatmul.mubr.bf16.gmra.mrb[8].mxu1 %v10297_v5  ;;  %8552 = vmatpush3.bf16.msra.mxu0 %v9946_v41  ;;  %v9964_v38 = vld [vmem:[%s12653_s1 + $0x1a0] sm:$0xff]   ;;  %v9965_v39 = vld [vmem:[%s12653_s1 + $0x1e8] sm:$0xff]   ;;  %v10501_v41 = vpack.c.bf16 %v428_v34, %v427_v33  ;;  %v434_v18 = vld [vmem:[#allocation2 + $0xb2] sm:$0xff] }
  0x44   : > { %8438 = vmatpush3.bf16.msra.mxu1 %v9932_v6  ;;  %1747 = vmatprep.mubr.bf16.mxu1 %v402_v9  ;;  %v9952_v6 = vld [vmem:[%s12653_s1 + $0x180] sm:$0xff]   ;;  %v304_v9 = vld [vmem:[#allocation2 + $0x98] sm:$0xff]  ;;  %v9966_v49 = vld [vmem:[%s12653_s1 + $0x1a8] sm:$0xff]  }
  0x45   : > { %8439 = vmatprep.subr.bf16.mxu1 %v9933_v8  ;;  %v303_v8 = vld [vmem:[#allocation2 + $0x90] sm:$0xff]  ;;  %v312_v10 = vld [vmem:[#allocation2 + $0xf8] sm:$0xff]  ;;  %v438_v33 = vld [vmem:[#allocation2 + $0xe2] sm:$0xff] }
  0x46   : > { %1652 = vmatmul.mubr.bf16.gmra.mrb[12].mxu0 %v10333_v24  ;;  %v433_v17 = vld [vmem:[#allocation2 + $0xaa] sm:$0xff] }
  0x47   : > { %1659 = vmatprep.mubr.bf16.mxu0 %v10344_v28  ;;  %v9959_v34 = vld [vmem:[%s12653_s1 + $0x210] sm:$0xff]  }
  0x48   : > { %8440 = vmatpush3.bf16.msra.mxu1 %v9934_v12  ;;  %v10447_v12 = vpack.c.bf16 %v304_v9, %v303_v8  ;;  %v432_v8 = vld [vmem:[#allocation2 + $0x9a] sm:$0xff]  ;;  %v311_v9 = vld [vmem:[#allocation2 + $0xf0] sm:$0xff] }
  0x49   : > { %8441 = vmatprep.subr.bf16.mxu1 %v9935_v21  ;;  %v9957_v21 = vld [vmem:[%s12653_s1 + $0x1d0] sm:$0xff]  }
  0x4a   : > { %v314_v19 = vld [vmem:[#allocation2 + $0x110] sm:$0xff] }
  0x4b   : > { %1748 = vmatmul.mubr.bf16.gmra.mrb[12].mxu1 %v10335_v25 }
  0x4c   : > { %8442 = vmatpush3.bf16.msra.mxu1 %v9937_v27  ;;  %1788 = vmatprep.mubr.bf16.mxu1 %v10267_v51  ;;  %v9947_v51 = vld [vmem:[%s12653_s1 + $0x170] sm:$0xff]   ;;  %v10478_v27 = vpack.c.bf16 %v10377_v43, %v10374_v42  ;;  %v10506_v43 = vpack.c.bf16 %v10389_v48, %v10384_v46  ;;  %v309_v46 = vld [vmem:[#allocation2 + $0xd8] sm:$0xff]  ;;  %v310_v48 = vld [vmem:[#allocation2 + $0xe0] sm:$0xff] }
  0x4d   : > { %8443 = vmatprep.subr.bf16.mxu1 %v9939_v29  ;;  %8553 = vmatprep.subr.bf16.mxu0 %v9947_v51  ;;  %v9960_v29 = vld [vmem:[%s12653_s1 + $0x1d8] sm:$0xff]   ;;  %v256_v42 = vld [vmem:[%s10198_s8 + $0xf0] sm:$0xff]  ;;  %v430_v51 = vld [vmem:[#allocation2 + $0x82] sm:$0xff] }
  0x4e   : > { %1660 = vmatmul.mubr.bf16.gmra.mrb[16].mxu0 %v10379_v44  ;;  %289 = vst [vmem:[#allocation2 + $0x181] sm:$0xff] %v256_v42 }
  0x4f   : > { %1667 = vmatprep.mubr.bf16.mxu0 %v10386_v47  ;;  %8554 = vmatpush3.bf16.msra.mxu0 %v9948_v53  ;;  %v9967_v53 = vld [vmem:[%s12653_s1 + $0x1f0] sm:$0xff]  }
  0x50   : > { %8444 = vmatpush3.bf16.msra.mxu1 %v9940_v32  ;;  %8555 = vmatprep.subr.bf16.mxu0 %v9949_v59  ;;  %v307_v32 = vld [vmem:[#allocation2 + $0xc0] sm:$0xff]  ;;  %v10525_v59 = vpack.c.bf16 %v310_v48, %v309_v46 }
  0x51   : > { %8653 = vmatprep.subr.bf16.mxu1 %v9951_v2  ;;  %v10499_v40 = vpack.c.bf16 %v308_v37, %v307_v32  ;;  %v10531_v2 = vpack.c.bf16 %v10406_v58, %v10401_v54  ;;  %v10540_v54 = vpack.c.bf16 %v312_v10, %v311_v9  ;;  %v437_v32 = vld [vmem:[#allocation2 + $0xda] sm:$0xff]  ;;  %v446_v48 = vld [vmem:[#allocation2 + $0x142] sm:$0xff]  ;;  %v450_v10 = vld [vmem:[#allocation2 + $0x172] sm:$0xff] }
  0x52   : > { %v440_v37 = vld [vmem:[#allocation2 + $0xfa] sm:$0xff] }
  0x53   : > { %1789 = vmatmul.mubr.bf16.vlgmr.msra.gmra.mrb[16].mxu1 %v451_v45  ;;  %8556 = vmatpush3.bf16.msra.mxu0 %v9950_v62  ;;  %v257_v45 = vld [vmem:[%s10198_s8 + $0xf8] sm:$0xff]  ;;  %v10527_v62 = vpack.c.bf16 %v430_v51, %v429_v50  ;;  %v443_v51 = vld [vmem:[#allocation2 + $0x122] sm:$0xff] }
  0x54   : > { %1796 = vmatprep.mubr.bf16.mxu1 %v10295_v4  ;;  %8654 = vmatpush3.bf16.msra.mxu1 %v9952_v6  ;;  %290 = vst [vmem:[#allocation2 + $0x189] sm:$0xff] %v257_v45  ;;  %v431_v6 = vld [vmem:[#allocation2 + $0x92] sm:$0xff]  ;;  %v445_v46 = vld [vmem:[#allocation2 + $0x13a] sm:$0xff] }
  0x55   : > { %9733 = vmatprep.subr.bf16.mxu0 %v10445_v11  ;;  %8655 = vmatprep.subr.bf16.mxu1 %v9954_v14  ;;  %v10542_v58 = vpack.c.bf16 %v432_v8, %v431_v6  ;;  %v10546_v14 = vpack.c.bf16 %v10428_v1, %v10425_v0  ;;  %v435_v0 = vld [vmem:[#allocation2 + $0xc2] sm:$0xff]  ;;  %v436_v1 = vld [vmem:[#allocation2 + $0xca] sm:$0xff]  ;;  %v9974_v50 = vld [vmem:[%s12653_s1 + $0x238] sm:$0xff]  }
  0x56   : > { %1668 = vmatmul.mubr.bf16.gmra.mrb[20].mxu0 %v10413_v60 }
  0x57   : > { %1675 = vmatprep.mubr.bf16.mxu0 %v10422_v63 }
  0x58   : > { %8656 = vmatpush3.bf16.msra.mxu1 %v9955_v16  ;;  %v313_v16 = vld [vmem:[#allocation2 + $0x108] sm:$0xff] }
  0x59   : > { %8657 = vmatprep.subr.bf16.mxu1 %v9957_v21  ;;  %v10552_v20 = vpack.c.bf16 %v314_v19, %v313_v16  ;;  %v10554_v21 = vpack.c.bf16 %v434_v18, %v433_v17 }
  0x5b   : > { %1797 = vmatmul.mubr.bf16.gmra.mrb[20].mxu1 %v10415_v61  ;;  %v514_v6 = vld [vmem:[#allocation2 + $0x188] sm:$0xff] }
  0x5c   : > { %1804 = vmatprep.mubr.bf16.mxu1 %v10333_v24  ;;  %8658 = vmatpush3.bf16.msra.mxu1 %v9958_v22  ;;  %v10556_v22 = vpack.c.bf16 %v257_v45, %v256_v42  ;;  %v442_v42 = vld [vmem:[#allocation2 + $0x112] sm:$0xff]  ;;  %v641_v18 = vld [vmem:[#allocation2 + $0x182] sm:$0xff]  ;;  %v642_v19 = vld [vmem:[#allocation2 + $0x18a] sm:$0xff] }
  0x5d   : > { %8659 = vmatprep.subr.bf16.mxu1 %v9960_v29  ;;  %v10562_v29 = vpack.c.bf16 %v436_v1, %v435_v0  ;;  %v9973_v45 = vld [vmem:[%s12653_s1 + $0x230] sm:$0xff]   ;;  %v10672_v1 = vpack.c.bf16 %v642_v19, %v641_v18  ;;  %v696_v18 = vld [vmem:[#allocation2 + $0x120] sm:$0xff]  ;;  %v697_v19 = vld [vmem:[#allocation2 + $0x128] sm:$0xff] }
  0x5e   : > { %1676 = vmatmul.mubr.bf16.gmra.mrb[24].mxu0 %v10447_v12 }
  0x5f   : > { %1683 = vmatprep.mubr.bf16.mxu0 %v10457_v15 }
  0x60   : > { %8660 = vmatpush3.bf16.msra.mxu1 %v9961_v30  ;;  %v9956_v30 = vld [vmem:[%s12653_s1 + $0x208] sm:$0xff]  }
  0x61   : > { %8661 = vmatprep.subr.bf16.mxu1 %v9962_v36  ;;  %v9963_v36 = vld [vmem:[%s12653_s1 + $0x218] sm:$0xff]  }
  0x63   : > { %1805 = vmatmul.mubr.bf16.gmra.mrb[24].mxu1 %v10449_v13 }
  0x64   : > { %1812 = vmatprep.mubr.bf16.mxu1 %v10379_v44  ;;  %8662 = vmatpush3.bf16.msra.mxu1 %v9964_v38  ;;  %v9972_v38 = vld [vmem:[%s12653_s1 + $0x228] sm:$0xff]  }
  0x65   : > { %8663 = vmatprep.subr.bf16.mxu1 %v9965_v39  ;;  %v441_v39 = vld [vmem:[#allocation2 + $0x10a] sm:$0xff] }
  0x66   : > { %1684 = vmatmul.mubr.bf16.gmra.mrb[28].mxu0 %v10472_v23 }
  0x67   : > { %1691 = vmatprep.mubr.bf16.mxu0 %v10478_v27 }
  0x68   : > { %8664 = vmatpush3.bf16.msra.mxu1 %v9966_v49  ;;  %v10599_v49 = vpack.c.bf16 %v442_v42, %v441_v39 }
  0x69   : > { %8665 = vmatprep.subr.bf16.mxu1 %v9967_v53  ;;  %v444_v53 = vld [vmem:[#allocation2 + $0x12a] sm:$0xff] }
  0x6b   : > { %1813 = vmatmul.mubr.bf16.gmra.mrb[28].mxu1 %v10474_v26 }
  0x6c   : > { %1820 = vmatprep.mubr.bf16.mxu1 %v10413_v60  ;;  %8666 = vmatpush3.bf16.msra.mxu1 %v9968_v55  ;;  %v10614_v55 = vpack.c.bf16 %v446_v48, %v445_v46 }
  0x6d   : > { %8667 = vmatprep.subr.bf16.mxu1 %v9969_v57  ;;  %v448_v57 = vld [vmem:[#allocation2 + $0x15a] sm:$0xff] }
  0x6e   : > { %1692 = vmatmul.mubr.bf16.gmra.mrb[32].mxu0 %v10499_v40 }
  0x6f   : > { %1699 = vmatprep.mubr.bf16.mxu0 %v10506_v43 }
  0x70   : > { %8668 = vmatpush3.bf16.msra.mxu1 %v9970_v3  ;;  %v513_v3 = vld [vmem:[#allocation2 + $0x180] sm:$0xff] }
  0x71   : > { %v10622_v9 = vpack.c.bf16 %v514_v6, %v513_v3 }
  0x73   : > { %1821 = vmatmul.mubr.bf16.gmra.mrb[32].mxu1 %v10501_v41 }
  0x74   : > { %1828 = vmatprep.mubr.bf16.mxu1 %v10447_v12 }
  0x76   : > { %1700 = vmatmul.mubr.bf16.gmra.mrb[36].mxu0 %v10525_v59 }
  0x77   : > { %1707 = vmatprep.mubr.bf16.mxu0 %v10531_v2 }
  0x7b   : > { %1829 = vmatmul.mubr.bf16.gmra.mrb[36].mxu1 %v10527_v62 }
  0x7c   : > { %1836 = vmatprep.mubr.bf16.mxu1 %v10472_v23 }
  0x7e   : > { %1708 = vmatmul.mubr.bf16.gmra.mrb[40].mxu0 %v10540_v54 }
  0x7f   : > { %1715 = vmatprep.mubr.bf16.mxu0 %v10546_v14 }
  0x83   : > { %1837 = vmatmul.mubr.bf16.gmra.mrb[40].mxu1 %v10542_v58 }
  0x84   : > { %1844 = vmatprep.mubr.bf16.mxu1 %v10499_v40 }
  0x86   : > { %1716 = vmatmul.mubr.bf16.gmra.mrb[44].mxu0 %v10552_v20 }
  0x87   : > { %1949 = vmatprep.mubr.bf16.mxu0 %v10415_v61  ;;  %v10575_v61 = vpack.c.bf16 %v438_v33, %v437_v32  ;;  %v805_v32 = vld [vmem:[#allocation2 + $0x3a] sm:$0xff] }
  0x8b   : > { %1845 = vmatmul.mubr.bf16.gmra.mrb[44].mxu1 %v10554_v21 }
  0x8c   : > { %1852 = vmatprep.mubr.bf16.mxu1 %v10525_v59 }
  0x8e   : > { %1950 = vmatmul.mubr.bf16.vlgmr.msra.gmra.mrb[48].mxu0 %v10244_v35  ;;  %v439_v35 = vld [vmem:[#allocation2 + $0xf2] sm:$0xff] }
  0x8f   : > { %9734 = vmatpush3.bf16.msra.mxu0 %v10445_v11  ;;  %1957 = vmatprep.mubr.bf16.mxu0 %v10449_v13  ;;  %v9971_v11 = vld [vmem:[%s12653_s1 + $0x220] sm:$0xff]   ;;  %v10587_v13 = vpack.c.bf16 %v440_v37, %v439_v35 }
  0x90   : > { %9735 = vmatprep.subr.bf16.mxu0 %v9956_v30 }
  0x93   : > { %1853 = vmatmul.mubr.bf16.gmra.mrb[48].mxu1 %v10562_v29  ;;  %9736 = vmatpush3.bf16.msra.mxu0 %v9956_v30  ;;  %v804_v30 = vld [vmem:[#allocation2 + $0x32] sm:$0xff] }
  0x94   : > { %1860 = vmatprep.mubr.bf16.mxu1 %v10540_v54  ;;  %9737 = vmatprep.subr.bf16.mxu0 %v9959_v34 }
  0x96   : > { %1958 = vmatmul.mubr.bf16.gmra.mrb[52].mxu0 %v10274_v56 }
  0x97   : > { %1965 = vmatprep.mubr.bf16.mxu0 %v10474_v26  ;;  %9738 = vmatpush3.bf16.msra.mxu0 %v9959_v34 }
  0x98   : > { %9739 = vmatprep.subr.bf16.mxu0 %v9963_v36 }
  0x9b   : > { %1861 = vmatmul.mubr.bf16.gmra.mrb[52].mxu1 %v10575_v61  ;;  %9740 = vmatpush3.bf16.msra.mxu0 %v9963_v36 }
  0x9c   : > { %1868 = vmatprep.mubr.bf16.mxu1 %v10552_v20  ;;  %9741 = vmatprep.subr.bf16.mxu0 %v9971_v11 }
  0x9e   : > { %1966 = vmatmul.mubr.bf16.gmra.mrb[56].mxu0 %v10302_v7 }
  0x9f   : > { %1973 = vmatprep.mubr.bf16.mxu0 %v10501_v41  ;;  %9742 = vmatpush3.bf16.msra.mxu0 %v9971_v11 }
  0xa0   : > { %9743 = vmatprep.subr.bf16.mxu0 %v9972_v38 }
  0xa3   : > { %1869 = vmatmul.mubr.bf16.gmra.mrb[56].mxu1 %v10587_v13  ;;  %9744 = vmatpush3.bf16.msra.mxu0 %v9972_v38 }
  0xa4   : > { %1876 = vmatprep.mubr.bf16.mxu1 %v10233_v31  ;;  %9745 = vmatprep.subr.bf16.mxu0 %v9973_v45  ;;  %v10608_v31 = vpack.c.bf16 %v444_v53, %v443_v51 }
  0xa6   : > { %1974 = vmatmul.mubr.bf16.gmra.mrb[60].mxu0 %v10344_v28 }
  0xa7   : > { %1981 = vmatprep.mubr.bf16.mxu0 %v10527_v62  ;;  %9746 = vmatpush3.bf16.msra.mxu0 %v9973_v45 }
  0xa8   : > { %9747 = vmatprep.subr.bf16.mxu0 %v9974_v50 }
  0xab   : > { %1877 = vmatmul.mubr.bf16.gmra.mrb[60].mxu1 %v10599_v49  ;;  %9748 = vmatpush3.bf16.msra.mxu0 %v9974_v50 }
  0xac   : > { %1884 = vmatprep.mubr.bf16.mxu1 %v10269_v52  ;;  %v447_v52 = vld [vmem:[#allocation2 + $0x152] sm:$0xff] }
  0xad   : > { %v10620_v8 = vpack.c.bf16 %v448_v57, %v447_v52 }
  0xae   : > { %1982 = vmatmul.mubr.bf16.gmra.mrb[64].mxu0 %v10386_v47 }
  0xaf   : > { %1989 = vmatprep.mubr.bf16.mxu0 %v10542_v58 }
  0xb3   : > { %1885 = vmatmul.mubr.bf16.gmra.mrb[64].mxu1 %v10608_v31 }
  0xb4   : > { %1892 = vmatprep.mubr.bf16.mxu1 %v10297_v5  ;;  %v449_v5 = vld [vmem:[#allocation2 + $0x16a] sm:$0xff] }
  0xb5   : > { %v10628_v16 = vpack.c.bf16 %v450_v10, %v449_v5 }
  0xb6   : > { %1990 = vmatmul.mubr.bf16.gmra.mrb[68].mxu0 %v10422_v63 }
  0xb7   : > { %1997 = vmatprep.mubr.bf16.mxu0 %v10554_v21 }
  0xbb   : > { %1893 = vmatmul.mubr.bf16.gmra.mrb[68].mxu1 %v10614_v55 }
  0xbc   : > { %1900 = vmatprep.mubr.bf16.mxu1 %v10335_v25 }
  0xbe   : > { %1998 = vmatmul.mubr.bf16.gmra.mrb[72].mxu0 %v10457_v15 }
  0xbf   : > { %2005 = vmatprep.mubr.bf16.mxu0 %v10562_v29 }
  0xc3   : > { %1901 = vmatmul.mubr.bf16.gmra.mrb[72].mxu1 %v10620_v8 }
  0xc4   : > { %1908 = vmatprep.mubr.bf16.mxu1 %v10622_v9 }
  0xc6   : > { %2006 = vmatmul.mubr.bf16.gmra.mrb[76].mxu0 %v10478_v27 }
  0xc7   : > { %2013 = vmatprep.mubr.bf16.mxu0 %v10575_v61 }
  0xcb   : > { %1909 = vmatmul.mubr.bf16.gmra.mrb[76].mxu1 %v10628_v16 }
  0xcc   : > { %2110 = vmatprep.mubr.bf16.mxu1 %v10274_v56  ;;  %v569_v56 = vld [vmem:[#allocation2 + $0x121] sm:$0xff] }
  0xce   : > { %2014 = vmatmul.mubr.bf16.gmra.mrb[80].mxu0 %v10506_v43 }
  0xcf   : > { %2021 = vmatprep.mubr.bf16.mxu0 %v10587_v13 }
  0xd3   : > { %2111 = vmatmul.mubr.bf16.vlgmr.msra.gmra.mrb[80].mxu1 %v10295_v4  ;;  %v570_v4 = vld [vmem:[#allocation2 + $0x129] sm:$0xff] }
  0xd4   : > { %2118 = vmatprep.mubr.bf16.mxu1 %v10302_v7  ;;  %v10646_v25 = vpack.c.bf16 %v570_v4, %v569_v56  ;;  %v571_v7 = vld [vmem:[#allocation2 + $0x139] sm:$0xff] }
  0xd6   : > { %2022 = vmatmul.mubr.bf16.gmra.mrb[84].mxu0 %v10531_v2 }
  0xd7   : > { %2029 = vmatprep.mubr.bf16.mxu0 %v10599_v49 }
  0xdb   : > { %2119 = vmatmul.mubr.bf16.gmra.mrb[84].mxu1 %v10333_v24  ;;  %v572_v24 = vld [vmem:[#allocation2 + $0x141] sm:$0xff] }
  0xdc   : > { %2126 = vmatprep.mubr.bf16.mxu1 %v10344_v28  ;;  %v10652_v28 = vpack.c.bf16 %v572_v24, %v571_v7 }
  0xde   : > { %2030 = vmatmul.mubr.bf16.gmra.mrb[88].mxu0 %v10546_v14 }
  0xdf   : > { %2037 = vmatprep.mubr.bf16.mxu0 %v10608_v31 }
  0xe3   : > { %2127 = vmatmul.mubr.bf16.gmra.mrb[88].mxu1 %v10379_v44  ;;  %v573_v44 = vld [vmem:[#allocation2 + $0x151] sm:$0xff] }
  0xe4   : > { %2134 = vmatprep.mubr.bf16.mxu1 %v10386_v47  ;;  %v574_v47 = vld [vmem:[#allocation2 + $0x159] sm:$0xff] }
  0xe5   : > { %v10664_v17 = vpack.c.bf16 %v574_v47, %v573_v44 }
  0xe6   : > { %2038 = vmatmul.mubr.bf16.gmra.mrb[92].mxu0 %v10646_v25 }
  0xe7   : > { %2045 = vmatprep.mubr.bf16.mxu0 %v10614_v55 }
  0xeb   : > { %2135 = vmatmul.mubr.bf16.gmra.mrb[92].mxu1 %v10413_v60  ;;  %v9975_v60 = vld [vmem:[%s12653_s1 + $0x280] sm:$0xff]  }
  0xec   : > { %2142 = vmatprep.mubr.bf16.mxu1 %v10422_v63  ;;  %v9976_v63 = vld [vmem:[%s12653_s1 + $0x240] sm:$0xff]   ;;  %8789 = vmatprep.subr.bf16.mxu1 %v9975_v60 }
  0xed   : > { %8790 = vmatpush3.bf16.msra.mxu1 %v9976_v63 }
  0xee   : > { %2046 = vmatmul.mubr.bf16.gmra.mrb[96].mxu0 %v10652_v28 }
  0xef   : > { %2053 = vmatprep.mubr.bf16.mxu0 %v10620_v8 }
  0xf3   : > { %2143 = vmatmul.mubr.bf16.gmra.mrb[96].mxu1 %v10447_v12  ;;  %v575_v12 = vld [vmem:[#allocation2 + $0x169] sm:$0xff] }
  0xf4   : > { %2150 = vmatprep.mubr.bf16.mxu1 %v10457_v15  ;;  %v576_v15 = vld [vmem:[#allocation2 + $0x171] sm:$0xff] }
  0xf5   : > { %v10670_v0 = vpack.c.bf16 %v576_v15, %v575_v12 }
  0xf6   : > { %2054 = vmatmul.mubr.bf16.gmra.mrb[100].mxu0 %v10664_v17 }
  0xf7   : > { %2061 = vmatprep.mubr.bf16.mxu0 %v10628_v16 }
  0xfb   : > { %2151 = vmatmul.mubr.bf16.gmra.mrb[100].mxu1 %v10472_v23  ;;  %v9977_v23 = vld [vmem:[%s12653_s1 + $0x288] sm:$0xff]  }
  0xfc   : > { %2158 = vmatprep.mubr.bf16.mxu1 %v10478_v27  ;;  %v9978_v27 = vld [vmem:[%s12653_s1 + $0x248] sm:$0xff]   ;;  %8791 = vmatprep.subr.bf16.mxu1 %v9977_v23 }
  0xfd   : > { %8792 = vmatpush3.bf16.msra.mxu1 %v9978_v27 }
  0xfe   : > { %2062 = vmatmul.mubr.bf16.gmra.mrb[104].mxu0 %v10670_v0 }
  0xff   : > { %2069 = vmatprep.mubr.bf16.mxu0 %v10672_v1 }
 0x101   : > { %v8333_v33 = vpop.f32.mrb[0].mxu0 }
 0x102   : > { %v8334_v36 = vpop.f32.mrb[1].mxu0 }
 0x103   : > { %2159 = vmatmul.mubr.bf16.gmra.mrb[104].mxu1 %v10499_v40  ;;  %v10684_v40 = vadd.f32 %v8334_v36, %v8333_v33  ;;  %v8336_v37 = vpop.f32.mrb[2].mxu0  ;;  %v718_v33 = vpack.c.bf16 %v697_v19, %v696_v18 }
 0x104   : > { %2166 = vmatprep.mubr.bf16.mxu1 %v10506_v43  ;;  %v836_v43 = vpack.c.bf16 %v805_v32, %v804_v30  ;;  %v8337_v39 = vpop.f32.mrb[3].mxu0 }
 0x105   : > { %v10688_v45 = vadd.f32 %v8337_v39, %v8336_v37  ;;  %v9981_v39 = vld [vmem:[%s12653_s1 + $0x298] sm:$0xff]  }
 0x106   : > { %v8405_v34 = vpop.f32.mrb[0].mxu1  ;;  %2070 = vmatmul.mubr.bf16.gmra.mrb[108].mxu0 %v10556_v22 }
 0x107   : > { %v8406_v35 = vpop.f32.mrb[1].mxu1  ;;  %9749 = vmatprep.mubr.bf16.mxu0 %v836_v43 }
 0x108   : > { %v10686_v11 = vadd.f32 %v8406_v35, %v8405_v34  ;;  %v8408_v38 = vpop.f32.mrb[2].mxu1 }
 0x109   : > { %v8409_v42 = vpop.f32.mrb[3].mxu1  ;;  %v8339_v51 = vpop.f32.mrb[4].mxu0 }
 0x10a   : > { %v10690_v50 = vadd.f32 %v8409_v42, %v8408_v38  ;;  %v8340_v46 = vpop.f32.mrb[5].mxu0  ;;  %v699_v38 = vld [vmem:[#allocation2 + $0x140] sm:$0xff]  ;;  %v9982_v42 = vld [vmem:[%s12653_s1 + $0x258] sm:$0xff]  }
 0x10b   : > { %2167 = vmatmul.mubr.bf16.gmra.mrb[108].mxu1 %v10525_v59  ;;  %v10695_v52 = vadd.f32 %v8340_v46, %v8339_v51  ;;  %v8342_v57 = vpop.f32.mrb[6].mxu0  ;;  %v9979_v59 = vld [vmem:[%s12653_s1 + $0x290] sm:$0xff]   ;;  %v10745_v51 = vld [vmem:[%s12654_s2] ss:$0 sm:$0xff] }
 0x10c   : > { %2174 = vmatprep.mubr.bf16.mxu1 %v10531_v2  ;;  %v8343_v5 = vpop.f32.mrb[7].mxu0  ;;  %v9980_v2 = vld [vmem:[%s12653_s1 + $0x250] sm:$0xff]   ;;  %8793 = vmatprep.subr.bf16.mxu1 %v9979_v59 }
 0x10d   : > { %v10699_v56 = vadd.f32 %v8343_v5, %v8342_v57  ;;  %8794 = vmatpush3.bf16.msra.mxu1 %v9980_v2 }
 0x10e   : > { %v8411_v53 = vpop.f32.mrb[4].mxu1  ;;  %9750 = vmatmul.mubr.bf16.vlgmr.msra.gmra.mrb[112].mxu0 %v10474_v26  ;;  %8795 = vmatprep.subr.bf16.mxu1 %v9981_v39 }
 0x10f   : > { %v8412_v48 = vpop.f32.mrb[5].mxu1  ;;  %9753 = vmatprep.mubr.bf16.mxu0 %v10501_v41 }
 0x110   : > { %v10697_v3 = vadd.f32 %v8412_v48, %v8411_v53  ;;  %v8414_v6 = vpop.f32.mrb[6].mxu1  ;;  %v1630_v48 = vadd.f32 %v10684_v40, %v10745_v51  ;;  %v700_v40 = vld [vmem:[#allocation2 + $0x150] sm:$0xff] }
 0x111   : > { %v8415_v10 = vpop.f32.mrb[7].mxu1  ;;  %v8345_v7 = vpop.f32.mrb[8].mxu0  ;;  %8796 = vmatpush3.bf16.msra.mxu1 %v9982_v42 }
 0x112   : > { %v10701_v4 = vadd.f32 %v8415_v10, %v8414_v6  ;;  %v8346_v44 = vpop.f32.mrb[9].mxu0 }
 0x113   : > { %2175 = vmatmul.mubr.bf16.gmra.mrb[112].mxu1 %v10540_v54  ;;  %v10713_v54 = vadd.f32 %v8346_v44, %v8345_v7  ;;  %v8348_v26 = vpop.f32.mrb[10].mxu0  ;;  %v1633_v7 = vadd.f32 %v10688_v45, %v10745_v51 }
 0x114   : > { %2182 = vmatprep.mubr.bf16.mxu1 %v10546_v14  ;;  %v8349_v60 = vpop.f32.mrb[11].mxu0 }
 0x115   : > { %v10717_v12 = vadd.f32 %v8349_v60, %v8348_v26 }
 0x116   : > { %v8417_v24 = vpop.f32.mrb[8].mxu1  ;;  %9754 = vmatmul.mubr.bf16.gmra.mrb[116].mxu0 %v10527_v62 }
 0x117   : > { %v8418_v47 = vpop.f32.mrb[9].mxu1  ;;  %9757 = vmatprep.mubr.bf16.mxu0 %v10542_v58  ;;  %v698_v58 = vld [vmem:[#allocation2 + $0x138] sm:$0xff] }
 0x118   : > { %v10715_v14 = vadd.f32 %v8418_v47, %v8417_v24  ;;  %v8420_v41 = vpop.f32.mrb[10].mxu1 }
 0x119   : > { %v8421_v63 = vpop.f32.mrb[11].mxu1  ;;  %v8351_v23 = vpop.f32.mrb[12].mxu0 }
 0x11a   : > { %v10719_v15 = vadd.f32 %v8421_v63, %v8420_v41  ;;  %v8352_v30 = vpop.f32.mrb[13].mxu0  ;;  %v701_v41 = vld [vmem:[#allocation2 + $0x158] sm:$0xff] }
 0x11b   : > { %2183 = vmatmul.mubr.bf16.gmra.mrb[116].mxu1 %v10552_v20  ;;  %v10725_v34 = vadd.f32 %v8352_v30, %v8351_v23  ;;  %v8354_v36 = vpop.f32.mrb[14].mxu0  ;;  %v720_v19 = vpack.c.bf16 %v701_v41, %v700_v40  ;;  %v1638_v23 = vadd.f32 %v10695_v52, %v10745_v51 }
 0x11c   : > { %2190 = vmatprep.mubr.bf16.mxu1 %v10646_v25  ;;  %v8355_v20 = vpop.f32.mrb[15].mxu0 }
 0x11d   : > { %v10729_v62 = vadd.f32 %v8355_v20, %v8354_v36 }
 0x11e   : > { %v8423_v27 = vpop.f32.mrb[12].mxu1  ;;  %9758 = vmatmul.mubr.bf16.gmra.mrb[120].mxu0 %v10554_v21 }
 0x11f   : > { %v8424_v32 = vpop.f32.mrb[13].mxu1  ;;  %9761 = vmatprep.mubr.bf16.mxu0 %v10562_v29  ;;  %v719_v29 = vpack.c.bf16 %v699_v38, %v698_v58  ;;  %v703_v58 = vld [vmem:[#allocation2 + $0x170] sm:$0xff]  ;;  %v9984_v38 = vld [vmem:[%s12653_s1 + $0x260] sm:$0xff]  }
 0x120   : > { %v10727_v35 = vadd.f32 %v8424_v32, %v8423_v27  ;;  %v8426_v37 = vpop.f32.mrb[14].mxu1 }
 0x121   : > { %v8427_v43 = vpop.f32.mrb[15].mxu1  ;;  %v8357_v21 = vpop.f32.mrb[16].mxu0 }
 0x122   : > { %v10731_v25 = vadd.f32 %v8427_v43, %v8426_v37  ;;  %v702_v43 = vld [vmem:[#allocation2 + $0x168] sm:$0xff] }
 0x123   : > { %2191 = vmatmul.mubr.bf16.gmra.mrb[120].mxu1 %v718_v33 }
 0x124   : > { %2198 = vmatprep.mubr.bf16.mxu1 %v10652_v28  ;;  %v8358_v28 = vpop.f32.mrb[17].mxu0 }
 0x125   : > { %v10749_v57 = vadd.f32 %v8358_v28, %v8357_v21  ;;  %v8360_v5 = vpop.f32.mrb[18].mxu0 }
 0x126   : > { %v8445_v53 = vpop.f32.mrb[16].mxu1  ;;  %v8361_v59 = vpop.f32.mrb[19].mxu0  ;;  %9762 = vmatmul.mubr.bf16.gmra.mrb[124].mxu0 %v10575_v61 }
 0x127   : > { %v8446_v46 = vpop.f32.mrb[17].mxu1  ;;  %v10755_v44 = vadd.f32 %v8361_v59, %v8360_v5  ;;  %9765 = vmatprep.mubr.bf16.mxu0 %v10587_v13  ;;  %v1641_v13 = vadd.f32 %v10699_v56, %v10745_v51  ;;  %v9983_v56 = vld [vmem:[%s12653_s1 + $0x2a0] sm:$0xff]   ;;  %v1649_v5 = vadd.f32 %v10717_v12, %v10745_v51 }
 0x128   : > { %v8447_v6 = vadd.f32 %v8446_v46, %v8445_v53  ;;  %v8448_v10 = vpop.f32.mrb[18].mxu1  ;;  %8797 = vmatprep.subr.bf16.mxu1 %v9983_v56  ;;  %v721_v53 = vpack.c.bf16 %v703_v58, %v702_v43  ;;  %v10119_v56 = vld [vmem:[#allocation2] sm:$0xff] }
 0x129   : > { %v8449_v2 = vpop.f32.mrb[19].mxu1  ;;  %v8363_v60 = vpop.f32.mrb[20].mxu0  ;;  %8798 = vmatpush3.bf16.msra.mxu1 %v9984_v38  ;;  %v10819_v38 = vpack.c.bf16 %v10119_v56, %v10119_v56  ;;  %v9990_v56 = vld [vmem:[%s12653_s1 + $0x2c0] sm:$0xff]  }
 0x12a   : > { %v10753_v24 = vadd.f32 %v8447_v6, %v1630_v48  ;;  %v8450_v47 = vadd.f32 %v8449_v2, %v8448_v10  ;;  %v8364_v18 = vpop.f32.mrb[21].mxu0 }
 0x12b   : > { %2199 = vmatmul.mubr.bf16.gmra.mrb[124].mxu1 %v719_v29  ;;  %v10764_v27 = vadd.f32 %v8364_v18, %v8363_v60  ;;  %v8366_v61 = vpop.f32.mrb[22].mxu0 }
 0x12c   : > { %v10758_v26 = vadd.f32 %v8450_v47, %v1633_v7  ;;  %2206 = vmatprep.mubr.bf16.mxu1 %v10664_v17  ;;  %v8367_v33 = vpop.f32.mrb[23].mxu0  ;;  %v771_v47 = vld [vmem:[#allocation2 + $0x1a1] sm:$0xff] }
 0x12d   : > { %v10770_v37 = vadd.f32 %v8367_v33, %v8366_v61 }
 0x12e   : > { %v8451_v63 = vpop.f32.mrb[20].mxu1  ;;  %9766 = vmatmul.mubr.bf16.gmra.mrb[128].mxu0 %v10599_v49 }
 0x12f   : > { %v8452_v45 = vpop.f32.mrb[21].mxu1  ;;  %9769 = vmatprep.mubr.bf16.mxu0 %v10608_v31 }
 0x130   : > { %v8453_v30 = vadd.f32 %v8452_v45, %v8451_v63  ;;  %v8454_v32 = vpop.f32.mrb[22].mxu1  ;;  %v1654_v63 = vadd.f32 %v10725_v34, %v10745_v51  ;;  %v834_v34 = vld [vmem:[#allocation2 + $0x19a] sm:$0xff] }
 0x131   : > { %v8455_v36 = vpop.f32.mrb[23].mxu1  ;;  %v8369_v39 = vpop.f32.mrb[24].mxu0 }
 0x132   : > { %v10768_v17 = vadd.f32 %v8453_v30, %v1638_v23  ;;  %v8456_v20 = vadd.f32 %v8455_v36, %v8454_v32  ;;  %v8370_v49 = vpop.f32.mrb[25].mxu0 }
 0x133   : > { %2207 = vmatmul.mubr.bf16.gmra.mrb[128].mxu1 %v720_v19  ;;  %v10785_v31 = vadd.f32 %v8370_v49, %v8369_v39  ;;  %v8372_v46 = vpop.f32.mrb[26].mxu0 }
 0x134   : > { %v10773_v52 = vadd.f32 %v8456_v20, %v1641_v13  ;;  %2214 = vmatprep.mubr.bf16.mxu1 %v10670_v0  ;;  %v1646_v0 = vadd.f32 %v10713_v54, %v10745_v51  ;;  %v8373_v48 = vpop.f32.mrb[27].mxu0  ;;  %v770_v54 = vld [vmem:[#allocation2 + $0x199] sm:$0xff]  ;;  %v835_v13 = vld [vmem:[#allocation2 + $0x1a2] sm:$0xff] }
 0x135   : > { %v10791_v59 = vadd.f32 %v8373_v48, %v8372_v46  ;;  %v787_v23 = vpack.c.bf16 %v771_v47, %v770_v54  ;;  %v9986_v20 = vld [vmem:[%s12653_s1 + $0x268] sm:$0xff]   ;;  %v851_v39 = vpack.c.bf16 %v835_v13, %v834_v34  ;;  %v1665_v46 = vadd.f32 %v10755_v44, %v10745_v51 }
 0x136   : > { %v8457_v42 = vpop.f32.mrb[24].mxu1  ;;  %9770 = vmatmul.mubr.bf16.gmra.mrb[132].mxu0 %v10614_v55 }
 0x137   : > { %v8458_v21 = vpop.f32.mrb[25].mxu1  ;;  %9773 = vmatprep.mubr.bf16.mxu0 %v10620_v8 }
 0x138   : > { %v8459_v28 = vadd.f32 %v8458_v21, %v8457_v42  ;;  %v8460_v29 = vpop.f32.mrb[26].mxu1 }
 0x139   : > { %v8461_v6 = vpop.f32.mrb[27].mxu1  ;;  %v8375_v40 = vpop.f32.mrb[28].mxu0 }
 0x13a   : > { %v10789_v10 = vadd.f32 %v8459_v28, %v1646_v0  ;;  %v8462_v2 = vadd.f32 %v8461_v6, %v8460_v29  ;;  %v8376_v60 = vpop.f32.mrb[29].mxu0 }
 0x13b   : > { %2215 = vmatmul.mubr.bf16.gmra.mrb[132].mxu1 %v721_v53  ;;  %v10800_v18 = vadd.f32 %v8376_v60, %v8375_v40  ;;  %v8378_v19 = vpop.f32.mrb[30].mxu0  ;;  %v1670_v40 = vadd.f32 %v10764_v27, %v10745_v51  ;;  %v9987_v27 = vld [vmem:[%s12653_s1 + $0x2b0] sm:$0xff]  }
 0x13c   : > { %v10794_v7 = vadd.f32 %v8462_v2, %v1649_v5  ;;  %2222 = vmatprep.mubr.bf16.mxu1 %v10556_v22  ;;  %v8379_v30 = vpop.f32.mrb[31].mxu0  ;;  %v1657_v22 = vadd.f32 %v10729_v62, %v10745_v51  ;;  %v9985_v62 = vld [vmem:[%s12653_s1 + $0x2a8] sm:$0xff]  }
 0x13d   : > { %v10806_v32 = vadd.f32 %v8379_v30, %v8378_v19  ;;  %8799 = vmatprep.subr.bf16.mxu1 %v9985_v62  ;;  %v1673_v19 = vadd.f32 %v10770_v37, %v10745_v51  ;;  %v9989_v62 = vld [vmem:[%s12653_s1 + $0x300] sm:$0xff]  }
 0x13e   : > { %v8463_v41 = vpop.f32.mrb[28].mxu1  ;;  %9774 = vmatmul.mubr.bf16.gmra.mrb[136].mxu0 %v10628_v16  ;;  %8800 = vmatpush3.bf16.msra.mxu1 %v9986_v20  ;;  %v1678_v20 = vadd.f32 %v10785_v31, %v10745_v51 }
 0x13f   : > { %v8464_v12 = vpop.f32.mrb[29].mxu1  ;;  %9777 = vmatprep.mubr.bf16.mxu0 %v10672_v1  ;;  %v1662_v1 = vadd.f32 %v10749_v57, %v10745_v51  ;;  %8801 = vmatprep.subr.bf16.mxu1 %v9987_v27 }
 0x140   : > { %v8465_v45 = vadd.f32 %v8464_v12, %v8463_v41  ;;  %v8466_v55 = vpop.f32.mrb[30].mxu1  ;;  %8901 = vmatprep.subr.bf16.mxu0 %v9989_v62 }
 0x141   : > { %v8467_v61 = vpop.f32.mrb[31].mxu1  ;;  %v8381_v43 = vpop.f32.mrb[32].mxu0  ;;  %8902 = vmatpush3.bf16.msra.mxu0 %v9990_v56 }
 0x142   : > { %v10804_v8 = vadd.f32 %v8465_v45, %v1654_v63  ;;  %v8468_v33 = vadd.f32 %v8467_v61, %v8466_v55 }
 0x143   : > { %2223 = vmatmul.mubr.bf16.gmra.mrb[136].mxu1 %v10622_v9  ;;  %v8382_v9 = vpop.f32.mrb[33].mxu0 }
 0x144   : > { %v10810_v36 = vadd.f32 %v8468_v33, %v1657_v22  ;;  %2230 = vmatprep.mubr.bf16.mxu1 %v787_v23  ;;  %v10823_v42 = vadd.f32 %v8382_v9, %v8381_v43  ;;  %v8384_v21 = vpop.f32.mrb[34].mxu0  ;;  %v9988_v22 = vld [vmem:[%s12653_s1 + $0x270] sm:$0xff]  }
 0x145   : > { %v8385_v0 = vpop.f32.mrb[35].mxu0  ;;  %8802 = vmatpush3.bf16.msra.mxu1 %v9988_v22 }
 0x146   : > { %v8469_v58 = vpop.f32.mrb[32].mxu1  ;;  %v10829_v48 = vadd.f32 %v8385_v0, %v8384_v21  ;;  %9778 = vmatmul.mubr.bf16.gmra.mrb[140].mxu0 %v851_v39  ;;  %v9991_v0 = vld [vmem:[%s12653_s1 + $0x308] sm:$0xff]   ;;  %v1694_v56 = vadd.f32 %v10823_v42, %v10745_v51 }
 0x147   : > { %v8470_v16 = vpop.f32.mrb[33].mxu1  ;;  %8903 = vmatprep.subr.bf16.mxu0 %v9991_v0  ;;  %v10000_v0 = vld [vmem:[%s12653_s1 + $0x2e0] sm:$0xff]  }
 0x148   : > { %v8471_v49 = vadd.f32 %v8470_v16, %v8469_v58  ;;  %v8472_v53 = vpop.f32.mrb[34].mxu1 }
 0x149   : > { %v8473_v28 = vpop.f32.mrb[35].mxu1  ;;  %v8387_v57 = vpop.f32.mrb[36].mxu0 }
 0x14a   : > { %v10827_v29 = vadd.f32 %v8471_v49, %v1662_v1  ;;  %v8474_v6 = vadd.f32 %v8473_v28, %v8472_v53  ;;  %v8388_v54 = vpop.f32.mrb[37].mxu0  ;;  %v1681_v49 = vadd.f32 %v10791_v59, %v10745_v51 }
 0x14b   : > { %2231 = vmatmul.mubr.bf16.gmra.mrb[140].mxu1 %v10819_v38  ;;  %v10836_v41 = vadd.f32 %v8388_v54, %v8387_v57  ;;  %v8390_v60 = vpop.f32.mrb[38].mxu0  ;;  %v9994_v54 = vld [vmem:[%s12653_s1 + $0x310] sm:$0xff]  }
 0x14c   : > { %v10832_v5 = vadd.f32 %v8474_v6, %v1665_v46  ;;  %v8391_v63 = vpop.f32.mrb[39].mxu0  ;;  %v9992_v46 = vld [vmem:[%s12653_s1 + $0x2c8] sm:$0xff]  }
 0x14d   : > { %v10842_v23 = vadd.f32 %v8391_v63, %v8390_v60  ;;  %8904 = vmatpush3.bf16.msra.mxu0 %v9992_v46  ;;  %v9996_v63 = vld [vmem:[%s12653_s1 + $0x2d0] sm:$0xff]   ;;  %v1697_v46 = vadd.f32 %v10829_v48, %v10745_v51 }
 0x14e   : > { %v8475_v2 = vpop.f32.mrb[36].mxu1  ;;  %8905 = vmatprep.subr.bf16.mxu0 %v9994_v54 }
 0x14f   : > { %v8476_v47 = vpop.f32.mrb[37].mxu1 }
 0x150   : > { %v8477_v44 = vadd.f32 %v8476_v47, %v8475_v2  ;;  %v8478_v12 = vpop.f32.mrb[38].mxu1  ;;  %v1686_v47 = vadd.f32 %v10800_v18, %v10745_v51 }
 0x151   : > { %v8479_v45 = vpop.f32.mrb[39].mxu1  ;;  %v8393_v33 = vpop.f32.mrb[40].mxu0  ;;  %8906 = vmatpush3.bf16.msra.mxu0 %v9996_v63 }
 0x152   : > { %v10840_v55 = vadd.f32 %v8477_v44, %v1670_v40  ;;  %v8480_v30 = vadd.f32 %v8479_v45, %v8478_v12  ;;  %v8394_v13 = vpop.f32.mrb[41].mxu0 }
 0x153   : > { %v10857_v43 = vadd.f32 %v8394_v13, %v8393_v33  ;;  %v8396_v9 = vpop.f32.mrb[42].mxu0  ;;  %v9997_v33 = vld [vmem:[%s12653_s1 + $0x318] sm:$0xff]  }
 0x154   : > { %v10844_v61 = vadd.f32 %v8480_v30, %v1673_v19  ;;  %v8397_v39 = vpop.f32.mrb[43].mxu0  ;;  %v1689_v30 = vadd.f32 %v10806_v32, %v10745_v51  ;;  %v9993_v13 = vld [vmem:[%s12653_s1 + $0x2b8] sm:$0xff]   ;;  %8907 = vmatprep.subr.bf16.mxu0 %v9997_v33  ;;  %v10003_v33 = vld [vmem:[%s12653_s1 + $0x330] sm:$0xff]  }
 0x155   : > { %v10866_v53 = vadd.f32 %v8397_v39, %v8396_v9  ;;  %v9995_v32 = vld [vmem:[%s12653_s1 + $0x278] sm:$0xff]   ;;  %8803 = vmatprep.subr.bf16.mxu1 %v9993_v13 }
 0x156   : > { %v8481_v34 = vpop.f32.mrb[40].mxu1  ;;  %8804 = vmatpush3.bf16.msra.mxu1 %v9995_v32 }
 0x157   : > { %v8482_v37 = vpop.f32.mrb[41].mxu1 }
 0x158   : > { %v8483_v58 = vadd.f32 %v8482_v37, %v8481_v34  ;;  %v8484_v16 = vpop.f32.mrb[42].mxu1  ;;  %v9998_v37 = vld [vmem:[%s12653_s1 + $0x2d8] sm:$0xff]  }
 0x159   : > { %v8485_v1 = vpop.f32.mrb[43].mxu1  ;;  %v8399_v6 = vpop.f32.mrb[44].mxu0  ;;  %8908 = vmatpush3.bf16.msra.mxu0 %v9998_v37 }
 0x15a   : > { %v10864_v21 = vadd.f32 %v8483_v58, %v1678_v20  ;;  %v8486_v31 = vadd.f32 %v8485_v1, %v8484_v16  ;;  %v8400_v59 = vpop.f32.mrb[45].mxu0  ;;  %v9999_v16 = vld [vmem:[%s12653_s1 + $0x320] sm:$0xff]  }
 0x15b   : > { %v10881_v40 = vadd.f32 %v8400_v59, %v8399_v6  ;;  %v8402_v60 = vpop.f32.mrb[46].mxu0  ;;  %8909 = vmatprep.subr.bf16.mxu0 %v9999_v16  ;;  %v2528_v59 = vld [vmem:[#allocation2 + $0x1] sm:$0xff] }
 0x15c   : > { %v10871_v28 = vadd.f32 %v8486_v31, %v1681_v49  ;;  %v8403_v45 = vpop.f32.mrb[47].mxu0 }
 0x15d   : > { %v10890_v22 = vadd.f32 %v8403_v45, %v8402_v60  ;;  %8910 = vmatpush3.bf16.msra.mxu0 %v10000_v0  ;;  %v10001_v60 = vld [vmem:[%s12653_s1 + $0x328] sm:$0xff]  }
 0x15e   : > { %v8487_v57 = vpop.f32.mrb[44].mxu1  ;;  %v10002_v45 = vld [vmem:[%s12653_s1 + $0x2e8] sm:$0xff]   ;;  %8911 = vmatprep.subr.bf16.mxu0 %v10001_v60 }
 0x15f   : > { %v8488_v2 = vpop.f32.mrb[45].mxu1 }
 0x160   : > { %v8489_v44 = vadd.f32 %v8488_v2, %v8487_v57  ;;  %v8490_v12 = vpop.f32.mrb[46].mxu1  ;;  %v2529_v2 = vld [vmem:[#allocation2 + $0x9] sm:$0xff] }
 0x161   : > { %v8491_v19 = vpop.f32.mrb[47].mxu1  ;;  %v8557_v20 = vpop.f32.mrb[48].mxu0  ;;  %8912 = vmatpush3.bf16.msra.mxu0 %v10002_v45 }
 0x162   : > { %v10888_v27 = vadd.f32 %v8489_v44, %v1686_v47  ;;  %v8492_v18 = vadd.f32 %v8491_v19, %v8490_v12  ;;  %v8558_v9 = vpop.f32.mrb[49].mxu0  ;;  %v2560_v12 = vpack.c.bf16 %v2529_v2, %v2528_v59  ;;  %8913 = vmatprep.subr.bf16.mxu0 %v10003_v33 }
 0x163   : > { %v8559_v1 = vadd.f32 %v8558_v9, %v8557_v20  ;;  %v8560_v31 = vpop.f32.mrb[50].mxu0  ;;  %v10005_v20 = vld [vmem:[%s12653_s1 + $0x2f0] sm:$0xff]  }
 0x164   : > { %v10895_v34 = vadd.f32 %v8492_v18, %v1689_v30  ;;  %v8561_v57 = vpop.f32.mrb[51].mxu0  ;;  %3801 = vmatprep.mubr.bf16.mxu1 %v2560_v12  ;;  %v1713_v12 = vadd.f32 %v10866_v53, %v10745_v51  ;;  %v1718_v53 = vadd.f32 %v10881_v40, %v10745_v51 }
 0x165   : > { %v10919_v42 = vadd.f32 %v8559_v1, %v10753_v24  ;;  %v8562_v44 = vadd.f32 %v8561_v57, %v8560_v31  ;;  %3802 = vmatmul.mubr.bf16.vlgmr.msra.gmra.mrb[144].mxu1 %v10819_v38  ;;  %v1705_v38 = vadd.f32 %v10842_v23, %v10745_v51  ;;  %8914 = vmatpush3.bf16.msra.mxu0 %v10005_v20  ;;  %v10007_v1 = vld [vmem:[%s12653_s1 + $0x338] sm:$0xff]  }
 0x166   : > { %v8493_v62 = vpop.f32.mrb[48].mxu1  ;;  %v10008_v23 = vld [vmem:[%s12653_s1 + $0x2f8] sm:$0xff]   ;;  %8915 = vmatprep.subr.bf16.mxu0 %v10007_v1 }
 0x167   : > { %v8494_v58 = vpop.f32.mrb[49].mxu1  ;;  %v10927_v48 = vadd.f32 %v8562_v44, %v10758_v26  ;;  %v1702_v26 = vadd.f32 %v10836_v41, %v10745_v51 }
 0x168   : > { %v8495_v39 = vadd.f32 %v8494_v58, %v8493_v62  ;;  %v8496_v49 = vpop.f32.mrb[50].mxu1 }
 0x169   : > { %v8497_v6 = vpop.f32.mrb[51].mxu1  ;;  %v8563_v19 = vpop.f32.mrb[52].mxu0  ;;  %8916 = vmatpush3.bf16.msra.mxu0 %v10008_v23 }
 0x16a   : > { %v10916_v54 = vadd.f32 %v8495_v39, %v1694_v56  ;;  %v8498_v47 = vadd.f32 %v8497_v6, %v8496_v49  ;;  %v8564_v18 = vpop.f32.mrb[53].mxu0  ;;  %v10006_v6 = vld [vmem:[%s12653_s1 + $0x340] sm:$0xff]  }
 0x16b   : > { %v8565_v32 = vadd.f32 %v8564_v18, %v8563_v19  ;;  %v8566_v62 = vpop.f32.mrb[54].mxu0 }
 0x16c   : > { %v10924_v63 = vadd.f32 %v8498_v47, %v1697_v46  ;;  %v8567_v9 = vpop.f32.mrb[55].mxu0  ;;  %v10004_v46 = vld [vmem:[%s12653_s1 + $0x380] sm:$0xff]  }
 0x16d   : > { %v10946_v56 = vadd.f32 %v8565_v32, %v10768_v17  ;;  %v8568_v39 = vadd.f32 %v8567_v9, %v8566_v62  ;;  %9013 = vmatprep.subr.bf16.mxu1 %v10004_v46 }
 0x16e   : > { %v8499_v24 = vpop.f32.mrb[52].mxu1  ;;  %9014 = vmatpush3.bf16.msra.mxu1 %v10006_v6 }
 0x16f   : > { %v8500_v30 = vpop.f32.mrb[53].mxu1  ;;  %v10954_v31 = vadd.f32 %v8568_v39, %v10773_v52  ;;  %v1710_v52 = vadd.f32 %v10857_v43, %v10745_v51 }
 0x170   : > { %v8501_v13 = vadd.f32 %v8500_v30, %v8499_v24  ;;  %v8502_v37 = vpop.f32.mrb[54].mxu1 }
 0x171   : > { %v8503_v58 = vpop.f32.mrb[55].mxu1  ;;  %v8569_v17 = vpop.f32.mrb[56].mxu0 }
 0x172   : > { %v10943_v16 = vadd.f32 %v8501_v13, %v1702_v26  ;;  %v8504_v41 = vadd.f32 %v8503_v58, %v8502_v37  ;;  %v8570_v59 = vpop.f32.mrb[57].mxu0 }
 0x173   : > { %v8571_v47 = vadd.f32 %v8570_v59, %v8569_v17  ;;  %v8572_v60 = vpop.f32.mrb[58].mxu0 }
 0x174   : > { %v10951_v49 = vadd.f32 %v8504_v41, %v1705_v38  ;;  %v8573_v24 = vpop.f32.mrb[59].mxu0 }
 0x175   : > { %v10972_v30 = vadd.f32 %v8571_v47, %v10789_v10  ;;  %v8574_v33 = vadd.f32 %v8573_v24, %v8572_v60  ;;  %v1721_v10 = vadd.f32 %v10890_v22, %v10745_v51  ;;  %v10009_v22 = vld [vmem:[%s12653_s1 + $0x388] sm:$0xff]   ;;  %v1729_v60 = vadd.f32 %v10690_v50, %v10745_v51 }
 0x176   : > { %v8505_v0 = vpop.f32.mrb[56].mxu1  ;;  %9015 = vmatprep.subr.bf16.mxu1 %v10009_v22  ;;  %v1734_v50 = vadd.f32 %v10697_v3, %v10745_v51 }
 0x177   : > { %v8506_v57 = vpop.f32.mrb[57].mxu1  ;;  %v10977_v43 = vadd.f32 %v8574_v33, %v10794_v7 }
 0x178   : > { %v8507_v2 = vadd.f32 %v8506_v57, %v8505_v0  ;;  %v8508_v44 = vpop.f32.mrb[58].mxu1  ;;  %v10010_v57 = vld [vmem:[%s12653_s1 + $0x348] sm:$0xff]  }
 0x179   : > { %v8509_v45 = vpop.f32.mrb[59].mxu1  ;;  %v8575_v32 = vpop.f32.mrb[60].mxu0  ;;  %9016 = vmatpush3.bf16.msra.mxu1 %v10010_v57 }
 0x17a   : > { %v10969_v19 = vadd.f32 %v8507_v2, %v1710_v52  ;;  %v8510_v18 = vadd.f32 %v8509_v45, %v8508_v44  ;;  %v8576_v62 = vpop.f32.mrb[61].mxu0  ;;  %v1726_v52 = vadd.f32 %v10686_v11, %v10745_v51 }
 0x17b   : > { %v8577_v38 = vadd.f32 %v8576_v62, %v8575_v32  ;;  %v8578_v9 = vpop.f32.mrb[62].mxu0 }
 0x17c   : > { %v10974_v26 = vadd.f32 %v8510_v18, %v1713_v12  ;;  %v8579_v39 = vpop.f32.mrb[63].mxu0 }
 0x17d   : > { %v10986_v7 = vadd.f32 %v8577_v38, %v10804_v8  ;;  %v8580_v0 = vadd.f32 %v8579_v39, %v8578_v9 }
 0x17e   : > { %v8511_v13 = vpop.f32.mrb[60].mxu1 }
 0x17f   : > { %v8512_v37 = vpop.f32.mrb[61].mxu1  ;;  %v10991_v40 = vadd.f32 %v8580_v0, %v10810_v36 }
 0x180   : > { %v8513_v20 = vadd.f32 %v8512_v37, %v8511_v13  ;;  %v8514_v58 = vpop.f32.mrb[62].mxu1 }
 0x181   : > { %v8515_v41 = vpop.f32.mrb[63].mxu1  ;;  %v8581_v6 = vpop.f32.mrb[64].mxu0 }
 0x182   : > { %v10983_v1 = vadd.f32 %v8513_v20, %v1718_v53  ;;  %v8516_v23 = vadd.f32 %v8515_v41, %v8514_v58  ;;  %v8582_v8 = vpop.f32.mrb[65].mxu0 }
 0x183   : > { %v8583_v47 = vadd.f32 %v8582_v8, %v8581_v6  ;;  %v8584_v36 = vpop.f32.mrb[66].mxu0 }
 0x184   : > { %v10988_v17 = vadd.f32 %v8516_v23, %v1721_v10  ;;  %v8585_v45 = vpop.f32.mrb[67].mxu0 }
 0x185   : > { %v11006_v18 = vadd.f32 %v8583_v47, %v10827_v29  ;;  %v8586_v13 = vadd.f32 %v8585_v45, %v8584_v36  ;;  %v1737_v29 = vadd.f32 %v10701_v4, %v10745_v51  ;;  %v10011_v4 = vld [vmem:[%s12653_s1 + $0x390] sm:$0xff]   ;;  %v1745_v36 = vadd.f32 %v10719_v15, %v10745_v51 }
 0x186   : > { %v8517_v46 = vpop.f32.mrb[64].mxu1  ;;  %9017 = vmatprep.subr.bf16.mxu1 %v10011_v4  ;;  %v1750_v15 = vadd.f32 %v10727_v35, %v10745_v51 }
 0x187   : > { %v8518_v59 = vpop.f32.mrb[65].mxu1  ;;  %v11011_v11 = vadd.f32 %v8586_v13, %v10832_v5 }
 0x188   : > { %v8519_v2 = vadd.f32 %v8518_v59, %v8517_v46  ;;  %v8520_v44 = vpop.f32.mrb[66].mxu1  ;;  %v10012_v59 = vld [vmem:[%s12653_s1 + $0x350] sm:$0xff]  }
 0x189   : > { %v8521_v12 = vpop.f32.mrb[67].mxu1  ;;  %v8587_v62 = vpop.f32.mrb[68].mxu0  ;;  %9018 = vmatpush3.bf16.msra.mxu1 %v10012_v59 }
 0x18a   : > { %v11003_v24 = vadd.f32 %v8519_v2, %v1726_v52  ;;  %v8522_v33 = vadd.f32 %v8521_v12, %v8520_v44  ;;  %v8588_v20 = vpop.f32.mrb[69].mxu0  ;;  %v1742_v52 = vadd.f32 %v10715_v14, %v10745_v51 }
 0x18b   : > { %v8589_v58 = vadd.f32 %v8588_v20, %v8587_v62  ;;  %v8590_v10 = vpop.f32.mrb[70].mxu0 }
 0x18c   : > { %v11008_v32 = vadd.f32 %v8522_v33, %v1729_v60  ;;  %v8591_v39 = vpop.f32.mrb[71].mxu0 }
 0x18d   : > { %v11020_v5 = vadd.f32 %v8589_v58, %v10840_v55  ;;  %v8592_v46 = vadd.f32 %v8591_v39, %v8590_v10 }
 0x18e   : > { %v8523_v37 = vpop.f32.mrb[68].mxu1 }
 0x18f   : > { %v8524_v53 = vpop.f32.mrb[69].mxu1  ;;  %v11025_v3 = vadd.f32 %v8592_v46, %v10844_v61 }
 0x190   : > { %v8525_v38 = vadd.f32 %v8524_v53, %v8523_v37  ;;  %v8526_v9 = vpop.f32.mrb[70].mxu1 }
 0x191   : > { %v8527_v41 = vpop.f32.mrb[71].mxu1  ;;  %v8593_v57 = vpop.f32.mrb[72].mxu0 }
 0x192   : > { %v11017_v23 = vadd.f32 %v8525_v38, %v1734_v50  ;;  %v8528_v0 = vadd.f32 %v8527_v41, %v8526_v9  ;;  %v8594_v55 = vpop.f32.mrb[73].mxu0 }
 0x193   : > { %v8595_v47 = vadd.f32 %v8594_v55, %v8593_v57  ;;  %v8596_v61 = vpop.f32.mrb[74].mxu0 }
 0x194   : > { %v11022_v6 = vadd.f32 %v8528_v0, %v1737_v29  ;;  %v8597_v12 = vpop.f32.mrb[75].mxu0 }
 0x195   : > { %v11040_v33 = vadd.f32 %v8595_v47, %v10864_v21  ;;  %v8598_v37 = vadd.f32 %v8597_v12, %v8596_v61  ;;  %v1753_v21 = vadd.f32 %v10731_v25, %v10745_v51  ;;  %v10014_v12 = vld [vmem:[%s12653_s1 + $0x358] sm:$0xff]  }
 0x196   : > { %v8529_v22 = vpop.f32.mrb[72].mxu1 }
 0x197   : > { %v8530_v8 = vpop.f32.mrb[73].mxu1  ;;  %v11045_v14 = vadd.f32 %v8598_v37, %v10871_v28 }
 0x198   : > { %v8531_v2 = vadd.f32 %v8530_v8, %v8529_v22  ;;  %v8532_v44 = vpop.f32.mrb[74].mxu1 }
 0x199   : > { %v8533_v60 = vpop.f32.mrb[75].mxu1  ;;  %v8599_v20 = vpop.f32.mrb[76].mxu0 }
 0x19a   : > { %v11037_v45 = vadd.f32 %v8531_v2, %v1742_v52  ;;  %v8534_v13 = vadd.f32 %v8533_v60, %v8532_v44  ;;  %v8600_v38 = vpop.f32.mrb[77].mxu0 }
 0x19b   : > { %v8601_v9 = vadd.f32 %v8600_v38, %v8599_v20  ;;  %v8602_v29 = vpop.f32.mrb[78].mxu0 }
 0x19c   : > { %v11042_v62 = vadd.f32 %v8534_v13, %v1745_v36  ;;  %v8603_v39 = vpop.f32.mrb[79].mxu0 }
 0x19d   : > { %v11054_v28 = vadd.f32 %v8601_v9, %v10888_v27  ;;  %v8604_v22 = vadd.f32 %v8603_v39, %v8602_v29  ;;  %v10016_v39 = vld [vmem:[%s12653_s1 + $0x360] sm:$0xff]  }
 0x19e   : > { %v8535_v53 = vpop.f32.mrb[76].mxu1 }
 0x19f   : > { %v8536_v50 = vpop.f32.mrb[77].mxu1  ;;  %v11059_v35 = vadd.f32 %v8604_v22, %v10895_v34  ;;  %v10013_v34 = vld [vmem:[%s12653_s1 + $0x398] sm:$0xff]  }
 0x1a0   : > { %v8537_v58 = vadd.f32 %v8536_v50, %v8535_v53  ;;  %v8538_v10 = vpop.f32.mrb[78].mxu1  ;;  %9019 = vmatprep.subr.bf16.mxu1 %v10013_v34 }
 0x1a1   : > { %v8539_v41 = vpop.f32.mrb[79].mxu1  ;;  %v8605_v4 = vpop.f32.mrb[80].mxu0  ;;  %9020 = vmatpush3.bf16.msra.mxu1 %v10014_v12 }
 0x1a2   : > { %v11051_v0 = vadd.f32 %v8537_v58, %v1750_v15  ;;  %v8540_v46 = vadd.f32 %v8539_v41, %v8538_v10  ;;  %v8606_v8 = vpop.f32.mrb[81].mxu0 }
 0x1a3   : > { %v8607_v52 = vadd.f32 %v8606_v8, %v8605_v4  ;;  %v8608_v51 = vpop.f32.mrb[82].mxu0 }
 0x1a4   : > { %v11056_v57 = vadd.f32 %v8540_v46, %v1753_v21  ;;  %v8609_v47 = vpop.f32.mrb[83].mxu0 }
 0x1a5   : > { %v11062_v27 = vadd.f32 %v8607_v52, %v10916_v54  ;;  %v8610_v61 = vadd.f32 %v8609_v47, %v8608_v51 }
 0x1a6   : > { %v8669_v59 = vpop.f32.mrb[80].mxu1 }
 0x1a7   : > { %v8670_v55 = vpop.f32.mrb[81].mxu1  ;;  %v11074_v13 = vadd.f32 %v8610_v61, %v10924_v63  ;;  %v10015_v63 = vld [vmem:[%s12653_s1 + $0x3a0] sm:$0xff]  }
 0x1a8   : > { %v8671_v25 = vadd.f32 %v8670_v55, %v8669_v59  ;;  %v8672_v2 = vpop.f32.mrb[82].mxu1  ;;  %9021 = vmatprep.subr.bf16.mxu1 %v10015_v63 }
 0x1a9   : > { %v8673_v44 = vpop.f32.mrb[83].mxu1  ;;  %v8611_v54 = vpop.f32.mrb[84].mxu0  ;;  %9022 = vmatpush3.bf16.msra.mxu1 %v10016_v39 }
 0x1aa   : > { %v8674_v36 = vadd.f32 %v8673_v44, %v8672_v2  ;;  %v11065_v60 = vadd.f32 %v8671_v25, %v10919_v42  ;;  %v8612_v42 = vpop.f32.mrb[85].mxu0 }
 0x1ab   : > { %v8613_v50 = vadd.f32 %v8612_v42, %v8611_v54  ;;  %v8614_v15 = vpop.f32.mrb[86].mxu0 }
 0x1ac   : > { %v11077_v37 = vadd.f32 %v8674_v36, %v10927_v48  ;;  %v8615_v9 = vpop.f32.mrb[87].mxu0 }
 0x1ad   : > { %v11083_v29 = vadd.f32 %v8613_v50, %v10943_v16  ;;  %v8616_v48 = vadd.f32 %v8615_v9, %v8614_v15 }
 0x1ae   : > { %v8675_v53 = vpop.f32.mrb[84].mxu1 }
 0x1af   : > { %v8676_v20 = vpop.f32.mrb[85].mxu1  ;;  %v11092_v46 = vadd.f32 %v8616_v48, %v10951_v49 }
 0x1b0   : > { %v8677_v38 = vadd.f32 %v8676_v20, %v8675_v53  ;;  %v8678_v58 = vpop.f32.mrb[86].mxu1 }
 0x1b1   : > { %v8679_v10 = vpop.f32.mrb[87].mxu1  ;;  %v8617_v4 = vpop.f32.mrb[88].mxu0 }
 0x1b2   : > { %v8680_v21 = vadd.f32 %v8679_v10, %v8678_v58  ;;  %v11086_v41 = vadd.f32 %v8677_v38, %v10946_v56  ;;  %v8618_v59 = vpop.f32.mrb[89].mxu0  ;;  %v10018_v10 = vld [vmem:[%s12653_s1 + $0x368] sm:$0xff]  }
 0x1b3   : > { %v8619_v55 = vadd.f32 %v8618_v59, %v8617_v4  ;;  %v8620_v56 = vpop.f32.mrb[90].mxu0 }
 0x1b4   : > { %v11095_v22 = vadd.f32 %v8680_v21, %v10954_v31  ;;  %v8621_v51 = vpop.f32.mrb[91].mxu0 }
 0x1b5   : > { %v11098_v47 = vadd.f32 %v8619_v55, %v10969_v19  ;;  %v8622_v44 = vadd.f32 %v8621_v51, %v8620_v56 }
 0x1b6   : > { %v8681_v16 = vpop.f32.mrb[88].mxu1 }
 0x1b7   : > { %v8682_v8 = vpop.f32.mrb[89].mxu1  ;;  %v11104_v31 = vadd.f32 %v8622_v44, %v10974_v26 }
 0x1b8   : > { %v8683_v52 = vadd.f32 %v8682_v8, %v8681_v16  ;;  %v8684_v25 = vpop.f32.mrb[90].mxu1 }
 0x1b9   : > { %v8685_v2 = vpop.f32.mrb[91].mxu1  ;;  %v8623_v34 = vpop.f32.mrb[92].mxu0 }
 0x1ba   : > { %v8686_v49 = vadd.f32 %v8685_v2, %v8684_v25  ;;  %v11101_v61 = vadd.f32 %v8683_v52, %v10972_v30  ;;  %v8624_v54 = vpop.f32.mrb[93].mxu0  ;;  %v10017_v30 = vld [vmem:[%s12653_s1 + $0x3a8] sm:$0xff]  }
 0x1bb   : > { %v8625_v42 = vadd.f32 %v8624_v54, %v8623_v34  ;;  %v8626_v50 = vpop.f32.mrb[94].mxu0  ;;  %9023 = vmatprep.subr.bf16.mxu1 %v10017_v30 }
 0x1bc   : > { %v11107_v36 = vadd.f32 %v8686_v49, %v10977_v43  ;;  %v8627_v38 = vpop.f32.mrb[95].mxu0  ;;  %9024 = vmatpush3.bf16.msra.mxu1 %v10018_v10 }
 0x1bd   : > { %v11113_v26 = vadd.f32 %v8625_v42, %v10983_v1  ;;  %v8628_v58 = vadd.f32 %v8627_v38, %v8626_v50 }
 0x1be   : > { %v8687_v12 = vpop.f32.mrb[92].mxu1 }
 0x1bf   : > { %v8688_v53 = vpop.f32.mrb[93].mxu1  ;;  %v11122_v63 = vadd.f32 %v8628_v58, %v10988_v17 }
 0x1c0   : > { %v8689_v20 = vadd.f32 %v8688_v53, %v8687_v12  ;;  %v8690_v19 = vpop.f32.mrb[94].mxu1 }
 0x1c1   : > { %v8691_v15 = vpop.f32.mrb[95].mxu1  ;;  %v8629_v21 = vpop.f32.mrb[96].mxu0 }
 0x1c2   : > { %v8692_v43 = vadd.f32 %v8691_v15, %v8690_v19  ;;  %v11116_v9 = vadd.f32 %v8689_v20, %v10986_v7  ;;  %v8630_v39 = vpop.f32.mrb[97].mxu0  ;;  %v10020_v15 = vld [vmem:[%s12653_s1 + $0x370] sm:$0xff]  }
 0x1c3   : > { %v8631_v16 = vadd.f32 %v8630_v39, %v8629_v21  ;;  %v8632_v7 = vpop.f32.mrb[98].mxu0 }
 0x1c4   : > { %v11125_v48 = vadd.f32 %v8692_v43, %v10991_v40  ;;  %v8633_v55 = vpop.f32.mrb[99].mxu0 }
 0x1c5   : > { %v11128_v56 = vadd.f32 %v8631_v16, %v11003_v24  ;;  %v8634_v25 = vadd.f32 %v8633_v55, %v8632_v7 }
 0x1c6   : > { %v8693_v1 = vpop.f32.mrb[96].mxu1 }
 0x1c7   : > { %v8694_v4 = vpop.f32.mrb[97].mxu1  ;;  %v11134_v40 = vadd.f32 %v8634_v25, %v11008_v32 }
 0x1c8   : > { %v8695_v59 = vadd.f32 %v8694_v4, %v8693_v1  ;;  %v8696_v8 = vpop.f32.mrb[98].mxu1 }
 0x1c9   : > { %v8697_v52 = vpop.f32.mrb[99].mxu1  ;;  %v8635_v44 = vpop.f32.mrb[100].mxu0 }
 0x1ca   : > { %v8698_v17 = vadd.f32 %v8697_v52, %v8696_v8  ;;  %v11131_v51 = vadd.f32 %v8695_v59, %v11006_v18  ;;  %v8636_v34 = vpop.f32.mrb[101].mxu0  ;;  %v10019_v18 = vld [vmem:[%s12653_s1 + $0x3b0] sm:$0xff]  }
 0x1cb   : > { %v8637_v54 = vadd.f32 %v8636_v34, %v8635_v44  ;;  %v8638_v42 = vpop.f32.mrb[102].mxu0  ;;  %9025 = vmatprep.subr.bf16.mxu1 %v10019_v18  ;;  %v10027_v18 = vld [vmem:[%s12653_s1 + $0x378] sm:$0xff]  }
 0x1cc   : > { %v11137_v2 = vadd.f32 %v8698_v17, %v11011_v11  ;;  %v8639_v20 = vpop.f32.mrb[103].mxu0  ;;  %9026 = vmatpush3.bf16.msra.mxu1 %v10020_v15 }
 0x1cd   : > { %v11143_v32 = vadd.f32 %v8637_v54, %v11017_v23  ;;  %v8640_v19 = vadd.f32 %v8639_v20, %v8638_v42 }
 0x1ce   : > { %v8699_v49 = vpop.f32.mrb[100].mxu1 }
 0x1cf   : > { %v8700_v12 = vpop.f32.mrb[101].mxu1  ;;  %v11152_v30 = vadd.f32 %v8640_v19, %v11022_v6 }
 0x1d0   : > { %v8701_v53 = vadd.f32 %v8700_v12, %v8699_v49  ;;  %v8702_v24 = vpop.f32.mrb[102].mxu1 }
 0x1d1   : > { %v8703_v50 = vpop.f32.mrb[103].mxu1  ;;  %v8641_v43 = vpop.f32.mrb[104].mxu0 }
 0x1d2   : > { %v8704_v11 = vadd.f32 %v8703_v50, %v8702_v24  ;;  %v11146_v38 = vadd.f32 %v8701_v53, %v11020_v5  ;;  %v8642_v10 = vpop.f32.mrb[105].mxu0  ;;  %v10021_v5 = vld [vmem:[%s12653_s1 + $0x400] sm:$0xff]  }
 0x1d3   : > { %v8643_v1 = vadd.f32 %v8642_v10, %v8641_v43  ;;  %v8644_v4 = vpop.f32.mrb[106].mxu0  ;;  %9125 = vmatprep.subr.bf16.mxu0 %v10021_v5 }
 0x1d4   : > { %v11155_v58 = vadd.f32 %v8704_v11, %v11025_v3  ;;  %v8645_v59 = vpop.f32.mrb[107].mxu0 }
 0x1d5   : > { %v11161_v6 = vadd.f32 %v8643_v1, %v11037_v45  ;;  %v8646_v3 = vadd.f32 %v8645_v59, %v8644_v4 }
 0x1d6   : > { %v8705_v23 = vpop.f32.mrb[104].mxu1 }
 0x1d7   : > { %v8706_v21 = vpop.f32.mrb[105].mxu1  ;;  %v11167_v52 = vadd.f32 %v8646_v3, %v11042_v62 }
 0x1d8   : > { %v8707_v39 = vadd.f32 %v8706_v21, %v8705_v23  ;;  %v8708_v16 = vpop.f32.mrb[106].mxu1 }
 0x1d9   : > { %v8709_v7 = vpop.f32.mrb[107].mxu1  ;;  %v8647_v17 = vpop.f32.mrb[108].mxu0 }
 0x1da   : > { %v8710_v8 = vadd.f32 %v8709_v7, %v8708_v16  ;;  %v11164_v55 = vadd.f32 %v8707_v39, %v11040_v33  ;;  %v8648_v49 = vpop.f32.mrb[109].mxu0  ;;  %v10025_v33 = vld [vmem:[%s12653_s1 + $0x3b8] sm:$0xff]  }
 0x1db   : > { %v8649_v12 = vadd.f32 %v8648_v49, %v8647_v17  ;;  %v8650_v53 = vpop.f32.mrb[110].mxu0  ;;  %9027 = vmatprep.subr.bf16.mxu1 %v10025_v33 }
 0x1dc   : > { %v11170_v25 = vadd.f32 %v8710_v8, %v11045_v14  ;;  %v8651_v42 = vpop.f32.mrb[111].mxu0  ;;  %9028 = vmatpush3.bf16.msra.mxu1 %v10027_v18 }
 0x1dd   : > { %v11176_v62 = vadd.f32 %v8649_v12, %v11051_v0  ;;  %v8652_v20 = vadd.f32 %v8651_v42, %v8650_v53 }
 0x1de   : > { %v8711_v44 = vpop.f32.mrb[108].mxu1 }
 0x1df   : > { %v8712_v34 = vpop.f32.mrb[109].mxu1  ;;  %v11185_v19 = vadd.f32 %v8652_v20, %v11056_v57  ;;  %v11206_v20 = vld [vmem:[%s12653_s1 + $0x440] sm:$0xff]  }
 0x1e0   : > { %v8713_v54 = vadd.f32 %v8712_v34, %v8711_v44  ;;  %v8714_v45 = vpop.f32.mrb[110].mxu1  ;;  %9781 = vmatprep.subr.bf16.mxu1 %v11206_v20 }
 0x1e1   : > { %v8715_v24 = vpop.f32.mrb[111].mxu1  ;;  %v9751_v0 = vpop.f32.mrb[112].mxu0 }
 0x1e2   : > { %v8716_v14 = vadd.f32 %v8715_v24, %v8714_v45  ;;  %v11179_v50 = vadd.f32 %v8713_v54, %v11054_v28  ;;  %v2282_v43 = vadd.f32 %v9751_v0, %v11086_v41  ;;  %v2273_v10 = vpop.f32.mrb[113].mxu0  ;;  %v2593_v0 = vld [vmem:[#allocation2 + $0xa] sm:$0xff] }
 0x1e3   : > { %v2274_v21 = vadd.f32 %v2273_v10, %v11065_v60  ;;  %v9752_v1 = vpop.f32.mrb[114].mxu0 }
 0x1e4   : > { %v11188_v11 = vadd.f32 %v8716_v14, %v11059_v35  ;;  %v2402_v39 = vmax.f32 %v2282_v43, 0.0  ;;  %v2285_v4 = vadd.f32 %v9752_v1, %v11095_v22  ;;  %v2276_v16 = vpop.f32.mrb[115].mxu0 }
 0x1e5   : > { %v2400_v59 = vmax.f32 %v2274_v21, 0.0  ;;  %v2277_v7 = vadd.f32 %v2276_v16, %v11077_v37 }
 0x1e6   : > { %v8717_v15 = vpop.f32.mrb[112].mxu1  ;;  %2434 = vst [vmem:[#allocation2 + $0x31] sm:$0xff] %v2402_v39  ;;  %v2403_v41 = vmax.f32 %v2285_v4, 0.0 }
 0x1e7   : > { %v8718_v23 = vpop.f32.mrb[113].mxu1  ;;  %2432 = vst [vmem:[#allocation2 + $0x19] sm:$0xff] %v2400_v59  ;;  %v2401_v8 = vmax.f32 %v2277_v7, 0.0  ;;  %v10023_v7 = vld [vmem:[%s12653_s1 + $0x408] sm:$0xff]  }
 0x1e8   : > { %v8719_v28 = vadd.f32 %v8718_v23, %v8717_v15  ;;  %v8720_v5 = vpop.f32.mrb[114].mxu1  ;;  %2435 = vst [vmem:[#allocation2 + $0x39] sm:$0xff] %v2403_v41  ;;  %v2562_v17 = vpack.c.bf16 %v2403_v41, %v2402_v39  ;;  %v2592_v15 = vld [vmem:[#allocation2 + $0x2] sm:$0xff] }
 0x1e9   : > { %v8721_v57 = vpop.f32.mrb[115].mxu1  ;;  %2433 = vst [vmem:[#allocation2 + $0x21] sm:$0xff] %v2401_v8  ;;  %v9755_v44 = vpop.f32.mrb[116].mxu0  ;;  %v2561_v49 = vpack.c.bf16 %v2401_v8, %v2400_v59  ;;  %v2624_v21 = vpack.c.bf16 %v2593_v0, %v2592_v15  ;;  %v10028_v15 = vld [vmem:[%s12653_s1 + $0x3d0] sm:$0xff]  }
 0x1ea   : > { %v8722_v35 = vadd.f32 %v8721_v57, %v8720_v5  ;;  %v11195_v3 = vadd.f32 %v8719_v28, %v11062_v27  ;;  %v2298_v34 = vadd.f32 %v9755_v44, %v11116_v9  ;;  %v2289_v37 = vpop.f32.mrb[117].mxu0  ;;  %v10022_v57 = vld [vmem:[%s12653_s1 + $0x3c0] sm:$0xff]  }
 0x1eb   : > { %v2290_v27 = vadd.f32 %v2289_v37, %v11101_v61  ;;  %v9756_v45 = vpop.f32.mrb[118].mxu0  ;;  %3809 = vmatprep.mubr.bf16.mxu1 %v2561_v49 }
 0x1ec   : > { %v11198_v60 = vadd.f32 %v8722_v35, %v11074_v13  ;;  %v2406_v42 = vmax.f32 %v2298_v34, 0.0  ;;  %v2301_v13 = vadd.f32 %v9756_v45, %v11125_v48  ;;  %v2292_v33 = vpop.f32.mrb[119].mxu0  ;;  %v10024_v45 = vld [vmem:[%s12653_s1 + $0x3c8] sm:$0xff]  }
 0x1ed   : > { %v2404_v14 = vmax.f32 %v2290_v27, 0.0  ;;  %v2293_v18 = vadd.f32 %v2292_v33, %v11107_v36  ;;  %v2658_v35 = vld [vmem:[#allocation2 + $0x30] sm:$0xff] }
 0x1ee   : > { %v8723_v22 = vpop.f32.mrb[116].mxu1  ;;  %2438 = vst [vmem:[#allocation2 + $0x61] sm:$0xff] %v2406_v42  ;;  %v2407_v43 = vmax.f32 %v2301_v13, 0.0  ;;  %v2656_v10 = vld [vmem:[#allocation2 + $0x18] sm:$0xff] }
 0x1ef   : > { %v8724_v12 = vpop.f32.mrb[117].mxu1  ;;  %2436 = vst [vmem:[#allocation2 + $0x49] sm:$0xff] %v2404_v14  ;;  %v2405_v48 = vmax.f32 %v2293_v18, 0.0  ;;  %v2659_v5 = vld [vmem:[#allocation2 + $0x38] sm:$0xff] }
 0x1f0   : > { %v8725_v54 = vadd.f32 %v8724_v12, %v8723_v22  ;;  %v8726_v53 = vpop.f32.mrb[118].mxu1  ;;  %2439 = vst [vmem:[#allocation2 + $0x69] sm:$0xff] %v2407_v43  ;;  %v2657_v28 = vld [vmem:[#allocation2 + $0x20] sm:$0xff]  ;;  %v11216_v36 = vpack.c.bf16 %v2407_v43, %v2406_v42  ;;  %v11226_v49 = vpack.c.bf16 %v2659_v5, %v2658_v35 }
 0x1f1   : > { %v8727_v24 = vpop.f32.mrb[119].mxu1  ;;  %2437 = vst [vmem:[#allocation2 + $0x51] sm:$0xff] %v2405_v48  ;;  %v2688_v39 = vpack.c.bf16 %v2657_v28, %v2656_v10  ;;  %v2563_v4 = vpack.c.bf16 %v2405_v48, %v2404_v14  ;;  %v2595_v13 = vld [vmem:[#allocation2 + $0x22] sm:$0xff]  ;;  %v10029_v28 = vld [vmem:[%s12653_s1 + $0x418] sm:$0xff]  }
 0x1f2   : > { %v8728_v9 = vadd.f32 %v8727_v24, %v8726_v53  ;;  %v11210_v61 = vadd.f32 %v8725_v54, %v11083_v29  ;;  %v9759_v29 = vpop.f32.mrb[120].mxu0 }
 0x1f3   : > { %v2314_v16 = vadd.f32 %v9759_v29, %v11146_v38  ;;  %v2305_v59 = vpop.f32.mrb[121].mxu0  ;;  %3962 = vmatprep.mubr.bf16.mxu0 %v2688_v39  ;;  %3810 = vmatmul.mubr.bf16.gmra.mrb[148].mxu1 %v2688_v39 }
 0x1f4   : > { %v11214_v23 = vadd.f32 %v8728_v9, %v11092_v46  ;;  %v2306_v8 = vadd.f32 %v2305_v59, %v11131_v51  ;;  %v9760_v44 = vpop.f32.mrb[122].mxu0  ;;  %3963 = vmatmul.mubr.bf16.vlgmr.msra.gmra.mrb[144].mxu0 %v2624_v21  ;;  %3817 = vmatprep.mubr.bf16.mxu1 %v2562_v17  ;;  %v10026_v17 = vld [vmem:[%s12653_s1 + $0x410] sm:$0xff]  }
 0x1f5   : > { %v2410_v34 = vmax.f32 %v2314_v16, 0.0  ;;  %v2317_v12 = vadd.f32 %v9760_v44, %v11155_v58  ;;  %v2308_v37 = vpop.f32.mrb[123].mxu0  ;;  %3970 = vmatprep.mubr.bf16.mxu0 %v11226_v49  ;;  %9126 = vmatpush3.bf16.msra.mxu0 %v10022_v57 }
 0x1f6   : > { %v8729_v1 = vpop.f32.mrb[120].mxu1  ;;  %v2408_v54 = vmax.f32 %v2306_v8, 0.0  ;;  %v2309_v53 = vadd.f32 %v2308_v37, %v11137_v2  ;;  %9127 = vmatprep.subr.bf16.mxu0 %v10023_v7  ;;  %v2594_v2 = vld [vmem:[#allocation2 + $0x1a] sm:$0xff]  ;;  %v2660_v10 = vld [vmem:[#allocation2 + $0x48] sm:$0xff] }
 0x1f7   : > { %v8730_v46 = vpop.f32.mrb[121].mxu1  ;;  %2442 = vst [vmem:[#allocation2 + $0x91] sm:$0xff] %v2410_v34  ;;  %v2411_v58 = vmax.f32 %v2317_v12, 0.0 }
 0x1f8   : > { %v8731_v41 = vadd.f32 %v8730_v46, %v8729_v1  ;;  %v8732_v22 = vpop.f32.mrb[122].mxu1  ;;  %2440 = vst [vmem:[#allocation2 + $0x79] sm:$0xff] %v2408_v54  ;;  %v2409_v42 = vmax.f32 %v2309_v53, 0.0 }
 0x1f9   : > { %v8733_v38 = vpop.f32.mrb[123].mxu1  ;;  %2443 = vst [vmem:[#allocation2 + $0x99] sm:$0xff] %v2411_v58  ;;  %v11243_v33 = vpack.c.bf16 %v2411_v58, %v2410_v34  ;;  %v9763_v9 = vpop.f32.mrb[124].mxu0  ;;  %9128 = vmatpush3.bf16.msra.mxu0 %v10024_v45  ;;  %v2662_v58 = vld [vmem:[#allocation2 + $0x60] sm:$0xff] }
 0x1fa   : > { %v8734_v27 = vadd.f32 %v8733_v38, %v8732_v22  ;;  %v11232_v51 = vadd.f32 %v8731_v41, %v11098_v47  ;;  %v2661_v47 = vld [vmem:[#allocation2 + $0x50] sm:$0xff]  ;;  %2441 = vst [vmem:[#allocation2 + $0x81] sm:$0xff] %v2409_v42  ;;  %v11245_v18 = vpack.c.bf16 %v2409_v42, %v2408_v54  ;;  %v2330_v0 = vadd.f32 %v9763_v9, %v11179_v50  ;;  %v2321_v48 = vpop.f32.mrb[125].mxu0  ;;  %v10030_v41 = vld [vmem:[%s12653_s1 + $0x3d8] sm:$0xff]   ;;  %v10032_v54 = vld [vmem:[%s12653_s1 + $0x3e0] sm:$0xff]  }
 0x1fb   : > { %9129 = vmatprep.subr.bf16.mxu0 %v10026_v17  ;;  %v2322_v5 = vadd.f32 %v2321_v48, %v11164_v55  ;;  %v9764_v29 = vpop.f32.mrb[126].mxu0  ;;  %3818 = vmatmul.mubr.bf16.gmra.mrb[152].mxu1 %v11226_v49  ;;  %v11258_v39 = vpack.c.bf16 %v2661_v47, %v2660_v10  ;;  %v2597_v22 = vld [vmem:[#allocation2 + $0x3a] sm:$0xff]  ;;  %v10033_v17 = vld [vmem:[%s12653_s1 + $0x428] sm:$0xff]  }
 0x1fc   : > { %v11241_v24 = vadd.f32 %v8734_v27, %v11104_v31  ;;  %v11251_v31 = vpack.c.bf16 %v2595_v13, %v2594_v2  ;;  %v2414_v50 = vmax.f32 %v2330_v0, 0.0  ;;  %v2333_v57 = vadd.f32 %v9764_v29, %v11188_v11  ;;  %v2324_v46 = vpop.f32.mrb[127].mxu0  ;;  %3825 = vmatprep.mubr.bf16.mxu1 %v2563_v4  ;;  %v10031_v4 = vld [vmem:[%s12653_s1 + $0x420] sm:$0xff]  }
 0x1fd   : > { %v2412_v59 = vmax.f32 %v2322_v5, 0.0  ;;  %v2325_v7 = vadd.f32 %v2324_v46, %v11170_v25  ;;  %9130 = vmatpush3.bf16.msra.mxu0 %v10028_v15  ;;  %v2596_v25 = vld [vmem:[#allocation2 + $0x32] sm:$0xff] }
 0x1fe   : > { %v8735_v14 = vpop.f32.mrb[124].mxu1  ;;  %3971 = vmatmul.mubr.bf16.gmra.mrb[148].mxu0 %v11251_v31  ;;  %2446 = vst [vmem:[#allocation2 + $0xc1] sm:$0xff] %v2414_v50  ;;  %v2415_v11 = vmax.f32 %v2333_v57, 0.0  ;;  %9131 = vmatprep.subr.bf16.mxu0 %v10029_v28  ;;  %v2599_v5 = vld [vmem:[#allocation2 + $0x52] sm:$0xff] }
 0x1ff   : > { %v8736_v43 = vpop.f32.mrb[125].mxu1  ;;  %3978 = vmatprep.mubr.bf16.mxu0 %v11258_v39  ;;  %2444 = vst [vmem:[#allocation2 + $0xa9] sm:$0xff] %v2412_v59  ;;  %v2413_v8 = vmax.f32 %v2325_v7, 0.0  ;;  %v10037_v46 = vld [vmem:[%s12653_s1 + $0x3f0] sm:$0xff]  }
 0x200   : > { %v8737_v21 = vadd.f32 %v8736_v43, %v8735_v14  ;;  %v8738_v1 = vpop.f32.mrb[126].mxu1  ;;  %2447 = vst [vmem:[#allocation2 + $0xc9] sm:$0xff] %v2415_v11  ;;  %v11276_v34 = vpack.c.bf16 %v2415_v11, %v2414_v50  ;;  %v10038_v11 = vld [vmem:[%s12653_s1 + $0x438] sm:$0xff]  }
 0x201   : > { %v8739_v16 = vpop.f32.mrb[127].mxu1  ;;  %2445 = vst [vmem:[#allocation2 + $0xb1] sm:$0xff] %v2413_v8  ;;  %v9767_v38 = vpop.f32.mrb[128].mxu0  ;;  %v11278_v37 = vpack.c.bf16 %v2413_v8, %v2412_v59  ;;  %9132 = vmatpush3.bf16.msra.mxu0 %v10030_v41  ;;  %v2664_v41 = vld [vmem:[#allocation2 + $0x78] sm:$0xff] }
 0x202   : > { %v8740_v35 = vadd.f32 %v8739_v16, %v8738_v1  ;;  %v11265_v55 = vadd.f32 %v8737_v21, %v11113_v26  ;;  %v2663_v26 = vld [vmem:[#allocation2 + $0x68] sm:$0xff]  ;;  %v2346_v27 = vadd.f32 %v9767_v38, %v11210_v61  ;;  %v2337_v45 = vpop.f32.mrb[129].mxu0  ;;  %9133 = vmatprep.subr.bf16.mxu0 %v10031_v4 }
 0x203   : > { %v2338_v2 = vadd.f32 %v2337_v45, %v11195_v3  ;;  %v9768_v47 = vpop.f32.mrb[130].mxu0  ;;  %3826 = vmatmul.mubr.bf16.gmra.mrb[156].mxu1 %v11258_v39  ;;  %v11291_v14 = vpack.c.bf16 %v2663_v26, %v2662_v58  ;;  %v10039_v58 = vld [vmem:[%s12653_s1 + $0x3f8] sm:$0xff]  }
 0x204   : > { %v11274_v44 = vadd.f32 %v8740_v35, %v11122_v63  ;;  %v11284_v63 = vpack.c.bf16 %v2597_v22, %v2596_v25  ;;  %v2418_v61 = vmax.f32 %v2346_v27, 0.0  ;;  %v2349_v9 = vadd.f32 %v9768_v47, %v11214_v23  ;;  %v2340_v0 = vpop.f32.mrb[131].mxu0  ;;  %3833 = vmatprep.mubr.bf16.mxu1 %v11216_v36  ;;  %v10034_v23 = vld [vmem:[%s12653_s1 + $0x3e8] sm:$0xff]   ;;  %v10035_v36 = vld [vmem:[%s12653_s1 + $0x430] sm:$0xff]  }
 0x205   : > { %v2416_v43 = vmax.f32 %v2338_v2, 0.0  ;;  %v2341_v10 = vadd.f32 %v2340_v0, %v11198_v60  ;;  %9134 = vmatpush3.bf16.msra.mxu0 %v10032_v54  ;;  %v2598_v60 = vld [vmem:[#allocation2 + $0x4a] sm:$0xff] }
 0x206   : > { %v8741_v12 = vpop.f32.mrb[128].mxu1  ;;  %3979 = vmatmul.mubr.bf16.gmra.mrb[152].mxu0 %v11284_v63  ;;  %2450 = vst [vmem:[#allocation2 + $0xf1] sm:$0xff] %v2418_v61  ;;  %v2419_v28 = vmax.f32 %v2349_v9, 0.0  ;;  %9135 = vmatprep.subr.bf16.mxu0 %v10033_v17  ;;  %v2601_v2 = vld [vmem:[#allocation2 + $0x6a] sm:$0xff] }
 0x207   : > { %v8742_v53 = vpop.f32.mrb[129].mxu1  ;;  %3986 = vmatprep.mubr.bf16.mxu0 %v11291_v14  ;;  %2448 = vst [vmem:[#allocation2 + $0xd9] sm:$0xff] %v2416_v43  ;;  %v2417_v21 = vmax.f32 %v2341_v10, 0.0 }
 0x208   : > { %v8743_v42 = vadd.f32 %v8742_v53, %v8741_v12  ;;  %v8744_v13 = vpop.f32.mrb[130].mxu1  ;;  %2451 = vst [vmem:[#allocation2 + $0xf9] sm:$0xff] %v2419_v28  ;;  %v11310_v29 = vpack.c.bf16 %v2419_v28, %v2418_v61 }
 0x209   : > { %v8745_v15 = vpop.f32.mrb[131].mxu1  ;;  %2449 = vst [vmem:[#allocation2 + $0xe1] sm:$0xff] %v2417_v21  ;;  %v9771_v57 = vpop.f32.mrb[132].mxu0  ;;  %v11312_v16 = vpack.c.bf16 %v2417_v21, %v2416_v43  ;;  %9136 = vmatpush3.bf16.msra.mxu0 %v10034_v23 }
 0x20a   : > { %v8746_v48 = vadd.f32 %v8745_v15, %v8744_v13  ;;  %v11299_v3 = vadd.f32 %v8743_v42, %v11128_v56  ;;  %v2665_v56 = vld [vmem:[#allocation2 + $0x80] sm:$0xff]  ;;  %v2362_v59 = vadd.f32 %v9771_v57, %v11265_v55  ;;  %v2353_v7 = vpop.f32.mrb[133].mxu0  ;;  %9137 = vmatprep.subr.bf16.mxu0 %v10035_v36 }
 0x20b   : > { %v2354_v8 = vadd.f32 %v2353_v7, %v11232_v51  ;;  %v9772_v22 = vpop.f32.mrb[134].mxu0  ;;  %3834 = vmatmul.mubr.bf16.gmra.mrb[160].mxu1 %v11291_v14  ;;  %v11325_v26 = vpack.c.bf16 %v2665_v56, %v2664_v41  ;;  %v2600_v42 = vld [vmem:[#allocation2 + $0x62] sm:$0xff]  ;;  %v2602_v41 = vld [vmem:[#allocation2 + $0x7a] sm:$0xff] }
 0x20c   : > { %v11308_v1 = vadd.f32 %v8746_v48, %v11134_v40  ;;  %v11318_v40 = vpack.c.bf16 %v2599_v5, %v2598_v60  ;;  %v2422_v55 = vmax.f32 %v2362_v59, 0.0  ;;  %v2365_v12 = vadd.f32 %v9772_v22, %v11274_v44  ;;  %v2356_v54 = vpop.f32.mrb[135].mxu0  ;;  %3841 = vmatprep.mubr.bf16.mxu1 %v11245_v18  ;;  %v2666_v48 = vld [vmem:[#allocation2 + $0x90] sm:$0xff] }
 0x20d   : > { %v2420_v27 = vmax.f32 %v2354_v8, 0.0  ;;  %v2357_v45 = vadd.f32 %v2356_v54, %v11241_v24  ;;  %9138 = vmatpush3.bf16.msra.mxu0 %v10037_v46  ;;  %v2667_v24 = vld [vmem:[#allocation2 + $0x98] sm:$0xff]  ;;  %v11341_v43 = vpack.c.bf16 %v2601_v2, %v2600_v42 }
 0x20e   : > { %v8747_v50 = vpop.f32.mrb[132].mxu1  ;;  %3987 = vmatmul.mubr.bf16.gmra.mrb[156].mxu0 %v11318_v40  ;;  %2454 = vst [vmem:[#allocation2 + $0x121] sm:$0xff] %v2422_v55  ;;  %v2423_v44 = vmax.f32 %v2365_v12, 0.0  ;;  %9139 = vmatprep.subr.bf16.mxu0 %v10038_v11  ;;  %v11345_v36 = vpack.c.bf16 %v2667_v24, %v2666_v48  ;;  %v2603_v11 = vld [vmem:[#allocation2 + $0x82] sm:$0xff] }
 0x20f   : > { %v8748_v35 = vpop.f32.mrb[133].mxu1  ;;  %3994 = vmatprep.mubr.bf16.mxu0 %v11325_v26  ;;  %2452 = vst [vmem:[#allocation2 + $0x109] sm:$0xff] %v2420_v27  ;;  %v2421_v17 = vmax.f32 %v2357_v45, 0.0  ;;  %v2668_v12 = vld [vmem:[#allocation2 + $0xa8] sm:$0xff] }
 0x210   : > { %v8749_v4 = vadd.f32 %v8748_v35, %v8747_v50  ;;  %v8750_v25 = vpop.f32.mrb[134].mxu1  ;;  %2455 = vst [vmem:[#allocation2 + $0x129] sm:$0xff] %v2423_v44  ;;  %v11337_v13 = vpack.c.bf16 %v2423_v44, %v2422_v55 }
 0x211   : > { %v8751_v38 = vpop.f32.mrb[135].mxu1  ;;  %2453 = vst [vmem:[#allocation2 + $0x111] sm:$0xff] %v2421_v17  ;;  %v9775_v47 = vpop.f32.mrb[136].mxu0  ;;  %v11339_v61 = vpack.c.bf16 %v2421_v17, %v2420_v27  ;;  %9140 = vmatpush3.bf16.msra.mxu0 %v10039_v58 }
 0x212   : > { %v8752_v53 = vadd.f32 %v8751_v38, %v8750_v25  ;;  %v2217_v51 = vadd.f32 %v8749_v4, %v11143_v32  ;;  %v2369_v0 = vpop.f32.mrb[137].mxu0  ;;  %v2669_v4 = vld [vmem:[#allocation2 + $0xb0] sm:$0xff] }
 0x213   : > { %v9776_v28 = vpop.f32.mrb[138].mxu0  ;;  %3842 = vmatmul.mubr.bf16.gmra.mrb[164].mxu1 %v11325_v26 }
 0x214   : > { %v2220_v18 = vadd.f32 %v8752_v53, %v11152_v30  ;;  %v2378_v9 = vadd.f32 %v9775_v47, %v2217_v51  ;;  %v2370_v30 = vadd.f32 %v2369_v0, %v11299_v3  ;;  %v2372_v56 = vpop.f32.mrb[139].mxu0  ;;  %3849 = vmatprep.mubr.bf16.mxu1 %v11243_v33  ;;  %v11360_v53 = vpack.c.bf16 %v2669_v4, %v2668_v12  ;;  %v2605_v47 = vld [vmem:[#allocation2 + $0x9a] sm:$0xff] }
 0x215   : > { %v2373_v46 = vadd.f32 %v2372_v56, %v11308_v1  ;;  %v2609_v56 = vld [vmem:[#allocation2 + $0xca] sm:$0xff] }
 0x216   : > { %v8753_v32 = vpop.f32.mrb[136].mxu1  ;;  %v2426_v21 = vmax.f32 %v2378_v9, 0.0  ;;  %v2381_v60 = vadd.f32 %v9776_v28, %v2220_v18  ;;  %3995 = vmatmul.mubr.bf16.gmra.mrb[160].mxu0 %v11341_v43  ;;  %v2424_v50 = vmax.f32 %v2370_v30, 0.0  ;;  %v2671_v9 = vld [vmem:[#allocation2 + $0xc8] sm:$0xff]  ;;  %v2673_v28 = vld [vmem:[#allocation2 + $0xe0] sm:$0xff] }
 0x217   : > { %v8754_v15 = vpop.f32.mrb[137].mxu1  ;;  %4002 = vmatprep.mubr.bf16.mxu0 %v11345_v36  ;;  %v2425_v35 = vmax.f32 %v2373_v46, 0.0  ;;  %v2674_v46 = vld [vmem:[#allocation2 + $0xf0] sm:$0xff] }
 0x218   : > { %v8755_v10 = vadd.f32 %v8754_v15, %v8753_v32  ;;  %v8756_v23 = vpop.f32.mrb[138].mxu1  ;;  %2458 = vst [vmem:[#allocation2 + $0x151] sm:$0xff] %v2426_v21  ;;  %v2427_v59 = vmax.f32 %v2381_v60, 0.0  ;;  %2456 = vst [vmem:[#allocation2 + $0x139] sm:$0xff] %v2424_v50  ;;  %v2604_v32 = vld [vmem:[#allocation2 + $0x92] sm:$0xff] }
 0x219   : > { %v8757_v5 = vpop.f32.mrb[139].mxu1  ;;  %2457 = vst [vmem:[#allocation2 + $0x141] sm:$0xff] %v2425_v35  ;;  %v9779_v25 = vpop.f32.mrb[140].mxu0  ;;  %v11355_v1 = vpack.c.bf16 %v2425_v35, %v2424_v50  ;;  %v11367_v48 = vpack.c.bf16 %v2605_v47, %v2604_v32  ;;  %v2672_v60 = vld [vmem:[#allocation2 + $0xd8] sm:$0xff]  ;;  %v2677_v35 = vld [vmem:[#allocation2 + $0x110] sm:$0xff] }
 0x21a   : > { %v8758_v57 = vadd.f32 %v8757_v5, %v8756_v23  ;;  %v2225_v3 = vadd.f32 %v8755_v10, %v11161_v6  ;;  %2459 = vst [vmem:[#allocation2 + $0x159] sm:$0xff] %v2427_v59  ;;  %v11353_v8 = vpack.c.bf16 %v2427_v59, %v2426_v21  ;;  %v2385_v55 = vpop.f32.mrb[141].mxu0  ;;  %v11357_v6 = vpack.c.bf16 %v2603_v11, %v2602_v41  ;;  %v2607_v23 = vld [vmem:[#allocation2 + $0xb2] sm:$0xff]  ;;  %v2610_v59 = vld [vmem:[#allocation2 + $0xda] sm:$0xff]  ;;  %v2676_v41 = vld [vmem:[#allocation2 + $0x108] sm:$0xff] }
 0x21b   : > { %3850 = vmatmul.mubr.bf16.gmra.mrb[168].mxu1 %v11345_v36  ;;  %v11380_v5 = vpack.c.bf16 %v2673_v28, %v2672_v60  ;;  %v2675_v50 = vld [vmem:[#allocation2 + $0xf8] sm:$0xff]  ;;  %v11396_v11 = vpack.c.bf16 %v2677_v35, %v2676_v41 }
 0x21c   : > { %v2228_v7 = vadd.f32 %v8758_v57, %v11167_v52  ;;  %v2386_v54 = vadd.f32 %v2385_v55, %v2225_v3  ;;  %v9780_v52 = vpop.f32.mrb[142].mxu0  ;;  %3857 = vmatprep.mubr.bf16.mxu1 %v11278_v37  ;;  %v2670_v37 = vld [vmem:[#allocation2 + $0xc0] sm:$0xff]  ;;  %v11388_v3 = vpack.c.bf16 %v2675_v50, %v2674_v46  ;;  %v2912_v41 = vld [vmem:[#allocation2 + $0x31] sm:$0xff] }
 0x21d   : > { %v2388_v51 = vpop.f32.mrb[143].mxu0  ;;  %v11372_v30 = vpack.c.bf16 %v2671_v9, %v2670_v37  ;;  %v2613_v55 = vld [vmem:[#allocation2 + $0xfa] sm:$0xff] }
 0x21e   : > { %v8759_v33 = vpop.f32.mrb[140].mxu1  ;;  %4003 = vmatmul.mubr.bf16.gmra.mrb[164].mxu0 %v11357_v6  ;;  %v2428_v44 = vmax.f32 %v2386_v54, 0.0  ;;  %v2389_v18 = vadd.f32 %v2388_v51, %v2228_v7  ;;  %v2615_v51 = vld [vmem:[#allocation2 + $0x112] sm:$0xff] }
 0x21f   : > { %v8760_v22 = vpop.f32.mrb[141].mxu1  ;;  %4010 = vmatprep.mubr.bf16.mxu0 %v11360_v53  ;;  %v2682_v32 = vld [vmem:[#allocation2 + $0x150] sm:$0xff]  ;;  %v2720_v46 = vld [vmem:[#allocation2 + $0x19] sm:$0xff] }
 0x220   : > { %v8761_v38 = vadd.f32 %v8760_v22, %v8759_v33  ;;  %v8762_v27 = vpop.f32.mrb[142].mxu1  ;;  %2460 = vst [vmem:[#allocation2 + $0x169] sm:$0xff] %v2428_v44  ;;  %v2429_v24 = vmax.f32 %v2389_v18, 0.0  ;;  %v2612_v22 = vld [vmem:[#allocation2 + $0xf2] sm:$0xff]  ;;  %v2618_v9 = vld [vmem:[#allocation2 + $0x13a] sm:$0xff] }
 0x221   : > { %v8763_v45 = vpop.f32.mrb[143].mxu1 }
 0x222   : > { %v2233_v58 = vadd.f32 %v8761_v38, %v11176_v62  ;;  %v8764_v17 = vadd.f32 %v8763_v45, %v8762_v27  ;;  %2461 = vst [vmem:[#allocation2 + $0x171] sm:$0xff] %v2429_v24  ;;  %v11369_v62 = vpack.c.bf16 %v2429_v24, %v2428_v44  ;;  %v2679_v38 = vld [vmem:[#allocation2 + $0x128] sm:$0xff]  ;;  %v11405_v27 = vpack.c.bf16 %v2613_v55, %v2612_v22  ;;  %v10042_v55 = vld [vmem:[%s12653_s1 + $0x458] sm:$0xff]  }
 0x223   : > { %3858 = vmatmul.mubr.bf16.gmra.mrb[172].mxu1 %v11360_v53  ;;  %v2914_v22 = vld [vmem:[#allocation2 + $0x49] sm:$0xff] }
 0x224   : > { %v2394_v42 = vadd.f32 %v9779_v25, %v2233_v58  ;;  %v2236_v2 = vadd.f32 %v8764_v17, %v11185_v19  ;;  %3865 = vmatprep.mubr.bf16.mxu1 %v11276_v34  ;;  %v2606_v19 = vld [vmem:[#allocation2 + $0xaa] sm:$0xff]  ;;  %v2608_v34 = vld [vmem:[#allocation2 + $0xc2] sm:$0xff]  ;;  %v2680_v17 = vld [vmem:[#allocation2 + $0x138] sm:$0xff] }
 0x225   : > { %v11377_v21 = vpack.c.bf16 %v2607_v23, %v2606_v19  ;;  %v11385_v57 = vpack.c.bf16 %v2609_v56, %v2608_v34  ;;  %v2681_v58 = vld [vmem:[#allocation2 + $0x140] sm:$0xff]  ;;  %v2620_v19 = vld [vmem:[#allocation2 + $0x152] sm:$0xff] }
 0x226   : > { %v2430_v15 = vmax.f32 %v2394_v42, 0.0  ;;  %v2397_v0 = vadd.f32 %v9780_v52, %v2236_v2  ;;  %4011 = vmatmul.mubr.bf16.gmra.mrb[168].mxu0 %v11367_v48  ;;  %v2678_v52 = vld [vmem:[#allocation2 + $0x120] sm:$0xff]  ;;  %v11416_v18 = vpack.c.bf16 %v2681_v58, %v2680_v17  ;;  %v2683_v2 = vld [vmem:[#allocation2 + $0x158] sm:$0xff] }
 0x227   : > { %4018 = vmatprep.mubr.bf16.mxu0 %v11372_v30  ;;  %v11408_v45 = vpack.c.bf16 %v2679_v38, %v2678_v52  ;;  %v2616_v42 = vld [vmem:[#allocation2 + $0x122] sm:$0xff]  ;;  %v11424_v47 = vpack.c.bf16 %v2683_v2, %v2682_v32  ;;  %v10046_v58 = vld [vmem:[%s12653_s1 + $0x478] sm:$0xff]  }
 0x228   : > { %2462 = vst [vmem:[#allocation2 + $0x181] sm:$0xff] %v2430_v15  ;;  %v2431_v10 = vmax.f32 %v2397_v0, 0.0  ;;  %v2684_v37 = vld [vmem:[#allocation2 + $0x168] sm:$0xff] }
 0x229   : > { %v2685_v15 = vld [vmem:[#allocation2 + $0x170] sm:$0xff]  ;;  %v2721_v56 = vld [vmem:[#allocation2 + $0x21] sm:$0xff] }
 0x22a   : > { %2463 = vst [vmem:[#allocation2 + $0x189] sm:$0xff] %v2431_v10  ;;  %v11432_v10 = vpack.c.bf16 %v2685_v15, %v2684_v37  ;;  %v2623_v50 = vld [vmem:[#allocation2 + $0x172] sm:$0xff]  ;;  %v2916_v38 = vld [vmem:[#allocation2 + $0x61] sm:$0xff]  ;;  %v2922_v2 = vld [vmem:[#allocation2 + $0xa9] sm:$0xff] }
 0x22b   : > { %3866 = vmatmul.mubr.bf16.gmra.mrb[176].mxu1 %v11372_v30  ;;  %v10044_v52 = vld [vmem:[%s12653_s1 + $0x468] sm:$0xff]  }
 0x22c   : > { %3873 = vmatprep.mubr.bf16.mxu1 %v11312_v16  ;;  %v2611_v16 = vld [vmem:[#allocation2 + $0xe2] sm:$0xff] }
 0x22d   : > { %v11393_v7 = vpack.c.bf16 %v2611_v16, %v2610_v59  ;;  %v2913_v59 = vld [vmem:[#allocation2 + $0x39] sm:$0xff]  ;;  %v2752_v16 = vpack.c.bf16 %v2721_v56, %v2720_v46 }
 0x22e   : > { %4019 = vmatmul.mubr.bf16.gmra.mrb[172].mxu0 %v11377_v21 }
 0x22f   : > { %4026 = vmatprep.mubr.bf16.mxu0 %v11380_v5  ;;  %v2686_v60 = vld [vmem:[#allocation2 + $0x180] sm:$0xff] }
 0x231   : > { %v2687_v23 = vld [vmem:[#allocation2 + $0x188] sm:$0xff] }
 0x232   : > { %v11440_v34 = vpack.c.bf16 %v2687_v23, %v2686_v60 }
 0x233   : > { %3874 = vmatmul.mubr.bf16.gmra.mrb[180].mxu1 %v11380_v5 }
 0x234   : > { %3881 = vmatprep.mubr.bf16.mxu1 %v11310_v29 }
 0x236   : > { %4027 = vmatmul.mubr.bf16.gmra.mrb[176].mxu0 %v11385_v57 }
 0x237   : > { %4034 = vmatprep.mubr.bf16.mxu0 %v11388_v3 }
 0x238   : > { %v8805_v4 = vpop.f32.mrb[144].mxu1 }
 0x239   : > { %v8806_v29 = vpop.f32.mrb[145].mxu1 }
 0x23a   : > { %v11401_v33 = vadd.f32 %v8806_v29, %v8805_v4  ;;  %v8808_v25 = vpop.f32.mrb[146].mxu1  ;;  %v10040_v4 = vld [vmem:[%s12653_s1 + $0x448] sm:$0xff]   ;;  %v2944_v29 = vpack.c.bf16 %v2913_v59, %v2912_v41  ;;  %v2936_v41 = vld [vmem:[#allocation2 + $0x151] sm:$0xff] }
 0x23b   : > { %3882 = vmatmul.mubr.bf16.gmra.mrb[184].mxu1 %v11388_v3  ;;  %v8809_v12 = vpop.f32.mrb[147].mxu1 }
 0x23c   : > { %3889 = vmatprep.mubr.bf16.mxu1 %v11339_v61  ;;  %v11403_v54 = vadd.f32 %v8809_v12, %v8808_v25  ;;  %v2614_v61 = vld [vmem:[#allocation2 + $0x10a] sm:$0xff] }
 0x23d   : > { %v11413_v44 = vpack.c.bf16 %v2615_v51, %v2614_v61  ;;  %v2915_v25 = vld [vmem:[#allocation2 + $0x51] sm:$0xff]  ;;  %v2918_v51 = vld [vmem:[#allocation2 + $0x79] sm:$0xff] }
 0x23e   : > { %4035 = vmatmul.mubr.bf16.gmra.mrb[180].mxu0 %v11393_v7  ;;  %v2945_v12 = vpack.c.bf16 %v2915_v25, %v2914_v22  ;;  %v10048_v22 = vld [vmem:[%s12653_s1 + $0x480] sm:$0xff]  }
 0x23f   : > { %4042 = vmatprep.mubr.bf16.mxu0 %v11396_v11 }
 0x243   : > { %3890 = vmatmul.mubr.bf16.gmra.mrb[188].mxu1 %v11396_v11 }
 0x244   : > { %3897 = vmatprep.mubr.bf16.mxu1 %v11337_v13  ;;  %v2617_v13 = vld [vmem:[#allocation2 + $0x12a] sm:$0xff] }
 0x245   : > { %v11421_v24 = vpack.c.bf16 %v2617_v13, %v2616_v42  ;;  %v2923_v13 = vld [vmem:[#allocation2 + $0xb1] sm:$0xff] }
 0x246   : > { %4043 = vmatmul.mubr.bf16.gmra.mrb[184].mxu0 %v11405_v27  ;;  %v2949_v32 = vpack.c.bf16 %v2923_v13, %v2922_v2 }
 0x247   : > { %4050 = vmatprep.mubr.bf16.mxu0 %v11408_v45 }
 0x24b   : > { %3898 = vmatmul.mubr.bf16.gmra.mrb[192].mxu1 %v11408_v45 }
 0x24c   : > { %3905 = vmatprep.mubr.bf16.mxu1 %v11355_v1  ;;  %v2619_v1 = vld [vmem:[#allocation2 + $0x142] sm:$0xff] }
 0x24d   : > { %v11429_v0 = vpack.c.bf16 %v2619_v1, %v2618_v9 }
 0x24e   : > { %4051 = vmatmul.mubr.bf16.gmra.mrb[188].mxu0 %v11413_v44 }
 0x24f   : > { %4058 = vmatprep.mubr.bf16.mxu0 %v11416_v18 }
 0x253   : > { %3906 = vmatmul.mubr.bf16.gmra.mrb[196].mxu1 %v11416_v18 }
 0x254   : > { %3913 = vmatprep.mubr.bf16.mxu1 %v11353_v8  ;;  %v2621_v8 = vld [vmem:[#allocation2 + $0x15a] sm:$0xff] }
 0x255   : > { %v11437_v28 = vpack.c.bf16 %v2621_v8, %v2620_v19 }
 0x256   : > { %4059 = vmatmul.mubr.bf16.gmra.mrb[192].mxu0 %v11421_v24 }
 0x257   : > { %4066 = vmatprep.mubr.bf16.mxu0 %v11424_v47 }
 0x25b   : > { %3914 = vmatmul.mubr.bf16.gmra.mrb[200].mxu1 %v11424_v47 }
 0x25c   : > { %3921 = vmatprep.mubr.bf16.mxu1 %v11369_v62  ;;  %v2622_v62 = vld [vmem:[#allocation2 + $0x16a] sm:$0xff] }
 0x25d   : > { %v11445_v35 = vpack.c.bf16 %v2623_v50, %v2622_v62  ;;  %v2937_v62 = vld [vmem:[#allocation2 + $0x159] sm:$0xff] }
 0x25e   : > { %4067 = vmatmul.mubr.bf16.gmra.mrb[196].mxu0 %v11429_v0 }
 0x25f   : > { %4074 = vmatprep.mubr.bf16.mxu0 %v11432_v10 }
 0x263   : > { %3922 = vmatmul.mubr.bf16.gmra.mrb[204].mxu1 %v11432_v10 }
 0x264   : > { %4123 = vmatprep.mubr.bf16.mxu1 %v11251_v31  ;;  %v10041_v31 = vld [vmem:[%s12653_s1 + $0x450] sm:$0xff]  }
 0x266   : > { %4075 = vmatmul.mubr.bf16.gmra.mrb[200].mxu0 %v11437_v28 }
 0x267   : > { %4082 = vmatprep.mubr.bf16.mxu0 %v11440_v34 }
 0x26b   : > { %4124 = vmatmul.mubr.bf16.vlgmr.msra.gmra.mrb[208].mxu1 %v2752_v16 }
 0x26c   : > { %4131 = vmatprep.mubr.bf16.mxu1 %v11284_v63  ;;  %9782 = vmatpush3.bf16.msra.mxu1 %v11206_v20  ;;  %v10043_v20 = vld [vmem:[%s12653_s1 + $0x460] sm:$0xff]   ;;  %v2917_v63 = vld [vmem:[#allocation2 + $0x69] sm:$0xff] }
 0x26d   : > { %9783 = vmatprep.subr.bf16.mxu1 %v10040_v4  ;;  %v2946_v61 = vpack.c.bf16 %v2917_v63, %v2916_v38 }
 0x26e   : > { %4083 = vmatmul.mubr.bf16.gmra.mrb[204].mxu0 %v11445_v35 }
 0x26f   : > { %4284 = vmatprep.mubr.bf16.mxu0 %v2944_v29 }
 0x270   : > { %9784 = vmatpush3.bf16.msra.mxu1 %v10040_v4 }
 0x271   : > { %9785 = vmatprep.subr.bf16.mxu1 %v10041_v31 }
 0x273   : > { %4132 = vmatmul.mubr.bf16.gmra.mrb[212].mxu1 %v2944_v29 }
 0x274   : > { %4139 = vmatprep.mubr.bf16.mxu1 %v11318_v40  ;;  %9786 = vmatpush3.bf16.msra.mxu1 %v10041_v31  ;;  %v2919_v40 = vld [vmem:[#allocation2 + $0x81] sm:$0xff]  ;;  %v2956_v31 = vpack.c.bf16 %v2937_v62, %v2936_v41 }
 0x275   : > { %9787 = vmatprep.subr.bf16.mxu1 %v10042_v55  ;;  %v2947_v17 = vpack.c.bf16 %v2919_v40, %v2918_v51 }
 0x276   : > { %4285 = vmatmul.mubr.bf16.vlgmr.msra.gmra.mrb[208].mxu0 %v11226_v49  ;;  %v10045_v49 = vld [vmem:[%s12653_s1 + $0x470] sm:$0xff]  }
 0x277   : > { %4292 = vmatprep.mubr.bf16.mxu0 %v2945_v12 }
 0x278   : > { %9788 = vmatpush3.bf16.msra.mxu1 %v10042_v55 }
 0x279   : > { %9789 = vmatprep.subr.bf16.mxu1 %v10043_v20 }
 0x27b   : > { %4140 = vmatmul.mubr.bf16.gmra.mrb[216].mxu1 %v2945_v12 }
 0x27c   : > { %4147 = vmatprep.mubr.bf16.mxu1 %v11341_v43  ;;  %9790 = vmatpush3.bf16.msra.mxu1 %v10043_v20  ;;  %v2920_v43 = vld [vmem:[#allocation2 + $0x91] sm:$0xff] }
 0x27d   : > { %9791 = vmatprep.subr.bf16.mxu1 %v10044_v52 }
 0x27e   : > { %4293 = vmatmul.mubr.bf16.gmra.mrb[212].mxu0 %v11258_v39  ;;  %v2921_v39 = vld [vmem:[#allocation2 + $0x99] sm:$0xff] }
 0x27f   : > { %4300 = vmatprep.mubr.bf16.mxu0 %v2946_v61  ;;  %v2948_v42 = vpack.c.bf16 %v2921_v39, %v2920_v43 }
 0x280   : > { %9792 = vmatpush3.bf16.msra.mxu1 %v10044_v52 }
 0x281   : > { %9793 = vmatprep.subr.bf16.mxu1 %v10045_v49 }
 0x283   : > { %4148 = vmatmul.mubr.bf16.gmra.mrb[220].mxu1 %v2946_v61 }
 0x284   : > { %4155 = vmatprep.mubr.bf16.mxu1 %v11357_v6  ;;  %9794 = vmatpush3.bf16.msra.mxu1 %v10045_v49  ;;  %v2924_v6 = vld [vmem:[#allocation2 + $0xc1] sm:$0xff] }
 0x285   : > { %9795 = vmatprep.subr.bf16.mxu1 %v10046_v58 }
 0x286   : > { %4301 = vmatmul.mubr.bf16.gmra.mrb[216].mxu0 %v11291_v14  ;;  %v2925_v14 = vld [vmem:[#allocation2 + $0xc9] sm:$0xff] }
 0x287   : > { %4308 = vmatprep.mubr.bf16.mxu0 %v2947_v17  ;;  %v2950_v9 = vpack.c.bf16 %v2925_v14, %v2924_v6 }
 0x288   : > { %9796 = vmatpush3.bf16.msra.mxu1 %v10046_v58 }
 0x28b   : > { %4156 = vmatmul.mubr.bf16.gmra.mrb[224].mxu1 %v2947_v17  ;;  %v2938_v17 = vld [vmem:[#allocation2 + $0x169] sm:$0xff] }
 0x28c   : > { %4163 = vmatprep.mubr.bf16.mxu1 %v11367_v48  ;;  %v2926_v48 = vld [vmem:[#allocation2 + $0xd9] sm:$0xff] }
 0x28e   : > { %4309 = vmatmul.mubr.bf16.gmra.mrb[220].mxu0 %v11325_v26  ;;  %v2927_v26 = vld [vmem:[#allocation2 + $0xe1] sm:$0xff] }
 0x28f   : > { %4316 = vmatprep.mubr.bf16.mxu0 %v2948_v42  ;;  %v2951_v1 = vpack.c.bf16 %v2927_v26, %v2926_v48  ;;  %v2815_v26 = vld [vmem:[#allocation2 + $0x18a] sm:$0xff] }
 0x293   : > { %4164 = vmatmul.mubr.bf16.gmra.mrb[228].mxu1 %v2948_v42 }
 0x294   : > { %4171 = vmatprep.mubr.bf16.mxu1 %v11377_v21  ;;  %v2928_v21 = vld [vmem:[#allocation2 + $0xf1] sm:$0xff] }
 0x296   : > { %4317 = vmatmul.mubr.bf16.gmra.mrb[224].mxu0 %v11345_v36  ;;  %v2929_v36 = vld [vmem:[#allocation2 + $0xf9] sm:$0xff] }
 0x297   : > { %4324 = vmatprep.mubr.bf16.mxu0 %v2949_v32  ;;  %v2952_v15 = vpack.c.bf16 %v2929_v36, %v2928_v21  ;;  %v2941_v21 = vld [vmem:[#allocation2 + $0x189] sm:$0xff] }
 0x29b   : > { %4172 = vmatmul.mubr.bf16.gmra.mrb[232].mxu1 %v2949_v32 }
 0x29c   : > { %4179 = vmatprep.mubr.bf16.mxu1 %v11385_v57  ;;  %v2930_v57 = vld [vmem:[#allocation2 + $0x109] sm:$0xff] }
 0x29e   : > { %4325 = vmatmul.mubr.bf16.gmra.mrb[228].mxu0 %v11360_v53  ;;  %v2931_v53 = vld [vmem:[#allocation2 + $0x111] sm:$0xff] }
 0x29f   : > { %4332 = vmatprep.mubr.bf16.mxu0 %v2950_v9  ;;  %v2953_v37 = vpack.c.bf16 %v2931_v53, %v2930_v57 }
 0x2a3   : > { %4180 = vmatmul.mubr.bf16.gmra.mrb[236].mxu1 %v2950_v9  ;;  %v2814_v9 = vld [vmem:[#allocation2 + $0x182] sm:$0xff] }
 0x2a4   : > { %4187 = vmatprep.mubr.bf16.mxu1 %v11393_v7  ;;  %v2932_v7 = vld [vmem:[#allocation2 + $0x121] sm:$0xff] }
 0x2a6   : > { %4333 = vmatmul.mubr.bf16.gmra.mrb[232].mxu0 %v11372_v30  ;;  %v2933_v30 = vld [vmem:[#allocation2 + $0x129] sm:$0xff] }
 0x2a7   : > { %4340 = vmatprep.mubr.bf16.mxu0 %v2951_v1  ;;  %v2954_v19 = vpack.c.bf16 %v2933_v30, %v2932_v7  ;;  %v2940_v7 = vld [vmem:[#allocation2 + $0x181] sm:$0xff] }
 0x2ab   : > { %4188 = vmatmul.mubr.bf16.gmra.mrb[240].mxu1 %v2951_v1 }
 0x2ac   : > { %4195 = vmatprep.mubr.bf16.mxu1 %v11405_v27  ;;  %v2934_v27 = vld [vmem:[#allocation2 + $0x139] sm:$0xff] }
 0x2ae   : > { %4341 = vmatmul.mubr.bf16.gmra.mrb[236].mxu0 %v11380_v5  ;;  %v2935_v5 = vld [vmem:[#allocation2 + $0x141] sm:$0xff] }
 0x2af   : > { %4348 = vmatprep.mubr.bf16.mxu0 %v2952_v15  ;;  %v2955_v8 = vpack.c.bf16 %v2935_v5, %v2934_v27  ;;  %v2958_v27 = vpack.c.bf16 %v2941_v21, %v2940_v7  ;;  %v2983_v7 = vld [vmem:[#allocation2 + $0x82] sm:$0xff] }
 0x2b3   : > { %4196 = vmatmul.mubr.bf16.gmra.mrb[244].mxu1 %v2952_v15 }
 0x2b4   : > { %4203 = vmatprep.mubr.bf16.mxu1 %v11413_v44 }
 0x2b6   : > { %4349 = vmatmul.mubr.bf16.gmra.mrb[240].mxu0 %v11388_v3  ;;  %v11496_v3 = vld [vmem:[%s12654_s2 + $0x1] ss:$0 sm:$0xff] }
 0x2b7   : > { %4356 = vmatprep.mubr.bf16.mxu0 %v2953_v37  ;;  %v3804_v50 = vadd.f32 %v11401_v33, %v11496_v3  ;;  %v3807_v4 = vadd.f32 %v11403_v54, %v11496_v3  ;;  %v10047_v33 = vld [vmem:[%s12653_s1 + $0x4c0] sm:$0xff]  }
 0x2b8   : > { %9261 = vmatprep.subr.bf16.mxu0 %v10047_v33 }
 0x2b9   : > { %9262 = vmatpush3.bf16.msra.mxu0 %v10048_v22 }
 0x2bb   : > { %4204 = vmatmul.mubr.bf16.gmra.mrb[248].mxu1 %v2953_v37 }
 0x2bc   : > { %4211 = vmatprep.mubr.bf16.mxu1 %v11421_v24 }
 0x2be   : > { %4357 = vmatmul.mubr.bf16.gmra.mrb[244].mxu0 %v11396_v11 }
 0x2bf   : > { %4364 = vmatprep.mubr.bf16.mxu0 %v2954_v19 }
 0x2c3   : > { %4212 = vmatmul.mubr.bf16.gmra.mrb[252].mxu1 %v2954_v19 }
 0x2c4   : > { %4219 = vmatprep.mubr.bf16.mxu1 %v11429_v0 }
 0x2c6   : > { %4365 = vmatmul.mubr.bf16.gmra.mrb[248].mxu0 %v11408_v45  ;;  %v8811_v44 = vpop.f32.mrb[148].mxu1 }
 0x2c7   : > { %4372 = vmatprep.mubr.bf16.mxu0 %v2955_v8  ;;  %v8917_v23 = vpop.f32.mrb[144].mxu0  ;;  %v8812_v11 = vpop.f32.mrb[149].mxu1 }
 0x2c8   : > { %v8813_v60 = vadd.f32 %v8812_v11, %v8811_v44  ;;  %v8918_v24 = vpop.f32.mrb[145].mxu0  ;;  %v8814_v56 = vpop.f32.mrb[150].mxu1  ;;  %v10049_v44 = vld [vmem:[%s12653_s1 + $0x4c8] sm:$0xff]  }
 0x2c9   : > { %v8919_v46 = vadd.f32 %v8918_v24, %v8917_v23  ;;  %v8920_v45 = vpop.f32.mrb[146].mxu0  ;;  %v8815_v59 = vpop.f32.mrb[151].mxu1  ;;  %v10050_v23 = vld [vmem:[%s12653_s1 + $0x488] sm:$0xff]   ;;  %v2942_v24 = vld [vmem:[#allocation2 + $0x199] sm:$0xff]  ;;  %9263 = vmatprep.subr.bf16.mxu0 %v10049_v44 }
 0x2ca   : > { %v8816_v0 = vadd.f32 %v8815_v59, %v8814_v56  ;;  %v8921_v16 = vpop.f32.mrb[147].mxu0  ;;  %v3812_v52 = vadd.f32 %v8813_v60, %v11496_v3  ;;  %v2943_v56 = vld [vmem:[#allocation2 + $0x1a1] sm:$0xff]  ;;  %9264 = vmatpush3.bf16.msra.mxu0 %v10050_v23 }
 0x2cb   : > { %v8922_v29 = vadd.f32 %v8921_v16, %v8920_v45  ;;  %4220 = vmatmul.mubr.bf16.gmra.mrb[0].mxu1 %v2955_v8  ;;  %v11502_v25 = vadd.f32 %v8919_v46, %v3804_v50  ;;  %v2977_v46 = vld [vmem:[#allocation2 + $0x3a] sm:$0xff] }
 0x2cc   : > { %4227 = vmatprep.mubr.bf16.mxu1 %v11437_v28  ;;  %v2939_v28 = vld [vmem:[#allocation2 + $0x171] sm:$0xff]  ;;  %v3815_v39 = vadd.f32 %v8816_v0, %v11496_v3  ;;  %v2985_v44 = vld [vmem:[#allocation2 + $0x9a] sm:$0xff] }
 0x2cd   : > { %v11512_v55 = vadd.f32 %v8922_v29, %v3807_v4  ;;  %v2957_v42 = vpack.c.bf16 %v2939_v28, %v2938_v17  ;;  %v2978_v28 = vld [vmem:[#allocation2 + $0x4a] sm:$0xff] }
 0x2ce   : > { %4373 = vmatmul.mubr.bf16.gmra.mrb[252].mxu0 %v11416_v18  ;;  %v8817_v54 = vpop.f32.mrb[152].mxu1 }
 0x2cf   : > { %4380 = vmatprep.mubr.bf16.mxu0 %v2956_v31  ;;  %v8818_v20 = vpop.f32.mrb[153].mxu1 }
 0x2d0   : > { %v8819_v63 = vadd.f32 %v8818_v20, %v8817_v54  ;;  %v8820_v38 = vpop.f32.mrb[154].mxu1 }
 0x2d1   : > { %v8923_v12 = vpop.f32.mrb[148].mxu0  ;;  %v8821_v40 = vpop.f32.mrb[155].mxu1 }
 0x2d2   : > { %v8924_v18 = vpop.f32.mrb[149].mxu0  ;;  %v8822_v51 = vadd.f32 %v8821_v40, %v8820_v38  ;;  %v3820_v15 = vadd.f32 %v8819_v63, %v11496_v3  ;;  %v2980_v40 = vld [vmem:[#allocation2 + $0x62] sm:$0xff] }
 0x2d3   : > { %v8925_v61 = vadd.f32 %v8924_v18, %v8923_v12  ;;  %v8926_v49 = vpop.f32.mrb[150].mxu0  ;;  %4228 = vmatmul.mubr.bf16.gmra.mrb[4].mxu1 %v2956_v31  ;;  %v2959_v31 = vpack.c.bf16 %v2943_v56, %v2942_v24 }
 0x2d4   : > { %v8927_v58 = vpop.f32.mrb[151].mxu0  ;;  %4235 = vmatprep.mubr.bf16.mxu1 %v11445_v35  ;;  %v11523_v35 = vpack.c.bf16 %v2815_v26, %v2814_v9  ;;  %v3823_v19 = vadd.f32 %v8822_v51, %v11496_v3  ;;  %v2981_v51 = vld [vmem:[#allocation2 + $0x6a] sm:$0xff] }
 0x2d5   : > { %v8928_v43 = vadd.f32 %v8927_v58, %v8926_v49  ;;  %v11516_v13 = vadd.f32 %v8925_v61, %v3812_v52  ;;  %v2979_v52 = vld [vmem:[#allocation2 + $0x52] sm:$0xff] }
 0x2d6   : > { %4381 = vmatmul.mubr.bf16.gmra.mrb[0].mxu0 %v11424_v47  ;;  %v8823_v32 = vpop.f32.mrb[156].mxu1  ;;  %v3009_v9 = vpack.c.bf16 %v2979_v52, %v2978_v28 }
 0x2d7   : > { %4388 = vmatprep.mubr.bf16.mxu0 %v2957_v42  ;;  %v11520_v2 = vadd.f32 %v8928_v43, %v3815_v39  ;;  %v8824_v6 = vpop.f32.mrb[157].mxu1  ;;  %v10120_v43 = vld [vmem:[#allocation2] sm:$0xff] }
 0x2d8   : > { %v8825_v48 = vadd.f32 %v8824_v6, %v8823_v32  ;;  %v8826_v36 = vpop.f32.mrb[158].mxu1 }
 0x2d9   : > { %v8929_v14 = vpop.f32.mrb[152].mxu0  ;;  %v8827_v37 = vpop.f32.mrb[159].mxu1 }
 0x2da   : > { %v8930_v1 = vpop.f32.mrb[153].mxu0  ;;  %v8828_v47 = vadd.f32 %v8827_v37, %v8826_v36  ;;  %v3828_v16 = vadd.f32 %v8825_v48, %v11496_v3 }
 0x2db   : > { %v8931_v53 = vadd.f32 %v8930_v1, %v8929_v14  ;;  %v8932_v57 = vpop.f32.mrb[154].mxu0  ;;  %4236 = vmatmul.mubr.bf16.gmra.mrb[8].mxu1 %v2957_v42  ;;  %v11545_v42 = vpack.c.bf16 %v10120_v43, %v10120_v43  ;;  %v3010_v1 = vpack.c.bf16 %v2981_v51, %v2980_v40 }
 0x2dc   : > { %v8933_v30 = vpop.f32.mrb[155].mxu0  ;;  %4243 = vmatprep.mubr.bf16.mxu1 %v11523_v35  ;;  %v3831_v12 = vadd.f32 %v8828_v47, %v11496_v3 }
 0x2dd   : > { %v8934_v5 = vadd.f32 %v8933_v30, %v8932_v57  ;;  %v11526_v8 = vadd.f32 %v8931_v53, %v3820_v15  ;;  %v10051_v53 = vld [vmem:[%s12653_s1 + $0x4d0] sm:$0xff]   ;;  %v2982_v30 = vld [vmem:[#allocation2 + $0x7a] sm:$0xff] }
 0x2de   : > { %4389 = vmatmul.mubr.bf16.gmra.mrb[4].mxu0 %v11432_v10  ;;  %v8829_v60 = vpop.f32.mrb[160].mxu1  ;;  %v2976_v10 = vld [vmem:[#allocation2 + $0x32] sm:$0xff]  ;;  %9265 = vmatprep.subr.bf16.mxu0 %v10051_v53 }
 0x2df   : > { %4396 = vmatprep.mubr.bf16.mxu0 %v2958_v27  ;;  %v11536_v11 = vadd.f32 %v8934_v5, %v3823_v19  ;;  %v8830_v50 = vpop.f32.mrb[161].mxu1  ;;  %v3008_v54 = vpack.c.bf16 %v2977_v46, %v2976_v10  ;;  %v10052_v57 = vld [vmem:[%s12653_s1 + $0x490] sm:$0xff]   ;;  %v3011_v46 = vpack.c.bf16 %v2983_v7, %v2982_v30  ;;  %v2993_v30 = vld [vmem:[#allocation2 + $0xfa] sm:$0xff] }
 0x2e0   : > { %v8831_v45 = vadd.f32 %v8830_v50, %v8829_v60  ;;  %v8832_v0 = vpop.f32.mrb[162].mxu1  ;;  %9266 = vmatpush3.bf16.msra.mxu0 %v10052_v57 }
 0x2e1   : > { %v8935_v62 = vpop.f32.mrb[156].mxu0  ;;  %v8833_v29 = vpop.f32.mrb[163].mxu1 }
 0x2e2   : > { %v8936_v59 = vpop.f32.mrb[157].mxu0  ;;  %v8834_v33 = vadd.f32 %v8833_v29, %v8832_v0  ;;  %v3836_v32 = vadd.f32 %v8831_v45, %v11496_v3 }
 0x2e3   : > { %v8937_v41 = vadd.f32 %v8936_v59, %v8935_v62  ;;  %v8938_v4 = vpop.f32.mrb[158].mxu0  ;;  %4244 = vmatmul.mubr.bf16.gmra.mrb[12].mxu1 %v2958_v27  ;;  %v2984_v27 = vld [vmem:[#allocation2 + $0x92] sm:$0xff] }
 0x2e4   : > { %v8939_v22 = vpop.f32.mrb[159].mxu0  ;;  %9797 = vmatprep.mubr.bf16.mxu1 %v3008_v54  ;;  %v3839_v36 = vadd.f32 %v8834_v33, %v11496_v3  ;;  %v3012_v0 = vpack.c.bf16 %v2985_v44, %v2984_v27  ;;  %v2986_v33 = vld [vmem:[#allocation2 + $0xaa] sm:$0xff] }
 0x2e5   : > { %v8940_v20 = vadd.f32 %v8939_v22, %v8938_v4  ;;  %v11540_v63 = vadd.f32 %v8937_v41, %v3828_v16  ;;  %v2987_v22 = vld [vmem:[#allocation2 + $0xb2] sm:$0xff] }
 0x2e6   : > { %4397 = vmatmul.mubr.bf16.gmra.mrb[8].mxu0 %v11440_v34  ;;  %v8835_v38 = vpop.f32.mrb[164].mxu1 }
 0x2e7   : > { %4404 = vmatprep.mubr.bf16.mxu0 %v2959_v31  ;;  %v11543_v18 = vadd.f32 %v8940_v20, %v3831_v12  ;;  %v8836_v49 = vpop.f32.mrb[165].mxu1  ;;  %v2988_v20 = vld [vmem:[#allocation2 + $0xc2] sm:$0xff] }
 0x2e8   : > { %v8837_v58 = vadd.f32 %v8836_v49, %v8835_v38  ;;  %v8838_v39 = vpop.f32.mrb[166].mxu1  ;;  %v2989_v38 = vld [vmem:[#allocation2 + $0xca] sm:$0xff] }
 0x2e9   : > { %v8941_v61 = vpop.f32.mrb[160].mxu0  ;;  %v8839_v6 = vpop.f32.mrb[167].mxu1 }
 0x2ea   : > { %v8942_v17 = vpop.f32.mrb[161].mxu0  ;;  %v8840_v26 = vadd.f32 %v8839_v6, %v8838_v39  ;;  %v3844_v56 = vadd.f32 %v8837_v58, %v11496_v3 }
 0x2eb   : > { %v8943_v34 = vadd.f32 %v8942_v17, %v8941_v61  ;;  %v8944_v14 = vpop.f32.mrb[162].mxu0  ;;  %9798 = vmatmul.mubr.bf16.vlgmr.msra.gmra.mrb[16].mxu1 %v3009_v9  ;;  %v3013_v17 = vpack.c.bf16 %v2987_v22, %v2986_v33  ;;  %v10053_v9 = vld [vmem:[%s12653_s1 + $0x4d8] sm:$0xff]   ;;  %v2996_v22 = vld [vmem:[#allocation2 + $0x122] sm:$0xff] }
 0x2ec   : > { %v8945_v48 = vpop.f32.mrb[163].mxu0  ;;  %9801 = vmatprep.mubr.bf16.mxu1 %v3010_v1  ;;  %v3847_v16 = vadd.f32 %v8840_v26, %v11496_v3  ;;  %v10054_v26 = vld [vmem:[%s12653_s1 + $0x498] sm:$0xff]   ;;  %9267 = vmatprep.subr.bf16.mxu0 %v10053_v9 }
 0x2ed   : > { %v8946_v21 = vadd.f32 %v8945_v48, %v8944_v14  ;;  %v11549_v15 = vadd.f32 %v8943_v34, %v3836_v32  ;;  %v3014_v32 = vpack.c.bf16 %v2989_v38, %v2988_v20  ;;  %9268 = vmatpush3.bf16.msra.mxu0 %v10054_v26 }
 0x2ee   : > { %4405 = vmatmul.mubr.bf16.gmra.mrb[12].mxu0 %v11545_v42  ;;  %v8841_v47 = vpop.f32.mrb[168].mxu1 }
 0x2ef   : > { %v11558_v37 = vadd.f32 %v8946_v21, %v3839_v36  ;;  %v8842_v5 = vpop.f32.mrb[169].mxu1  ;;  %v2990_v36 = vld [vmem:[#allocation2 + $0xda] sm:$0xff]  ;;  %v2991_v21 = vld [vmem:[#allocation2 + $0xe2] sm:$0xff] }
 0x2f0   : > { %v8843_v23 = vadd.f32 %v8842_v5, %v8841_v47  ;;  %v8844_v24 = vpop.f32.mrb[170].mxu1  ;;  %v2992_v47 = vld [vmem:[#allocation2 + $0xf2] sm:$0xff] }
 0x2f1   : > { %v8947_v19 = vpop.f32.mrb[164].mxu0  ;;  %v8845_v10 = vpop.f32.mrb[171].mxu1 }
 0x2f2   : > { %v8948_v60 = vpop.f32.mrb[165].mxu0  ;;  %v8846_v45 = vadd.f32 %v8845_v10, %v8844_v24  ;;  %v3852_v49 = vadd.f32 %v8843_v23, %v11496_v3  ;;  %v3015_v24 = vpack.c.bf16 %v2991_v21, %v2990_v36  ;;  %v2999_v36 = vld [vmem:[#allocation2 + $0x142] sm:$0xff] }
 0x2f3   : > { %v8949_v62 = vadd.f32 %v8948_v60, %v8947_v19  ;;  %v8950_v50 = vpop.f32.mrb[166].mxu0  ;;  %9802 = vmatmul.mubr.bf16.gmra.mrb[20].mxu1 %v3011_v46 }
 0x2f4   : > { %v8951_v59 = vpop.f32.mrb[167].mxu0  ;;  %9805 = vmatprep.mubr.bf16.mxu1 %v3012_v0  ;;  %v3855_v34 = vadd.f32 %v8846_v45, %v11496_v3 }
 0x2f5   : > { %v8952_v41 = vadd.f32 %v8951_v59, %v8950_v50  ;;  %v11562_v4 = vadd.f32 %v8949_v62, %v3844_v56  ;;  %v3016_v50 = vpack.c.bf16 %v2993_v30, %v2992_v47  ;;  %v3001_v47 = vld [vmem:[#allocation2 + $0x15a] sm:$0xff] }
 0x2f6   : > { %v8847_v31 = vpop.f32.mrb[172].mxu1 }
 0x2f7   : > { %v11564_v29 = vadd.f32 %v8952_v41, %v3847_v16  ;;  %v8848_v12 = vpop.f32.mrb[173].mxu1  ;;  %v2994_v16 = vld [vmem:[#allocation2 + $0x10a] sm:$0xff]  ;;  %v2995_v41 = vld [vmem:[#allocation2 + $0x112] sm:$0xff] }
 0x2f8   : > { %v8849_v28 = vadd.f32 %v8848_v12, %v8847_v31  ;;  %v8850_v61 = vpop.f32.mrb[174].mxu1 }
 0x2f9   : > { %v8953_v54 = vpop.f32.mrb[168].mxu0  ;;  %v8851_v58 = vpop.f32.mrb[175].mxu1 }
 0x2fa   : > { %v8954_v52 = vpop.f32.mrb[169].mxu0  ;;  %v8852_v39 = vadd.f32 %v8851_v58, %v8850_v61  ;;  %v3860_v27 = vadd.f32 %v8849_v28, %v11496_v3 }
 0x2fb   : > { %v8955_v40 = vadd.f32 %v8954_v52, %v8953_v54  ;;  %v8956_v51 = vpop.f32.mrb[170].mxu0  ;;  %9806 = vmatmul.mubr.bf16.gmra.mrb[24].mxu1 %v3013_v17  ;;  %v2997_v54 = vld [vmem:[#allocation2 + $0x12a] sm:$0xff] }
 0x2fc   : > { %v8957_v43 = vpop.f32.mrb[171].mxu0  ;;  %9809 = vmatprep.mubr.bf16.mxu1 %v3014_v32  ;;  %v3863_v10 = vadd.f32 %v8852_v39, %v11496_v3  ;;  %v3018_v17 = vpack.c.bf16 %v2997_v54, %v2996_v22 }
 0x2fd   : > { %v8958_v14 = vadd.f32 %v8957_v43, %v8956_v51  ;;  %v11568_v6 = vadd.f32 %v8955_v40, %v3852_v49  ;;  %v3017_v40 = vpack.c.bf16 %v2995_v41, %v2994_v16  ;;  %v3002_v41 = vld [vmem:[#allocation2 + $0x16a] sm:$0xff] }
 0x2fe   : > { %v8853_v1 = vpop.f32.mrb[176].mxu1 }
 0x2ff   : > { %v11576_v48 = vadd.f32 %v8958_v14, %v3855_v34  ;;  %v8854_v57 = vpop.f32.mrb[177].mxu1  ;;  %v10055_v34 = vld [vmem:[%s12653_s1 + $0x4e0] sm:$0xff]  }
 0x300   : > { %v8855_v7 = vadd.f32 %v8854_v57, %v8853_v1  ;;  %v8856_v5 = vpop.f32.mrb[178].mxu1  ;;  %v10056_v14 = vld [vmem:[%s12653_s1 + $0x4a0] sm:$0xff]   ;;  %9269 = vmatprep.subr.bf16.mxu0 %v10055_v34  ;;  %v3000_v57 = vld [vmem:[#allocation2 + $0x152] sm:$0xff] }
 0x301   : > { %v8959_v53 = vpop.f32.mrb[172].mxu0  ;;  %v8857_v60 = vpop.f32.mrb[179].mxu1  ;;  %v2998_v1 = vld [vmem:[#allocation2 + $0x13a] sm:$0xff]  ;;  %9270 = vmatpush3.bf16.msra.mxu0 %v10056_v14  ;;  %v3007_v34 = vld [vmem:[#allocation2 + $0x1a2] sm:$0xff] }
 0x302   : > { %v8960_v19 = vpop.f32.mrb[173].mxu0  ;;  %v8858_v56 = vadd.f32 %v8857_v60, %v8856_v5  ;;  %v3868_v28 = vadd.f32 %v8855_v7, %v11496_v3  ;;  %v3019_v60 = vpack.c.bf16 %v2999_v36, %v2998_v1  ;;  %v10057_v14 = vld [vmem:[%s12653_s1 + $0x4e8] sm:$0xff]  }
 0x303   : > { %v8961_v44 = vadd.f32 %v8960_v19, %v8959_v53  ;;  %v8962_v23 = vpop.f32.mrb[174].mxu0  ;;  %9810 = vmatmul.mubr.bf16.gmra.mrb[28].mxu1 %v3015_v24  ;;  %9271 = vmatprep.subr.bf16.mxu0 %v10057_v14 }
 0x304   : > { %v8963_v62 = vpop.f32.mrb[175].mxu0  ;;  %9813 = vmatprep.mubr.bf16.mxu1 %v3016_v50  ;;  %v3871_v39 = vadd.f32 %v8858_v56, %v11496_v3 }
 0x305   : > { %v8964_v46 = vadd.f32 %v8963_v62, %v8962_v23  ;;  %v11580_v45 = vadd.f32 %v8961_v44, %v3860_v27  ;;  %v3020_v62 = vpack.c.bf16 %v3001_v47, %v3000_v57 }
 0x306   : > { %v8859_v0 = vpop.f32.mrb[180].mxu1 }
 0x307   : > { %v11582_v59 = vadd.f32 %v8964_v46, %v3863_v10  ;;  %v8860_v33 = vpop.f32.mrb[181].mxu1 }
 0x308   : > { %v8861_v12 = vadd.f32 %v8860_v33, %v8859_v0  ;;  %v8862_v38 = vpop.f32.mrb[182].mxu1 }
 0x309   : > { %v8965_v31 = vpop.f32.mrb[176].mxu0  ;;  %v8863_v49 = vpop.f32.mrb[183].mxu1 }
 0x30a   : > { %v8966_v20 = vpop.f32.mrb[177].mxu0  ;;  %v8864_v51 = vadd.f32 %v8863_v49, %v8862_v38  ;;  %v3876_v5 = vadd.f32 %v8861_v12, %v11496_v3 }
 0x30b   : > { %v8967_v52 = vadd.f32 %v8966_v20, %v8965_v31  ;;  %v8968_v61 = vpop.f32.mrb[178].mxu0  ;;  %9814 = vmatmul.mubr.bf16.gmra.mrb[32].mxu1 %v3017_v40  ;;  %v3003_v31 = vld [vmem:[#allocation2 + $0x172] sm:$0xff] }
 0x30c   : > { %v8969_v58 = vpop.f32.mrb[179].mxu0  ;;  %9817 = vmatprep.mubr.bf16.mxu1 %v3018_v17  ;;  %v3879_v50 = vadd.f32 %v8864_v51, %v11496_v3  ;;  %v3021_v49 = vpack.c.bf16 %v3003_v31, %v3002_v41 }
 0x30d   : > { %v11586_v43 = vadd.f32 %v8967_v52, %v3868_v28  ;;  %v8970_v32 = vadd.f32 %v8969_v58, %v8968_v61 }
 0x30e   : > { %v8865_v26 = vpop.f32.mrb[184].mxu1 }
 0x30f   : > { %v11594_v9 = vadd.f32 %v8970_v32, %v3871_v39  ;;  %v8866_v53 = vpop.f32.mrb[185].mxu1  ;;  %v3006_v32 = vld [vmem:[#allocation2 + $0x19a] sm:$0xff] }
 0x310   : > { %v8867_v30 = vadd.f32 %v8866_v53, %v8865_v26  ;;  %v8868_v19 = vpop.f32.mrb[186].mxu1  ;;  %v10058_v26 = vld [vmem:[%s12653_s1 + $0x4a8] sm:$0xff]   ;;  %v3023_v57 = vpack.c.bf16 %v3007_v34, %v3006_v32 }
 0x311   : > { %v8971_v21 = vpop.f32.mrb[180].mxu0  ;;  %v8869_v23 = vpop.f32.mrb[187].mxu1  ;;  %9272 = vmatpush3.bf16.msra.mxu0 %v10058_v26 }
 0x312   : > { %v8972_v7 = vpop.f32.mrb[181].mxu0  ;;  %v8870_v24 = vadd.f32 %v8869_v23, %v8868_v19  ;;  %v3884_v38 = vadd.f32 %v8867_v30, %v11496_v3 }
 0x313   : > { %v8973_v27 = vadd.f32 %v8972_v7, %v8971_v21  ;;  %v8974_v44 = vpop.f32.mrb[182].mxu0  ;;  %9818 = vmatmul.mubr.bf16.gmra.mrb[36].mxu1 %v3019_v60 }
 0x314   : > { %v8975_v56 = vpop.f32.mrb[183].mxu0  ;;  %9821 = vmatprep.mubr.bf16.mxu1 %v3020_v62  ;;  %v3887_v58 = vadd.f32 %v8870_v24, %v11496_v3 }
 0x315   : > { %v11598_v10 = vadd.f32 %v8973_v27, %v3876_v5  ;;  %v8976_v46 = vadd.f32 %v8975_v56, %v8974_v44 }
 0x316   : > { %v8871_v16 = vpop.f32.mrb[188].mxu1 }
 0x317   : > { %v11600_v0 = vadd.f32 %v8976_v46, %v3879_v50  ;;  %v8872_v22 = vpop.f32.mrb[189].mxu1 }
 0x318   : > { %v8873_v54 = vadd.f32 %v8872_v22, %v8871_v16  ;;  %v8874_v20 = vpop.f32.mrb[190].mxu1 }
 0x319   : > { %v8977_v33 = vpop.f32.mrb[184].mxu0  ;;  %v8875_v61 = vpop.f32.mrb[191].mxu1 }
 0x31a   : > { %v8978_v12 = vpop.f32.mrb[185].mxu0  ;;  %v8876_v40 = vadd.f32 %v8875_v61, %v8874_v20  ;;  %v3892_v7 = vadd.f32 %v8873_v54, %v11496_v3 }
 0x31b   : > { %v8979_v28 = vadd.f32 %v8978_v12, %v8977_v33  ;;  %v8980_v52 = vpop.f32.mrb[186].mxu0  ;;  %9822 = vmatmul.mubr.bf16.gmra.mrb[40].mxu1 %v3021_v49 }
 0x31c   : > { %v8981_v51 = vpop.f32.mrb[187].mxu0  ;;  %9825 = vmatprep.mubr.bf16.mxu1 %v11523_v35  ;;  %v3895_v60 = vadd.f32 %v8876_v40, %v11496_v3  ;;  %v10059_v40 = vld [vmem:[%s12653_s1 + $0x4f0] sm:$0xff]  }
 0x31d   : > { %v11604_v17 = vadd.f32 %v8979_v28, %v3884_v38  ;;  %v8982_v39 = vadd.f32 %v8981_v51, %v8980_v52  ;;  %v10060_v51 = vld [vmem:[%s12653_s1 + $0x4b0] sm:$0xff]   ;;  %9273 = vmatprep.subr.bf16.mxu0 %v10059_v40 }
 0x31e   : > { %v8877_v36 = vpop.f32.mrb[192].mxu1  ;;  %9274 = vmatpush3.bf16.msra.mxu0 %v10060_v51 }
 0x31f   : > { %v11613_v1 = vadd.f32 %v8982_v39, %v3887_v58  ;;  %v8878_v53 = vpop.f32.mrb[193].mxu1 }
 0x320   : > { %v8879_v47 = vadd.f32 %v8878_v53, %v8877_v36  ;;  %v8880_v35 = vpop.f32.mrb[194].mxu1 }
 0x321   : > { %v8983_v21 = vpop.f32.mrb[188].mxu0  ;;  %v8881_v27 = vpop.f32.mrb[195].mxu1 }
 0x322   : > { %v8984_v30 = vpop.f32.mrb[189].mxu0  ;;  %v8882_v44 = vadd.f32 %v8881_v27, %v8880_v35  ;;  %v3900_v22 = vadd.f32 %v8879_v47, %v11496_v3 }
 0x323   : > { %v8985_v19 = vadd.f32 %v8984_v30, %v8983_v21  ;;  %v8986_v5 = vpop.f32.mrb[190].mxu0  ;;  %9826 = vmatmul.mubr.bf16.gmra.mrb[44].mxu1 %v3023_v57 }
 0x324   : > { %v8987_v23 = vpop.f32.mrb[191].mxu0  ;;  %v3903_v52 = vadd.f32 %v8882_v44, %v11496_v3  ;;  %v10062_v44 = vld [vmem:[%s12653_s1 + $0x500] sm:$0xff]  }
 0x325   : > { %v11617_v24 = vadd.f32 %v8985_v19, %v3892_v7  ;;  %v8988_v56 = vadd.f32 %v8987_v23, %v8986_v5  ;;  %v10061_v7 = vld [vmem:[%s12653_s1 + $0x540] sm:$0xff]   ;;  %v10063_v23 = vld [vmem:[%s12653_s1 + $0x548] sm:$0xff]  }
 0x326   : > { %v8883_v50 = vpop.f32.mrb[196].mxu1  ;;  %9373 = vmatprep.subr.bf16.mxu1 %v10061_v7 }
 0x327   : > { %v11619_v62 = vadd.f32 %v8988_v56, %v3895_v60  ;;  %v8884_v16 = vpop.f32.mrb[197].mxu1  ;;  %9374 = vmatpush3.bf16.msra.mxu1 %v10062_v44 }
 0x328   : > { %v8885_v41 = vadd.f32 %v8884_v16, %v8883_v50  ;;  %v8886_v33 = vpop.f32.mrb[198].mxu1  ;;  %9375 = vmatprep.subr.bf16.mxu1 %v10063_v23  ;;  %v10064_v16 = vld [vmem:[%s12653_s1 + $0x508] sm:$0xff]  }
 0x329   : > { %v8989_v46 = vpop.f32.mrb[192].mxu0  ;;  %v8887_v20 = vpop.f32.mrb[199].mxu1 }
 0x32a   : > { %v8990_v31 = vpop.f32.mrb[193].mxu0  ;;  %v8888_v38 = vadd.f32 %v8887_v20, %v8886_v33  ;;  %v3908_v21 = vadd.f32 %v8885_v41, %v11496_v3 }
 0x32b   : > { %v8991_v54 = vadd.f32 %v8990_v31, %v8989_v46  ;;  %v8992_v12 = vpop.f32.mrb[194].mxu0  ;;  %9376 = vmatpush3.bf16.msra.mxu1 %v10064_v16 }
 0x32c   : > { %v8993_v28 = vpop.f32.mrb[195].mxu0  ;;  %v3911_v19 = vadd.f32 %v8888_v38, %v11496_v3 }
 0x32d   : > { %v11623_v61 = vadd.f32 %v8991_v54, %v3900_v22  ;;  %v8994_v49 = vadd.f32 %v8993_v28, %v8992_v12 }
 0x32e   : > { %v8889_v39 = vpop.f32.mrb[200].mxu1 }
 0x32f   : > { %v11631_v58 = vadd.f32 %v8994_v49, %v3903_v52  ;;  %v8890_v34 = vpop.f32.mrb[201].mxu1  ;;  %v10066_v52 = vld [vmem:[%s12653_s1 + $0x550] sm:$0xff]  }
 0x330   : > { %v8891_v14 = vadd.f32 %v8890_v34, %v8889_v39  ;;  %v8892_v36 = vpop.f32.mrb[202].mxu1  ;;  %v10068_v39 = vld [vmem:[%s12653_s1 + $0x510] sm:$0xff]   ;;  %9377 = vmatprep.subr.bf16.mxu1 %v10066_v52  ;;  %v10067_v34 = vld [vmem:[%s12653_s1 + $0x4b8] sm:$0xff]  }
 0x331   : > { %v8995_v32 = vpop.f32.mrb[196].mxu0  ;;  %v8893_v47 = vpop.f32.mrb[203].mxu1  ;;  %9378 = vmatpush3.bf16.msra.mxu1 %v10068_v39 }
 0x332   : > { %v8996_v26 = vpop.f32.mrb[197].mxu0  ;;  %v8894_v30 = vadd.f32 %v8893_v47, %v8892_v36  ;;  %v3916_v22 = vadd.f32 %v8891_v14, %v11496_v3  ;;  %v10069_v14 = vld [vmem:[%s12653_s1 + $0x558] sm:$0xff]  }
 0x333   : > { %v8997_v53 = vadd.f32 %v8996_v26, %v8995_v32  ;;  %v8998_v57 = vpop.f32.mrb[198].mxu0  ;;  %v10065_v32 = vld [vmem:[%s12653_s1 + $0x4f8] sm:$0xff]   ;;  %9379 = vmatprep.subr.bf16.mxu1 %v10069_v14 }
 0x334   : > { %v8999_v35 = vpop.f32.mrb[199].mxu0  ;;  %v3919_v49 = vadd.f32 %v8894_v30, %v11496_v3  ;;  %9275 = vmatprep.subr.bf16.mxu0 %v10065_v32 }
 0x335   : > { %v11638_v5 = vadd.f32 %v8997_v53, %v3908_v21  ;;  %v9000_v27 = vadd.f32 %v8999_v35, %v8998_v57  ;;  %9276 = vmatpush3.bf16.msra.mxu0 %v10067_v34  ;;  %v10070_v57 = vld [vmem:[%s12653_s1 + $0x518] sm:$0xff]  }
 0x336   : > { %v8895_v56 = vpop.f32.mrb[204].mxu1  ;;  %9380 = vmatpush3.bf16.msra.mxu1 %v10070_v57  ;;  %v10075_v57 = vld [vmem:[%s12653_s1 + $0x570] sm:$0xff]  }
 0x337   : > { %v11646_v60 = vadd.f32 %v9000_v27, %v3911_v19  ;;  %v8896_v46 = vpop.f32.mrb[205].mxu1 }
 0x338   : > { %v8897_v41 = vadd.f32 %v8896_v46, %v8895_v56  ;;  %v8898_v33 = vpop.f32.mrb[206].mxu1  ;;  %v10071_v46 = vld [vmem:[%s12653_s1 + $0x560] sm:$0xff]  }
 0x339   : > { %v9001_v50 = vpop.f32.mrb[200].mxu0  ;;  %v8899_v20 = vpop.f32.mrb[207].mxu1  ;;  %9381 = vmatprep.subr.bf16.mxu1 %v10071_v46 }
 0x33a   : > { %v9002_v31 = vpop.f32.mrb[201].mxu0  ;;  %v8900_v38 = vadd.f32 %v8899_v20, %v8898_v33  ;;  %v3924_v7 = vadd.f32 %v8897_v41, %v11496_v3  ;;  %v10072_v41 = vld [vmem:[%s12653_s1 + $0x520] sm:$0xff]  }
 0x33b   : > { %v9003_v54 = vadd.f32 %v9002_v31, %v9001_v50  ;;  %v9004_v12 = vpop.f32.mrb[202].mxu0  ;;  %9382 = vmatpush3.bf16.msra.mxu1 %v10072_v41 }
 0x33c   : > { %v9005_v28 = vpop.f32.mrb[203].mxu0  ;;  %v3927_v16 = vadd.f32 %v8900_v38, %v11496_v3  ;;  %v10073_v3 = vld [vmem:[%s12653_s1 + $0x568] sm:$0xff]  }
 0x33d   : > { %v11656_v40 = vadd.f32 %v9003_v54, %v3916_v22  ;;  %v9006_v51 = vadd.f32 %v9005_v28, %v9004_v12  ;;  %v4702_v54 = vld [vmem:[#allocation2 + $0x1] sm:$0xff]  ;;  %9383 = vmatprep.subr.bf16.mxu1 %v10073_v3 }
 0x33e   : > { %v9029_v36 = vpop.f32.mrb[208].mxu1 }
 0x33f   : > { %v11670_v26 = vadd.f32 %v9006_v51, %v3919_v49  ;;  %v9030_v53 = vpop.f32.mrb[209].mxu1  ;;  %v10074_v49 = vld [vmem:[%s12653_s1 + $0x528] sm:$0xff]  }
 0x340   : > { %v9031_v30 = vadd.f32 %v9030_v53, %v9029_v36  ;;  %v9032_v35 = vpop.f32.mrb[210].mxu1  ;;  %9384 = vmatpush3.bf16.msra.mxu1 %v10074_v49 }
 0x341   : > { %v9007_v21 = vpop.f32.mrb[204].mxu0  ;;  %v9033_v44 = vpop.f32.mrb[211].mxu1  ;;  %9385 = vmatprep.subr.bf16.mxu1 %v10075_v57 }
 0x342   : > { %v9008_v47 = vpop.f32.mrb[205].mxu0  ;;  %v4126_v23 = vadd.f32 %v9031_v30, %v11502_v25  ;;  %v9034_v50 = vadd.f32 %v9033_v44, %v9032_v35  ;;  %v4703_v25 = vld [vmem:[#allocation2 + $0x9] sm:$0xff]  ;;  %v10079_v44 = vld [vmem:[%s12653_s1 + $0x578] sm:$0xff]  }
 0x343   : > { %v9009_v19 = vadd.f32 %v9008_v47, %v9007_v21  ;;  %v9010_v27 = vpop.f32.mrb[206].mxu0  ;;  %v4734_v20 = vpack.c.bf16 %v4703_v25, %v4702_v54  ;;  %v10077_v35 = vld [vmem:[%s12653_s1 + $0x530] sm:$0xff]  }
 0x344   : > { %v9011_v56 = vpop.f32.mrb[207].mxu0  ;;  %v4129_v22 = vadd.f32 %v9034_v50, %v11512_v55  ;;  %9386 = vmatpush3.bf16.msra.mxu1 %v10077_v35 }
 0x345   : > { %v11681_v31 = vadd.f32 %v9009_v19, %v3924_v7  ;;  %v9012_v33 = vadd.f32 %v9011_v56, %v9010_v27  ;;  %5975 = vmatprep.mubr.bf16.mxu0 %v4734_v20  ;;  %v10076_v19 = vld [vmem:[%s12653_s1 + $0x5c0] sm:$0xff]   ;;  %9387 = vmatprep.subr.bf16.mxu1 %v10079_v44 }
 0x346   : > { %v9035_v28 = vpop.f32.mrb[212].mxu1  ;;  %5976 = vmatmul.mubr.bf16.vlgmr.msra.gmra.mrb[16].mxu0 %v11545_v42  ;;  %v10078_v27 = vld [vmem:[%s12653_s1 + $0x580] sm:$0xff]   ;;  %9485 = vmatprep.subr.bf16.mxu0 %v10076_v19  ;;  %v10081_v19 = vld [vmem:[%s12653_s1 + $0x5c8] sm:$0xff]  }
 0x347   : > { %v11687_v12 = vadd.f32 %v9012_v33, %v3927_v16  ;;  %v9036_v52 = vpop.f32.mrb[213].mxu1  ;;  %9486 = vmatpush3.bf16.msra.mxu0 %v10078_v27  ;;  %v10082_v27 = vld [vmem:[%s12653_s1 + $0x588] sm:$0xff]  }
 0x348   : > { %v9037_v55 = vadd.f32 %v9036_v52, %v9035_v28  ;;  %v9038_v39 = vpop.f32.mrb[214].mxu1  ;;  %9487 = vmatprep.subr.bf16.mxu0 %v10081_v19 }
 0x349   : > { %v9141_v38 = vpop.f32.mrb[208].mxu0  ;;  %v9039_v14 = vpop.f32.mrb[215].mxu1 }
 0x34a   : > { %v9142_v51 = vpop.f32.mrb[209].mxu0  ;;  %v4134_v36 = vadd.f32 %v9037_v55, %v11516_v13  ;;  %v9040_v21 = vadd.f32 %v9039_v14, %v9038_v39 }
 0x34b   : > { %v9143_v32 = vadd.f32 %v9142_v51, %v9141_v38  ;;  %v9144_v34 = vpop.f32.mrb[210].mxu0  ;;  %9488 = vmatpush3.bf16.msra.mxu0 %v10082_v27 }
 0x34c   : > { %v9145_v53 = vpop.f32.mrb[211].mxu0  ;;  %v4137_v42 = vadd.f32 %v9040_v21, %v11520_v2  ;;  %v10080_v2 = vld [vmem:[%s12653_s1 + $0x538] sm:$0xff]  }
 0x34d   : > { %v9146_v47 = vadd.f32 %v9145_v53, %v9144_v34  ;;  %v11700_v30 = vadd.f32 %v9143_v32, %v4126_v23  ;;  %9388 = vmatpush3.bf16.msra.mxu1 %v10080_v2 }
 0x34e   : > { %v9041_v13 = vpop.f32.mrb[216].mxu1 }
 0x34f   : > { %v11706_v7 = vadd.f32 %v9146_v47, %v4129_v22  ;;  %v9042_v56 = vpop.f32.mrb[217].mxu1 }
 0x350   : > { %v9043_v50 = vadd.f32 %v9042_v56, %v9041_v13  ;;  %v9044_v16 = vpop.f32.mrb[218].mxu1 }
 0x351   : > { %v9147_v23 = vpop.f32.mrb[212].mxu0  ;;  %v9045_v22 = vpop.f32.mrb[219].mxu1 }
 0x352   : > { %v9148_v46 = vpop.f32.mrb[213].mxu0  ;;  %v4142_v54 = vadd.f32 %v9043_v50, %v11526_v8  ;;  %v9046_v25 = vadd.f32 %v9045_v22, %v9044_v16 }
 0x353   : > { %v9149_v33 = vadd.f32 %v9148_v46, %v9147_v23  ;;  %v9150_v41 = vpop.f32.mrb[214].mxu0 }
 0x354   : > { %v9151_v20 = vpop.f32.mrb[215].mxu0  ;;  %v4145_v38 = vadd.f32 %v9046_v25, %v11536_v11 }
 0x355   : > { %v9152_v28 = vadd.f32 %v9151_v20, %v9150_v41  ;;  %v11721_v3 = vadd.f32 %v9149_v33, %v4134_v36 }
 0x356   : > { %v9047_v49 = vpop.f32.mrb[220].mxu1 }
 0x357   : > { %v11724_v52 = vadd.f32 %v9152_v28, %v4137_v42  ;;  %v9048_v51 = vpop.f32.mrb[221].mxu1 }
 0x358   : > { %v9049_v39 = vadd.f32 %v9048_v51, %v9047_v49  ;;  %v9050_v34 = vpop.f32.mrb[222].mxu1 }
 0x359   : > { %v9153_v55 = vpop.f32.mrb[216].mxu0  ;;  %v9051_v53 = vpop.f32.mrb[223].mxu1 }
 0x35a   : > { %v9154_v32 = vpop.f32.mrb[217].mxu0  ;;  %v4150_v8 = vadd.f32 %v9049_v39, %v11540_v63  ;;  %v9052_v57 = vadd.f32 %v9051_v53, %v9050_v34 }
 0x35b   : > { %v9155_v14 = vadd.f32 %v9154_v32, %v9153_v55  ;;  %v9156_v21 = vpop.f32.mrb[218].mxu0 }
 0x35c   : > { %v9157_v47 = vpop.f32.mrb[219].mxu0  ;;  %v4153_v11 = vadd.f32 %v9052_v57, %v11543_v18 }
 0x35d   : > { %v9158_v35 = vadd.f32 %v9157_v47, %v9156_v21  ;;  %v11727_v36 = vadd.f32 %v9155_v14, %v4142_v54 }
 0x35e   : > { %v9053_v13 = vpop.f32.mrb[224].mxu1 }
 0x35f   : > { %v11730_v42 = vadd.f32 %v9158_v35, %v4145_v38  ;;  %v9054_v63 = vpop.f32.mrb[225].mxu1 }
 0x360   : > { %v9055_v23 = vadd.f32 %v9054_v63, %v9053_v13  ;;  %v9056_v2 = vpop.f32.mrb[226].mxu1  ;;  %v10084_v13 = vld [vmem:[%s12653_s1 + $0x590] sm:$0xff]  }
 0x361   : > { %v9159_v44 = vpop.f32.mrb[220].mxu0  ;;  %v9057_v18 = vpop.f32.mrb[227].mxu1 }
 0x362   : > { %v9160_v56 = vpop.f32.mrb[221].mxu0  ;;  %v4158_v16 = vadd.f32 %v9055_v23, %v11549_v15  ;;  %v9058_v33 = vadd.f32 %v9057_v18, %v9056_v2 }
 0x363   : > { %v9161_v50 = vadd.f32 %v9160_v56, %v9159_v44  ;;  %v9162_v46 = vpop.f32.mrb[222].mxu0 }
 0x364   : > { %v9163_v41 = vpop.f32.mrb[223].mxu0  ;;  %v4161_v25 = vadd.f32 %v9058_v33, %v11558_v37 }
 0x365   : > { %v9164_v22 = vadd.f32 %v9163_v41, %v9162_v46  ;;  %v11739_v54 = vadd.f32 %v9161_v50, %v4150_v8 }
 0x366   : > { %v9059_v28 = vpop.f32.mrb[228].mxu1 }
 0x367   : > { %v11742_v20 = vadd.f32 %v9164_v22, %v4153_v11  ;;  %v9060_v49 = vpop.f32.mrb[229].mxu1  ;;  %v10083_v11 = vld [vmem:[%s12653_s1 + $0x5d0] sm:$0xff]  }
 0x368   : > { %v9061_v55 = vadd.f32 %v9060_v49, %v9059_v28  ;;  %v9062_v39 = vpop.f32.mrb[230].mxu1  ;;  %9489 = vmatprep.subr.bf16.mxu0 %v10083_v11 }
 0x369   : > { %v9165_v38 = vpop.f32.mrb[224].mxu0  ;;  %v9063_v14 = vpop.f32.mrb[231].mxu1  ;;  %9490 = vmatpush3.bf16.msra.mxu0 %v10084_v13 }
 0x36a   : > { %v9166_v51 = vpop.f32.mrb[225].mxu0  ;;  %v4166_v15 = vadd.f32 %v9061_v55, %v11562_v4  ;;  %v9064_v21 = vadd.f32 %v9063_v14, %v9062_v39 }
 0x36b   : > { %v9167_v32 = vadd.f32 %v9166_v51, %v9165_v38  ;;  %v9168_v34 = vpop.f32.mrb[226].mxu0 }
 0x36c   : > { %v9169_v53 = vpop.f32.mrb[227].mxu0  ;;  %v4169_v37 = vadd.f32 %v9064_v21, %v11564_v29 }
 0x36d   : > { %v9170_v57 = vadd.f32 %v9169_v53, %v9168_v34  ;;  %v11745_v8 = vadd.f32 %v9167_v32, %v4158_v16 }
 0x36e   : > { %v9065_v35 = vpop.f32.mrb[232].mxu1 }
 0x36f   : > { %v11748_v47 = vadd.f32 %v9170_v57, %v4161_v25  ;;  %v9066_v4 = vpop.f32.mrb[233].mxu1 }
 0x370   : > { %v9067_v27 = vadd.f32 %v9066_v4, %v9065_v35  ;;  %v9068_v63 = vpop.f32.mrb[234].mxu1  ;;  %v10086_v35 = vld [vmem:[%s12653_s1 + $0x598] sm:$0xff]  }
 0x371   : > { %v9171_v19 = vpop.f32.mrb[228].mxu0  ;;  %v9069_v29 = vpop.f32.mrb[235].mxu1 }
 0x372   : > { %v9172_v44 = vpop.f32.mrb[229].mxu0  ;;  %v4174_v2 = vadd.f32 %v9067_v27, %v11568_v6  ;;  %v9070_v50 = vadd.f32 %v9069_v29, %v9068_v63  ;;  %v10087_v29 = vld [vmem:[%s12653_s1 + $0x640] sm:$0xff]  }
 0x373   : > { %v9173_v23 = vadd.f32 %v9172_v44, %v9171_v19  ;;  %v9174_v56 = vpop.f32.mrb[230].mxu0  ;;  %9597 = vmatprep.subr.bf16.mxu1 %v10087_v29 }
 0x374   : > { %v9175_v46 = vpop.f32.mrb[231].mxu0  ;;  %v4177_v33 = vadd.f32 %v9070_v50, %v11576_v48 }
 0x375   : > { %v9176_v18 = vadd.f32 %v9175_v46, %v9174_v56  ;;  %v11757_v16 = vadd.f32 %v9173_v23, %v4166_v15 }
 0x376   : > { %v9071_v22 = vpop.f32.mrb[236].mxu1 }
 0x377   : > { %v11760_v41 = vadd.f32 %v9176_v18, %v4169_v37  ;;  %v9072_v28 = vpop.f32.mrb[237].mxu1  ;;  %v10085_v37 = vld [vmem:[%s12653_s1 + $0x5d8] sm:$0xff]  }
 0x378   : > { %v9073_v38 = vadd.f32 %v9072_v28, %v9071_v22  ;;  %v9074_v55 = vpop.f32.mrb[238].mxu1  ;;  %9491 = vmatprep.subr.bf16.mxu0 %v10085_v37 }
 0x379   : > { %v9177_v25 = vpop.f32.mrb[232].mxu0  ;;  %v9075_v32 = vpop.f32.mrb[239].mxu1  ;;  %9492 = vmatpush3.bf16.msra.mxu0 %v10086_v35 }
 0x37a   : > { %v9178_v49 = vpop.f32.mrb[233].mxu0  ;;  %v4182_v6 = vadd.f32 %v9073_v38, %v11580_v45  ;;  %v9076_v34 = vadd.f32 %v9075_v32, %v9074_v55 }
 0x37b   : > { %v9179_v51 = vadd.f32 %v9178_v49, %v9177_v25  ;;  %v9180_v39 = vpop.f32.mrb[234].mxu0 }
 0x37c   : > { %v9181_v14 = vpop.f32.mrb[235].mxu0  ;;  %v4185_v48 = vadd.f32 %v9076_v34, %v11582_v59  ;;  %v10090_v34 = vld [vmem:[%s12653_s1 + $0x5a0] sm:$0xff]  }
 0x37d   : > { %v9182_v21 = vadd.f32 %v9181_v14, %v9180_v39  ;;  %v11763_v15 = vadd.f32 %v9179_v51, %v4174_v2  ;;  %v10089_v39 = vld [vmem:[%s12653_s1 + $0x5e0] sm:$0xff]  }
 0x37e   : > { %v9077_v57 = vpop.f32.mrb[240].mxu1  ;;  %9493 = vmatprep.subr.bf16.mxu0 %v10089_v39 }
 0x37f   : > { %v11766_v53 = vadd.f32 %v9182_v21, %v4177_v33  ;;  %v9078_v45 = vpop.f32.mrb[241].mxu1  ;;  %9494 = vmatpush3.bf16.msra.mxu0 %v10090_v34 }
 0x380   : > { %v9079_v13 = vadd.f32 %v9078_v45, %v9077_v57  ;;  %v9080_v4 = vpop.f32.mrb[242].mxu1 }
 0x381   : > { %v9183_v11 = vpop.f32.mrb[236].mxu0  ;;  %v9081_v59 = vpop.f32.mrb[243].mxu1 }
 0x382   : > { %v9184_v19 = vpop.f32.mrb[237].mxu0  ;;  %v4190_v63 = vadd.f32 %v9079_v13, %v11586_v43  ;;  %v9082_v23 = vadd.f32 %v9081_v59, %v9080_v4 }
 0x383   : > { %v9185_v27 = vadd.f32 %v9184_v19, %v9183_v11  ;;  %v9186_v44 = vpop.f32.mrb[238].mxu0 }
 0x384   : > { %v9187_v56 = vpop.f32.mrb[239].mxu0  ;;  %v4193_v46 = vadd.f32 %v9082_v23, %v11594_v9 }
 0x385   : > { %v9188_v2 = vadd.f32 %v9187_v56, %v9186_v44  ;;  %v11778_v50 = vadd.f32 %v9185_v27, %v4182_v6 }
 0x386   : > { %v9083_v33 = vpop.f32.mrb[244].mxu1 }
 0x387   : > { %v11781_v18 = vadd.f32 %v9188_v2, %v4185_v48  ;;  %v9084_v25 = vpop.f32.mrb[245].mxu1 }
 0x388   : > { %v9085_v28 = vadd.f32 %v9084_v25, %v9083_v33  ;;  %v9086_v43 = vpop.f32.mrb[246].mxu1 }
 0x389   : > { %v9189_v22 = vpop.f32.mrb[240].mxu0  ;;  %v9087_v51 = vpop.f32.mrb[247].mxu1 }
 0x38a   : > { %v9190_v38 = vpop.f32.mrb[241].mxu0  ;;  %v4198_v32 = vadd.f32 %v9085_v28, %v11598_v10  ;;  %v9088_v6 = vadd.f32 %v9087_v51, %v9086_v43 }
 0x38b   : > { %v9191_v49 = vadd.f32 %v9190_v38, %v9189_v22  ;;  %v9192_v55 = vpop.f32.mrb[242].mxu0 }
 0x38c   : > { %v9193_v9 = vpop.f32.mrb[243].mxu0  ;;  %v4201_v48 = vadd.f32 %v9088_v6, %v11600_v0 }
 0x38d   : > { %v9194_v14 = vadd.f32 %v9193_v9, %v9192_v55  ;;  %v11790_v21 = vadd.f32 %v9191_v49, %v4190_v63 }
 0x38e   : > { %v9089_v37 = vpop.f32.mrb[248].mxu1 }
 0x38f   : > { %v11793_v57 = vadd.f32 %v9194_v14, %v4193_v46  ;;  %v9090_v11 = vpop.f32.mrb[249].mxu1 }
 0x390   : > { %v9091_v45 = vadd.f32 %v9090_v11, %v9089_v37  ;;  %v9092_v13 = vpop.f32.mrb[250].mxu1 }
 0x391   : > { %v9195_v35 = vpop.f32.mrb[244].mxu0  ;;  %v9093_v27 = vpop.f32.mrb[251].mxu1 }
 0x392   : > { %v9196_v10 = vpop.f32.mrb[245].mxu0  ;;  %v4206_v44 = vadd.f32 %v9091_v45, %v11604_v17  ;;  %v9094_v59 = vadd.f32 %v9093_v27, %v9092_v13  ;;  %v10093_v17 = vld [vmem:[%s12653_s1 + $0x5e8] sm:$0xff]  }
 0x393   : > { %v9197_v19 = vadd.f32 %v9196_v10, %v9195_v35  ;;  %v9198_v4 = vpop.f32.mrb[246].mxu0  ;;  %9495 = vmatprep.subr.bf16.mxu0 %v10093_v17 }
 0x394   : > { %v9199_v63 = vpop.f32.mrb[247].mxu0  ;;  %v4209_v0 = vadd.f32 %v9094_v59, %v11613_v1  ;;  %v10094_v1 = vld [vmem:[%s12653_s1 + $0x5a8] sm:$0xff]  }
 0x395   : > { %v9200_v23 = vadd.f32 %v9199_v63, %v9198_v4  ;;  %v11796_v56 = vadd.f32 %v9197_v19, %v4198_v32  ;;  %9496 = vmatpush3.bf16.msra.mxu0 %v10094_v1 }
 0x396   : > { %v9095_v2 = vpop.f32.mrb[252].mxu1 }
 0x397   : > { %v11799_v29 = vadd.f32 %v9200_v23, %v4201_v48  ;;  %v9096_v33 = vpop.f32.mrb[253].mxu1 }
 0x398   : > { %v9097_v22 = vadd.f32 %v9096_v33, %v9095_v2  ;;  %v9098_v28 = vpop.f32.mrb[254].mxu1 }
 0x399   : > { %v9201_v46 = vpop.f32.mrb[248].mxu0  ;;  %v9099_v49 = vpop.f32.mrb[255].mxu1 }
 0x39a   : > { %v9202_v25 = vpop.f32.mrb[249].mxu0  ;;  %v4214_v55 = vadd.f32 %v9097_v22, %v11617_v24  ;;  %v9100_v51 = vadd.f32 %v9099_v49, %v9098_v28 }
 0x39b   : > { %v9203_v38 = vadd.f32 %v9202_v25, %v9201_v46  ;;  %v9204_v43 = vpop.f32.mrb[250].mxu0 }
 0x39c   : > { %v9205_v39 = vpop.f32.mrb[251].mxu0  ;;  %v4217_v9 = vadd.f32 %v9100_v51, %v11619_v62 }
 0x39d   : > { %v9206_v32 = vadd.f32 %v9205_v39, %v9204_v43  ;;  %v11808_v6 = vadd.f32 %v9203_v38, %v4206_v44 }
 0x39e   : > { %v9101_v14 = vpop.f32.mrb[0].mxu1 }
 0x39f   : > { %v11811_v34 = vadd.f32 %v9206_v32, %v4209_v0  ;;  %v9102_v37 = vpop.f32.mrb[1].mxu1 }
 0x3a0   : > { %v9103_v35 = vadd.f32 %v9102_v37, %v9101_v14  ;;  %v9104_v11 = vpop.f32.mrb[2].mxu1 }
 0x3a1   : > { %v9207_v48 = vpop.f32.mrb[252].mxu0  ;;  %v9105_v13 = vpop.f32.mrb[3].mxu1 }
 0x3a2   : > { %v9208_v24 = vpop.f32.mrb[253].mxu0  ;;  %v4222_v19 = vadd.f32 %v9103_v35, %v11623_v61  ;;  %v9106_v4 = vadd.f32 %v9105_v13, %v9104_v11  ;;  %v10097_v61 = vld [vmem:[%s12653_s1 + $0x5f0] sm:$0xff]  }
 0x3a3   : > { %v9209_v45 = vadd.f32 %v9208_v24, %v9207_v48  ;;  %v9210_v10 = vpop.f32.mrb[254].mxu0  ;;  %9497 = vmatprep.subr.bf16.mxu0 %v10097_v61 }
 0x3a4   : > { %v9211_v27 = vpop.f32.mrb[255].mxu0  ;;  %v4225_v62 = vadd.f32 %v9106_v4, %v11631_v58  ;;  %v10098_v58 = vld [vmem:[%s12653_s1 + $0x5b0] sm:$0xff]  }
 0x3a5   : > { %v9212_v44 = vadd.f32 %v9211_v27, %v9210_v10  ;;  %v11814_v59 = vadd.f32 %v9209_v45, %v4214_v55  ;;  %9498 = vmatpush3.bf16.msra.mxu0 %v10098_v58 }
 0x3a6   : > { %v9107_v23 = vpop.f32.mrb[4].mxu1 }
 0x3a7   : > { %v11817_v63 = vadd.f32 %v9212_v44, %v4217_v9  ;;  %v9108_v2 = vpop.f32.mrb[5].mxu1 }
 0x3a8   : > { %v9109_v46 = vadd.f32 %v9108_v2, %v9107_v23  ;;  %v9110_v22 = vpop.f32.mrb[6].mxu1 }
 0x3a9   : > { %v9213_v0 = vpop.f32.mrb[0].mxu0  ;;  %v9111_v38 = vpop.f32.mrb[7].mxu1 }
 0x3aa   : > { %v9214_v33 = vpop.f32.mrb[1].mxu0  ;;  %v4230_v43 = vadd.f32 %v9109_v46, %v11638_v5  ;;  %v9112_v49 = vadd.f32 %v9111_v38, %v9110_v22 }
 0x3ab   : > { %v9215_v25 = vadd.f32 %v9214_v33, %v9213_v0  ;;  %v9216_v28 = vpop.f32.mrb[2].mxu0 }
 0x3ac   : > { %v9217_v17 = vpop.f32.mrb[3].mxu0  ;;  %v4233_v39 = vadd.f32 %v9112_v49, %v11646_v60 }
 0x3ad   : > { %v9218_v55 = vadd.f32 %v9217_v17, %v9216_v28  ;;  %v11826_v51 = vadd.f32 %v9215_v25, %v4222_v19 }
 0x3ae   : > { %v9113_v32 = vpop.f32.mrb[8].mxu1 }
 0x3af   : > { %v11829_v1 = vadd.f32 %v9218_v55, %v4225_v62  ;;  %v9114_v14 = vpop.f32.mrb[9].mxu1 }
 0x3b0   : > { %v9115_v48 = vadd.f32 %v9114_v14, %v9113_v32  ;;  %v9116_v37 = vpop.f32.mrb[10].mxu1 }
 0x3b1   : > { %v9219_v9 = vpop.f32.mrb[4].mxu0  ;;  %v9117_v11 = vpop.f32.mrb[11].mxu1 }
 0x3b2   : > { %v9220_v5 = vpop.f32.mrb[5].mxu0  ;;  %v4238_v45 = vadd.f32 %v9115_v48, %v11656_v40  ;;  %v9118_v10 = vadd.f32 %v9117_v11, %v9116_v37  ;;  %v10101_v40 = vld [vmem:[%s12653_s1 + $0x5f8] sm:$0xff]  }
 0x3b3   : > { %v9221_v35 = vadd.f32 %v9220_v5, %v9219_v9  ;;  %v9222_v24 = vpop.f32.mrb[6].mxu0  ;;  %9499 = vmatprep.subr.bf16.mxu0 %v10101_v40 }
 0x3b4   : > { %v9223_v13 = vpop.f32.mrb[7].mxu0  ;;  %v4241_v60 = vadd.f32 %v9118_v10, %v11670_v26  ;;  %v10102_v26 = vld [vmem:[%s12653_s1 + $0x5b8] sm:$0xff]  }
 0x3b5   : > { %v9224_v19 = vadd.f32 %v9223_v13, %v9222_v24  ;;  %v11832_v4 = vadd.f32 %v9221_v35, %v4230_v43  ;;  %9500 = vmatpush3.bf16.msra.mxu0 %v10102_v26 }
 0x3b6   : > { %v9119_v44 = vpop.f32.mrb[12].mxu1 }
 0x3b7   : > { %v11835_v27 = vadd.f32 %v9224_v19, %v4233_v39  ;;  %v9120_v23 = vpop.f32.mrb[13].mxu1 }
 0x3b8   : > { %v9121_v0 = vadd.f32 %v9120_v23, %v9119_v44  ;;  %v9122_v46 = vpop.f32.mrb[14].mxu1 }
 0x3b9   : > { %v9225_v62 = vpop.f32.mrb[8].mxu0  ;;  %v9123_v25 = vpop.f32.mrb[15].mxu1 }
 0x3ba   : > { %v9226_v2 = vpop.f32.mrb[9].mxu0  ;;  %v4246_v28 = vadd.f32 %v9121_v0, %v11681_v31  ;;  %v9124_v38 = vadd.f32 %v9123_v25, %v9122_v46  ;;  %v11863_v25 = vld [vmem:[%s12653_s1 + $0x680] sm:$0xff]  }
 0x3bb   : > { %v9227_v33 = vadd.f32 %v9226_v2, %v9225_v62  ;;  %v9228_v22 = vpop.f32.mrb[10].mxu0  ;;  %9829 = vmatprep.subr.bf16.mxu0 %v11863_v25 }
 0x3bc   : > { %v9229_v61 = vpop.f32.mrb[11].mxu0  ;;  %v4249_v17 = vadd.f32 %v9124_v38, %v11687_v12  ;;  %v4766_v38 = vld [vmem:[#allocation2 + $0x2] sm:$0xff] }
 0x3bd   : > { %v9230_v43 = vadd.f32 %v9229_v61, %v9228_v22  ;;  %v11844_v49 = vadd.f32 %v9227_v33, %v4238_v45  ;;  %v4767_v61 = vld [vmem:[#allocation2 + $0xa] sm:$0xff] }
 0x3be   : > { %v9799_v55 = vpop.f32.mrb[16].mxu1 }
 0x3bf   : > { %v11847_v58 = vadd.f32 %v9230_v43, %v4241_v60  ;;  %v4456_v32 = vadd.f32 %v9799_v55, %v11721_v3  ;;  %v4447_v31 = vpop.f32.mrb[17].mxu1  ;;  %v4798_v43 = vpack.c.bf16 %v4767_v61, %v4766_v38 }
 0x3c0   : > { %v4448_v14 = vadd.f32 %v4447_v31, %v11700_v30  ;;  %v9800_v48 = vpop.f32.mrb[18].mxu1 }
 0x3c1   : > { %v9231_v39 = vpop.f32.mrb[12].mxu0  ;;  %v4576_v5 = vmax.f32 %v4456_v32, 0.0  ;;  %v4459_v24 = vadd.f32 %v9800_v48, %v11724_v52  ;;  %v4450_v11 = vpop.f32.mrb[19].mxu1 }
 0x3c2   : > { %v9232_v9 = vpop.f32.mrb[13].mxu0  ;;  %v4574_v45 = vmax.f32 %v4448_v14, 0.0  ;;  %v4451_v10 = vadd.f32 %v4450_v11, %v11706_v7 }
 0x3c3   : > { %v9233_v37 = vadd.f32 %v9232_v9, %v9231_v39  ;;  %v9234_v35 = vpop.f32.mrb[14].mxu0  ;;  %4608 = vst [vmem:[#allocation2 + $0x31] sm:$0xff] %v4576_v5  ;;  %v4577_v13 = vmax.f32 %v4459_v24, 0.0 }
 0x3c4   : > { %v9235_v12 = vpop.f32.mrb[15].mxu0  ;;  %4606 = vst [vmem:[#allocation2 + $0x19] sm:$0xff] %v4574_v45  ;;  %v4575_v3 = vmax.f32 %v4451_v10, 0.0 }
 0x3c5   : > { %v9236_v19 = vadd.f32 %v9235_v12, %v9234_v35  ;;  %v11853_v60 = vadd.f32 %v9233_v37, %v4246_v28  ;;  %4609 = vst [vmem:[#allocation2 + $0x39] sm:$0xff] %v4577_v13  ;;  %v4736_v30 = vpack.c.bf16 %v4577_v13, %v4576_v5  ;;  %v10091_v5 = vld [vmem:[%s12653_s1 + $0x648] sm:$0xff]  }
 0x3c6   : > { %4607 = vst [vmem:[#allocation2 + $0x21] sm:$0xff] %v4575_v3  ;;  %v9803_v62 = vpop.f32.mrb[20].mxu1  ;;  %v4735_v23 = vpack.c.bf16 %v4575_v3, %v4574_v45 }
 0x3c7   : > { %v11855_v44 = vadd.f32 %v9236_v19, %v4249_v17  ;;  %v4472_v52 = vadd.f32 %v9803_v62, %v11739_v54  ;;  %v4463_v0 = vpop.f32.mrb[21].mxu1 }
 0x3c8   : > { %v4464_v2 = vadd.f32 %v4463_v0, %v11727_v36  ;;  %v9804_v7 = vpop.f32.mrb[22].mxu1  ;;  %5983 = vmatprep.mubr.bf16.mxu0 %v4735_v23  ;;  %v10096_v0 = vld [vmem:[%s12653_s1 + $0x610] sm:$0xff]  }
 0x3c9   : > { %v4580_v46 = vmax.f32 %v4472_v52, 0.0  ;;  %v4475_v33 = vadd.f32 %v9804_v7, %v11742_v20  ;;  %v4466_v22 = vpop.f32.mrb[23].mxu1 }
 0x3ca   : > { %v4578_v40 = vmax.f32 %v4464_v2, 0.0  ;;  %v4467_v28 = vadd.f32 %v4466_v22, %v11730_v42  ;;  %v10088_v42 = vld [vmem:[%s12653_s1 + $0x600] sm:$0xff]   ;;  %v4832_v48 = vld [vmem:[#allocation2 + $0x30] sm:$0xff]  ;;  %v10099_v22 = vld [vmem:[%s12653_s1 + $0x658] sm:$0xff]  }
 0x3cb   : > { %4612 = vst [vmem:[#allocation2 + $0x61] sm:$0xff] %v4580_v46  ;;  %v4581_v54 = vmax.f32 %v4475_v33, 0.0  ;;  %v4830_v26 = vld [vmem:[#allocation2 + $0x18] sm:$0xff] }
 0x3cc   : > { %4610 = vst [vmem:[#allocation2 + $0x49] sm:$0xff] %v4578_v40  ;;  %v4579_v36 = vmax.f32 %v4467_v28, 0.0  ;;  %v4833_v17 = vld [vmem:[#allocation2 + $0x38] sm:$0xff] }
 0x3cd   : > { %4613 = vst [vmem:[#allocation2 + $0x69] sm:$0xff] %v4581_v54  ;;  %v4831_v20 = vld [vmem:[#allocation2 + $0x20] sm:$0xff]  ;;  %v11867_v55 = vpack.c.bf16 %v4581_v54, %v4580_v46  ;;  %v11877_v24 = vpack.c.bf16 %v4833_v17, %v4832_v48  ;;  %v4770_v17 = vld [vmem:[#allocation2 + $0x32] sm:$0xff] }
 0x3ce   : > { %4611 = vst [vmem:[#allocation2 + $0x51] sm:$0xff] %v4579_v36  ;;  %v9807_v39 = vpop.f32.mrb[24].mxu1  ;;  %v4862_v32 = vpack.c.bf16 %v4831_v20, %v4830_v26  ;;  %v4737_v31 = vpack.c.bf16 %v4579_v36, %v4578_v40  ;;  %v4768_v3 = vld [vmem:[#allocation2 + $0x1a] sm:$0xff] }
 0x3cf   : > { %v4488_v9 = vadd.f32 %v9807_v39, %v11757_v16  ;;  %v4479_v14 = vpop.f32.mrb[25].mxu1  ;;  %v4771_v39 = vld [vmem:[#allocation2 + $0x3a] sm:$0xff] }
 0x3d0   : > { %v4480_v37 = vadd.f32 %v4479_v14, %v11745_v8  ;;  %v9808_v35 = vpop.f32.mrb[26].mxu1  ;;  %6136 = vmatprep.mubr.bf16.mxu1 %v4862_v32  ;;  %5984 = vmatmul.mubr.bf16.gmra.mrb[20].mxu0 %v4862_v32  ;;  %v10092_v8 = vld [vmem:[%s12653_s1 + $0x608] sm:$0xff]  }
 0x3d1   : > { %v4584_v11 = vmax.f32 %v4488_v9, 0.0  ;;  %v4491_v45 = vadd.f32 %v9808_v35, %v11760_v41  ;;  %v4482_v12 = vpop.f32.mrb[27].mxu1  ;;  %6137 = vmatmul.mubr.bf16.vlgmr.msra.gmra.mrb[48].mxu1 %v4798_v43  ;;  %5991 = vmatprep.mubr.bf16.mxu0 %v4736_v30  ;;  %v10095_v41 = vld [vmem:[%s12653_s1 + $0x650] sm:$0xff]   ;;  %v4769_v30 = vld [vmem:[#allocation2 + $0x22] sm:$0xff] }
 0x3d2   : > { %v4582_v16 = vmax.f32 %v4480_v37, 0.0  ;;  %v4483_v10 = vadd.f32 %v4482_v12, %v11748_v47  ;;  %6144 = vmatprep.mubr.bf16.mxu1 %v11877_v24  ;;  %9598 = vmatpush3.bf16.msra.mxu1 %v10088_v42  ;;  %v11896_v46 = vpack.c.bf16 %v4769_v30, %v4768_v3  ;;  %v10104_v9 = vld [vmem:[%s12653_s1 + $0x620] sm:$0xff]   ;;  %v10105_v35 = vld [vmem:[%s12653_s1 + $0x668] sm:$0xff]  }
 0x3d3   : > { %4616 = vst [vmem:[#allocation2 + $0x91] sm:$0xff] %v4584_v11  ;;  %v4585_v13 = vmax.f32 %v4491_v45, 0.0  ;;  %9599 = vmatprep.subr.bf16.mxu1 %v10091_v5  ;;  %v4834_v33 = vld [vmem:[#allocation2 + $0x48] sm:$0xff]  ;;  %v11923_v5 = vpack.c.bf16 %v4771_v39, %v4770_v17  ;;  %v4836_v37 = vld [vmem:[#allocation2 + $0x60] sm:$0xff] }
 0x3d4   : > { %4614 = vst [vmem:[#allocation2 + $0x79] sm:$0xff] %v4582_v16  ;;  %v4583_v19 = vmax.f32 %v4483_v10, 0.0 }
 0x3d5   : > { %4617 = vst [vmem:[#allocation2 + $0x99] sm:$0xff] %v4585_v13  ;;  %v4835_v47 = vld [vmem:[#allocation2 + $0x50] sm:$0xff]  ;;  %v11888_v62 = vpack.c.bf16 %v4585_v13, %v4584_v11 }
 0x3d6   : > { %4615 = vst [vmem:[#allocation2 + $0x81] sm:$0xff] %v4583_v19  ;;  %v9811_v23 = vpop.f32.mrb[28].mxu1  ;;  %v11890_v52 = vpack.c.bf16 %v4583_v19, %v4582_v16  ;;  %9600 = vmatpush3.bf16.msra.mxu1 %v10092_v8  ;;  %v11903_v38 = vpack.c.bf16 %v4835_v47, %v4834_v33  ;;  %v4773_v3 = vld [vmem:[#allocation2 + $0x52] sm:$0xff] }
 0x3d7   : > { %v4504_v2 = vadd.f32 %v9811_v23, %v11778_v50  ;;  %v4495_v7 = vpop.f32.mrb[29].mxu1  ;;  %9601 = vmatprep.subr.bf16.mxu1 %v10095_v41 }
 0x3d8   : > { %v4496_v40 = vadd.f32 %v4495_v7, %v11763_v15  ;;  %v9812_v28 = vpop.f32.mrb[30].mxu1  ;;  %5992 = vmatmul.mubr.bf16.gmra.mrb[24].mxu0 %v11877_v24  ;;  %v10100_v15 = vld [vmem:[%s12653_s1 + $0x618] sm:$0xff]  }
 0x3d9   : > { %v4588_v61 = vmax.f32 %v4504_v2, 0.0  ;;  %v4507_v54 = vadd.f32 %v9812_v28, %v11781_v18  ;;  %v4498_v50 = vpop.f32.mrb[31].mxu1  ;;  %6145 = vmatmul.mubr.bf16.gmra.mrb[52].mxu1 %v11896_v46  ;;  %5999 = vmatprep.mubr.bf16.mxu0 %v4737_v31  ;;  %v10103_v18 = vld [vmem:[%s12653_s1 + $0x660] sm:$0xff]  }
 0x3da   : > { %v4586_v36 = vmax.f32 %v4496_v40, 0.0  ;;  %v4499_v26 = vadd.f32 %v4498_v50, %v11766_v53  ;;  %6152 = vmatprep.mubr.bf16.mxu1 %v11903_v38  ;;  %9602 = vmatpush3.bf16.msra.mxu1 %v10096_v0  ;;  %v4837_v53 = vld [vmem:[#allocation2 + $0x68] sm:$0xff]  ;;  %v10109_v0 = vld [vmem:[%s12653_s1 + $0x630] sm:$0xff]   ;;  %v10110_v40 = vld [vmem:[%s12653_s1 + $0x678] sm:$0xff]  }
 0x3db   : > { %4620 = vst [vmem:[#allocation2 + $0xc1] sm:$0xff] %v4588_v61  ;;  %v4589_v20 = vmax.f32 %v4507_v54, 0.0  ;;  %9603 = vmatprep.subr.bf16.mxu1 %v10099_v22  ;;  %v11930_v12 = vpack.c.bf16 %v4837_v53, %v4836_v37  ;;  %v4838_v22 = vld [vmem:[#allocation2 + $0x78] sm:$0xff] }
 0x3dc   : > { %4618 = vst [vmem:[#allocation2 + $0xa9] sm:$0xff] %v4586_v36  ;;  %v4587_v43 = vmax.f32 %v4499_v26, 0.0  ;;  %v4841_v17 = vld [vmem:[#allocation2 + $0x98] sm:$0xff] }
 0x3dd   : > { %4621 = vst [vmem:[#allocation2 + $0xc9] sm:$0xff] %v4589_v20  ;;  %v11915_v32 = vpack.c.bf16 %v4589_v20, %v4588_v61 }
 0x3de   : > { %4619 = vst [vmem:[#allocation2 + $0xb1] sm:$0xff] %v4587_v43  ;;  %v9815_v31 = vpop.f32.mrb[32].mxu1  ;;  %v11917_v42 = vpack.c.bf16 %v4587_v43, %v4586_v36  ;;  %9604 = vmatpush3.bf16.msra.mxu1 %v10100_v15  ;;  %v4775_v43 = vld [vmem:[#allocation2 + $0x6a] sm:$0xff] }
 0x3df   : > { %v4520_v14 = vadd.f32 %v9815_v31, %v11796_v56  ;;  %v4511_v48 = vpop.f32.mrb[33].mxu1  ;;  %9605 = vmatprep.subr.bf16.mxu1 %v10103_v18  ;;  %v4774_v18 = vld [vmem:[#allocation2 + $0x62] sm:$0xff] }
 0x3e0   : > { %v4512_v11 = vadd.f32 %v4511_v48, %v11790_v21  ;;  %v9816_v45 = vpop.f32.mrb[34].mxu1  ;;  %6000 = vmatmul.mubr.bf16.gmra.mrb[28].mxu0 %v11903_v38  ;;  %v10106_v21 = vld [vmem:[%s12653_s1 + $0x628] sm:$0xff]  }
 0x3e1   : > { %v4592_v16 = vmax.f32 %v4520_v14, 0.0  ;;  %v4523_v10 = vadd.f32 %v9816_v45, %v11799_v29  ;;  %v4514_v56 = vpop.f32.mrb[35].mxu1  ;;  %6153 = vmatmul.mubr.bf16.gmra.mrb[56].mxu1 %v11923_v5  ;;  %6007 = vmatprep.mubr.bf16.mxu0 %v11867_v55  ;;  %v10107_v29 = vld [vmem:[%s12653_s1 + $0x670] sm:$0xff]  }
 0x3e2   : > { %v4590_v8 = vmax.f32 %v4512_v11, 0.0  ;;  %v4515_v13 = vadd.f32 %v4514_v56, %v11793_v57  ;;  %6160 = vmatprep.mubr.bf16.mxu1 %v11930_v12  ;;  %9606 = vmatpush3.bf16.msra.mxu1 %v10104_v9  ;;  %v4772_v55 = vld [vmem:[#allocation2 + $0x4a] sm:$0xff]  ;;  %v4839_v57 = vld [vmem:[#allocation2 + $0x80] sm:$0xff]  ;;  %v11973_v9 = vpack.c.bf16 %v4775_v43, %v4774_v18 }
 0x3e3   : > { %4624 = vst [vmem:[#allocation2 + $0xf1] sm:$0xff] %v4592_v16  ;;  %v4593_v41 = vmax.f32 %v4523_v10, 0.0  ;;  %9607 = vmatprep.subr.bf16.mxu1 %v10105_v35  ;;  %v11951_v33 = vpack.c.bf16 %v4773_v3, %v4772_v55  ;;  %v11958_v54 = vpack.c.bf16 %v4839_v57, %v4838_v22  ;;  %v4840_v14 = vld [vmem:[#allocation2 + $0x90] sm:$0xff]  ;;  %v4842_v55 = vld [vmem:[#allocation2 + $0xa8] sm:$0xff] }
 0x3e4   : > { %4622 = vst [vmem:[#allocation2 + $0xd9] sm:$0xff] %v4590_v8  ;;  %v4591_v19 = vmax.f32 %v4515_v13, 0.0  ;;  %v11977_v35 = vpack.c.bf16 %v4841_v17, %v4840_v14  ;;  %v4777_v13 = vld [vmem:[#allocation2 + $0x82] sm:$0xff] }
 0x3e5   : > { %4625 = vst [vmem:[#allocation2 + $0xf9] sm:$0xff] %v4593_v41  ;;  %v11943_v30 = vpack.c.bf16 %v4593_v41, %v4592_v16  ;;  %v4782_v18 = vld [vmem:[#allocation2 + $0xc2] sm:$0xff] }
 0x3e6   : > { %4623 = vst [vmem:[#allocation2 + $0xe1] sm:$0xff] %v4591_v19  ;;  %v9819_v47 = vpop.f32.mrb[36].mxu1  ;;  %v11945_v23 = vpack.c.bf16 %v4591_v19, %v4590_v8  ;;  %9608 = vmatpush3.bf16.msra.mxu1 %v10106_v21  ;;  %v4776_v8 = vld [vmem:[#allocation2 + $0x7a] sm:$0xff]  ;;  %v4843_v21 = vld [vmem:[#allocation2 + $0xb0] sm:$0xff] }
 0x3e7   : > { %v4536_v2 = vadd.f32 %v9819_v47, %v11814_v59  ;;  %v4527_v7 = vpop.f32.mrb[37].mxu1  ;;  %9609 = vmatprep.subr.bf16.mxu1 %v10107_v29  ;;  %v11993_v47 = vpack.c.bf16 %v4843_v21, %v4842_v55 }
 0x3e8   : > { %v4528_v28 = vadd.f32 %v4527_v7, %v11808_v6  ;;  %v9820_v61 = vpop.f32.mrb[38].mxu1  ;;  %6008 = vmatmul.mubr.bf16.gmra.mrb[32].mxu0 %v11930_v12  ;;  %v10111_v6 = vld [vmem:[%s12653_s1 + $0x638] sm:$0xff]  }
 0x3e9   : > { %v4596_v50 = vmax.f32 %v4536_v2, 0.0  ;;  %v4539_v36 = vadd.f32 %v9820_v61, %v11817_v63  ;;  %v4530_v59 = vpop.f32.mrb[39].mxu1  ;;  %6161 = vmatmul.mubr.bf16.gmra.mrb[60].mxu1 %v11951_v33  ;;  %6015 = vmatprep.mubr.bf16.mxu0 %v11890_v52  ;;  %v4779_v61 = vld [vmem:[#allocation2 + $0x9a] sm:$0xff] }
 0x3ea   : > { %v4594_v26 = vmax.f32 %v4528_v28, 0.0  ;;  %v4531_v15 = vadd.f32 %v4530_v59, %v11811_v34  ;;  %6168 = vmatprep.mubr.bf16.mxu1 %v11958_v54  ;;  %9610 = vmatpush3.bf16.msra.mxu1 %v10109_v0  ;;  %v4778_v28 = vld [vmem:[#allocation2 + $0x92] sm:$0xff]  ;;  %v4844_v59 = vld [vmem:[#allocation2 + $0xc0] sm:$0xff] }
 0x3eb   : > { %4628 = vst [vmem:[#allocation2 + $0x121] sm:$0xff] %v4596_v50  ;;  %v4597_v20 = vmax.f32 %v4539_v36, 0.0  ;;  %9611 = vmatprep.subr.bf16.mxu1 %v10110_v40  ;;  %v12002_v36 = vpack.c.bf16 %v4779_v61, %v4778_v28 }
 0x3ec   : > { %4626 = vst [vmem:[#allocation2 + $0x109] sm:$0xff] %v4594_v26  ;;  %v4595_v63 = vmax.f32 %v4531_v15, 0.0  ;;  %v4849_v43 = vld [vmem:[#allocation2 + $0xf8] sm:$0xff] }
 0x3ed   : > { %4629 = vst [vmem:[#allocation2 + $0x129] sm:$0xff] %v4597_v20  ;;  %v11968_v52 = vpack.c.bf16 %v4597_v20, %v4596_v50  ;;  %v4845_v50 = vld [vmem:[#allocation2 + $0xc8] sm:$0xff]  ;;  %v4847_v15 = vld [vmem:[#allocation2 + $0xe0] sm:$0xff]  ;;  %v4846_v20 = vld [vmem:[#allocation2 + $0xd8] sm:$0xff] }
 0x3ee   : > { %4627 = vst [vmem:[#allocation2 + $0x111] sm:$0xff] %v4595_v63  ;;  %v9823_v34 = vpop.f32.mrb[40].mxu1  ;;  %v11970_v39 = vpack.c.bf16 %v4595_v63, %v4594_v26  ;;  %9612 = vmatpush3.bf16.msra.mxu1 %v10111_v6  ;;  %v4781_v26 = vld [vmem:[#allocation2 + $0xb2] sm:$0xff]  ;;  %v12013_v63 = vpack.c.bf16 %v4847_v15, %v4846_v20 }
 0x3ef   : > { %v4552_v53 = vadd.f32 %v9823_v34, %v11832_v4  ;;  %v4543_v31 = vpop.f32.mrb[41].mxu1  ;;  %v4848_v34 = vld [vmem:[#allocation2 + $0xf0] sm:$0xff] }
 0x3f0   : > { %v4544_v48 = vadd.f32 %v4543_v31, %v11826_v51  ;;  %v9824_v37 = vpop.f32.mrb[42].mxu1  ;;  %6016 = vmatmul.mubr.bf16.gmra.mrb[36].mxu0 %v11958_v54  ;;  %v4784_v31 = vld [vmem:[#allocation2 + $0xda] sm:$0xff] }
 0x3f1   : > { %v4600_v11 = vmax.f32 %v4552_v53, 0.0  ;;  %v4555_v45 = vadd.f32 %v9824_v37, %v11835_v27  ;;  %v4546_v16 = vpop.f32.mrb[43].mxu1  ;;  %6169 = vmatmul.mubr.bf16.gmra.mrb[64].mxu1 %v11973_v9  ;;  %6023 = vmatprep.mubr.bf16.mxu0 %v11888_v62  ;;  %v12021_v53 = vpack.c.bf16 %v4849_v43, %v4848_v34  ;;  %v4894_v34 = vld [vmem:[#allocation2 + $0x19] sm:$0xff] }
 0x3f2   : > { %v4598_v4 = vmax.f32 %v4544_v48, 0.0  ;;  %v4547_v10 = vadd.f32 %v4546_v16, %v11829_v1  ;;  %6176 = vmatprep.mubr.bf16.mxu1 %v11977_v35  ;;  %v11989_v1 = vpack.c.bf16 %v4777_v13, %v4776_v8  ;;  %v4787_v16 = vld [vmem:[#allocation2 + $0xfa] sm:$0xff] }
 0x3f3   : > { %4632 = vst [vmem:[#allocation2 + $0x151] sm:$0xff] %v4600_v11  ;;  %v4601_v51 = vmax.f32 %v4555_v45, 0.0  ;;  %v4850_v37 = vld [vmem:[#allocation2 + $0x108] sm:$0xff]  ;;  %v4852_v21 = vld [vmem:[#allocation2 + $0x120] sm:$0xff] }
 0x3f4   : > { %4630 = vst [vmem:[#allocation2 + $0x139] sm:$0xff] %v4598_v4  ;;  %v4599_v56 = vmax.f32 %v4547_v10, 0.0  ;;  %v4853_v10 = vld [vmem:[#allocation2 + $0x128] sm:$0xff] }
 0x3f5   : > { %4633 = vst [vmem:[#allocation2 + $0x159] sm:$0xff] %v4601_v51  ;;  %v11984_v41 = vpack.c.bf16 %v4601_v51, %v4600_v11  ;;  %v4851_v14 = vld [vmem:[#allocation2 + $0x110] sm:$0xff] }
 0x3f6   : > { %4631 = vst [vmem:[#allocation2 + $0x141] sm:$0xff] %v4599_v56  ;;  %v9827_v27 = vpop.f32.mrb[44].mxu1  ;;  %v11986_v29 = vpack.c.bf16 %v4599_v56, %v4598_v4  ;;  %v12029_v11 = vpack.c.bf16 %v4851_v14, %v4850_v37  ;;  %v5086_v37 = vld [vmem:[#allocation2 + $0x31] sm:$0xff] }
 0x3f7   : > { %v4568_v62 = vadd.f32 %v9827_v27, %v11853_v60  ;;  %v4559_v19 = vpop.f32.mrb[45].mxu1 }
 0x3f8   : > { %v4560_v3 = vadd.f32 %v4559_v19, %v11844_v49  ;;  %v9828_v57 = vpop.f32.mrb[46].mxu1  ;;  %6024 = vmatmul.mubr.bf16.gmra.mrb[40].mxu0 %v11977_v35  ;;  %v4789_v19 = vld [vmem:[#allocation2 + $0x112] sm:$0xff] }
 0x3f9   : > { %v4604_v0 = vmax.f32 %v4568_v62, 0.0  ;;  %v4571_v2 = vadd.f32 %v9828_v57, %v11855_v44  ;;  %v4562_v7 = vpop.f32.mrb[47].mxu1  ;;  %6177 = vmatmul.mubr.bf16.gmra.mrb[68].mxu1 %v11989_v1  ;;  %6031 = vmatprep.mubr.bf16.mxu0 %v11917_v42  ;;  %v12005_v42 = vpack.c.bf16 %v4845_v50, %v4844_v59  ;;  %v12041_v62 = vpack.c.bf16 %v4853_v10, %v4852_v21  ;;  %v10114_v10 = vld [vmem:[%s12653_s1 + $0x698] sm:$0xff]   ;;  %v10116_v21 = vld [vmem:[%s12653_s1 + $0x6a8] sm:$0xff]  }
 0x3fa   : > { %v4602_v60 = vmax.f32 %v4560_v3, 0.0  ;;  %v4563_v22 = vadd.f32 %v4562_v7, %v11847_v58  ;;  %6184 = vmatprep.mubr.bf16.mxu1 %v11993_v47  ;;  %v4780_v58 = vld [vmem:[#allocation2 + $0xaa] sm:$0xff] }
 0x3fb   : > { %4636 = vst [vmem:[#allocation2 + $0x181] sm:$0xff] %v4604_v0  ;;  %v4605_v49 = vmax.f32 %v4571_v2, 0.0  ;;  %v12010_v6 = vpack.c.bf16 %v4781_v26, %v4780_v58  ;;  %v4854_v57 = vld [vmem:[#allocation2 + $0x138] sm:$0xff]  ;;  %v4790_v2 = vld [vmem:[#allocation2 + $0x122] sm:$0xff] }
 0x3fc   : > { %4634 = vst [vmem:[#allocation2 + $0x169] sm:$0xff] %v4602_v60  ;;  %v4603_v40 = vmax.f32 %v4563_v22, 0.0  ;;  %v4857_v7 = vld [vmem:[#allocation2 + $0x158] sm:$0xff]  ;;  %v4856_v22 = vld [vmem:[#allocation2 + $0x150] sm:$0xff] }
 0x3fd   : > { %4637 = vst [vmem:[#allocation2 + $0x189] sm:$0xff] %v4605_v49  ;;  %v4855_v55 = vld [vmem:[#allocation2 + $0x140] sm:$0xff]  ;;  %v12057_v49 = vpack.c.bf16 %v4857_v7, %v4856_v22  ;;  %v4794_v58 = vld [vmem:[#allocation2 + $0x152] sm:$0xff]  ;;  %v5096_v7 = vld [vmem:[#allocation2 + $0xa9] sm:$0xff] }
 0x3fe   : > { %4635 = vst [vmem:[#allocation2 + $0x171] sm:$0xff] %v4603_v40  ;;  %v12000_v44 = vpack.c.bf16 %v4603_v40, %v4602_v60  ;;  %v12049_v0 = vpack.c.bf16 %v4855_v55, %v4854_v57  ;;  %v4792_v40 = vld [vmem:[#allocation2 + $0x13a] sm:$0xff] }
 0x3ff   : > { %v10118_v55 = vld [vmem:[%s12653_s1 + $0x6b8] sm:$0xff]  }
 0x400   : > { %6032 = vmatmul.mubr.bf16.gmra.mrb[44].mxu0 %v11993_v47 }
 0x401   : > { %6185 = vmatmul.mubr.bf16.gmra.mrb[72].mxu1 %v12002_v36  ;;  %6039 = vmatprep.mubr.bf16.mxu0 %v11915_v32  ;;  %v4783_v32 = vld [vmem:[#allocation2 + $0xca] sm:$0xff] }
 0x402   : > { %6192 = vmatprep.mubr.bf16.mxu1 %v12005_v42  ;;  %v12018_v17 = vpack.c.bf16 %v4783_v32, %v4782_v18  ;;  %v4860_v20 = vld [vmem:[#allocation2 + $0x180] sm:$0xff] }
 0x403   : > { %v4858_v50 = vld [vmem:[#allocation2 + $0x168] sm:$0xff] }
 0x404   : > { %v4861_v26 = vld [vmem:[#allocation2 + $0x188] sm:$0xff] }
 0x405   : > { %v4859_v28 = vld [vmem:[#allocation2 + $0x170] sm:$0xff]  ;;  %v12073_v18 = vpack.c.bf16 %v4861_v26, %v4860_v20  ;;  %v4895_v32 = vld [vmem:[#allocation2 + $0x21] sm:$0xff] }
 0x406   : > { %v12065_v59 = vpack.c.bf16 %v4859_v28, %v4858_v50  ;;  %v4797_v43 = vld [vmem:[#allocation2 + $0x172] sm:$0xff] }
 0x408   : > { %6040 = vmatmul.mubr.bf16.gmra.mrb[48].mxu0 %v12005_v42 }
 0x409   : > { %6193 = vmatmul.mubr.bf16.gmra.mrb[76].mxu1 %v12010_v6  ;;  %6047 = vmatprep.mubr.bf16.mxu0 %v11945_v23  ;;  %v4785_v23 = vld [vmem:[#allocation2 + $0xe2] sm:$0xff] }
 0x40a   : > { %6200 = vmatprep.mubr.bf16.mxu1 %v12013_v63  ;;  %v12026_v48 = vpack.c.bf16 %v4785_v23, %v4784_v31  ;;  %v5087_v31 = vld [vmem:[#allocation2 + $0x39] sm:$0xff]  ;;  %v4926_v23 = vpack.c.bf16 %v4895_v32, %v4894_v34 }
 0x410   : > { %6048 = vmatmul.mubr.bf16.gmra.mrb[52].mxu0 %v12013_v63 }
 0x411   : > { %6201 = vmatmul.mubr.bf16.gmra.mrb[80].mxu1 %v12018_v17  ;;  %6055 = vmatprep.mubr.bf16.mxu0 %v11943_v30  ;;  %v4786_v30 = vld [vmem:[#allocation2 + $0xf2] sm:$0xff] }
 0x412   : > { %6208 = vmatprep.mubr.bf16.mxu1 %v12021_v53  ;;  %v12036_v13 = vpack.c.bf16 %v4787_v16, %v4786_v30  ;;  %v5118_v30 = vpack.c.bf16 %v5087_v31, %v5086_v37  ;;  %v5089_v16 = vld [vmem:[#allocation2 + $0x51] sm:$0xff] }
 0x413   : > { %v5110_v37 = vld [vmem:[#allocation2 + $0x151] sm:$0xff] }
 0x418   : > { %6056 = vmatmul.mubr.bf16.gmra.mrb[56].mxu0 %v12021_v53 }
 0x419   : > { %6209 = vmatmul.mubr.bf16.gmra.mrb[84].mxu1 %v12026_v48  ;;  %6063 = vmatprep.mubr.bf16.mxu0 %v11970_v39  ;;  %v9277_v45 = vpop.f32.mrb[16].mxu0  ;;  %v4788_v39 = vld [vmem:[#allocation2 + $0x10a] sm:$0xff] }
 0x41a   : > { %6216 = vmatprep.mubr.bf16.mxu1 %v12029_v11  ;;  %v9278_v4 = vpop.f32.mrb[17].mxu0  ;;  %v12046_v3 = vpack.c.bf16 %v4789_v19, %v4788_v39  ;;  %v5092_v19 = vld [vmem:[#allocation2 + $0x79] sm:$0xff] }
 0x41b   : > { %v12034_v51 = vadd.f32 %v9278_v4, %v9277_v45  ;;  %v9280_v56 = vpop.f32.mrb[18].mxu0  ;;  %v10112_v45 = vld [vmem:[%s12653_s1 + $0x688] sm:$0xff]  }
 0x41c   : > { %v9281_v8 = vpop.f32.mrb[19].mxu0  ;;  %v5088_v4 = vld [vmem:[#allocation2 + $0x49] sm:$0xff] }
 0x41d   : > { %v12038_v27 = vadd.f32 %v9281_v8, %v9280_v56  ;;  %v5119_v56 = vpack.c.bf16 %v5089_v16, %v5088_v4  ;;  %v5090_v8 = vld [vmem:[#allocation2 + $0x61] sm:$0xff] }
 0x420   : > { %6064 = vmatmul.mubr.bf16.gmra.mrb[60].mxu0 %v12029_v11 }
 0x421   : > { %6217 = vmatmul.mubr.bf16.gmra.mrb[88].mxu1 %v12036_v13  ;;  %6071 = vmatprep.mubr.bf16.mxu0 %v11968_v52  ;;  %v4791_v52 = vld [vmem:[#allocation2 + $0x12a] sm:$0xff] }
 0x422   : > { %6224 = vmatprep.mubr.bf16.mxu1 %v12041_v62  ;;  %v12054_v60 = vpack.c.bf16 %v4791_v52, %v4790_v2  ;;  %v5097_v52 = vld [vmem:[#allocation2 + $0xb1] sm:$0xff] }
 0x423   : > { %v5123_v22 = vpack.c.bf16 %v5097_v52, %v5096_v7 }
 0x428   : > { %6072 = vmatmul.mubr.bf16.gmra.mrb[64].mxu0 %v12041_v62 }
 0x429   : > { %6225 = vmatmul.mubr.bf16.gmra.mrb[92].mxu1 %v12046_v3  ;;  %6079 = vmatprep.mubr.bf16.mxu0 %v11986_v29  ;;  %v4793_v29 = vld [vmem:[#allocation2 + $0x142] sm:$0xff] }
 0x42a   : > { %6232 = vmatprep.mubr.bf16.mxu1 %v12049_v0  ;;  %v12062_v61 = vpack.c.bf16 %v4793_v29, %v4792_v40 }
 0x430   : > { %6080 = vmatmul.mubr.bf16.gmra.mrb[68].mxu0 %v12049_v0 }
 0x431   : > { %6233 = vmatmul.mubr.bf16.gmra.mrb[96].mxu1 %v12054_v60  ;;  %6087 = vmatprep.mubr.bf16.mxu0 %v11984_v41  ;;  %v4795_v41 = vld [vmem:[#allocation2 + $0x15a] sm:$0xff] }
 0x432   : > { %6240 = vmatprep.mubr.bf16.mxu1 %v12057_v49  ;;  %v12070_v15 = vpack.c.bf16 %v4795_v41, %v4794_v58 }
 0x438   : > { %6088 = vmatmul.mubr.bf16.gmra.mrb[72].mxu0 %v12057_v49 }
 0x439   : > { %6241 = vmatmul.mubr.bf16.gmra.mrb[100].mxu1 %v12062_v61  ;;  %6095 = vmatprep.mubr.bf16.mxu0 %v12000_v44  ;;  %v4796_v44 = vld [vmem:[#allocation2 + $0x16a] sm:$0xff] }
 0x43a   : > { %6248 = vmatprep.mubr.bf16.mxu1 %v12065_v59  ;;  %v12078_v14 = vpack.c.bf16 %v4797_v43, %v4796_v44  ;;  %v5111_v44 = vld [vmem:[#allocation2 + $0x159] sm:$0xff] }
 0x43b   : > { %v5130_v16 = vpack.c.bf16 %v5111_v44, %v5110_v37 }
 0x440   : > { %6096 = vmatmul.mubr.bf16.gmra.mrb[76].mxu0 %v12065_v59 }
 0x441   : > { %6249 = vmatmul.mubr.bf16.gmra.mrb[104].mxu1 %v12070_v15  ;;  %6297 = vmatprep.mubr.bf16.mxu0 %v11896_v46  ;;  %v10113_v46 = vld [vmem:[%s12653_s1 + $0x690] sm:$0xff]  }
 0x442   : > { %6256 = vmatprep.mubr.bf16.mxu1 %v12073_v18 }
 0x448   : > { %6298 = vmatmul.mubr.bf16.vlgmr.msra.gmra.mrb[80].mxu0 %v4926_v23 }
 0x449   : > { %6257 = vmatmul.mubr.bf16.gmra.mrb[108].mxu1 %v12078_v14  ;;  %6305 = vmatprep.mubr.bf16.mxu0 %v11923_v5  ;;  %v5091_v5 = vld [vmem:[#allocation2 + $0x69] sm:$0xff] }
 0x44a   : > { %6458 = vmatprep.mubr.bf16.mxu1 %v5118_v30  ;;  %9830 = vmatpush3.bf16.msra.mxu0 %v11863_v25  ;;  %v10115_v25 = vld [vmem:[%s12653_s1 + $0x6a0] sm:$0xff]   ;;  %v5120_v39 = vpack.c.bf16 %v5091_v5, %v5090_v8 }
 0x44b   : > { %9831 = vmatprep.subr.bf16.mxu0 %v10112_v45 }
 0x44e   : > { %9832 = vmatpush3.bf16.msra.mxu0 %v10112_v45 }
 0x44f   : > { %9833 = vmatprep.subr.bf16.mxu0 %v10113_v46 }
 0x450   : > { %6306 = vmatmul.mubr.bf16.gmra.mrb[84].mxu0 %v5118_v30 }
 0x451   : > { %6459 = vmatmul.mubr.bf16.vlgmr.msra.gmra.mrb[112].mxu1 %v11877_v24  ;;  %6313 = vmatprep.mubr.bf16.mxu0 %v11951_v33  ;;  %v10117_v24 = vld [vmem:[%s12653_s1 + $0x6b0] sm:$0xff]   ;;  %v5093_v33 = vld [vmem:[#allocation2 + $0x81] sm:$0xff] }
 0x452   : > { %6466 = vmatprep.mubr.bf16.mxu1 %v5119_v56  ;;  %9834 = vmatpush3.bf16.msra.mxu0 %v10113_v46  ;;  %v5121_v57 = vpack.c.bf16 %v5093_v33, %v5092_v19 }
 0x453   : > { %9835 = vmatprep.subr.bf16.mxu0 %v10114_v10 }
 0x456   : > { %9836 = vmatpush3.bf16.msra.mxu0 %v10114_v10 }
 0x457   : > { %9837 = vmatprep.subr.bf16.mxu0 %v10115_v25 }
 0x458   : > { %6314 = vmatmul.mubr.bf16.gmra.mrb[88].mxu0 %v5119_v56 }
 0x459   : > { %6467 = vmatmul.mubr.bf16.gmra.mrb[116].mxu1 %v11903_v38  ;;  %6321 = vmatprep.mubr.bf16.mxu0 %v11973_v9  ;;  %v5095_v38 = vld [vmem:[#allocation2 + $0x99] sm:$0xff]  ;;  %v5094_v9 = vld [vmem:[#allocation2 + $0x91] sm:$0xff] }
 0x45a   : > { %6474 = vmatprep.mubr.bf16.mxu1 %v5120_v39  ;;  %9838 = vmatpush3.bf16.msra.mxu0 %v10115_v25  ;;  %v5122_v2 = vpack.c.bf16 %v5095_v38, %v5094_v9 }
 0x45b   : > { %9839 = vmatprep.subr.bf16.mxu0 %v10116_v21 }
 0x45e   : > { %9840 = vmatpush3.bf16.msra.mxu0 %v10116_v21  ;;  %v5113_v21 = vld [vmem:[#allocation2 + $0x171] sm:$0xff] }
 0x45f   : > { %9841 = vmatprep.subr.bf16.mxu0 %v10117_v24 }
 0x460   : > { %6322 = vmatmul.mubr.bf16.gmra.mrb[92].mxu0 %v5120_v39 }
 0x461   : > { %6475 = vmatmul.mubr.bf16.gmra.mrb[120].mxu1 %v11930_v12  ;;  %6329 = vmatprep.mubr.bf16.mxu0 %v11989_v1  ;;  %v5099_v12 = vld [vmem:[#allocation2 + $0xc9] sm:$0xff]  ;;  %v5098_v1 = vld [vmem:[#allocation2 + $0xc1] sm:$0xff] }
 0x462   : > { %6482 = vmatprep.mubr.bf16.mxu1 %v5121_v57  ;;  %9842 = vmatpush3.bf16.msra.mxu0 %v10117_v24  ;;  %v5124_v40 = vpack.c.bf16 %v5099_v12, %v5098_v1  ;;  %v4988_v12 = vld [vmem:[#allocation2 + $0x182] sm:$0xff]  ;;  %v4989_v1 = vld [vmem:[#allocation2 + $0x18a] sm:$0xff] }
 0x463   : > { %9843 = vmatprep.subr.bf16.mxu0 %v10118_v55 }
 0x466   : > { %9844 = vmatpush3.bf16.msra.mxu0 %v10118_v55 }
 0x468   : > { %6330 = vmatmul.mubr.bf16.gmra.mrb[96].mxu0 %v5121_v57 }
 0x469   : > { %6483 = vmatmul.mubr.bf16.gmra.mrb[124].mxu1 %v11958_v54  ;;  %6337 = vmatprep.mubr.bf16.mxu0 %v12002_v36  ;;  %v5101_v54 = vld [vmem:[#allocation2 + $0xe1] sm:$0xff]  ;;  %v5100_v36 = vld [vmem:[#allocation2 + $0xd9] sm:$0xff] }
 0x46a   : > { %6490 = vmatprep.mubr.bf16.mxu1 %v5122_v2  ;;  %v5125_v29 = vpack.c.bf16 %v5101_v54, %v5100_v36 }
 0x470   : > { %6338 = vmatmul.mubr.bf16.gmra.mrb[100].mxu0 %v5122_v2 }
 0x471   : > { %6491 = vmatmul.mubr.bf16.gmra.mrb[128].mxu1 %v11977_v35  ;;  %6345 = vmatprep.mubr.bf16.mxu0 %v12010_v6  ;;  %v5103_v35 = vld [vmem:[#allocation2 + $0xf9] sm:$0xff]  ;;  %v5102_v6 = vld [vmem:[#allocation2 + $0xf1] sm:$0xff] }
 0x472   : > { %6498 = vmatprep.mubr.bf16.mxu1 %v5123_v22  ;;  %v5126_v28 = vpack.c.bf16 %v5103_v35, %v5102_v6 }
 0x478   : > { %6346 = vmatmul.mubr.bf16.gmra.mrb[104].mxu0 %v5123_v22 }
 0x479   : > { %6499 = vmatmul.mubr.bf16.gmra.mrb[132].mxu1 %v11993_v47  ;;  %6353 = vmatprep.mubr.bf16.mxu0 %v12018_v17  ;;  %v5105_v47 = vld [vmem:[#allocation2 + $0x111] sm:$0xff]  ;;  %v5104_v17 = vld [vmem:[#allocation2 + $0x109] sm:$0xff] }
 0x47a   : > { %6506 = vmatprep.mubr.bf16.mxu1 %v5124_v40  ;;  %v5127_v50 = vpack.c.bf16 %v5105_v47, %v5104_v17 }
 0x480   : > { %6354 = vmatmul.mubr.bf16.gmra.mrb[108].mxu0 %v5124_v40 }
 0x481   : > { %6507 = vmatmul.mubr.bf16.gmra.mrb[136].mxu1 %v12005_v42  ;;  %6361 = vmatprep.mubr.bf16.mxu0 %v12026_v48  ;;  %v5107_v42 = vld [vmem:[#allocation2 + $0x129] sm:$0xff]  ;;  %v5106_v48 = vld [vmem:[#allocation2 + $0x121] sm:$0xff] }
 0x482   : > { %6514 = vmatprep.mubr.bf16.mxu1 %v5125_v29  ;;  %v5128_v58 = vpack.c.bf16 %v5107_v42, %v5106_v48 }
 0x488   : > { %6362 = vmatmul.mubr.bf16.gmra.mrb[112].mxu0 %v5125_v29  ;;  %v5115_v29 = vld [vmem:[#allocation2 + $0x189] sm:$0xff] }
 0x489   : > { %6515 = vmatmul.mubr.bf16.gmra.mrb[140].mxu1 %v12013_v63  ;;  %6369 = vmatprep.mubr.bf16.mxu0 %v12036_v13  ;;  %v5109_v63 = vld [vmem:[#allocation2 + $0x141] sm:$0xff]  ;;  %v5108_v13 = vld [vmem:[#allocation2 + $0x139] sm:$0xff] }
 0x48a   : > { %6522 = vmatprep.mubr.bf16.mxu1 %v5126_v28  ;;  %v5129_v41 = vpack.c.bf16 %v5109_v63, %v5108_v13 }
 0x490   : > { %6370 = vmatmul.mubr.bf16.gmra.mrb[116].mxu0 %v5126_v28 }
 0x491   : > { %6523 = vmatmul.mubr.bf16.gmra.mrb[144].mxu1 %v12021_v53  ;;  %6377 = vmatprep.mubr.bf16.mxu0 %v12046_v3  ;;  %v12129_v53 = vld [vmem:[%s12654_s2 + $0x2] ss:$0 sm:$0xff] }
 0x492   : > { %6530 = vmatprep.mubr.bf16.mxu1 %v5127_v50  ;;  %v5978_v43 = vadd.f32 %v12034_v51, %v12129_v53  ;;  %v5981_v45 = vadd.f32 %v12038_v27, %v12129_v53 }
 0x498   : > { %6378 = vmatmul.mubr.bf16.gmra.mrb[120].mxu0 %v5127_v50  ;;  %v5114_v50 = vld [vmem:[#allocation2 + $0x181] sm:$0xff] }
 0x499   : > { %6531 = vmatmul.mubr.bf16.gmra.mrb[148].mxu1 %v12029_v11  ;;  %6385 = vmatprep.mubr.bf16.mxu0 %v12054_v60  ;;  %v5132_v63 = vpack.c.bf16 %v5115_v29, %v5114_v50  ;;  %v5159_v50 = vld [vmem:[#allocation2 + $0x9a] sm:$0xff] }
 0x49a   : > { %6538 = vmatprep.mubr.bf16.mxu1 %v5128_v58 }
 0x4a0   : > { %6386 = vmatmul.mubr.bf16.gmra.mrb[124].mxu0 %v5128_v58 }
 0x4a1   : > { %6539 = vmatmul.mubr.bf16.gmra.mrb[152].mxu1 %v12041_v62  ;;  %6393 = vmatprep.mubr.bf16.mxu0 %v12062_v61 }
 0x4a2   : > { %6546 = vmatprep.mubr.bf16.mxu1 %v5129_v41 }
 0x4a3   : > { %v9283_v3 = vpop.f32.mrb[20].mxu0 }
 0x4a4   : > { %v9389_v26 = vpop.f32.mrb[48].mxu1  ;;  %v9284_v11 = vpop.f32.mrb[21].mxu0 }
 0x4a5   : > { %v9285_v20 = vadd.f32 %v9284_v11, %v9283_v3  ;;  %v9390_v60 = vpop.f32.mrb[49].mxu1  ;;  %v9286_v32 = vpop.f32.mrb[22].mxu0  ;;  %v5116_v3 = vld [vmem:[#allocation2 + $0x199] sm:$0xff] }
 0x4a6   : > { %v9391_v34 = vadd.f32 %v9390_v60, %v9389_v26  ;;  %v9392_v62 = vpop.f32.mrb[50].mxu1  ;;  %v9287_v31 = vpop.f32.mrb[23].mxu0  ;;  %v5117_v26 = vld [vmem:[#allocation2 + $0x1a1] sm:$0xff]  ;;  %v5150_v60 = vld [vmem:[#allocation2 + $0x32] sm:$0xff] }
 0x4a7   : > { %v9288_v61 = vadd.f32 %v9287_v31, %v9286_v32  ;;  %v9393_v23 = vpop.f32.mrb[51].mxu1  ;;  %v5986_v27 = vadd.f32 %v9285_v20, %v12129_v53  ;;  %v5151_v32 = vld [vmem:[#allocation2 + $0x3a] sm:$0xff] }
 0x4a8   : > { %v12135_v30 = vadd.f32 %v9391_v34, %v5978_v43  ;;  %v9394_v46 = vadd.f32 %v9393_v23, %v9392_v62  ;;  %6394 = vmatmul.mubr.bf16.gmra.mrb[128].mxu0 %v5129_v41  ;;  %v5133_v23 = vpack.c.bf16 %v5117_v26, %v5116_v3 }
 0x4a9   : > { %6547 = vmatmul.mubr.bf16.gmra.mrb[156].mxu1 %v12049_v0  ;;  %6401 = vmatprep.mubr.bf16.mxu0 %v12070_v15  ;;  %v5112_v0 = vld [vmem:[#allocation2 + $0x169] sm:$0xff]  ;;  %v5989_v15 = vadd.f32 %v9288_v61, %v12129_v53 }
 0x4aa   : > { %v12139_v4 = vadd.f32 %v9394_v46, %v5981_v45  ;;  %6554 = vmatprep.mubr.bf16.mxu1 %v5130_v16  ;;  %v5131_v9 = vpack.c.bf16 %v5113_v21, %v5112_v0  ;;  %v5182_v46 = vpack.c.bf16 %v5151_v32, %v5150_v60  ;;  %v10121_v0 = vld [vmem:[#allocation2] sm:$0xff] }
 0x4ab   : > { %v9289_v51 = vpop.f32.mrb[24].mxu0 }
 0x4ac   : > { %v9395_v10 = vpop.f32.mrb[52].mxu1  ;;  %v9290_v56 = vpop.f32.mrb[25].mxu0 }
 0x4ad   : > { %v9291_v25 = vadd.f32 %v9290_v56, %v9289_v51  ;;  %v9396_v5 = vpop.f32.mrb[53].mxu1  ;;  %v9292_v8 = vpop.f32.mrb[26].mxu0 }
 0x4ae   : > { %v9397_v39 = vadd.f32 %v9396_v5, %v9395_v10  ;;  %v9398_v24 = vpop.f32.mrb[54].mxu1  ;;  %v9293_v33 = vpop.f32.mrb[27].mxu0  ;;  %v5152_v5 = vld [vmem:[#allocation2 + $0x4a] sm:$0xff] }
 0x4af   : > { %v9294_v19 = vadd.f32 %v9293_v33, %v9292_v8  ;;  %v9399_v55 = vpop.f32.mrb[55].mxu1  ;;  %v5994_v35 = vadd.f32 %v9291_v25, %v12129_v53  ;;  %v5153_v8 = vld [vmem:[#allocation2 + $0x52] sm:$0xff] }
 0x4b0   : > { %v12143_v57 = vadd.f32 %v9397_v39, %v5986_v27  ;;  %v9400_v38 = vadd.f32 %v9399_v55, %v9398_v24  ;;  %6402 = vmatmul.mubr.bf16.gmra.mrb[132].mxu0 %v5130_v16  ;;  %v5154_v39 = vld [vmem:[#allocation2 + $0x62] sm:$0xff]  ;;  %v5155_v24 = vld [vmem:[#allocation2 + $0x6a] sm:$0xff] }
 0x4b1   : > { %6555 = vmatmul.mubr.bf16.gmra.mrb[160].mxu1 %v12057_v49  ;;  %6409 = vmatprep.mubr.bf16.mxu0 %v12078_v14  ;;  %v12150_v14 = vpack.c.bf16 %v4989_v1, %v4988_v12  ;;  %v5997_v42 = vadd.f32 %v9294_v19, %v12129_v53  ;;  %v5184_v1 = vpack.c.bf16 %v5155_v24, %v5154_v39 }
 0x4b2   : > { %v12147_v2 = vadd.f32 %v9400_v38, %v5989_v15  ;;  %6562 = vmatprep.mubr.bf16.mxu1 %v5131_v9  ;;  %v5069_v15 = vpack.c.bf16 %v10121_v0, %v10121_v0 }
 0x4b3   : > { %v9295_v52 = vpop.f32.mrb[28].mxu0 }
 0x4b4   : > { %v9401_v7 = vpop.f32.mrb[56].mxu1  ;;  %v9296_v22 = vpop.f32.mrb[29].mxu0 }
 0x4b5   : > { %v9297_v40 = vadd.f32 %v9296_v22, %v9295_v52  ;;  %v9402_v54 = vpop.f32.mrb[57].mxu1  ;;  %v9298_v36 = vpop.f32.mrb[30].mxu0 }
 0x4b6   : > { %v9403_v6 = vadd.f32 %v9402_v54, %v9401_v7  ;;  %v9404_v28 = vpop.f32.mrb[58].mxu1  ;;  %v9299_v47 = vpop.f32.mrb[31].mxu0  ;;  %v5183_v7 = vpack.c.bf16 %v5153_v8, %v5152_v5 }
 0x4b7   : > { %v9300_v49 = vadd.f32 %v9299_v47, %v9298_v36  ;;  %v9405_v17 = vpop.f32.mrb[59].mxu1  ;;  %v6002_v62 = vadd.f32 %v9297_v40, %v12129_v53 }
 0x4b8   : > { %v12153_v48 = vadd.f32 %v9403_v6, %v5994_v35  ;;  %v9406_v58 = vadd.f32 %v9405_v17, %v9404_v28  ;;  %6410 = vmatmul.mubr.bf16.gmra.mrb[136].mxu0 %v5131_v9  ;;  %v5156_v6 = vld [vmem:[#allocation2 + $0x7a] sm:$0xff]  ;;  %v5157_v28 = vld [vmem:[#allocation2 + $0x82] sm:$0xff]  ;;  %v5158_v17 = vld [vmem:[#allocation2 + $0x92] sm:$0xff] }
 0x4b9   : > { %6563 = vmatmul.mubr.bf16.gmra.mrb[164].mxu1 %v12065_v59  ;;  %6417 = vmatprep.mubr.bf16.mxu0 %v12150_v14  ;;  %v6005_v16 = vadd.f32 %v9300_v49, %v12129_v53 }
 0x4ba   : > { %v12157_v13 = vadd.f32 %v9406_v58, %v5997_v42  ;;  %6570 = vmatprep.mubr.bf16.mxu1 %v5132_v63 }
 0x4bb   : > { %v9301_v41 = vpop.f32.mrb[32].mxu0 }
 0x4bc   : > { %v9407_v11 = vpop.f32.mrb[60].mxu1  ;;  %v9302_v20 = vpop.f32.mrb[33].mxu0 }
 0x4bd   : > { %v9303_v44 = vadd.f32 %v9302_v20, %v9301_v41  ;;  %v9408_v43 = vpop.f32.mrb[61].mxu1  ;;  %v9304_v34 = vpop.f32.mrb[34].mxu0  ;;  %v5185_v20 = vpack.c.bf16 %v5157_v28, %v5156_v6 }
 0x4be   : > { %v9409_v31 = vadd.f32 %v9408_v43, %v9407_v11  ;;  %v9410_v61 = vpop.f32.mrb[62].mxu1  ;;  %v9305_v59 = vpop.f32.mrb[35].mxu0 }
 0x4bf   : > { %v9306_v37 = vadd.f32 %v9305_v59, %v9304_v34  ;;  %v9411_v45 = vpop.f32.mrb[63].mxu1  ;;  %v6010_v38 = vadd.f32 %v9303_v44, %v12129_v53  ;;  %v5186_v44 = vpack.c.bf16 %v5159_v50, %v5158_v17  ;;  %v5160_v59 = vld [vmem:[#allocation2 + $0xaa] sm:$0xff] }
 0x4c0   : > { %v12161_v51 = vadd.f32 %v9409_v31, %v6002_v62  ;;  %v9412_v10 = vadd.f32 %v9411_v45, %v9410_v61  ;;  %6418 = vmatmul.mubr.bf16.gmra.mrb[140].mxu0 %v5132_v63 }
 0x4c1   : > { %6571 = vmatmul.mubr.bf16.gmra.mrb[168].mxu1 %v12073_v18  ;;  %9845 = vmatprep.mubr.bf16.mxu0 %v5182_v46  ;;  %v6013_v40 = vadd.f32 %v9306_v37, %v12129_v53  ;;  %v5162_v46 = vld [vmem:[#allocation2 + $0xc2] sm:$0xff] }
 0x4c2   : > { %v12164_v56 = vadd.f32 %v9412_v10, %v6005_v16  ;;  %6578 = vmatprep.mubr.bf16.mxu1 %v5133_v23  ;;  %v5161_v23 = vld [vmem:[#allocation2 + $0xb2] sm:$0xff]  ;;  %v5163_v16 = vld [vmem:[#allocation2 + $0xca] sm:$0xff] }
 0x4c3   : > { %v9307_v25 = vpop.f32.mrb[36].mxu0  ;;  %v5187_v24 = vpack.c.bf16 %v5161_v23, %v5160_v59 }
 0x4c4   : > { %v9413_v21 = vpop.f32.mrb[64].mxu1  ;;  %v9308_v27 = vpop.f32.mrb[37].mxu0 }
 0x4c5   : > { %v9309_v33 = vadd.f32 %v9308_v27, %v9307_v25  ;;  %v9414_v19 = vpop.f32.mrb[65].mxu1  ;;  %v9310_v55 = vpop.f32.mrb[38].mxu0 }
 0x4c6   : > { %v9415_v9 = vadd.f32 %v9414_v19, %v9413_v21  ;;  %v9416_v18 = vpop.f32.mrb[66].mxu1  ;;  %v9311_v52 = vpop.f32.mrb[39].mxu0 }
 0x4c7   : > { %v9312_v22 = vadd.f32 %v9311_v52, %v9310_v55  ;;  %v9417_v12 = vpop.f32.mrb[67].mxu1  ;;  %v6018_v41 = vadd.f32 %v9309_v33, %v12129_v53  ;;  %v5188_v55 = vpack.c.bf16 %v5163_v16, %v5162_v46  ;;  %v5164_v52 = vld [vmem:[#allocation2 + $0xda] sm:$0xff] }
 0x4c8   : > { %v12168_v54 = vadd.f32 %v9415_v9, %v6010_v38  ;;  %v9418_v36 = vadd.f32 %v9417_v12, %v9416_v18  ;;  %9846 = vmatmul.mubr.bf16.vlgmr.msra.gmra.mrb[144].mxu0 %v5183_v7  ;;  %v5165_v7 = vld [vmem:[#allocation2 + $0xe2] sm:$0xff] }
 0x4c9   : > { %6579 = vmatmul.mubr.bf16.gmra.mrb[172].mxu1 %v5069_v15  ;;  %9849 = vmatprep.mubr.bf16.mxu0 %v5184_v1  ;;  %v6021_v43 = vadd.f32 %v9312_v22, %v12129_v53  ;;  %v5166_v1 = vld [vmem:[#allocation2 + $0xf2] sm:$0xff]  ;;  %v5189_v50 = vpack.c.bf16 %v5165_v7, %v5164_v52  ;;  %v5175_v7 = vld [vmem:[#allocation2 + $0x15a] sm:$0xff] }
 0x4ca   : > { %v12170_v29 = vadd.f32 %v9418_v36, %v6013_v40  ;;  %v5167_v40 = vld [vmem:[#allocation2 + $0xfa] sm:$0xff]  ;;  %v5174_v52 = vld [vmem:[#allocation2 + $0x152] sm:$0xff] }
 0x4cb   : > { %v9313_v35 = vpop.f32.mrb[40].mxu0 }
 0x4cc   : > { %v9419_v47 = vpop.f32.mrb[68].mxu1  ;;  %v9314_v49 = vpop.f32.mrb[41].mxu0 }
 0x4cd   : > { %v9315_v42 = vadd.f32 %v9314_v49, %v9313_v35  ;;  %v9420_v58 = vpop.f32.mrb[69].mxu1  ;;  %v9316_v63 = vpop.f32.mrb[42].mxu0 }
 0x4ce   : > { %v9421_v3 = vadd.f32 %v9420_v58, %v9419_v47  ;;  %v9422_v26 = vpop.f32.mrb[70].mxu1  ;;  %v9317_v11 = vpop.f32.mrb[43].mxu0 }
 0x4cf   : > { %v9318_v60 = vadd.f32 %v9317_v11, %v9316_v63  ;;  %v9423_v32 = vpop.f32.mrb[71].mxu1  ;;  %v6026_v8 = vadd.f32 %v9315_v42, %v12129_v53  ;;  %v5190_v63 = vpack.c.bf16 %v5167_v40, %v5166_v1 }
 0x4d0   : > { %v12174_v34 = vadd.f32 %v9421_v3, %v6018_v41  ;;  %v9424_v62 = vadd.f32 %v9423_v32, %v9422_v26  ;;  %9850 = vmatmul.mubr.bf16.gmra.mrb[148].mxu0 %v5185_v20  ;;  %v5169_v32 = vld [vmem:[#allocation2 + $0x112] sm:$0xff] }
 0x4d1   : > { %9853 = vmatprep.mubr.bf16.mxu0 %v5186_v44  ;;  %v6029_v0 = vadd.f32 %v9318_v60, %v12129_v53  ;;  %v5168_v60 = vld [vmem:[#allocation2 + $0x10a] sm:$0xff] }
 0x4d2   : > { %v12176_v31 = vadd.f32 %v9424_v62, %v6021_v43  ;;  %v5170_v62 = vld [vmem:[#allocation2 + $0x122] sm:$0xff] }
 0x4d3   : > { %v9319_v61 = vpop.f32.mrb[44].mxu0 }
 0x4d4   : > { %v9425_v37 = vpop.f32.mrb[72].mxu1  ;;  %v9320_v45 = vpop.f32.mrb[45].mxu0 }
 0x4d5   : > { %v9321_v10 = vadd.f32 %v9320_v45, %v9319_v61  ;;  %v9426_v25 = vpop.f32.mrb[73].mxu1  ;;  %v9322_v5 = vpop.f32.mrb[46].mxu0  ;;  %v5171_v61 = vld [vmem:[#allocation2 + $0x12a] sm:$0xff] }
 0x4d6   : > { %v9427_v21 = vadd.f32 %v9426_v25, %v9425_v37  ;;  %v9428_v27 = vpop.f32.mrb[74].mxu1  ;;  %v9323_v39 = vpop.f32.mrb[47].mxu0  ;;  %v5191_v25 = vpack.c.bf16 %v5169_v32, %v5168_v60 }
 0x4d7   : > { %v9324_v33 = vadd.f32 %v9323_v39, %v9322_v5  ;;  %v9429_v19 = vpop.f32.mrb[75].mxu1  ;;  %v6034_v28 = vadd.f32 %v9321_v10, %v12129_v53 }
 0x4d8   : > { %v12180_v15 = vadd.f32 %v9427_v21, %v6026_v8  ;;  %v9430_v38 = vadd.f32 %v9429_v19, %v9428_v27  ;;  %9854 = vmatmul.mubr.bf16.gmra.mrb[152].mxu0 %v5187_v24  ;;  %v5192_v21 = vpack.c.bf16 %v5171_v61, %v5170_v62 }
 0x4d9   : > { %9857 = vmatprep.mubr.bf16.mxu0 %v5188_v55  ;;  %v6037_v41 = vadd.f32 %v9324_v33, %v12129_v53  ;;  %v5172_v55 = vld [vmem:[#allocation2 + $0x13a] sm:$0xff] }
 0x4da   : > { %v12182_v9 = vadd.f32 %v9430_v38, %v6029_v0  ;;  %v5173_v0 = vld [vmem:[#allocation2 + $0x142] sm:$0xff] }
 0x4db   : > { %v9325_v18 = vpop.f32.mrb[48].mxu0 }
 0x4dc   : > { %v9431_v22 = vpop.f32.mrb[76].mxu1  ;;  %v9326_v12 = vpop.f32.mrb[49].mxu0 }
 0x4dd   : > { %v9327_v36 = vadd.f32 %v9326_v12, %v9325_v18  ;;  %v9432_v35 = vpop.f32.mrb[77].mxu1  ;;  %v9328_v6 = vpop.f32.mrb[50].mxu0 }
 0x4de   : > { %v9433_v47 = vadd.f32 %v9432_v35, %v9431_v22  ;;  %v9434_v49 = vpop.f32.mrb[78].mxu1  ;;  %v9329_v17 = vpop.f32.mrb[51].mxu0 }
 0x4df   : > { %v9330_v42 = vadd.f32 %v9329_v17, %v9328_v6  ;;  %v9435_v58 = vpop.f32.mrb[79].mxu1  ;;  %v6042_v45 = vadd.f32 %v9327_v36, %v12129_v53  ;;  %v5194_v17 = vpack.c.bf16 %v5175_v7, %v5174_v52 }
 0x4e0   : > { %v12186_v3 = vadd.f32 %v9433_v47, %v6034_v28  ;;  %v9436_v26 = vadd.f32 %v9435_v58, %v9434_v49  ;;  %9858 = vmatmul.mubr.bf16.gmra.mrb[156].mxu0 %v5189_v50  ;;  %v5193_v28 = vpack.c.bf16 %v5173_v0, %v5172_v55 }
 0x4e1   : > { %9861 = vmatprep.mubr.bf16.mxu0 %v5190_v63  ;;  %v6045_v27 = vadd.f32 %v9330_v42, %v12129_v53 }
 0x4e2   : > { %v12188_v11 = vadd.f32 %v9436_v26, %v6037_v41  ;;  %v5176_v26 = vld [vmem:[#allocation2 + $0x16a] sm:$0xff] }
 0x4e3   : > { %v9331_v20 = vpop.f32.mrb[52].mxu0 }
 0x4e4   : > { %v9437_v44 = vpop.f32.mrb[80].mxu1  ;;  %v9332_v43 = vpop.f32.mrb[53].mxu0 }
 0x4e5   : > { %v9333_v59 = vadd.f32 %v9332_v43, %v9331_v20  ;;  %v9438_v23 = vpop.f32.mrb[81].mxu1  ;;  %v9334_v37 = vpop.f32.mrb[54].mxu0  ;;  %v5177_v20 = vld [vmem:[#allocation2 + $0x172] sm:$0xff] }
 0x4e6   : > { %v9439_v46 = vadd.f32 %v9438_v23, %v9437_v44  ;;  %v9440_v16 = vpop.f32.mrb[82].mxu1  ;;  %v9335_v10 = vpop.f32.mrb[55].mxu0 }
 0x4e7   : > { %v9336_v5 = vadd.f32 %v9335_v10, %v9334_v37  ;;  %v9441_v8 = vpop.f32.mrb[83].mxu1  ;;  %v6050_v40 = vadd.f32 %v9333_v59, %v12129_v53 }
 0x4e8   : > { %v12192_v39 = vadd.f32 %v9439_v46, %v6042_v45  ;;  %v9442_v24 = vadd.f32 %v9441_v8, %v9440_v16  ;;  %9862 = vmatmul.mubr.bf16.gmra.mrb[160].mxu0 %v5191_v25  ;;  %v5195_v45 = vpack.c.bf16 %v5177_v20, %v5176_v26  ;;  %v5180_v8 = vld [vmem:[#allocation2 + $0x19a] sm:$0xff] }
 0x4e9   : > { %9865 = vmatprep.mubr.bf16.mxu0 %v5192_v21  ;;  %v6053_v50 = vadd.f32 %v9336_v5, %v12129_v53  ;;  %v5181_v21 = vld [vmem:[#allocation2 + $0x1a2] sm:$0xff] }
 0x4ea   : > { %v12194_v33 = vadd.f32 %v9442_v24, %v6045_v27  ;;  %v5197_v0 = vpack.c.bf16 %v5181_v21, %v5180_v8 }
 0x4eb   : > { %v9337_v19 = vpop.f32.mrb[56].mxu0 }
 0x4ec   : > { %v9443_v38 = vpop.f32.mrb[84].mxu1  ;;  %v9338_v18 = vpop.f32.mrb[57].mxu0 }
 0x4ed   : > { %v9339_v22 = vadd.f32 %v9338_v18, %v9337_v19  ;;  %v9444_v12 = vpop.f32.mrb[85].mxu1  ;;  %v9340_v1 = vpop.f32.mrb[58].mxu0 }
 0x4ee   : > { %v9445_v36 = vadd.f32 %v9444_v12, %v9443_v38  ;;  %v9446_v35 = vpop.f32.mrb[86].mxu1  ;;  %v9341_v6 = vpop.f32.mrb[59].mxu0 }
 0x4ef   : > { %v9342_v47 = vadd.f32 %v9341_v6, %v9340_v1  ;;  %v9447_v49 = vpop.f32.mrb[87].mxu1  ;;  %v6058_v61 = vadd.f32 %v9339_v22, %v12129_v53 }
 0x4f0   : > { %v12198_v42 = vadd.f32 %v9445_v36, %v6050_v40  ;;  %v9448_v58 = vadd.f32 %v9447_v49, %v9446_v35  ;;  %9866 = vmatmul.mubr.bf16.gmra.mrb[164].mxu0 %v5193_v28 }
 0x4f1   : > { %9869 = vmatprep.mubr.bf16.mxu0 %v5194_v17  ;;  %v6061_v10 = vadd.f32 %v9342_v47, %v12129_v53 }
 0x4f2   : > { %v12200_v63 = vadd.f32 %v9448_v58, %v6053_v50 }
 0x4f3   : > { %v9343_v41 = vpop.f32.mrb[60].mxu0 }
 0x4f4   : > { %v9449_v60 = vpop.f32.mrb[88].mxu1  ;;  %v9344_v32 = vpop.f32.mrb[61].mxu0 }
 0x4f5   : > { %v9345_v44 = vadd.f32 %v9344_v32, %v9343_v41  ;;  %v9450_v43 = vpop.f32.mrb[89].mxu1  ;;  %v9346_v62 = vpop.f32.mrb[62].mxu0 }
 0x4f6   : > { %v9451_v59 = vadd.f32 %v9450_v43, %v9449_v60  ;;  %v9452_v23 = vpop.f32.mrb[90].mxu1  ;;  %v9347_v37 = vpop.f32.mrb[63].mxu0 }
 0x4f7   : > { %v9348_v46 = vadd.f32 %v9347_v37, %v9346_v62  ;;  %v9453_v16 = vpop.f32.mrb[91].mxu1  ;;  %v6066_v7 = vadd.f32 %v9345_v44, %v12129_v53 }
 0x4f8   : > { %v12204_v25 = vadd.f32 %v9451_v59, %v6058_v61  ;;  %v9454_v5 = vadd.f32 %v9453_v16, %v9452_v23  ;;  %9870 = vmatmul.mubr.bf16.gmra.mrb[168].mxu0 %v5195_v45 }
 0x4f9   : > { %9873 = vmatprep.mubr.bf16.mxu0 %v12150_v14  ;;  %v6069_v14 = vadd.f32 %v9348_v46, %v12129_v53 }
 0x4fa   : > { %v12207_v27 = vadd.f32 %v9454_v5, %v6061_v10 }
 0x4fb   : > { %v9349_v24 = vpop.f32.mrb[64].mxu0 }
 0x4fc   : > { %v9455_v19 = vpop.f32.mrb[92].mxu1  ;;  %v9350_v55 = vpop.f32.mrb[65].mxu0 }
 0x4fd   : > { %v9351_v38 = vadd.f32 %v9350_v55, %v9349_v24  ;;  %v9456_v18 = vpop.f32.mrb[93].mxu1  ;;  %v9352_v52 = vpop.f32.mrb[66].mxu0 }
 0x4fe   : > { %v9457_v22 = vadd.f32 %v9456_v18, %v9455_v19  ;;  %v9458_v12 = vpop.f32.mrb[94].mxu1  ;;  %v9353_v1 = vpop.f32.mrb[67].mxu0 }
 0x4ff   : > { %v9354_v40 = vadd.f32 %v9353_v1, %v9352_v52  ;;  %v9459_v36 = vpop.f32.mrb[95].mxu1  ;;  %v6074_v26 = vadd.f32 %v9351_v38, %v12129_v53 }
 0x500   : > { %v12211_v35 = vadd.f32 %v9457_v22, %v6066_v7  ;;  %v9460_v6 = vadd.f32 %v9459_v36, %v9458_v12  ;;  %9874 = vmatmul.mubr.bf16.gmra.mrb[172].mxu0 %v5197_v0 }
 0x501   : > { %v6077_v62 = vadd.f32 %v9354_v40, %v12129_v53 }
 0x502   : > { %v12213_v28 = vadd.f32 %v9460_v6, %v6069_v14 }
 0x503   : > { %v9355_v47 = vpop.f32.mrb[68].mxu0 }
 0x504   : > { %v9461_v49 = vpop.f32.mrb[96].mxu1  ;;  %v9356_v17 = vpop.f32.mrb[69].mxu0 }
 0x505   : > { %v9357_v50 = vadd.f32 %v9356_v17, %v9355_v47  ;;  %v9462_v58 = vpop.f32.mrb[97].mxu1  ;;  %v9358_v41 = vpop.f32.mrb[70].mxu0 }
 0x506   : > { %v9463_v20 = vadd.f32 %v9462_v58, %v9461_v49  ;;  %v9464_v60 = vpop.f32.mrb[98].mxu1  ;;  %v9359_v32 = vpop.f32.mrb[71].mxu0 }
 0x507   : > { %v9360_v44 = vadd.f32 %v9359_v32, %v9358_v41  ;;  %v9465_v43 = vpop.f32.mrb[99].mxu1  ;;  %v6082_v8 = vadd.f32 %v9357_v50, %v12129_v53 }
 0x508   : > { %v12217_v61 = vadd.f32 %v9463_v20, %v6074_v26  ;;  %v9466_v59 = vadd.f32 %v9465_v43, %v9464_v60 }
 0x509   : > { %v6085_v38 = vadd.f32 %v9360_v44, %v12129_v53 }
 0x50a   : > { %v12219_v23 = vadd.f32 %v9466_v59, %v6077_v62 }
 0x50b   : > { %v9361_v37 = vpop.f32.mrb[72].mxu0 }
 0x50c   : > { %v9467_v45 = vpop.f32.mrb[100].mxu1  ;;  %v9362_v46 = vpop.f32.mrb[73].mxu0 }
 0x50d   : > { %v9363_v16 = vadd.f32 %v9362_v46, %v9361_v37  ;;  %v9468_v10 = vpop.f32.mrb[101].mxu1  ;;  %v9364_v5 = vpop.f32.mrb[74].mxu0 }
 0x50e   : > { %v9469_v21 = vadd.f32 %v9468_v10, %v9467_v45  ;;  %v9470_v24 = vpop.f32.mrb[102].mxu1  ;;  %v9365_v19 = vpop.f32.mrb[75].mxu0 }
 0x50f   : > { %v9366_v55 = vadd.f32 %v9365_v19, %v9364_v5  ;;  %v9471_v0 = vpop.f32.mrb[103].mxu1  ;;  %v6090_v6 = vadd.f32 %v9363_v16, %v12129_v53 }
 0x510   : > { %v12223_v18 = vadd.f32 %v9469_v21, %v6082_v8  ;;  %v9472_v52 = vadd.f32 %v9471_v0, %v9470_v24 }
 0x511   : > { %v6093_v41 = vadd.f32 %v9366_v55, %v12129_v53 }
 0x512   : > { %v12225_v7 = vadd.f32 %v9472_v52, %v6085_v38 }
 0x513   : > { %v9367_v22 = vpop.f32.mrb[76].mxu0 }
 0x514   : > { %v9473_v12 = vpop.f32.mrb[104].mxu1  ;;  %v9368_v1 = vpop.f32.mrb[77].mxu0 }
 0x515   : > { %v9369_v40 = vadd.f32 %v9368_v1, %v9367_v22  ;;  %v9474_v36 = vpop.f32.mrb[105].mxu1  ;;  %v9370_v14 = vpop.f32.mrb[78].mxu0 }
 0x516   : > { %v9475_v47 = vadd.f32 %v9474_v36, %v9473_v12  ;;  %v9476_v49 = vpop.f32.mrb[106].mxu1  ;;  %v9371_v17 = vpop.f32.mrb[79].mxu0 }
 0x517   : > { %v9372_v50 = vadd.f32 %v9371_v17, %v9370_v14  ;;  %v9477_v58 = vpop.f32.mrb[107].mxu1  ;;  %v6098_v45 = vadd.f32 %v9369_v40, %v12129_v53 }
 0x518   : > { %v12229_v26 = vadd.f32 %v9475_v47, %v6090_v6  ;;  %v9478_v20 = vadd.f32 %v9477_v58, %v9476_v49 }
 0x519   : > { %v6101_v24 = vadd.f32 %v9372_v50, %v12129_v53 }
 0x51a   : > { %v12231_v60 = vadd.f32 %v9478_v20, %v6093_v41 }
 0x51b   : > { %v9501_v32 = vpop.f32.mrb[80].mxu0 }
 0x51c   : > { %v9479_v44 = vpop.f32.mrb[108].mxu1  ;;  %v9502_v43 = vpop.f32.mrb[81].mxu0 }
 0x51d   : > { %v9480_v62 = vpop.f32.mrb[109].mxu1  ;;  %v9503_v59 = vadd.f32 %v9502_v43, %v9501_v32  ;;  %v9504_v37 = vpop.f32.mrb[82].mxu0 }
 0x51e   : > { %v9481_v46 = vadd.f32 %v9480_v62, %v9479_v44  ;;  %v9482_v16 = vpop.f32.mrb[110].mxu1  ;;  %v9505_v10 = vpop.f32.mrb[83].mxu0 }
 0x51f   : > { %v6300_v5 = vadd.f32 %v9503_v59, %v12135_v30  ;;  %v9483_v8 = vpop.f32.mrb[111].mxu1  ;;  %v9506_v21 = vadd.f32 %v9505_v10, %v9504_v37 }
 0x520   : > { %v12236_v19 = vadd.f32 %v9481_v46, %v6098_v45  ;;  %v9484_v55 = vadd.f32 %v9483_v8, %v9482_v16 }
 0x521   : > { %v6303_v0 = vadd.f32 %v9506_v21, %v12139_v4 }
 0x522   : > { %v12239_v38 = vadd.f32 %v9484_v55, %v6101_v24 }
 0x523   : > { %v9507_v52 = vpop.f32.mrb[84].mxu0 }
 0x524   : > { %v9613_v22 = vpop.f32.mrb[112].mxu1  ;;  %v9508_v12 = vpop.f32.mrb[85].mxu0 }
 0x525   : > { %v9509_v1 = vadd.f32 %v9508_v12, %v9507_v52  ;;  %v9614_v40 = vpop.f32.mrb[113].mxu1  ;;  %v9510_v36 = vpop.f32.mrb[86].mxu0 }
 0x526   : > { %v9615_v14 = vadd.f32 %v9614_v40, %v9613_v22  ;;  %v9616_v6 = vpop.f32.mrb[114].mxu1  ;;  %v9511_v30 = vpop.f32.mrb[87].mxu0 }
 0x527   : > { %v6308_v47 = vadd.f32 %v9509_v1, %v12143_v57  ;;  %v9512_v49 = vadd.f32 %v9511_v30, %v9510_v36  ;;  %v9617_v53 = vpop.f32.mrb[115].mxu1 }
 0x528   : > { %v9618_v17 = vadd.f32 %v9617_v53, %v9616_v6  ;;  %v12242_v50 = vadd.f32 %v9615_v14, %v6300_v5 }
 0x529   : > { %v6311_v4 = vadd.f32 %v9512_v49, %v12147_v2 }
 0x52a   : > { %v12245_v58 = vadd.f32 %v9618_v17, %v6303_v0 }
 0x52b   : > { %v9513_v41 = vpop.f32.mrb[88].mxu0 }
 0x52c   : > { %v9619_v20 = vpop.f32.mrb[116].mxu1  ;;  %v9514_v32 = vpop.f32.mrb[89].mxu0 }
 0x52d   : > { %v9515_v44 = vadd.f32 %v9514_v32, %v9513_v41  ;;  %v9620_v43 = vpop.f32.mrb[117].mxu1  ;;  %v9516_v62 = vpop.f32.mrb[90].mxu0 }
 0x52e   : > { %v9621_v59 = vadd.f32 %v9620_v43, %v9619_v20  ;;  %v9622_v37 = vpop.f32.mrb[118].mxu1  ;;  %v9517_v45 = vpop.f32.mrb[91].mxu0 }
 0x52f   : > { %v6316_v57 = vadd.f32 %v9515_v44, %v12153_v48  ;;  %v9518_v46 = vadd.f32 %v9517_v45, %v9516_v62  ;;  %v9623_v16 = vpop.f32.mrb[119].mxu1 }
 0x530   : > { %v9624_v10 = vadd.f32 %v9623_v16, %v9622_v37  ;;  %v12248_v5 = vadd.f32 %v9621_v59, %v6308_v47 }
 0x531   : > { %v6319_v2 = vadd.f32 %v9518_v46, %v12157_v13 }
 0x532   : > { %v12251_v8 = vadd.f32 %v9624_v10, %v6311_v4 }
 0x533   : > { %v9519_v21 = vpop.f32.mrb[92].mxu0 }
 0x534   : > { %v9625_v24 = vpop.f32.mrb[120].mxu1  ;;  %v9520_v55 = vpop.f32.mrb[93].mxu0 }
 0x535   : > { %v9521_v0 = vadd.f32 %v9520_v55, %v9519_v21  ;;  %v9626_v52 = vpop.f32.mrb[121].mxu1  ;;  %v9522_v22 = vpop.f32.mrb[94].mxu0 }
 0x536   : > { %v9627_v12 = vadd.f32 %v9626_v52, %v9625_v24  ;;  %v9628_v1 = vpop.f32.mrb[122].mxu1  ;;  %v9523_v40 = vpop.f32.mrb[95].mxu0 }
 0x537   : > { %v6324_v48 = vadd.f32 %v9521_v0, %v12161_v51  ;;  %v9524_v36 = vadd.f32 %v9523_v40, %v9522_v22  ;;  %v9629_v14 = vpop.f32.mrb[123].mxu1 }
 0x538   : > { %v9630_v6 = vadd.f32 %v9629_v14, %v9628_v1  ;;  %v12255_v47 = vadd.f32 %v9627_v12, %v6316_v57 }
 0x539   : > { %v6327_v30 = vadd.f32 %v9524_v36, %v12164_v56 }
 0x53a   : > { %v12257_v13 = vadd.f32 %v9630_v6, %v6319_v2 }
 0x53b   : > { %v9525_v49 = vpop.f32.mrb[96].mxu0 }
 0x53c   : > { %v9631_v53 = vpop.f32.mrb[124].mxu1  ;;  %v9526_v17 = vpop.f32.mrb[97].mxu0 }
 0x53d   : > { %v9527_v4 = vadd.f32 %v9526_v17, %v9525_v49  ;;  %v9632_v41 = vpop.f32.mrb[125].mxu1  ;;  %v9528_v20 = vpop.f32.mrb[98].mxu0 }
 0x53e   : > { %v9633_v32 = vadd.f32 %v9632_v41, %v9631_v53  ;;  %v9634_v44 = vpop.f32.mrb[126].mxu1  ;;  %v9529_v43 = vpop.f32.mrb[99].mxu0 }
 0x53f   : > { %v6332_v51 = vadd.f32 %v9527_v4, %v12168_v54  ;;  %v9530_v62 = vadd.f32 %v9529_v43, %v9528_v20  ;;  %v9635_v59 = vpop.f32.mrb[127].mxu1 }
 0x540   : > { %v9636_v37 = vadd.f32 %v9635_v59, %v9634_v44  ;;  %v12260_v45 = vadd.f32 %v9633_v32, %v6324_v48 }
 0x541   : > { %v6335_v56 = vadd.f32 %v9530_v62, %v12170_v29 }
 0x542   : > { %v12263_v57 = vadd.f32 %v9636_v37, %v6327_v30 }
 0x543   : > { %v9531_v46 = vpop.f32.mrb[100].mxu0 }
 0x544   : > { %v9637_v16 = vpop.f32.mrb[128].mxu1  ;;  %v9532_v10 = vpop.f32.mrb[101].mxu0 }
 0x545   : > { %v9533_v2 = vadd.f32 %v9532_v10, %v9531_v46  ;;  %v9638_v21 = vpop.f32.mrb[129].mxu1  ;;  %v9534_v24 = vpop.f32.mrb[102].mxu0 }
 0x546   : > { %v9639_v55 = vadd.f32 %v9638_v21, %v9637_v16  ;;  %v9640_v0 = vpop.f32.mrb[130].mxu1  ;;  %v9535_v52 = vpop.f32.mrb[103].mxu0 }
 0x547   : > { %v6340_v54 = vadd.f32 %v9533_v2, %v12174_v34  ;;  %v9536_v22 = vadd.f32 %v9535_v52, %v9534_v24  ;;  %v9641_v12 = vpop.f32.mrb[131].mxu1 }
 0x548   : > { %v9642_v1 = vadd.f32 %v9641_v12, %v9640_v0  ;;  %v12266_v40 = vadd.f32 %v9639_v55, %v6332_v51 }
 0x549   : > { %v6343_v29 = vadd.f32 %v9536_v22, %v12176_v31 }
 0x54a   : > { %v12269_v48 = vadd.f32 %v9642_v1, %v6335_v56 }
 0x54b   : > { %v9537_v36 = vpop.f32.mrb[104].mxu0 }
 0x54c   : > { %v9643_v14 = vpop.f32.mrb[132].mxu1  ;;  %v9538_v6 = vpop.f32.mrb[105].mxu0 }
 0x54d   : > { %v9539_v30 = vadd.f32 %v9538_v6, %v9537_v36  ;;  %v9644_v49 = vpop.f32.mrb[133].mxu1  ;;  %v9540_v53 = vpop.f32.mrb[106].mxu0 }
 0x54e   : > { %v9645_v17 = vadd.f32 %v9644_v49, %v9643_v14  ;;  %v9646_v4 = vpop.f32.mrb[134].mxu1  ;;  %v9541_v41 = vpop.f32.mrb[107].mxu0 }
 0x54f   : > { %v6348_v34 = vadd.f32 %v9539_v30, %v12180_v15  ;;  %v9542_v20 = vadd.f32 %v9541_v41, %v9540_v53  ;;  %v9647_v32 = vpop.f32.mrb[135].mxu1 }
 0x550   : > { %v9648_v44 = vadd.f32 %v9647_v32, %v9646_v4  ;;  %v12272_v43 = vadd.f32 %v9645_v17, %v6340_v54 }
 0x551   : > { %v6351_v31 = vadd.f32 %v9542_v20, %v12182_v9 }
 0x552   : > { %v12275_v51 = vadd.f32 %v9648_v44, %v6343_v29 }
 0x553   : > { %v9543_v62 = vpop.f32.mrb[108].mxu0 }
 0x554   : > { %v9649_v59 = vpop.f32.mrb[136].mxu1  ;;  %v9544_v37 = vpop.f32.mrb[109].mxu0 }
 0x555   : > { %v9545_v56 = vadd.f32 %v9544_v37, %v9543_v62  ;;  %v9650_v46 = vpop.f32.mrb[137].mxu1  ;;  %v9546_v16 = vpop.f32.mrb[110].mxu0 }
 0x556   : > { %v9651_v10 = vadd.f32 %v9650_v46, %v9649_v59  ;;  %v9652_v2 = vpop.f32.mrb[138].mxu1  ;;  %v9547_v21 = vpop.f32.mrb[111].mxu0 }
 0x557   : > { %v6356_v15 = vadd.f32 %v9545_v56, %v12186_v3  ;;  %v9548_v24 = vadd.f32 %v9547_v21, %v9546_v16  ;;  %v9653_v55 = vpop.f32.mrb[139].mxu1 }
 0x558   : > { %v9654_v0 = vadd.f32 %v9653_v55, %v9652_v2  ;;  %v12278_v52 = vadd.f32 %v9651_v10, %v6348_v34 }
 0x559   : > { %v6359_v9 = vadd.f32 %v9548_v24, %v12188_v11 }
 0x55a   : > { %v12281_v54 = vadd.f32 %v9654_v0, %v6351_v31 }
 0x55b   : > { %v9549_v22 = vpop.f32.mrb[112].mxu0 }
 0x55c   : > { %v9655_v12 = vpop.f32.mrb[140].mxu1  ;;  %v9550_v1 = vpop.f32.mrb[113].mxu0 }
 0x55d   : > { %v9551_v29 = vadd.f32 %v9550_v1, %v9549_v22  ;;  %v9656_v36 = vpop.f32.mrb[141].mxu1  ;;  %v9552_v14 = vpop.f32.mrb[114].mxu0 }
 0x55e   : > { %v9657_v6 = vadd.f32 %v9656_v36, %v9655_v12  ;;  %v9658_v30 = vpop.f32.mrb[142].mxu1  ;;  %v9553_v49 = vpop.f32.mrb[115].mxu0 }
 0x55f   : > { %v6364_v3 = vadd.f32 %v9551_v29, %v12192_v39  ;;  %v9554_v53 = vadd.f32 %v9553_v49, %v9552_v14  ;;  %v9659_v17 = vpop.f32.mrb[143].mxu1 }
 0x560   : > { %v9660_v4 = vadd.f32 %v9659_v17, %v9658_v30  ;;  %v12284_v41 = vadd.f32 %v9657_v6, %v6356_v15 }
 0x561   : > { %v6367_v11 = vadd.f32 %v9554_v53, %v12194_v33 }
 0x562   : > { %v12287_v34 = vadd.f32 %v9660_v4, %v6359_v9 }
 0x563   : > { %v9555_v20 = vpop.f32.mrb[116].mxu0 }
 0x564   : > { %v9661_v32 = vpop.f32.mrb[144].mxu1  ;;  %v9556_v44 = vpop.f32.mrb[117].mxu0 }
 0x565   : > { %v9557_v31 = vadd.f32 %v9556_v44, %v9555_v20  ;;  %v9662_v62 = vpop.f32.mrb[145].mxu1  ;;  %v9558_v59 = vpop.f32.mrb[118].mxu0 }
 0x566   : > { %v9663_v37 = vadd.f32 %v9662_v62, %v9661_v32  ;;  %v9664_v56 = vpop.f32.mrb[146].mxu1  ;;  %v9559_v46 = vpop.f32.mrb[119].mxu0 }
 0x567   : > { %v6372_v39 = vadd.f32 %v9557_v31, %v12198_v42  ;;  %v9560_v16 = vadd.f32 %v9559_v46, %v9558_v59  ;;  %v9665_v10 = vpop.f32.mrb[147].mxu1 }
 0x568   : > { %v9666_v2 = vadd.f32 %v9665_v10, %v9664_v56  ;;  %v12290_v21 = vadd.f32 %v9663_v37, %v6364_v3 }
 0x569   : > { %v6375_v33 = vadd.f32 %v9560_v16, %v12200_v63 }
 0x56a   : > { %v12293_v15 = vadd.f32 %v9666_v2, %v6367_v11 }
 0x56b   : > { %v9561_v24 = vpop.f32.mrb[120].mxu0 }
 0x56c   : > { %v9667_v55 = vpop.f32.mrb[148].mxu1  ;;  %v9562_v0 = vpop.f32.mrb[121].mxu0 }
 0x56d   : > { %v9563_v9 = vadd.f32 %v9562_v0, %v9561_v24  ;;  %v9668_v22 = vpop.f32.mrb[149].mxu1  ;;  %v9564_v12 = vpop.f32.mrb[122].mxu0 }
 0x56e   : > { %v9669_v1 = vadd.f32 %v9668_v22, %v9667_v55  ;;  %v9670_v29 = vpop.f32.mrb[150].mxu1  ;;  %v9565_v36 = vpop.f32.mrb[123].mxu0 }
 0x56f   : > { %v6380_v42 = vadd.f32 %v9563_v9, %v12204_v25  ;;  %v9566_v14 = vadd.f32 %v9565_v36, %v9564_v12  ;;  %v9671_v6 = vpop.f32.mrb[151].mxu1 }
 0x570   : > { %v9672_v30 = vadd.f32 %v9671_v6, %v9670_v29  ;;  %v12296_v49 = vadd.f32 %v9669_v1, %v6372_v39 }
 0x571   : > { %v6383_v63 = vadd.f32 %v9566_v14, %v12207_v27 }
 0x572   : > { %v12299_v3 = vadd.f32 %v9672_v30, %v6375_v33 }
 0x573   : > { %v9567_v53 = vpop.f32.mrb[124].mxu0 }
 0x574   : > { %v9673_v17 = vpop.f32.mrb[152].mxu1  ;;  %v9568_v4 = vpop.f32.mrb[125].mxu0 }
 0x575   : > { %v9569_v11 = vadd.f32 %v9568_v4, %v9567_v53  ;;  %v9674_v20 = vpop.f32.mrb[153].mxu1  ;;  %v9570_v32 = vpop.f32.mrb[126].mxu0 }
 0x576   : > { %v9675_v44 = vadd.f32 %v9674_v20, %v9673_v17  ;;  %v9676_v31 = vpop.f32.mrb[154].mxu1  ;;  %v9571_v62 = vpop.f32.mrb[127].mxu0 }
 0x577   : > { %v6388_v25 = vadd.f32 %v9569_v11, %v12211_v35  ;;  %v9572_v59 = vadd.f32 %v9571_v62, %v9570_v32  ;;  %v9677_v37 = vpop.f32.mrb[155].mxu1 }
 0x578   : > { %v9678_v56 = vadd.f32 %v9677_v37, %v9676_v31  ;;  %v12302_v46 = vadd.f32 %v9675_v44, %v6380_v42 }
 0x579   : > { %v6391_v27 = vadd.f32 %v9572_v59, %v12213_v28 }
 0x57a   : > { %v12305_v39 = vadd.f32 %v9678_v56, %v6383_v63 }
 0x57b   : > { %v9573_v16 = vpop.f32.mrb[128].mxu0 }
 0x57c   : > { %v9679_v10 = vpop.f32.mrb[156].mxu1  ;;  %v9574_v2 = vpop.f32.mrb[129].mxu0 }
 0x57d   : > { %v9575_v33 = vadd.f32 %v9574_v2, %v9573_v16  ;;  %v9680_v24 = vpop.f32.mrb[157].mxu1  ;;  %v9576_v55 = vpop.f32.mrb[130].mxu0 }
 0x57e   : > { %v9681_v0 = vadd.f32 %v9680_v24, %v9679_v10  ;;  %v9682_v9 = vpop.f32.mrb[158].mxu1  ;;  %v9577_v22 = vpop.f32.mrb[131].mxu0 }
 0x57f   : > { %v6396_v35 = vadd.f32 %v9575_v33, %v12217_v61  ;;  %v9578_v12 = vadd.f32 %v9577_v22, %v9576_v55  ;;  %v9683_v1 = vpop.f32.mrb[159].mxu1 }
 0x580   : > { %v9684_v29 = vadd.f32 %v9683_v1, %v9682_v9  ;;  %v12308_v36 = vadd.f32 %v9681_v0, %v6388_v25 }
 0x581   : > { %v6399_v28 = vadd.f32 %v9578_v12, %v12219_v23 }
 0x582   : > { %v12311_v42 = vadd.f32 %v9684_v29, %v6391_v27 }
 0x583   : > { %v9579_v14 = vpop.f32.mrb[132].mxu0 }
 0x584   : > { %v9685_v6 = vpop.f32.mrb[160].mxu1  ;;  %v9580_v30 = vpop.f32.mrb[133].mxu0 }
 0x585   : > { %v9581_v63 = vadd.f32 %v9580_v30, %v9579_v14  ;;  %v9686_v53 = vpop.f32.mrb[161].mxu1  ;;  %v9582_v17 = vpop.f32.mrb[134].mxu0 }
 0x586   : > { %v9687_v4 = vadd.f32 %v9686_v53, %v9685_v6  ;;  %v9688_v11 = vpop.f32.mrb[162].mxu1  ;;  %v9583_v20 = vpop.f32.mrb[135].mxu0 }
 0x587   : > { %v6404_v61 = vadd.f32 %v9581_v63, %v12223_v18  ;;  %v9584_v32 = vadd.f32 %v9583_v20, %v9582_v17  ;;  %v9689_v44 = vpop.f32.mrb[163].mxu1 }
 0x588   : > { %v9690_v31 = vadd.f32 %v9689_v44, %v9688_v11  ;;  %v12314_v62 = vadd.f32 %v9687_v4, %v6396_v35  ;;  %v10132_v11 = vmov 1983009808  }
 0x589   : > { %v6407_v23 = vadd.f32 %v9584_v32, %v12225_v7  ;;  %v6814_v20 = vunpack.c.l.s4 %v10132_v11 }
 0x58a   : > { %v12317_v25 = vadd.f32 %v9690_v31, %v6399_v28 }
 0x58b   : > { %v9585_v59 = vpop.f32.mrb[136].mxu0 }
 0x58c   : > { %v9691_v37 = vpop.f32.mrb[164].mxu1  ;;  %v9586_v56 = vpop.f32.mrb[137].mxu0 }
 0x58d   : > { %v9587_v27 = vadd.f32 %v9586_v56, %v9585_v59  ;;  %v9692_v16 = vpop.f32.mrb[165].mxu1  ;;  %v9588_v10 = vpop.f32.mrb[138].mxu0  ;;  %v6815_v59 = vunpack.c.0.s8 %v6814_v20 }
 0x58e   : > { %v9693_v2 = vadd.f32 %v9692_v16, %v9691_v37  ;;  %v9694_v33 = vpop.f32.mrb[166].mxu1  ;;  %v9589_v24 = vpop.f32.mrb[139].mxu0 }
 0x58f   : > { %v6412_v18 = vadd.f32 %v9587_v27, %v12229_v26  ;;  %v9590_v55 = vadd.f32 %v9589_v24, %v9588_v10  ;;  %v9695_v0 = vpop.f32.mrb[167].mxu1 }
 0x590   : > { %v9696_v9 = vadd.f32 %v9695_v0, %v9694_v33  ;;  %v12320_v22 = vadd.f32 %v9693_v2, %v6404_v61  ;;  %v6816_v61 = vlaneseq }
 0x591   : > { %v6415_v7 = vadd.f32 %v9590_v55, %v12231_v60 }
 0x592   : > { %v12323_v35 = vadd.f32 %v9696_v9, %v6407_v23  ;;  %v6817_v37 = vshrl.u32 %v6816_v61, 7 }
 0x593   : > { %v9591_v12 = vpop.f32.mrb[140].mxu0 }
 0x594   : > { %v9697_v1 = vpop.f32.mrb[168].mxu1  ;;  %v9592_v29 = vpop.f32.mrb[141].mxu0  ;;  %v12334_v9 = vsub.s32 %v6815_v59, %v6817_v37 }
 0x595   : > { %v9593_v28 = vadd.f32 %v9592_v29, %v9591_v12  ;;  %v9698_v14 = vpop.f32.mrb[169].mxu1  ;;  %v9594_v6 = vpop.f32.mrb[142].mxu0 }
 0x596   : > { %v9699_v30 = vadd.f32 %v9698_v14, %v9697_v1  ;;  %v9700_v63 = vpop.f32.mrb[170].mxu1  ;;  %v9595_v53 = vpop.f32.mrb[143].mxu0 }
 0x597   : > { %v6420_v26 = vadd.f32 %v9593_v28, %v12236_v19  ;;  %v9596_v17 = vadd.f32 %v9595_v53, %v9594_v6  ;;  %v9701_v4 = vpop.f32.mrb[171].mxu1 }
 0x598   : > { %v9702_v32 = vadd.f32 %v9701_v4, %v9700_v63  ;;  %v12326_v60 = vadd.f32 %v9699_v30, %v6412_v18 }
 0x599   : > { %v6423_v44 = vadd.f32 %v9596_v17, %v12239_v38 }
 0x59a   : > { %v12329_v31 = vadd.f32 %v9702_v32, %v6415_v7 }
 0x59b   : > { %v9847_v23 = vpop.f32.mrb[144].mxu0 }
 0x59c   : > { %12656 = vst [vmem:[#allocation4_spill] sm:$0xff] %v12329_v31  ;;  %v9703_v56 = vpop.f32.mrb[172].mxu1  ;;  %v6630_v27 = vadd.f32 %v9847_v23, %v12248_v5  ;;  %v6621_v16 = vpop.f32.mrb[145].mxu0 }
 0x59d   : > { %v9704_v19 = vpop.f32.mrb[173].mxu1  ;;  %v6622_v10 = vadd.f32 %v6621_v16, %v12242_v50  ;;  %v9848_v2 = vpop.f32.mrb[146].mxu0 }
 0x59e   : > { %v6750_v33 = vmax.f32 %v6630_v27, 0.0  ;;  %v9705_v24 = vadd.f32 %v9704_v19, %v9703_v56  ;;  %v9706_v55 = vpop.f32.mrb[174].mxu1  ;;  %v6633_v18 = vadd.f32 %v9848_v2, %v12251_v8  ;;  %v6624_v0 = vpop.f32.mrb[147].mxu0 }
 0x59f   : > { %v6748_v38 = vmax.f32 %v6622_v10, 0.0  ;;  %v9707_v7 = vpop.f32.mrb[175].mxu1  ;;  %v6625_v12 = vadd.f32 %v6624_v0, %v12245_v58 }
 0x5a0   : > { %v6751_v1 = vmax.f32 %v6633_v18, 0.0  ;;  %v9708_v29 = vadd.f32 %v9707_v7, %v9706_v55  ;;  %v12337_v5 = vadd.f32 %v9705_v24, %v6420_v26 }
 0x5a1   : > { %v6780_v28 = vmax.f32 %v6748_v38, %v6750_v33  ;;  %v6749_v14 = vmax.f32 %v6625_v12, 0.0 }
 0x5a2   : > { %v12339_v50 = vadd.f32 %v9708_v29, %v6423_v44 }
 0x5a3   : > { %v6812_v6 = vcombine.high %v6780_v28, %v6780_v28  ;;  %v6819_v30 = vrot.slane %v6780_v28, %v12334_v9  ;;  %v6781_v8 = vmax.f32 %v6749_v14, %v6751_v1  ;;  %v9851_v63 = vpop.f32.mrb[148].mxu0 }
 0x5a4   : > { %12657 = vst [vmem:[#allocation5_spill] sm:$0xff] %v12339_v50  ;;  %v12343_v53 = vadd.f32 %v9851_v63, %v12260_v45  ;;  %v6637_v17 = vpop.f32.mrb[149].mxu0 }
 0x5a5   : > { %v6826_v58 = vrot.slane %v6812_v6, %v12334_v9  ;;  %v6827_v4 = vcombine.high %v6819_v30, %v6819_v30  ;;  %v7149_v26 = vsel %vm7148_vm0, %v6819_v30, -inf  ;;  %v6829_v11 = vcombine.high %v6781_v8, %v6781_v8  ;;  %v12347_v20 = vpop.f32.mrb[150].mxu0 }
 0x5a6   : > { %v7150_v61 = vrot.slane %v7149_v26, 4  ;;  %v6836_v32 = vrot.slane %v6781_v8, %v12334_v9  ;;  %v12352_v23 = vadd.f32 %v6637_v17, %v12255_v47  ;;  %v12354_v59 = vpop.f32.mrb[151].mxu0 }
 0x5a7   : > { %v6828_v45 = vcombine.high %v6826_v58, %v6826_v58  ;;  %v7156_v37 = vsel %vm7148_vm0, %v6827_v4, -inf  ;;  %v7163_v56 = vsel %vm7148_vm0, %v6826_v58, -inf  ;;  %v6843_v27 = vrot.slane %v6829_v11, %v12334_v9 }
 0x5a8   : > { %v7151_v16 = vmax.f32 %v7149_v26, %v7150_v61  ;;  %v7157_v19 = vrot.slane %v7156_v37, 4  ;;  %v7164_v10 = vrot.slane %v7163_v56, 4  ;;  %v6844_v2 = vcombine.high %v6836_v32, %v6836_v32 }
 0x5a9   : > { %v7170_v33 = vsel %vm7148_vm0, %v6828_v45, -inf  ;;  %v6845_v24 = vcombine.high %v6843_v27, %v6843_v27  ;;  %v7177_v47 = vsel %vm7148_vm0, %v6836_v32, -inf  ;;  %v7191_v55 = vsel %vm7148_vm0, %v6843_v27, -inf }
 0x5aa   : > { %v7152_v18 = vrot.slane %v7151_v16, 2  ;;  %v7158_v0 = vmax.f32 %v7156_v37, %v7157_v19  ;;  %v7165_v38 = vmax.f32 %v7163_v56, %v7164_v10  ;;  %v7171_v7 = vrot.slane %v7170_v33, 4 }
 0x5ab   : > { %v7178_v12 = vrot.slane %v7177_v47, 4  ;;  %v7184_v1 = vsel %vm7148_vm0, %v6844_v2, -inf  ;;  %v7192_v29 = vrot.slane %v7191_v55, 4  ;;  %v7198_v28 = vsel %vm7148_vm0, %v6845_v24, -inf  ;;  %v12364_v14 = vpop.f32.mrb[152].mxu0 }
 0x5ac   : > { %v7153_v6 = vmax.f32 %v7151_v16, %v7152_v18  ;;  %v7159_v30 = vrot.slane %v7158_v0, 2  ;;  %v7166_v8 = vrot.slane %v7165_v38, 2  ;;  %v7172_v63 = vmax.f32 %v7170_v33, %v7171_v7  ;;  %v12366_v17 = vpop.f32.mrb[153].mxu0 }
 0x5ad   : > { %v7179_v58 = vmax.f32 %v7177_v47, %v7178_v12  ;;  %v7185_v4 = vrot.slane %v7184_v1, 4  ;;  %v7193_v26 = vmax.f32 %v7191_v55, %v7192_v29  ;;  %v7199_v11 = vrot.slane %v7198_v28, 4  ;;  %v12368_v61 = vpop.f32.mrb[154].mxu0 }
 0x5ae   : > { %v7154_v32 = vrot.slane %v7153_v6, 1  ;;  %v7160_v45 = vmax.f32 %v7158_v0, %v7159_v30  ;;  %v7167_v37 = vmax.f32 %v7165_v38, %v7166_v8  ;;  %v7173_v56 = vrot.slane %v7172_v63, 2  ;;  %v12370_v27 = vpop.f32.mrb[155].mxu0 }
 0x5af   : > { %v7180_v16 = vrot.slane %v7179_v58, 2  ;;  %v7186_v19 = vmax.f32 %v7184_v1, %v7185_v4  ;;  %v7194_v10 = vrot.slane %v7193_v26, 2  ;;  %v7200_v2 = vmax.f32 %v7198_v28, %v7199_v11 }
 0x5b0   : > { %v7155_v33 = vmax.f32 %v7153_v6, %v7154_v32  ;;  %v7161_v24 = vrot.slane %v7160_v45, 1  ;;  %v7168_v47 = vrot.slane %v7167_v37, 1  ;;  %v7174_v18 = vmax.f32 %v7172_v63, %v7173_v56 }
 0x5b1   : > { %v7181_v55 = vmax.f32 %v7179_v58, %v7180_v16  ;;  %v7187_v7 = vrot.slane %v7186_v19, 2  ;;  %v7195_v12 = vmax.f32 %v7193_v26, %v7194_v10  ;;  %v7201_v29 = vrot.slane %v7200_v2, 2 }
 0x5b2   : > { %v7162_v0 = vmax.f32 %v7160_v45, %v7161_v24  ;;  %v7169_v38 = vmax.f32 %v7167_v37, %v7168_v47  ;;  %v7175_v30 = vrot.slane %v7174_v18, 1  ;;  %v6752_v8 = vmax.f32 %v12352_v23, 0.0 }
 0x5b3   : > { %v7182_v44 = vrot.slane %v7181_v55, 1  ;;  %v7188_v1 = vmax.f32 %v7186_v19, %v7187_v7  ;;  %v7196_v4 = vrot.slane %v7195_v12, 1  ;;  %v7202_v28 = vmax.f32 %v7200_v2, %v7201_v29  ;;  %v12373_v11 = vpop.f32.mrb[156].mxu0 }
 0x5b4   : > { %v7176_v6 = vmax.f32 %v7174_v18, %v7175_v30  ;;  %v7662_v63 = vsel %vm7661_vm1, %v7162_v0, %v7155_v33  ;;  %v12658_v58 = vmax.f32 %v12343_v53, 0.0  ;;  %v6649_v26 = vadd.f32 %v12347_v20, %v12263_v57  ;;  %v12380_v45 = vpop.f32.mrb[157].mxu0 }
 0x5b5   : > { %v7664_v23 = vsel %vm7663_vm2, %v7169_v38, %v7662_v63  ;;  %v7183_v37 = vmax.f32 %v7181_v55, %v7182_v44  ;;  %v7189_v56 = vrot.slane %v7188_v1, 1  ;;  %v7197_v16 = vmax.f32 %v7195_v12, %v7196_v4  ;;  %v12383_v19 = vpop.f32.mrb[158].mxu0 }
 0x5b6   : > { %v6782_v32 = vmax.f32 %v6752_v8, %v12658_v58  ;;  %v7203_v10 = vrot.slane %v7202_v28, 1  ;;  %v7666_v2 = vsel %vm7665_vm3, %v7176_v6, %v7664_v23  ;;  %v12388_v24 = vpop.f32.mrb[159].mxu0  ;;  %v6755_v20 = vmax.f32 %v6649_v26, 0.0 }
 0x5b7   : > { %v7190_v47 = vmax.f32 %v7188_v1, %v7189_v56  ;;  %v7668_v57 = vsel %vm7667_vm4, %v7183_v37, %v7666_v2  ;;  %v6641_v44 = vadd.f32 %v12354_v59, %v12257_v13  ;;  %v6662_v30 = vadd.f32 %v12364_v14, %v12272_v43 }
 0x5b8   : > { %v6846_v33 = vcombine.high %v6782_v32, %v6782_v32  ;;  %v6853_v53 = vrot.slane %v6782_v32, %v12334_v9  ;;  %v7204_v18 = vmax.f32 %v7202_v28, %v7203_v10  ;;  %v6654_v43 = vadd.f32 %v12366_v17, %v12266_v40 }
 0x5b9   : > { %v7670_v29 = vsel %vm7669_vm5, %v7190_v47, %v7668_v57  ;;  %v6753_v38 = vmax.f32 %v6641_v44, 0.0  ;;  %v6758_v23 = vmax.f32 %v6662_v30, 0.0  ;;  %v12420_v57 = vadd.f32 %v12368_v61, %v12275_v51 }
 0x5ba   : > { %v6860_v55 = vrot.slane %v6846_v33, %v12334_v9  ;;  %v6861_v7 = vcombine.high %v6853_v53, %v6853_v53  ;;  %v7205_v12 = vsel %vm7148_vm0, %v6853_v53, -inf  ;;  %v7672_v13 = vsel %vm7671_vm6, %v7197_v16, %v7670_v29 }
 0x5bb   : > { %v7206_v0 = vrot.slane %v7205_v12, 4  ;;  %v7674_v4 = vsel %vm7673_vm7, %v7204_v18, %v7672_v13  ;;  %v12407_v58 = vpop.f32.mrb[160].mxu0  ;;  %v6783_v26 = vmax.f32 %v6753_v38, %v6755_v20  ;;  %v6756_v47 = vmax.f32 %v6654_v43, 0.0 }
 0x5bc   : > { %v6862_v59 = vcombine.high %v6860_v55, %v6860_v55  ;;  %v7212_v8 = vsel %vm7148_vm0, %v6861_v7, -inf  ;;  %v7219_v1 = vsel %vm7148_vm0, %v6860_v55, -inf  ;;  %7732 = vst [vmem:[%s12398_s10] sm:$0xff] %v7674_v4  ;;  %v12413_v14 = vpop.f32.mrb[161].mxu0 }
 0x5bd   : > { %v7207_v28 = vmax.f32 %v7205_v12, %v7206_v0  ;;  %v7213_v6 = vrot.slane %v7212_v8, 4  ;;  %v7220_v63 = vrot.slane %v7219_v1, 4  ;;  %v12415_v2 = vpop.f32.mrb[162].mxu0  ;;  %v6863_v33 = vcombine.high %v6783_v26, %v6783_v26 }
 0x5be   : > { %v7226_v32 = vsel %vm7148_vm0, %v6862_v59, -inf  ;;  %v6870_v53 = vrot.slane %v6783_v26, %v12334_v9  ;;  %v12422_v20 = vpop.f32.mrb[163].mxu0  ;;  %v6784_v29 = vmax.f32 %v6756_v47, %v6758_v23 }
 0x5bf   : > { %v7208_v37 = vrot.slane %v7207_v28, 2  ;;  %v7214_v56 = vmax.f32 %v7212_v8, %v7213_v6  ;;  %v7221_v16 = vmax.f32 %v7219_v1, %v7220_v63  ;;  %v7227_v10 = vrot.slane %v7226_v32, 4 }
 0x5c0   : > { %v6877_v55 = vrot.slane %v6863_v33, %v12334_v9  ;;  %v6878_v7 = vcombine.high %v6870_v53, %v6870_v53  ;;  %v7233_v12 = vsel %vm7148_vm0, %v6870_v53, -inf }
 0x5c1   : > { %v7209_v44 = vmax.f32 %v7207_v28, %v7208_v37  ;;  %v7215_v40 = vrot.slane %v7214_v56, 2  ;;  %v7222_v17 = vrot.slane %v7221_v16, 2  ;;  %v7228_v18 = vmax.f32 %v7226_v32, %v7227_v10 }
 0x5c2   : > { %v6879_v59 = vcombine.high %v6877_v55, %v6877_v55  ;;  %v7234_v8 = vrot.slane %v7233_v12, 4  ;;  %v7240_v51 = vsel %vm7148_vm0, %v6878_v7, -inf  ;;  %v7247_v61 = vsel %vm7148_vm0, %v6877_v55, -inf }
 0x5c3   : > { %v7210_v0 = vrot.slane %v7209_v44, 1  ;;  %v7216_v38 = vmax.f32 %v7214_v56, %v7215_v40  ;;  %v7223_v30 = vmax.f32 %v7221_v16, %v7222_v17  ;;  %v7229_v13 = vrot.slane %v7228_v18, 2  ;;  %v12428_v63 = vpop.f32.mrb[164].mxu0 }
 0x5c4   : > { %v7235_v32 = vmax.f32 %v7233_v12, %v7234_v8  ;;  %v7241_v26 = vrot.slane %v7240_v51, 4  ;;  %v7248_v43 = vrot.slane %v7247_v61, 4  ;;  %v7254_v23 = vsel %vm7148_vm0, %v6879_v59, -inf  ;;  %v12431_v37 = vpop.f32.mrb[165].mxu0 }
 0x5c5   : > { %v7211_v1 = vmax.f32 %v7209_v44, %v7210_v0  ;;  %v7217_v4 = vrot.slane %v7216_v38, 1  ;;  %v7224_v28 = vrot.slane %v7223_v30, 1  ;;  %v7230_v6 = vmax.f32 %v7228_v18, %v7229_v13  ;;  %v12433_v53 = vpop.f32.mrb[166].mxu0 }
 0x5c6   : > { %v7255_v33 = vrot.slane %v7254_v23, 4  ;;  %v7236_v47 = vrot.slane %v7235_v32, 2  ;;  %v7242_v44 = vmax.f32 %v7240_v51, %v7241_v26  ;;  %v7249_v40 = vmax.f32 %v7247_v61, %v7248_v43  ;;  %v12435_v18 = vpop.f32.mrb[167].mxu0 }
 0x5c7   : > { %v7218_v56 = vmax.f32 %v7216_v38, %v7217_v4  ;;  %v7225_v16 = vmax.f32 %v7223_v30, %v7224_v28  ;;  %v7231_v10 = vrot.slane %v7230_v6, 1  ;;  %v6880_v17 = vcombine.high %v6784_v29, %v6784_v29 }
 0x5c8   : > { %v7256_v12 = vmax.f32 %v7254_v23, %v7255_v33  ;;  %v6887_v0 = vrot.slane %v6784_v29, %v12334_v9  ;;  %v7237_v38 = vmax.f32 %v7235_v32, %v7236_v47  ;;  %v7243_v30 = vrot.slane %v7242_v44, 2 }
 0x5c9   : > { %v7232_v55 = vmax.f32 %v7230_v6, %v7231_v10  ;;  %v7675_v7 = vsel %vm7661_vm1, %v7218_v56, %v7211_v1  ;;  %v7250_v59 = vrot.slane %v7249_v40, 2  ;;  %v6894_v51 = vrot.slane %v6880_v17, %v12334_v9 }
 0x5ca   : > { %v7676_v13 = vsel %vm7663_vm2, %v7225_v16, %v7675_v7  ;;  %v7257_v8 = vrot.slane %v7256_v12, 2  ;;  %v6895_v61 = vcombine.high %v6887_v0, %v6887_v0  ;;  %v7238_v28 = vrot.slane %v7237_v38, 1 }
 0x5cb   : > { %v7677_v4 = vsel %vm7665_vm3, %v7232_v55, %v7676_v13  ;;  %v7244_v26 = vmax.f32 %v7242_v44, %v7243_v30  ;;  %v7251_v43 = vmax.f32 %v7249_v40, %v7250_v59  ;;  %v7261_v6 = vsel %vm7148_vm0, %v6887_v0, -inf  ;;  %v12444_v16 = vpop.f32.mrb[168].mxu0 }
 0x5cc   : > { %v7258_v1 = vmax.f32 %v7256_v12, %v7257_v8  ;;  %v6896_v23 = vcombine.high %v6894_v51, %v6894_v51  ;;  %v7262_v56 = vrot.slane %v7261_v6, 4  ;;  %v7268_v29 = vsel %vm7148_vm0, %v6895_v61, -inf  ;;  %v12446_v55 = vpop.f32.mrb[169].mxu0 }
 0x5cd   : > { %v7239_v32 = vmax.f32 %v7237_v38, %v7238_v28  ;;  %v7245_v10 = vrot.slane %v7244_v26, 1  ;;  %v7252_v33 = vrot.slane %v7251_v43, 1  ;;  %v7269_v47 = vrot.slane %v7268_v29, 4  ;;  %v12450_v0 = vpop.f32.mrb[170].mxu0 }
 0x5ce   : > { %v7259_v17 = vrot.slane %v7258_v1, 1  ;;  %v7263_v7 = vmax.f32 %v7261_v6, %v7262_v56  ;;  %v7275_v44 = vsel %vm7148_vm0, %v6894_v51, -inf  ;;  %v7282_v40 = vsel %vm7148_vm0, %v6896_v23, -inf  ;;  %v12453_v8 = vpop.f32.mrb[171].mxu0 }
 0x5cf   : > { %v7246_v12 = vmax.f32 %v7244_v26, %v7245_v10  ;;  %v7253_v13 = vmax.f32 %v7251_v43, %v7252_v33  ;;  %v7678_v30 = vsel %vm7667_vm4, %v7239_v32, %v7677_v4  ;;  %v7270_v59 = vmax.f32 %v7268_v29, %v7269_v47 }
 0x5d0   : > { %v7260_v38 = vmax.f32 %v7258_v1, %v7259_v17  ;;  %v7264_v61 = vrot.slane %v7263_v7, 2  ;;  %v7276_v28 = vrot.slane %v7275_v44, 4  ;;  %v7283_v31 = vrot.slane %v7282_v40, 4 }
 0x5d1   : > { %v7679_v6 = vsel %vm7669_vm5, %v7246_v12, %v7678_v30  ;;  %v7271_v56 = vrot.slane %v7270_v59, 2  ;;  %v6759_v51 = vmax.f32 %v12420_v57, 0.0  ;;  %v6657_v23 = vadd.f32 %v12370_v27, %v12269_v48 }
 0x5d2   : > { %v7680_v26 = vsel %vm7671_vm6, %v7253_v13, %v7679_v6  ;;  %v7265_v43 = vmax.f32 %v7263_v7, %v7264_v61  ;;  %v7277_v4 = vmax.f32 %v7275_v44, %v7276_v28  ;;  %v7284_v29 = vmax.f32 %v7282_v40, %v7283_v31 }
 0x5d3   : > { %v7681_v32 = vsel %vm7673_vm7, %v7260_v38, %v7680_v26  ;;  %v7272_v1 = vmax.f32 %v7270_v59, %v7271_v56  ;;  %v6757_v10 = vmax.f32 %v6657_v23, 0.0  ;;  %v6678_v33 = vadd.f32 %v12373_v11, %v12284_v41  ;;  %v12466_v48 = vpop.f32.mrb[172].mxu0 }
 0x5d4   : > { %7733 = vst [vmem:[%s12398_s10 + $0x8] sm:$0xff] %v7681_v32  ;;  %v7266_v47 = vrot.slane %v7265_v43, 1  ;;  %v7278_v17 = vrot.slane %v7277_v4, 2  ;;  %v7285_v12 = vrot.slane %v7284_v29, 2  ;;  %v6670_v57 = vadd.f32 %v12380_v45, %v12278_v52  ;;  %v12472_v40 = vpop.f32.mrb[173].mxu0 }
 0x5d5   : > { %v7273_v27 = vrot.slane %v7272_v1, 1  ;;  %v6785_v7 = vmax.f32 %v6757_v10, %v6759_v51  ;;  %v6762_v44 = vmax.f32 %v6678_v33, 0.0  ;;  %v12470_v31 = vadd.f32 %v12383_v19, %v12287_v34  ;;  %12659 = vst [vmem:[#allocation6_spill] sm:$0xff] %v12472_v40  ;;  %v12474_v59 = vpop.f32.mrb[174].mxu0 }
 0x5d6   : > { %v7267_v13 = vmax.f32 %v7265_v43, %v7266_v47  ;;  %v7279_v41 = vmax.f32 %v7277_v4, %v7278_v17  ;;  %v7286_v11 = vmax.f32 %v7284_v29, %v7285_v12  ;;  %v6760_v30 = vmax.f32 %v6670_v57, 0.0  ;;  %12660 = vst [vmem:[#allocation7_spill] sm:$0xff] %v12474_v59  ;;  %v12478_v28 = vpop.f32.mrb[175].mxu0 }
 0x5d7   : > { %v7274_v38 = vmax.f32 %v7272_v1, %v7273_v27  ;;  %v6897_v61 = vcombine.high %v6785_v7, %v6785_v7  ;;  %v6904_v52 = vrot.slane %v6785_v7, %v12334_v9  ;;  %12661 = vst [vmem:[#allocation8_spill] sm:$0xff] %v12478_v28  ;;  %v12482_v19 = vadd.f32 %v12388_v24, %v12281_v54 }
 0x5d8   : > { %v7280_v6 = vrot.slane %v7279_v41, 1  ;;  %v7287_v56 = vrot.slane %v7286_v11, 1  ;;  %v6786_v34 = vmax.f32 %v6760_v30, %v6762_v44 }
 0x5d9   : > { %v7682_v51 = vsel %vm7661_vm1, %v7274_v38, %v7267_v13  ;;  %v6911_v23 = vrot.slane %v6897_v61, %v12334_v9  ;;  %v6912_v26 = vcombine.high %v6904_v52, %v6904_v52  ;;  %v7289_v43 = vsel %vm7148_vm0, %v6904_v52, -inf }
 0x5da   : > { %v7281_v4 = vmax.f32 %v7279_v41, %v7280_v6  ;;  %v7288_v29 = vmax.f32 %v7286_v11, %v7287_v56  ;;  %v7290_v32 = vrot.slane %v7289_v43, 4  ;;  %v6914_v1 = vcombine.high %v6786_v34, %v6786_v34 }
 0x5db   : > { %v6913_v10 = vcombine.high %v6911_v23, %v6911_v23  ;;  %v7296_v33 = vsel %vm7148_vm0, %v6912_v26, -inf  ;;  %v7303_v47 = vsel %vm7148_vm0, %v6911_v23, -inf  ;;  %v6921_v17 = vrot.slane %v6786_v34, %v12334_v9 }
 0x5dc   : > { %v7683_v54 = vsel %vm7663_vm2, %v7281_v4, %v7682_v51  ;;  %v7291_v24 = vmax.f32 %v7289_v43, %v7290_v32  ;;  %v7297_v12 = vrot.slane %v7296_v33, 4  ;;  %v7304_v57 = vrot.slane %v7303_v47, 4 }
 0x5dd   : > { %v7310_v27 = vsel %vm7148_vm0, %v6913_v10, -inf  ;;  %v7684_v7 = vsel %vm7665_vm3, %v7288_v29, %v7683_v54  ;;  %v6928_v44 = vrot.slane %v6914_v1, %v12334_v9  ;;  %v6929_v13 = vcombine.high %v6921_v17, %v6921_v17 }
 0x5de   : > { %v7292_v41 = vrot.slane %v7291_v24, 2  ;;  %v7298_v11 = vmax.f32 %v7296_v33, %v7297_v12  ;;  %v7305_v30 = vmax.f32 %v7303_v47, %v7304_v57  ;;  %v7311_v38 = vrot.slane %v7310_v27, 4 }
 0x5df   : > { %v6930_v61 = vcombine.high %v6928_v44, %v6928_v44  ;;  %v7317_v52 = vsel %vm7148_vm0, %v6921_v17, -inf  ;;  %v7324_v6 = vsel %vm7148_vm0, %v6929_v13, -inf  ;;  %v7331_v56 = vsel %vm7148_vm0, %v6928_v44, -inf }
 0x5e0   : > { %v7293_v34 = vmax.f32 %v7291_v24, %v7292_v41  ;;  %v7299_v51 = vrot.slane %v7298_v11, 2  ;;  %v7306_v23 = vrot.slane %v7305_v30, 2  ;;  %v7312_v26 = vmax.f32 %v7310_v27, %v7311_v38 }
 0x5e1   : > { %v7318_v43 = vrot.slane %v7317_v52, 4  ;;  %v7325_v4 = vrot.slane %v7324_v6, 4  ;;  %v7332_v29 = vrot.slane %v7331_v56, 4  ;;  %v7338_v32 = vsel %vm7148_vm0, %v6930_v61, -inf }
 0x5e2   : > { %v7294_v1 = vrot.slane %v7293_v34, 1  ;;  %v7300_v10 = vmax.f32 %v7298_v11, %v7299_v51  ;;  %v7307_v33 = vmax.f32 %v7305_v30, %v7306_v23  ;;  %v7313_v47 = vrot.slane %v7312_v26, 2 }
 0x5e3   : > { %v7319_v54 = vmax.f32 %v7317_v52, %v7318_v43  ;;  %v7326_v12 = vmax.f32 %v7324_v6, %v7325_v4  ;;  %v7333_v17 = vmax.f32 %v7331_v56, %v7332_v29  ;;  %v7339_v57 = vrot.slane %v7338_v32, 4 }
 0x5e4   : > { %v7295_v13 = vmax.f32 %v7293_v34, %v7294_v1  ;;  %v7301_v45 = vrot.slane %v7300_v10, 1  ;;  %v7308_v44 = vrot.slane %v7307_v33, 1  ;;  %v7314_v24 = vmax.f32 %v7312_v26, %v7313_v47 }
 0x5e5   : > { %v7320_v41 = vrot.slane %v7319_v54, 2  ;;  %v7327_v28 = vrot.slane %v7326_v12, 2  ;;  %v7334_v27 = vrot.slane %v7333_v17, 2  ;;  %v7340_v38 = vmax.f32 %v7338_v32, %v7339_v57 }
 0x5e6   : > { %v7302_v59 = vmax.f32 %v7300_v10, %v7301_v45  ;;  %v7309_v50 = vmax.f32 %v7307_v33, %v7308_v44  ;;  %v7315_v40 = vrot.slane %v7314_v24, 1  ;;  %v7685_v61 = vsel %vm7667_vm4, %v7295_v13, %v7684_v7 }
 0x5e7   : > { %v7321_v11 = vmax.f32 %v7319_v54, %v7320_v41  ;;  %v7328_v30 = vmax.f32 %v7326_v12, %v7327_v28  ;;  %v7335_v52 = vmax.f32 %v7333_v17, %v7334_v27  ;;  %v7341_v6 = vrot.slane %v7340_v38, 2 }
 0x5e8   : > { %v7316_v56 = vmax.f32 %v7314_v24, %v7315_v40  ;;  %v7686_v34 = vsel %vm7669_vm5, %v7302_v59, %v7685_v61  ;;  %v6761_v51 = vmax.f32 %v12482_v19, 0.0  ;;  %v6694_v23 = vadd.f32 %v12407_v58, %v12296_v49 }
 0x5e9   : > { %v7687_v26 = vsel %vm7671_vm6, %v7309_v50, %v7686_v34  ;;  %v7322_v45 = vrot.slane %v7321_v11, 1  ;;  %v7329_v43 = vrot.slane %v7328_v30, 1  ;;  %v7336_v4 = vrot.slane %v7335_v52, 1 }
 0x5ea   : > { %v7688_v7 = vsel %vm7673_vm7, %v7316_v56, %v7687_v26  ;;  %v7342_v29 = vmax.f32 %v7340_v38, %v7341_v6  ;;  %v12662_v28 = vmax.f32 %v12470_v31, 0.0  ;;  %v6766_v1 = vmax.f32 %v6694_v23, 0.0 }
 0x5eb   : > { %7734 = vst [vmem:[%s12398_s10 + $0x10] sm:$0xff] %v7688_v7  ;;  %v7323_v40 = vmax.f32 %v7321_v11, %v7322_v45  ;;  %v7330_v59 = vmax.f32 %v7328_v30, %v7329_v43  ;;  %v7337_v10 = vmax.f32 %v7335_v52, %v7336_v4  ;;  %v6686_v19 = vadd.f32 %v12413_v14, %v12290_v21 }
 0x5ec   : > { %v6787_v32 = vmax.f32 %v6761_v51, %v12662_v28  ;;  %v7343_v49 = vrot.slane %v7342_v29, 1  ;;  %v6697_v33 = vadd.f32 %v12415_v2, %v12299_v3  ;;  %v6689_v31 = vadd.f32 %v12422_v20, %v12293_v15 }
 0x5ed   : > { %v7689_v47 = vsel %vm7661_vm1, %v7330_v59, %v7323_v40  ;;  %v6764_v54 = vmax.f32 %v6686_v19, 0.0  ;;  %v12518_v12 = vadd.f32 %v12428_v63, %v12308_v36 }
 0x5ee   : > { %v6931_v58 = vcombine.high %v6787_v32, %v6787_v32  ;;  %v6938_v50 = vrot.slane %v6787_v32, %v12334_v9  ;;  %v7344_v17 = vmax.f32 %v7342_v29, %v7343_v49  ;;  %v7690_v21 = vsel %vm7663_vm2, %v7337_v10, %v7689_v47 }
 0x5ef   : > { %v6788_v44 = vmax.f32 %v6764_v54, %v6766_v1  ;;  %v6767_v3 = vmax.f32 %v6697_v33, 0.0  ;;  %v6765_v2 = vmax.f32 %v6689_v31, 0.0 }
 0x5f0   : > { %v6945_v14 = vrot.slane %v6931_v58, %v12334_v9  ;;  %v6946_v57 = vcombine.high %v6938_v50, %v6938_v50  ;;  %v7345_v13 = vsel %vm7148_vm0, %v6938_v50, -inf  ;;  %v7691_v63 = vsel %vm7665_vm3, %v7344_v17, %v7690_v21 }
 0x5f1   : > { %v7346_v41 = vrot.slane %v7345_v13, 4  ;;  %v6948_v38 = vcombine.high %v6788_v44, %v6788_v44  ;;  %v6955_v30 = vrot.slane %v6788_v44, %v12334_v9  ;;  %v6789_v52 = vmax.f32 %v6765_v2, %v6767_v3 }
 0x5f2   : > { %v6947_v24 = vcombine.high %v6945_v14, %v6945_v14  ;;  %v7352_v27 = vsel %vm7148_vm0, %v6946_v57, -inf  ;;  %v7359_v15 = vsel %vm7148_vm0, %v6945_v14, -inf }
 0x5f3   : > { %v7353_v20 = vrot.slane %v7352_v27, 4  ;;  %v7360_v36 = vrot.slane %v7359_v15, 4  ;;  %v7347_v61 = vmax.f32 %v7345_v13, %v7346_v41  ;;  %v6962_v51 = vrot.slane %v6948_v38, %v12334_v9 }
 0x5f4   : > { %v7366_v11 = vsel %vm7148_vm0, %v6947_v24, -inf  ;;  %v6963_v26 = vcombine.high %v6955_v30, %v6955_v30  ;;  %v7373_v45 = vsel %vm7148_vm0, %v6955_v30, -inf  ;;  %v6965_v43 = vcombine.high %v6789_v52, %v6789_v52 }
 0x5f5   : > { %v7354_v6 = vmax.f32 %v7352_v27, %v7353_v20  ;;  %v7361_v56 = vmax.f32 %v7359_v15, %v7360_v36  ;;  %v7367_v34 = vrot.slane %v7366_v11, 4  ;;  %v7348_v23 = vrot.slane %v7347_v61, 2 }
 0x5f6   : > { %v6964_v28 = vcombine.high %v6962_v51, %v6962_v51  ;;  %v7374_v1 = vrot.slane %v7373_v45, 4  ;;  %v7380_v40 = vsel %vm7148_vm0, %v6963_v26, -inf  ;;  %v7387_v59 = vsel %vm7148_vm0, %v6962_v51, -inf }
 0x5f7   : > { %v7355_v4 = vrot.slane %v7354_v6, 2  ;;  %v7362_v7 = vrot.slane %v7361_v56, 2  ;;  %v7368_v29 = vmax.f32 %v7366_v11, %v7367_v34  ;;  %v7349_v32 = vmax.f32 %v7347_v61, %v7348_v23 }
 0x5f8   : > { %v7381_v58 = vrot.slane %v7380_v40, 4  ;;  %v7375_v33 = vmax.f32 %v7373_v45, %v7374_v1  ;;  %v7388_v47 = vrot.slane %v7387_v59, 4  ;;  %v7394_v54 = vsel %vm7148_vm0, %v6964_v28, -inf }
 0x5f9   : > { %v7356_v10 = vmax.f32 %v7354_v6, %v7355_v4  ;;  %v7363_v19 = vmax.f32 %v7361_v56, %v7362_v7  ;;  %v7369_v49 = vrot.slane %v7368_v29, 2  ;;  %v7350_v50 = vrot.slane %v7349_v32, 1 }
 0x5fa   : > { %v7382_v14 = vmax.f32 %v7380_v40, %v7381_v58  ;;  %v7376_v13 = vrot.slane %v7375_v33, 2  ;;  %v7389_v44 = vmax.f32 %v7387_v59, %v7388_v47  ;;  %v7395_v3 = vrot.slane %v7394_v54, 4 }
 0x5fb   : > { %v7357_v31 = vrot.slane %v7356_v10, 1  ;;  %v7364_v17 = vrot.slane %v7363_v19, 1  ;;  %v7370_v21 = vmax.f32 %v7368_v29, %v7369_v49  ;;  %v7351_v57 = vmax.f32 %v7349_v32, %v7350_v50 }
 0x5fc   : > { %v7383_v27 = vrot.slane %v7382_v14, 2  ;;  %v7377_v20 = vmax.f32 %v7375_v33, %v7376_v13  ;;  %v7390_v36 = vrot.slane %v7389_v44, 2  ;;  %v7396_v38 = vmax.f32 %v7394_v54, %v7395_v3 }
 0x5fd   : > { %v7358_v2 = vmax.f32 %v7356_v10, %v7357_v31  ;;  %v7365_v24 = vmax.f32 %v7363_v19, %v7364_v17  ;;  %v7371_v41 = vrot.slane %v7370_v21, 1  ;;  %v7692_v15 = vsel %vm7667_vm4, %v7351_v57, %v7691_v63 }
 0x5fe   : > { %v7384_v30 = vmax.f32 %v7382_v14, %v7383_v27  ;;  %v6972_v6 = vrot.slane %v6789_v52, %v12334_v9  ;;  %v7378_v34 = vrot.slane %v7377_v20, 1  ;;  %v7391_v51 = vmax.f32 %v7389_v44, %v7390_v36 }
 0x5ff   : > { %v7372_v61 = vmax.f32 %v7370_v21, %v7371_v41  ;;  %v7693_v11 = vsel %vm7669_vm5, %v7358_v2, %v7692_v15  ;;  %v7397_v23 = vrot.slane %v7396_v38, 2  ;;  %v6979_v63 = vrot.slane %v6965_v43, %v12334_v9 }
 0x600   : > { %v7694_v56 = vsel %vm7671_vm6, %v7365_v24, %v7693_v11  ;;  %v7385_v45 = vrot.slane %v7384_v30, 1  ;;  %v6980_v4 = vcombine.high %v6972_v6, %v6972_v6  ;;  %v7379_v7 = vmax.f32 %v7377_v20, %v7378_v34 }
 0x601   : > { %v7695_v26 = vsel %vm7673_vm7, %v7372_v61, %v7694_v56  ;;  %v7392_v29 = vrot.slane %v7391_v51, 1  ;;  %v7398_v28 = vmax.f32 %v7396_v38, %v7397_v23  ;;  %v7401_v32 = vsel %vm7148_vm0, %v6972_v6, -inf }
 0x602   : > { %7735 = vst [vmem:[%s12398_s10 + $0x18] sm:$0xff] %v7695_v26  ;;  %v7386_v1 = vmax.f32 %v7384_v30, %v7385_v45  ;;  %v6981_v40 = vcombine.high %v6979_v63, %v6979_v63  ;;  %v7402_v52 = vrot.slane %v7401_v32, 4  ;;  %v7408_v59 = vsel %vm7148_vm0, %v6980_v4, -inf }
 0x603   : > { %v7393_v10 = vmax.f32 %v7391_v51, %v7392_v29  ;;  %v7399_v19 = vrot.slane %v7398_v28, 1  ;;  %v7409_v49 = vrot.slane %v7408_v59, 4  ;;  %v7415_v58 = vsel %vm7148_vm0, %v6979_v63, -inf }
 0x604   : > { %v7696_v50 = vsel %vm7661_vm1, %v7386_v1, %v7379_v7  ;;  %v7403_v43 = vmax.f32 %v7401_v32, %v7402_v52  ;;  %v7416_v33 = vrot.slane %v7415_v58, 4  ;;  %v7422_v47 = vsel %vm7148_vm0, %v6981_v40, -inf }
 0x605   : > { %v7400_v54 = vmax.f32 %v7398_v28, %v7399_v19  ;;  %v7697_v31 = vsel %vm7663_vm2, %v7393_v10, %v7696_v50  ;;  %v7410_v17 = vmax.f32 %v7408_v59, %v7409_v49  ;;  %v7423_v21 = vrot.slane %v7422_v47, 4 }
 0x606   : > { %v7404_v14 = vrot.slane %v7403_v43, 2  ;;  %v7417_v57 = vmax.f32 %v7415_v58, %v7416_v33  ;;  %v6770_v13 = vmax.f32 %v12518_v12, 0.0  ;;  %v6702_v44 = vadd.f32 %v12431_v37, %v12302_v46 }
 0x607   : > { %v7411_v3 = vrot.slane %v7410_v17, 2  ;;  %v7424_v2 = vmax.f32 %v7422_v47, %v7423_v21  ;;  %v7698_v24 = vsel %vm7665_vm3, %v7400_v54, %v7697_v31  ;;  %v6713_v41 = vadd.f32 %v12433_v53, %v12311_v42 }
 0x608   : > { %v7405_v27 = vmax.f32 %v7403_v43, %v7404_v14  ;;  %v7418_v15 = vrot.slane %v7417_v57, 2  ;;  %v6768_v20 = vmax.f32 %v6702_v44, 0.0  ;;  %v6705_v36 = vadd.f32 %v12435_v18, %v12305_v39 }
 0x609   : > { %v7412_v38 = vmax.f32 %v7410_v17, %v7411_v3  ;;  %v7425_v61 = vrot.slane %v7424_v2, 2  ;;  %v6771_v11 = vmax.f32 %v6713_v41, 0.0  ;;  %v12556_v12 = vadd.f32 %v12444_v16, %v12320_v22 }
 0x60a   : > { %v7406_v46 = vrot.slane %v7405_v27, 1  ;;  %v7419_v37 = vmax.f32 %v7417_v57, %v7418_v15  ;;  %v6790_v30 = vmax.f32 %v6768_v20, %v6770_v13  ;;  %v6769_v6 = vmax.f32 %v6705_v36, 0.0 }
 0x60b   : > { %v7413_v56 = vrot.slane %v7412_v38, 1  ;;  %v7426_v34 = vmax.f32 %v7424_v2, %v7425_v61  ;;  %v6774_v42 = vmax.f32 %v12556_v12, 0.0  ;;  %v12561_v53 = vadd.f32 %v12446_v55, %v12314_v62 }
 0x60c   : > { %v7407_v39 = vmax.f32 %v7405_v27, %v7406_v46  ;;  %v7420_v18 = vrot.slane %v7419_v37, 1  ;;  %v6982_v51 = vcombine.high %v6790_v30, %v6790_v30  ;;  %v6989_v23 = vrot.slane %v6790_v30, %v12334_v9 }
 0x60d   : > { %v7414_v26 = vmax.f32 %v7412_v38, %v7413_v56  ;;  %v7427_v22 = vrot.slane %v7426_v34, 1  ;;  %v6791_v16 = vmax.f32 %v6769_v6, %v6771_v11  ;;  %v6772_v45 = vmax.f32 %v12561_v53, 0.0 }
 0x60e   : > { %v7421_v63 = vmax.f32 %v7419_v37, %v7420_v18  ;;  %v7699_v4 = vsel %vm7667_vm4, %v7407_v39, %v7698_v24  ;;  %v6996_v7 = vrot.slane %v6982_v51, %v12334_v9  ;;  %v6997_v29 = vcombine.high %v6989_v23, %v6989_v23 }
 0x60f   : > { %v7428_v28 = vmax.f32 %v7426_v34, %v7427_v22  ;;  %v7700_v62 = vsel %vm7669_vm5, %v7414_v26, %v7699_v4  ;;  %v7429_v55 = vsel %vm7148_vm0, %v6989_v23, -inf  ;;  %v6999_v32 = vcombine.high %v6791_v16, %v6791_v16 }
 0x610   : > { %v7701_v1 = vsel %vm7671_vm6, %v7421_v63, %v7700_v62  ;;  %v6998_v40 = vcombine.high %v6996_v7, %v6996_v7  ;;  %v7430_v52 = vrot.slane %v7429_v55, 4  ;;  %v7436_v59 = vsel %vm7148_vm0, %v6997_v29, -inf }
 0x611   : > { %v7702_v10 = vsel %vm7673_vm7, %v7428_v28, %v7701_v1  ;;  %v7437_v19 = vrot.slane %v7436_v59, 4  ;;  %v7443_v49 = vsel %vm7148_vm0, %v6996_v7, -inf  ;;  %v7006_v58 = vrot.slane %v6791_v16, %v12334_v9 }
 0x612   : > { %7736 = vst [vmem:[%s12398_s10 + $0x20] sm:$0xff] %v7702_v10  ;;  %v7431_v50 = vmax.f32 %v7429_v55, %v7430_v52  ;;  %v7444_v43 = vrot.slane %v7443_v49, 4  ;;  %v7450_v33 = vsel %vm7148_vm0, %v6998_v40, -inf  ;;  %v7013_v47 = vrot.slane %v6999_v32, %v12334_v9 }
 0x613   : > { %v7438_v54 = vmax.f32 %v7436_v59, %v7437_v19  ;;  %v7451_v31 = vrot.slane %v7450_v33, 4  ;;  %v7014_v17 = vcombine.high %v7006_v58, %v7006_v58  ;;  %v7457_v21 = vsel %vm7148_vm0, %v7006_v58, -inf }
 0x614   : > { %v7432_v14 = vrot.slane %v7431_v50, 2  ;;  %v7445_v57 = vmax.f32 %v7443_v49, %v7444_v43  ;;  %v7015_v13 = vcombine.high %v7013_v47, %v7013_v47  ;;  %v7458_v44 = vrot.slane %v7457_v21, 4 }
 0x615   : > { %v7439_v3 = vrot.slane %v7438_v54, 2  ;;  %v7452_v2 = vmax.f32 %v7450_v33, %v7451_v31  ;;  %v7464_v24 = vsel %vm7148_vm0, %v7014_v17, -inf  ;;  %v7471_v41 = vsel %vm7148_vm0, %v7013_v47, -inf }
 0x616   : > { %v7433_v27 = vmax.f32 %v7431_v50, %v7432_v14  ;;  %v7446_v15 = vrot.slane %v7445_v57, 2  ;;  %v7459_v20 = vmax.f32 %v7457_v21, %v7458_v44  ;;  %v7465_v36 = vrot.slane %v7464_v24, 4 }
 0x617   : > { %v7440_v38 = vmax.f32 %v7438_v54, %v7439_v3  ;;  %v7453_v61 = vrot.slane %v7452_v2, 2  ;;  %v7472_v11 = vrot.slane %v7471_v41, 4  ;;  %v7478_v46 = vsel %vm7148_vm0, %v7015_v13, -inf }
 0x618   : > { %v7434_v37 = vrot.slane %v7433_v27, 1  ;;  %v7447_v30 = vmax.f32 %v7445_v57, %v7446_v15  ;;  %v7460_v6 = vrot.slane %v7459_v20, 2  ;;  %v7466_v56 = vmax.f32 %v7464_v24, %v7465_v36 }
 0x619   : > { %v7441_v34 = vrot.slane %v7440_v38, 1  ;;  %v7454_v53 = vmax.f32 %v7452_v2, %v7453_v61  ;;  %v7473_v39 = vmax.f32 %v7471_v41, %v7472_v11  ;;  %v7479_v18 = vrot.slane %v7478_v46, 4 }
 0x61a   : > { %v7435_v51 = vmax.f32 %v7433_v27, %v7434_v37  ;;  %v7448_v23 = vrot.slane %v7447_v30, 1  ;;  %v7461_v26 = vmax.f32 %v7459_v20, %v7460_v6  ;;  %v7467_v22 = vrot.slane %v7466_v56, 2 }
 0x61b   : > { %v7442_v16 = vmax.f32 %v7440_v38, %v7441_v34  ;;  %v7455_v63 = vrot.slane %v7454_v53, 1  ;;  %v7474_v4 = vrot.slane %v7473_v39, 2  ;;  %v7480_v7 = vmax.f32 %v7478_v46, %v7479_v18  ;;  %v12665_v18 = vld [vmem:[#allocation7_spill] sm:$0xff] }
 0x61c   : > { %v7449_v29 = vmax.f32 %v7447_v30, %v7448_v23  ;;  %v7462_v28 = vrot.slane %v7461_v26, 1  ;;  %v7468_v62 = vmax.f32 %v7466_v56, %v7467_v22  ;;  %v6792_v55 = vmax.f32 %v6772_v45, %v6774_v42  ;;  %v12663_v30 = vld [vmem:[#allocation6_spill] sm:$0xff] }
 0x61d   : > { %v7456_v32 = vmax.f32 %v7454_v53, %v7455_v63  ;;  %v7703_v1 = vsel %vm7661_vm1, %v7442_v16, %v7435_v51  ;;  %v7475_v40 = vmax.f32 %v7473_v39, %v7474_v4  ;;  %v7481_v52 = vrot.slane %v7480_v7, 2  ;;  %v12664_v39 = vld [vmem:[#allocation5_spill] sm:$0xff] }
 0x61e   : > { %v7704_v59 = vsel %vm7663_vm2, %v7449_v29, %v7703_v1  ;;  %v7463_v10 = vmax.f32 %v7461_v26, %v7462_v28  ;;  %v7469_v19 = vrot.slane %v7468_v62, 1  ;;  %v7016_v49 = vcombine.high %v6792_v55, %v6792_v55  ;;  %v12667_v29 = vld [vmem:[#allocation8_spill] sm:$0xff] }
 0x61f   : > { %v7476_v58 = vrot.slane %v7475_v40, 1  ;;  %v7482_v50 = vmax.f32 %v7480_v7, %v7481_v52  ;;  %v7705_v43 = vsel %vm7665_vm3, %v7456_v32, %v7704_v59  ;;  %v7023_v33 = vrot.slane %v6792_v55, %v12334_v9 }
 0x620   : > { %v7470_v47 = vmax.f32 %v7468_v62, %v7469_v19  ;;  %v7706_v12 = vsel %vm7667_vm4, %v7463_v10, %v7705_v43  ;;  %v7030_v42 = vrot.slane %v7016_v49, %v12334_v9  ;;  %v6729_v45 = vadd.f32 %v12450_v0, %v12323_v35 }
 0x621   : > { %v7477_v54 = vmax.f32 %v7475_v40, %v7476_v58  ;;  %v7483_v31 = vrot.slane %v7482_v50, 1  ;;  %v7031_v17 = vcombine.high %v7023_v33, %v7023_v33  ;;  %v7485_v21 = vsel %vm7148_vm0, %v7023_v33, -inf }
 0x622   : > { %v7707_v14 = vsel %vm7669_vm5, %v7470_v47, %v7706_v12  ;;  %v7032_v57 = vcombine.high %v7030_v42, %v7030_v42  ;;  %v7486_v13 = vrot.slane %v7485_v21, 4  ;;  %v7499_v44 = vsel %vm7148_vm0, %v7030_v42, -inf }
 0x623   : > { %v7484_v3 = vmax.f32 %v7482_v50, %v7483_v31  ;;  %v7708_v2 = vsel %vm7671_vm6, %v7477_v54, %v7707_v14  ;;  %v7492_v24 = vsel %vm7148_vm0, %v7031_v17, -inf  ;;  %v7500_v41 = vrot.slane %v7499_v44, 4 }
 0x624   : > { %v7487_v27 = vmax.f32 %v7485_v21, %v7486_v13  ;;  %v7493_v35 = vrot.slane %v7492_v24, 4  ;;  %v7506_v0 = vsel %vm7148_vm0, %v7032_v57, -inf  ;;  %v6775_v15 = vmax.f32 %v6729_v45, 0.0 }
 0x625   : > { %v7709_v20 = vsel %vm7673_vm7, %v7484_v3, %v7708_v2  ;;  %v7501_v36 = vmax.f32 %v7499_v44, %v7500_v41  ;;  %v7507_v38 = vrot.slane %v7506_v0, 4  ;;  %v6721_v61 = vadd.f32 %v12453_v8, %v12317_v25 }
 0x626   : > { %7737 = vst [vmem:[%s12398_s10 + $0x28] sm:$0xff] %v7709_v20  ;;  %v7488_v11 = vrot.slane %v7487_v27, 2  ;;  %v7494_v46 = vmax.f32 %v7492_v24, %v7493_v35  ;;  %v6742_v37 = vadd.f32 %v12466_v48, %v12337_v5  ;;  %v6734_v6 = vadd.f32 %v12663_v30, %v12326_v60  ;;  %v12666_v48 = vld [vmem:[#allocation4_spill] sm:$0xff] }
 0x627   : > { %v7502_v56 = vrot.slane %v7501_v36, 2  ;;  %v7508_v34 = vmax.f32 %v7506_v0, %v7507_v38  ;;  %v6773_v53 = vmax.f32 %v6721_v61, 0.0  ;;  %v12607_v51 = vadd.f32 %v12665_v18, %v12664_v39 }
 0x628   : > { %v7489_v23 = vmax.f32 %v7487_v27, %v7488_v11  ;;  %v7495_v26 = vrot.slane %v7494_v46, 2  ;;  %v6778_v22 = vmax.f32 %v6742_v37, 0.0  ;;  %v6776_v25 = vmax.f32 %v6734_v6, 0.0 }
 0x629   : > { %v7503_v8 = vmax.f32 %v7501_v36, %v7502_v56  ;;  %v7509_v16 = vrot.slane %v7508_v34, 2  ;;  %v6793_v63 = vmax.f32 %v6773_v53, %v6775_v15  ;;  %v12611_v60 = vadd.f32 %v12667_v29, %v12666_v48 }
 0x62a   : > { %v7490_v4 = vrot.slane %v7489_v23, 1  ;;  %v7496_v7 = vmax.f32 %v7494_v46, %v7495_v26  ;;  %v6794_v5 = vmax.f32 %v6776_v25, %v6778_v22 }
 0x62b   : > { %v7504_v28 = vrot.slane %v7503_v8, 1  ;;  %v7510_v62 = vmax.f32 %v7508_v34, %v7509_v16  ;;  %v7033_v55 = vcombine.high %v6793_v63, %v6793_v63  ;;  %v7040_v32 = vrot.slane %v6793_v63, %v12334_v9 }
 0x62c   : > { %v7491_v1 = vmax.f32 %v7489_v23, %v7490_v4  ;;  %v7497_v40 = vrot.slane %v7496_v7, 1  ;;  %v7050_v52 = vcombine.high %v6794_v5, %v6794_v5  ;;  %v7057_v59 = vrot.slane %v6794_v5, %v12334_v9 }
 0x62d   : > { %v7505_v10 = vmax.f32 %v7503_v8, %v7504_v28  ;;  %v7511_v19 = vrot.slane %v7510_v62, 1  ;;  %v7047_v49 = vrot.slane %v7033_v55, %v12334_v9  ;;  %v7048_v58 = vcombine.high %v7040_v32, %v7040_v32 }
 0x62e   : > { %v7498_v50 = vmax.f32 %v7496_v7, %v7497_v40  ;;  %v7513_v43 = vsel %vm7148_vm0, %v7040_v32, -inf  ;;  %v7064_v33 = vrot.slane %v7050_v52, %v12334_v9  ;;  %v7065_v47 = vcombine.high %v7057_v59, %v7057_v59 }
 0x62f   : > { %v7512_v12 = vmax.f32 %v7510_v62, %v7511_v19  ;;  %v7049_v42 = vcombine.high %v7047_v49, %v7047_v49  ;;  %v7514_v45 = vrot.slane %v7513_v43, 4  ;;  %v7520_v54 = vsel %vm7148_vm0, %v7048_v58, -inf }
 0x630   : > { %v7710_v31 = vsel %vm7661_vm1, %v7498_v50, %v7491_v1  ;;  %v7521_v17 = vrot.slane %v7520_v54, 4  ;;  %v7527_v21 = vsel %vm7148_vm0, %v7047_v49, -inf  ;;  %v7066_v14 = vcombine.high %v7064_v33, %v7064_v33 }
 0x631   : > { %v7711_v57 = vsel %vm7663_vm2, %v7505_v10, %v7710_v31  ;;  %v7515_v13 = vmax.f32 %v7513_v43, %v7514_v45  ;;  %v7528_v44 = vrot.slane %v7527_v21, 4  ;;  %v7534_v3 = vsel %vm7148_vm0, %v7049_v42, -inf }
 0x632   : > { %v7522_v2 = vmax.f32 %v7520_v54, %v7521_v17  ;;  %v7535_v24 = vrot.slane %v7534_v3, 4  ;;  %v7712_v41 = vsel %vm7665_vm3, %v7512_v12, %v7711_v57  ;;  %v7541_v27 = vsel %vm7148_vm0, %v7057_v59, -inf }
 0x633   : > { %v7516_v35 = vrot.slane %v7515_v13, 2  ;;  %v7529_v0 = vmax.f32 %v7527_v21, %v7528_v44  ;;  %v7542_v15 = vrot.slane %v7541_v27, 4  ;;  %v7548_v20 = vsel %vm7148_vm0, %v7065_v47, -inf }
 0x634   : > { %v7523_v36 = vrot.slane %v7522_v2, 2  ;;  %v7536_v38 = vmax.f32 %v7534_v3, %v7535_v24  ;;  %v7549_v61 = vrot.slane %v7548_v20, 4  ;;  %v7555_v11 = vsel %vm7148_vm0, %v7064_v33, -inf }
 0x635   : > { %v7517_v46 = vmax.f32 %v7515_v13, %v7516_v35  ;;  %v7530_v37 = vrot.slane %v7529_v0, 2  ;;  %v7543_v30 = vmax.f32 %v7541_v27, %v7542_v15  ;;  %v7556_v6 = vrot.slane %v7555_v11, 4 }
 0x636   : > { %v7524_v56 = vmax.f32 %v7522_v2, %v7523_v36  ;;  %v7537_v34 = vrot.slane %v7536_v38, 2  ;;  %v7550_v53 = vmax.f32 %v7548_v20, %v7549_v61  ;;  %v7562_v39 = vsel %vm7148_vm0, %v7066_v14, -inf }
 0x637   : > { %v7518_v18 = vrot.slane %v7517_v46, 1  ;;  %v7531_v23 = vmax.f32 %v7529_v0, %v7530_v37  ;;  %v7544_v26 = vrot.slane %v7543_v30, 2  ;;  %v7557_v22 = vmax.f32 %v7555_v11, %v7556_v6 }
 0x638   : > { %v7525_v25 = vrot.slane %v7524_v56, 1  ;;  %v7538_v8 = vmax.f32 %v7536_v38, %v7537_v34  ;;  %v7551_v16 = vrot.slane %v7550_v53, 2  ;;  %v7563_v63 = vrot.slane %v7562_v39, 4 }
 0x639   : > { %v7519_v4 = vmax.f32 %v7517_v46, %v7518_v18  ;;  %v7532_v7 = vrot.slane %v7531_v23, 1  ;;  %v7558_v5 = vrot.slane %v7557_v22, 2  ;;  %v6779_v1 = vmax.f32 %v12607_v51, 0.0 }
 0x63a   : > { %v7526_v48 = vmax.f32 %v7524_v56, %v7525_v25  ;;  %v7539_v29 = vrot.slane %v7538_v8, 1  ;;  %v7552_v28 = vmax.f32 %v7550_v53, %v7551_v16  ;;  %v7564_v62 = vmax.f32 %v7562_v39, %v7563_v63 }
 0x63b   : > { %v7533_v55 = vmax.f32 %v7531_v23, %v7532_v7  ;;  %v7713_v32 = vsel %vm7667_vm4, %v7519_v4, %v7712_v41  ;;  %v7545_v59 = vmax.f32 %v7543_v30, %v7544_v26  ;;  %v7559_v10 = vmax.f32 %v7557_v22, %v7558_v5 }
 0x63c   : > { %v7540_v40 = vmax.f32 %v7538_v8, %v7539_v29  ;;  %v7714_v52 = vsel %vm7669_vm5, %v7526_v48, %v7713_v32  ;;  %v7565_v49 = vrot.slane %v7564_v62, 2  ;;  %v6777_v58 = vmax.f32 %v12611_v60, 0.0 }
 0x63d   : > { %v7715_v19 = vsel %vm7671_vm6, %v7533_v55, %v7714_v52  ;;  %v7553_v43 = vrot.slane %v7552_v28, 1  ;;  %v7546_v47 = vrot.slane %v7545_v59, 1  ;;  %v7560_v12 = vrot.slane %v7559_v10, 1 }
 0x63e   : > { %v7716_v50 = vsel %vm7673_vm7, %v7540_v40, %v7715_v19  ;;  %v6795_v33 = vmax.f32 %v6777_v58, %v6779_v1  ;;  %v7566_v42 = vmax.f32 %v7564_v62, %v7565_v49 }
 0x63f   : > { %7738 = vst [vmem:[%s12398_s10 + $0x30] sm:$0xff] %v7716_v50  ;;  %v7554_v54 = vmax.f32 %v7552_v28, %v7553_v43  ;;  %v7547_v14 = vmax.f32 %v7545_v59, %v7546_v47  ;;  %v7561_v57 = vmax.f32 %v7559_v10, %v7560_v12 }
 0x640   : > { %v7067_v45 = vcombine.high %v6795_v33, %v6795_v33  ;;  %v7074_v51 = vrot.slane %v6795_v33, %v12334_v9  ;;  %v7567_v13 = vrot.slane %v7566_v42, 1 }
 0x641   : > { %v7717_v24 = vsel %vm7661_vm1, %v7554_v54, %v7547_v14 }
 0x642   : > { %v7081_v31 = vrot.slane %v7067_v45, %v12334_v9  ;;  %v7082_v17 = vcombine.high %v7074_v51, %v7074_v51  ;;  %v7569_v21 = vsel %vm7148_vm0, %v7074_v51, -inf  ;;  %v7568_v38 = vmax.f32 %v7566_v42, %v7567_v13 }
 0x643   : > { %v7570_v60 = vrot.slane %v7569_v21, 4  ;;  %v7718_v61 = vsel %vm7663_vm2, %v7561_v57, %v7717_v24 }
 0x644   : > { %v7083_v44 = vcombine.high %v7081_v31, %v7081_v31  ;;  %v7576_v3 = vsel %vm7148_vm0, %v7082_v17, -inf  ;;  %v7583_v2 = vsel %vm7148_vm0, %v7081_v31, -inf  ;;  %v7719_v39 = vsel %vm7665_vm3, %v7568_v38, %v7718_v61 }
 0x645   : > { %v7571_v41 = vmax.f32 %v7569_v21, %v7570_v60  ;;  %v7577_v27 = vrot.slane %v7576_v3, 4  ;;  %v7584_v35 = vrot.slane %v7583_v2, 4 }
 0x646   : > { %v7590_v0 = vsel %vm7148_vm0, %v7083_v44, -inf }
 0x647   : > { %v7572_v9 = vrot.slane %v7571_v41, 2  ;;  %v7578_v15 = vmax.f32 %v7576_v3, %v7577_v27  ;;  %v7585_v20 = vmax.f32 %v7583_v2, %v7584_v35  ;;  %v7591_v36 = vrot.slane %v7590_v0, 4 }
 0x649   : > { %v7573_v11 = vmax.f32 %v7571_v41, %v7572_v9  ;;  %v7579_v46 = vrot.slane %v7578_v15, 2  ;;  %v7586_v37 = vrot.slane %v7585_v20, 2  ;;  %v7592_v30 = vmax.f32 %v7590_v0, %v7591_v36 }
 0x64b   : > { %v7574_v6 = vrot.slane %v7573_v11, 1  ;;  %v7580_v56 = vmax.f32 %v7578_v15, %v7579_v46  ;;  %v7587_v34 = vmax.f32 %v7585_v20, %v7586_v37  ;;  %v7593_v53 = vrot.slane %v7592_v30, 2 }
 0x64d   : > { %v7575_v18 = vmax.f32 %v7573_v11, %v7574_v6  ;;  %v7581_v23 = vrot.slane %v7580_v56, 1  ;;  %v7588_v26 = vrot.slane %v7587_v34, 1  ;;  %v7594_v22 = vmax.f32 %v7592_v30, %v7593_v53 }
 0x64f   : > { %v7582_v25 = vmax.f32 %v7580_v56, %v7581_v23  ;;  %v7595_v8 = vrot.slane %v7594_v22, 1  ;;  %v7720_v16 = vsel %vm7667_vm4, %v7575_v18, %v7719_v39  ;;  %v7589_v63 = vmax.f32 %v7587_v34, %v7588_v26 }
 0x651   : > { %v7596_v4 = vmax.f32 %v7594_v22, %v7595_v8  ;;  %v7721_v7 = vsel %vm7669_vm5, %v7582_v25, %v7720_v16 }
 0x652   : > { %v7722_v5 = vsel %vm7671_vm6, %v7589_v63, %v7721_v7 }
 0x653   : > { %v7723_v48 = vsel %vm7673_vm7, %v7596_v4, %v7722_v5 }
 0x654   : > { %7739 = vst [vmem:[%s12398_s10 + $0x38] sm:$0xff] %v7723_v48 }
 0x655 PF: > { %s13_s12 = sadd.s32 1, %s10128_s12  }
 0x656   : > { %p10_p4 = scmp.ge.s32.totalorder %s13_s12, 4  }
 0x658   :  { %12 = sbr.rel (!%p10_p4) target bundleno = 1 (0x1), region = 68 }

</bundles_post_ra>
